<compile_context>
chip_gen: v5e
topology: v5e:2x2
jax: 0.10.0
libtpu: 0.0.40
codegen_flags: <defaults>
</compile_context>

<pallas_src>
import functools

import numpy as np
import jax
import jax.numpy as jnp
from jax.experimental import pallas as pl
from jax.experimental.pallas import tpu as pltpu


# --------------------------- interpolation matrices --------------------------

def _linear_matrix(n_in, n_out):
    """1-D linear interpolation matrix matching PyTorch align_corners=True."""
    A = np.zeros((n_out, n_in), np.float32)
    if n_out == 1 or n_in == 1:
        A[:, 0] = 1.0
        return A
    scale = (n_in - 1) / (n_out - 1)
    for i in range(n_out):
        pos = i * scale
        lo = min(int(np.floor(pos)), n_in - 1)
        hi = min(lo + 1, n_in - 1)
        frac = pos - lo
        A[i, lo] += 1.0 - frac
        A[i, hi] += frac
    return A


def _bilinear_matrix(hi, wi, ho, wo):
    """(Ho*Wo, Hi*Wi) matrix == F.interpolate(mode='bilinear', align_corners=True)."""
    return np.kron(_linear_matrix(hi, ho), _linear_matrix(wi, wo)).astype(np.float32)


# ------------------------------- fused kernel --------------------------------

def _make_decoder_kernel(stage_cfgs, final_cfg):
    """stage_cfgs: tuple of (Hi, Wi, Cx, Ho, Wo, Cy, Co); final_cfg: (Hf, Wf, Cf, Cout)."""
    n_stages = len(stage_cfgs)

    def _conv3x3_relu(pad_ref, patch_ref, parts, b_ref, H, W, Co):
        # 3x3 'same' conv + bias + ReLU.  `parts` = sequence of
        # (value (H, W, C), weight_ref (9*C, Co)); their channel blocks follow the
        # PyTorch cat([y, x], 1) Cin order, so no concatenated tensor is ever built.
        HW = H * W
        # bias-initialized f32 accumulator (hoisted broadcast, no zeros+add pass)
        acc = jnp.broadcast_to(b_ref[...], (HW, Co)).astype(jnp.float32)
        for val, w_ref in parts:
            C = val.shape[-1]
            # zero 'same' padding inside the kernel: border of pad_ref is pre-zeroed,
            # only the interior is written.
            pad_ref[1:H + 1, 1:W + 1, :C] = val
            xp = pad_ref[:, :, :C]                               # (H+2, W+2, C)
            # im2col into a VMEM patch buffer; column order (ky, kx, cin) matches
            # w.reshape(9*C, Co), giving ONE big-K MXU matmul instead of 9 tiny dots.
            for k in range(9):
                dy, dx = divmod(k, 3)
                patch_ref[:, :, k * C:(k + 1) * C] = xp[dy:dy + H, dx:dx + W, :]
            patches = patch_ref[:, :, :9 * C].reshape(HW, 9 * C)
            acc = acc + jnp.dot(patches, w_ref[...],
                                preferred_element_type=jnp.float32)
        return jnp.maximum(acc, 0.0).reshape(H, W, Co)

    def kernel(*refs):
        pos = 0
        x_ref = refs[pos]; pos += 1
        stage_refs = []
        for _ in range(n_stages):
            stage_refs.append(refs[pos:pos + 7]); pos += 7
        wf_ref, bf_ref = refs[pos], refs[pos + 1]; pos += 2
        o_ref = refs[pos]; pos += 1
        scratch = refs[pos:]

        x = x_ref[0].astype(jnp.float32)                          # (Hi, Wi, Cx)

        for s in range(n_stages):
            Hi, Wi, Cx, Ho, Wo, Cy, Co = stage_cfgs[s]
            y_ref, m_ref, w1y_ref, w1x_ref, b1_ref, w2_ref, b2_ref = stage_refs[s]
            pad_ref, patch_ref = scratch[2 * s], scratch[2 * s + 1]
            pad_ref[...] = jnp.zeros(pad_ref.shape, jnp.float32)  # zero border once

            # bilinear upsample (align_corners=True): one matmul with kron(Ah, Aw).
            # (Replace with a separable row/col pass before scaling resolution.)
            xu = jnp.dot(m_ref[...], x.reshape(Hi * Wi, Cx),
                         preferred_element_type=jnp.float32).reshape(Ho, Wo, Cx)
            y = y_ref[0].astype(jnp.float32)                      # (Ho, Wo, Cy)

            # conv3x3(cat([y, xu]))+ReLU via split weights, then conv3x3+ReLU.
            h = _conv3x3_relu(pad_ref, patch_ref,
                              ((y, w1y_ref), (xu, w1x_ref)), b1_ref, Ho, Wo, Co)
            x = _conv3x3_relu(pad_ref, patch_ref, ((h, w2_ref),), b2_ref, Ho, Wo, Co)

        # final 1x1 conv (no activation), computed transposed so the single HBM store
        # is lane-dense: (Cout, Hf*Wf) with Hf*Wf on the lane axis.
        Hf, Wf, Cf, Cout = final_cfg
        xf = x.reshape(Hf * Wf, Cf)
        out = jax.lax.dot_general(wf_ref[...], xf,
                                  dimension_numbers=(((1,), (1,)), ((), ())),
                                  preferred_element_type=jnp.float32)
        out = out + bf_ref[...]                                   # (Cout, Hf*Wf)
        o_ref[0] = out.astype(o_ref.dtype)

    return kernel


# ------------------------------ host-side wrapper -----------------------------

def _full_spec(arr):
    nd = arr.ndim
    return pl.BlockSpec(arr.shape, lambda n, _z=(0,) * nd: _z)


def _batched_spec(arr):
    tail = tuple(arr.shape[1:])
    return pl.BlockSpec((1,) + tail, lambda n, _k=len(tail): (n,) + (0,) * _k)


def unet_decoder_forward(params, x, acts):
    """x, acts[i]: NHWC.  Returns NCHW (N, out_channels, H, W) like the PyTorch module."""
    N, Hx, Wx, Cxc = x.shape
    stage_cfgs = []
    inputs = [x]
    in_specs = [_batched_spec(x)]
    scratch_shapes = []
    cur_h, cur_w, cur_c = Hx, Wx, Cxc

    for y, ((w1, b1), (w2, b2)) in zip(reversed(acts), reversed(params["blocks"])):
        _, Ho, Wo, Cy = y.shape
        Co = w1.shape[-1]
        assert w1.shape[2] == Cy + cur_c
        M = jnp.asarray(_bilinear_matrix(cur_h, cur_w, Ho, Wo))     # (Ho*Wo, Hi*Wi)
        # split conv1 weight along Cin in cat([y, x], 1) order -> no concat needed
        w1y = w1[:, :, :Cy, :].reshape(9 * Cy, Co)
        w1x = w1[:, :, Cy:, :].reshape(9 * cur_c, Co)
        w2f = w2.reshape(9 * Co, Co)
        stage_inputs = [y, M, w1y, w1x, b1.reshape(1, Co), w2f, b2.reshape(1, Co)]
        inputs += stage_inputs
        in_specs += [_batched_spec(y)] + [_full_spec(a) for a in stage_inputs[1:]]
        cmax = max(Cy, cur_c, Co)
        scratch_shapes += [pltpu.VMEM((Ho + 2, Wo + 2, cmax), jnp.float32),
                           pltpu.VMEM((Ho, Wo, 9 * cmax), jnp.float32)]
        stage_cfgs.append((cur_h, cur_w, cur_c, Ho, Wo, Cy, Co))
        cur_h, cur_w, cur_c = Ho, Wo, Co

    wf, bf = params["final"]
    Cout = wf.shape[-1]
    wft = wf.reshape(cur_c, Cout).T                                 # (Cout, Cf)
    bft = bf.reshape(Cout, 1)
    inputs += [wft, bft]
    in_specs += [_full_spec(wft), _full_spec(bft)]

    kernel = _make_decoder_kernel(tuple(stage_cfgs), (cur_h, cur_w, cur_c, Cout))
    out = pl.pallas_call(
        kernel,
        out_shape=jax.ShapeDtypeStruct((N, Cout, cur_h * cur_w), jnp.float32),
        grid=(N,),
        in_specs=in_specs,
        out_specs=pl.BlockSpec((1, Cout, cur_h * cur_w), lambda n: (n, 0, 0)),
        scratch_shapes=scratch_shapes,
        compiler_params=pltpu.CompilerParams(dimension_semantics=("parallel",)),
    )(*inputs)
    return out.reshape(N, Cout, cur_h, cur_w)                       # NCHW (free view)


# --------------------------- parameters (HWIO weights) ------------------------

def init_unet_decoder_params(key, out_channels, num_stages, initial_num_channels,
                             kernel_size=3):
    """Deterministic init mirroring nn.Conv2d default (uniform +-1/sqrt(fan_in))."""
    params = {"blocks": [], "final": None}
    for i in range(num_stages - 1):
        cin = (2 ** (i + 1) + 2 ** (i + 2)) * initial_num_channels
        cout = 2 ** (i + 1) * initial_num_channels
        block = []
        for ci, co in ((cin, cout), (cout, cout)):
            key, kw, kb = jax.random.split(key, 3)
            bound = 1.0 / np.sqrt(ci * kernel_size * kernel_size)
            w = jax.random.uniform(kw, (kernel_size, kernel_size, ci, co),
                                   jnp.float32, -bound, bound)
            b = jax.random.uniform(kb, (co,), jnp.float32, -bound, bound)
            block.append((w, b))
        params["blocks"].append(block)
    ci = 2 * initial_num_channels
    key, kw, kb = jax.random.split(key, 3)
    bound = 1.0 / np.sqrt(ci)
    w = jax.random.uniform(kw, (1, 1, ci, out_channels), jnp.float32, -bound, bound)
    b = jax.random.uniform(kb, (out_channels,), jnp.float32, -bound, bound)
    params["final"] = (w, b)
    return params


# ---------------------------------- main --------------------------------------

if __name__ == "__main__":
    num_stages = 3
    C0 = 4                # initial_num_channels
    out_channels = 3
    N = 2

    key = jax.random.PRNGKey(0)
    kp, kx, k0, k1 = jax.random.split(key, 4)
    params = init_unet_decoder_params(kp, out_channels, num_stages, C0)

    # bottleneck: 2**num_stages * C0 = 32 channels at 4x4 (NHWC)
    x = jax.random.normal(kx, (N, 4, 4, 2 ** num_stages * C0), jnp.float32)
    # encoder activations (shallow -> deep): 8 ch @ 16x16, 16 ch @ 8x8 (NHWC)
    acts = [
        jax.random.normal(k0, (N, 16, 16, 2 ** 1 * C0), jnp.float32),
        jax.random.normal(k1, (N, 8, 8, 2 ** 2 * C0), jnp.float32),
    ]

    fwd = jax.jit(unet_decoder_forward)
    out = jax.block_until_ready(fwd(params, x, acts))
    assert out.shape == (N, out_channels, 16, 16), out.shape
    assert bool(jnp.all(jnp.isfinite(out)))
    print("KERNEL_OK")
</pallas_src>

<mosaic_0001>
module attributes {stable_mosaic.version = 11 : i64} {
  func.func @kernel(%arg0: i32, %arg1: memref<1x4x4x32xf32, #tpu.memory_space<vmem>>, %arg2: memref<1x8x8x16xf32, #tpu.memory_space<vmem>>, %arg3: memref<64x16xf32, #tpu.memory_space<vmem>>, %arg4: memref<144x16xf32, #tpu.memory_space<vmem>>, %arg5: memref<288x16xf32, #tpu.memory_space<vmem>>, %arg6: memref<1x16xf32, #tpu.memory_space<vmem>>, %arg7: memref<144x16xf32, #tpu.memory_space<vmem>>, %arg8: memref<1x16xf32, #tpu.memory_space<vmem>>, %arg9: memref<1x16x16x8xf32, #tpu.memory_space<vmem>>, %arg10: memref<256x64xf32, #tpu.memory_space<vmem>>, %arg11: memref<72x8xf32, #tpu.memory_space<vmem>>, %arg12: memref<144x8xf32, #tpu.memory_space<vmem>>, %arg13: memref<1x8xf32, #tpu.memory_space<vmem>>, %arg14: memref<72x8xf32, #tpu.memory_space<vmem>>, %arg15: memref<1x8xf32, #tpu.memory_space<vmem>>, %arg16: memref<3x8xf32, #tpu.memory_space<vmem>>, %arg17: memref<3x1xf32, #tpu.memory_space<vmem>>, %arg18: memref<1x3x256xf32, #tpu.memory_space<vmem>>, %arg19: memref<10x10x32xf32, #tpu.memory_space<vmem>>, %arg20: memref<8x8x288xf32, #tpu.memory_space<vmem>>, %arg21: memref<18x18x16xf32, #tpu.memory_space<vmem>>, %arg22: memref<16x16x144xf32, #tpu.memory_space<vmem>>) attributes {dimension_semantics = [#tpu.dimension_semantics<parallel>], iteration_bounds = array<i64: 2>, scalar_prefetch = 0 : i64, scratch_operands = 4 : i64, tpu.core_type = #tpu.core_type<tc>, window_params = [{transform_indices = @transform_0, window_bounds = array<i64: 1, 4, 4, 32>}, {transform_indices = @transform_1, window_bounds = array<i64: 1, 8, 8, 16>}, {pipeline_mode = #tpu.pipeline_mode<synchronous>, transform_indices = @transform_2, window_bounds = array<i64: 64, 16>}, {pipeline_mode = #tpu.pipeline_mode<synchronous>, transform_indices = @transform_3, window_bounds = array<i64: 144, 16>}, {pipeline_mode = #tpu.pipeline_mode<synchronous>, transform_indices = @transform_4, window_bounds = array<i64: 288, 16>}, {pipeline_mode = #tpu.pipeline_mode<synchronous>, transform_indices = @transform_5, window_bounds = array<i64: 1, 16>}, {pipeline_mode = #tpu.pipeline_mode<synchronous>, transform_indices = @transform_6, window_bounds = array<i64: 144, 16>}, {pipeline_mode = #tpu.pipeline_mode<synchronous>, transform_indices = @transform_7, window_bounds = array<i64: 1, 16>}, {transform_indices = @transform_8, window_bounds = array<i64: 1, 16, 16, 8>}, {pipeline_mode = #tpu.pipeline_mode<synchronous>, transform_indices = @transform_9, window_bounds = array<i64: 256, 64>}, {pipeline_mode = #tpu.pipeline_mode<synchronous>, transform_indices = @transform_10, window_bounds = array<i64: 72, 8>}, {pipeline_mode = #tpu.pipeline_mode<synchronous>, transform_indices = @transform_11, window_bounds = array<i64: 144, 8>}, {pipeline_mode = #tpu.pipeline_mode<synchronous>, transform_indices = @transform_12, window_bounds = array<i64: 1, 8>}, {pipeline_mode = #tpu.pipeline_mode<synchronous>, transform_indices = @transform_13, window_bounds = array<i64: 72, 8>}, {pipeline_mode = #tpu.pipeline_mode<synchronous>, transform_indices = @transform_14, window_bounds = array<i64: 1, 8>}, {pipeline_mode = #tpu.pipeline_mode<synchronous>, transform_indices = @transform_15, window_bounds = array<i64: 3, 8>}, {pipeline_mode = #tpu.pipeline_mode<synchronous>, transform_indices = @transform_16, window_bounds = array<i64: 3, 1>}, {transform_indices = @transform_17, window_bounds = array<i64: 1, 3, 256>}]} {
    %c0 = arith.constant 0 : index
    %c0_0 = arith.constant 0 : index
    %c0_1 = arith.constant 0 : index
    %c0_2 = arith.constant 0 : index
    %0 = vector.load %arg1[%c0, %c0_0, %c0_1, %c0_2] : memref<1x4x4x32xf32, #tpu.memory_space<vmem>>, vector<1x4x4x32xf32>
    %1 = vector.shape_cast %0 : vector<1x4x4x32xf32> to vector<4x4x32xf32>
    %cst = arith.constant 0.000000e+00 : f32
    %2 = vector.broadcast %cst : f32 to vector<10x10x32xf32>
    %c0_3 = arith.constant 0 : index
    %c0_4 = arith.constant 0 : index
    %c0_5 = arith.constant 0 : index
    %3 = vector.load %arg19[%c0_3, %c0_4, %c0_5] : memref<10x10x32xf32, #tpu.memory_space<vmem>>, vector<10x10x32xf32>
    tpu.vector_store %arg19[%c0_3, %c0_4, %c0_5], %2 {strides = array<i32>} : memref<10x10x32xf32, #tpu.memory_space<vmem>>, vector<10x10x32xf32>,
    %c0_6 = arith.constant 0 : index
    %c0_7 = arith.constant 0 : index
    %4 = vector.load %arg3[%c0_6, %c0_7] : memref<64x16xf32, #tpu.memory_space<vmem>>, vector<64x16xf32>
    %5 = vector.shape_cast %1 : vector<4x4x32xf32> to vector<16x32xf32>
    %cst_8 = arith.constant dense<0.000000e+00> : vector<64x32xf32>
    %6 = tpu.matmul %4, %5, %cst_8 {dimension_numbers = #tpu.dot_dimension_numbers<[1], [0], [0], [1], [0, 0, 1, 1], [], []>} : vector<64x16xf32>, vector<16x32xf32>, vector<64x32xf32> -> vector<64x32xf32>
    %7 = vector.shape_cast %6 : vector<64x32xf32> to vector<8x8x32xf32>
    %c0_9 = arith.constant 0 : index
    %c0_10 = arith.constant 0 : index
    %c0_11 = arith.constant 0 : index
    %c0_12 = arith.constant 0 : index
    %8 = vector.load %arg2[%c0_9, %c0_10, %c0_11, %c0_12] : memref<1x8x8x16xf32, #tpu.memory_space<vmem>>, vector<1x8x8x16xf32>
    %9 = vector.shape_cast %8 : vector<1x8x8x16xf32> to vector<8x8x16xf32>
    %c0_13 = arith.constant 0 : index
    %c0_14 = arith.constant 0 : index
    %10 = vector.load %arg6[%c0_13, %c0_14] : memref<1x16xf32, #tpu.memory_space<vmem>>, vector<1x16xf32>
    %11 = vector.shape_cast %10 : vector<1x16xf32> to vector<1x16xf32>
    %12 = vector.broadcast %11 : vector<1x16xf32> to vector<64x16xf32>
    %c1 = arith.constant 1 : index
    %c1_15 = arith.constant 1 : index
    %c0_16 = arith.constant 0 : index
    %13 = vector.load %arg19[%c1, %c1_15, %c0_16] : memref<10x10x32xf32, #tpu.memory_space<vmem>>, vector<8x8x16xf32>
    tpu.vector_store %arg19[%c1, %c1_15, %c0_16], %9 {strides = array<i32>} : memref<10x10x32xf32, #tpu.memory_space<vmem>>, vector<8x8x16xf32>,
    %c0_17 = arith.constant 0 : index
    %c0_18 = arith.constant 0 : index
    %c0_19 = arith.constant 0 : index
    %14 = vector.load %arg19[%c0_17, %c0_18, %c0_19] : memref<10x10x32xf32, #tpu.memory_space<vmem>>, vector<10x10x16xf32>
    %15 = vector.extract_strided_slice %14 {offsets = [0, 0, 0], sizes = [8, 8, 16], strides = [1, 1, 1]} : vector<10x10x16xf32> to vector<8x8x16xf32>
    %c0_20 = arith.constant 0 : index
    %c0_21 = arith.constant 0 : index
    %c0_22 = arith.constant 0 : index
    %16 = vector.load %arg20[%c0_20, %c0_21, %c0_22] : memref<8x8x288xf32, #tpu.memory_space<vmem>>, vector<8x8x16xf32>
    tpu.vector_store %arg20[%c0_20, %c0_21, %c0_22], %15 {strides = array<i32>} : memref<8x8x288xf32, #tpu.memory_space<vmem>>, vector<8x8x16xf32>,
    %17 = vector.extract_strided_slice %14 {offsets = [0, 1, 0], sizes = [8, 8, 16], strides = [1, 1, 1]} : vector<10x10x16xf32> to vector<8x8x16xf32>
    %c0_23 = arith.constant 0 : index
    %c0_24 = arith.constant 0 : index
    %c16 = arith.constant 16 : index
    %18 = vector.load %arg20[%c0_23, %c0_24, %c16] : memref<8x8x288xf32, #tpu.memory_space<vmem>>, vector<8x8x16xf32>
    tpu.vector_store %arg20[%c0_23, %c0_24, %c16], %17 {strides = array<i32>} : memref<8x8x288xf32, #tpu.memory_space<vmem>>, vector<8x8x16xf32>,
    %19 = vector.extract_strided_slice %14 {offsets = [0, 2, 0], sizes = [8, 8, 16], strides = [1, 1, 1]} : vector<10x10x16xf32> to vector<8x8x16xf32>
    %c0_25 = arith.constant 0 : index
    %c0_26 = arith.constant 0 : index
    %c32 = arith.constant 32 : index
    %20 = vector.load %arg20[%c0_25, %c0_26, %c32] : memref<8x8x288xf32, #tpu.memory_space<vmem>>, vector<8x8x16xf32>
    tpu.vector_store %arg20[%c0_25, %c0_26, %c32], %19 {strides = array<i32>} : memref<8x8x288xf32, #tpu.memory_space<vmem>>, vector<8x8x16xf32>,
    %21 = vector.extract_strided_slice %14 {offsets = [1, 0, 0], sizes = [8, 8, 16], strides = [1, 1, 1]} : vector<10x10x16xf32> to vector<8x8x16xf32>
    %c0_27 = arith.constant 0 : index
    %c0_28 = arith.constant 0 : index
    %c48 = arith.constant 48 : index
    %22 = vector.load %arg20[%c0_27, %c0_28, %c48] : memref<8x8x288xf32, #tpu.memory_space<vmem>>, vector<8x8x16xf32>
    tpu.vector_store %arg20[%c0_27, %c0_28, %c48], %21 {strides = array<i32>} : memref<8x8x288xf32, #tpu.memory_space<vmem>>, vector<8x8x16xf32>,
    %23 = vector.extract_strided_slice %14 {offsets = [1, 1, 0], sizes = [8, 8, 16], strides = [1, 1, 1]} : vector<10x10x16xf32> to vector<8x8x16xf32>
    %c0_29 = arith.constant 0 : index
    %c0_30 = arith.constant 0 : index
    %c64 = arith.constant 64 : index
    %24 = vector.load %arg20[%c0_29, %c0_30, %c64] : memref<8x8x288xf32, #tpu.memory_space<vmem>>, vector<8x8x16xf32>
    tpu.vector_store %arg20[%c0_29, %c0_30, %c64], %23 {strides = array<i32>} : memref<8x8x288xf32, #tpu.memory_space<vmem>>, vector<8x8x16xf32>,
    %25 = vector.extract_strided_slice %14 {offsets = [1, 2, 0], sizes = [8, 8, 16], strides = [1, 1, 1]} : vector<10x10x16xf32> to vector<8x8x16xf32>
    %c0_31 = arith.constant 0 : index
    %c0_32 = arith.constant 0 : index
    %c80 = arith.constant 80 : index
    %26 = vector.load %arg20[%c0_31, %c0_32, %c80] : memref<8x8x288xf32, #tpu.memory_space<vmem>>, vector<8x8x16xf32>
    tpu.vector_store %arg20[%c0_31, %c0_32, %c80], %25 {strides = array<i32>} : memref<8x8x288xf32, #tpu.memory_space<vmem>>, vector<8x8x16xf32>,
    %27 = vector.extract_strided_slice %14 {offsets = [2, 0, 0], sizes = [8, 8, 16], strides = [1, 1, 1]} : vector<10x10x16xf32> to vector<8x8x16xf32>
    %c0_33 = arith.constant 0 : index
    %c0_34 = arith.constant 0 : index
    %c96 = arith.constant 96 : index
    %28 = vector.load %arg20[%c0_33, %c0_34, %c96] : memref<8x8x288xf32, #tpu.memory_space<vmem>>, vector<8x8x16xf32>
    tpu.vector_store %arg20[%c0_33, %c0_34, %c96], %27 {strides = array<i32>} : memref<8x8x288xf32, #tpu.memory_space<vmem>>, vector<8x8x16xf32>,
    %29 = vector.extract_strided_slice %14 {offsets = [2, 1, 0], sizes = [8, 8, 16], strides = [1, 1, 1]} : vector<10x10x16xf32> to vector<8x8x16xf32>
    %c0_35 = arith.constant 0 : index
    %c0_36 = arith.constant 0 : index
    %c112 = arith.constant 112 : index
    %30 = vector.load %arg20[%c0_35, %c0_36, %c112] : memref<8x8x288xf32, #tpu.memory_space<vmem>>, vector<8x8x16xf32>
    tpu.vector_store %arg20[%c0_35, %c0_36, %c112], %29 {strides = array<i32>} : memref<8x8x288xf32, #tpu.memory_space<vmem>>, vector<8x8x16xf32>,
    %31 = vector.extract_strided_slice %14 {offsets = [2, 2, 0], sizes = [8, 8, 16], strides = [1, 1, 1]} : vector<10x10x16xf32> to vector<8x8x16xf32>
    %c0_37 = arith.constant 0 : index
    %c0_38 = arith.constant 0 : index
    %c128 = arith.constant 128 : index
    %32 = vector.load %arg20[%c0_37, %c0_38, %c128] : memref<8x8x288xf32, #tpu.memory_space<vmem>>, vector<8x8x16xf32>
    tpu.vector_store %arg20[%c0_37, %c0_38, %c128], %31 {strides = array<i32>} : memref<8x8x288xf32, #tpu.memory_space<vmem>>, vector<8x8x16xf32>,
    %c0_39 = arith.constant 0 : index
    %c0_40 = arith.constant 0 : index
    %c0_41 = arith.constant 0 : index
    %33 = vector.load %arg20[%c0_39, %c0_40, %c0_41] : memref<8x8x288xf32, #tpu.memory_space<vmem>>, vector<8x8x144xf32>
    %34 = vector.shape_cast %33 : vector<8x8x144xf32> to vector<64x144xf32>
    %c0_42 = arith.constant 0 : index
    %c0_43 = arith.constant 0 : index
    %35 = vector.load %arg4[%c0_42, %c0_43] : memref<144x16xf32, #tpu.memory_space<vmem>>, vector<144x16xf32>
    %cst_44 = arith.constant dense<0.000000e+00> : vector<64x16xf32>
    %36 = tpu.matmul %34, %35, %cst_44 {dimension_numbers = #tpu.dot_dimension_numbers<[1], [0], [0], [1], [0, 0, 1, 1], [], []>} : vector<64x144xf32>, vector<144x16xf32>, vector<64x16xf32> -> vector<64x16xf32>
    %37 = arith.addf %12, %36 : vector<64x16xf32>
    %c1_45 = arith.constant 1 : index
    %c1_46 = arith.constant 1 : index
    %c0_47 = arith.constant 0 : index
    %38 = vector.load %arg19[%c1_45, %c1_46, %c0_47] : memref<10x10x32xf32, #tpu.memory_space<vmem>>, vector<8x8x32xf32>
    tpu.vector_store %arg19[%c1_45, %c1_46, %c0_47], %7 {strides = array<i32>} : memref<10x10x32xf32, #tpu.memory_space<vmem>>, vector<8x8x32xf32>,
    %c0_48 = arith.constant 0 : index
    %c0_49 = arith.constant 0 : index
    %c0_50 = arith.constant 0 : index
    %39 = vector.load %arg19[%c0_48, %c0_49, %c0_50] : memref<10x10x32xf32, #tpu.memory_space<vmem>>, vector<10x10x32xf32>
    %40 = vector.extract_strided_slice %39 {offsets = [0, 0, 0], sizes = [8, 8, 32], strides = [1, 1, 1]} : vector<10x10x32xf32> to vector<8x8x32xf32>
    %c0_51 = arith.constant 0 : index
    %c0_52 = arith.constant 0 : index
    %c0_53 = arith.constant 0 : index
    %41 = vector.load %arg20[%c0_51, %c0_52, %c0_53] : memref<8x8x288xf32, #tpu.memory_space<vmem>>, vector<8x8x32xf32>
    tpu.vector_store %arg20[%c0_51, %c0_52, %c0_53], %40 {strides = array<i32>} : memref<8x8x288xf32, #tpu.memory_space<vmem>>, vector<8x8x32xf32>,
    %42 = vector.extract_strided_slice %39 {offsets = [0, 1, 0], sizes = [8, 8, 32], strides = [1, 1, 1]} : vector<10x10x32xf32> to vector<8x8x32xf32>
    %c0_54 = arith.constant 0 : index
    %c0_55 = arith.constant 0 : index
    %c32_56 = arith.constant 32 : index
    %43 = vector.load %arg20[%c0_54, %c0_55, %c32_56] : memref<8x8x288xf32, #tpu.memory_space<vmem>>, vector<8x8x32xf32>
    tpu.vector_store %arg20[%c0_54, %c0_55, %c32_56], %42 {strides = array<i32>} : memref<8x8x288xf32, #tpu.memory_space<vmem>>, vector<8x8x32xf32>,
    %44 = vector.extract_strided_slice %39 {offsets = [0, 2, 0], sizes = [8, 8, 32], strides = [1, 1, 1]} : vector<10x10x32xf32> to vector<8x8x32xf32>
    %c0_57 = arith.constant 0 : index
    %c0_58 = arith.constant 0 : index
    %c64_59 = arith.constant 64 : index
    %45 = vector.load %arg20[%c0_57, %c0_58, %c64_59] : memref<8x8x288xf32, #tpu.memory_space<vmem>>, vector<8x8x32xf32>
    tpu.vector_store %arg20[%c0_57, %c0_58, %c64_59], %44 {strides = array<i32>} : memref<8x8x288xf32, #tpu.memory_space<vmem>>, vector<8x8x32xf32>,
    %46 = vector.extract_strided_slice %39 {offsets = [1, 0, 0], sizes = [8, 8, 32], strides = [1, 1, 1]} : vector<10x10x32xf32> to vector<8x8x32xf32>
    %c0_60 = arith.constant 0 : index
    %c0_61 = arith.constant 0 : index
    %c96_62 = arith.constant 96 : index
    %47 = vector.load %arg20[%c0_60, %c0_61, %c96_62] : memref<8x8x288xf32, #tpu.memory_space<vmem>>, vector<8x8x32xf32>
    tpu.vector_store %arg20[%c0_60, %c0_61, %c96_62], %46 {strides = array<i32>} : memref<8x8x288xf32, #tpu.memory_space<vmem>>, vector<8x8x32xf32>,
    %48 = vector.extract_strided_slice %39 {offsets = [1, 1, 0], sizes = [8, 8, 32], strides = [1, 1, 1]} : vector<10x10x32xf32> to vector<8x8x32xf32>
    %c0_63 = arith.constant 0 : index
    %c0_64 = arith.constant 0 : index
    %c128_65 = arith.constant 128 : index
    %49 = vector.load %arg20[%c0_63, %c0_64, %c128_65] : memref<8x8x288xf32, #tpu.memory_space<vmem>>, vector<8x8x32xf32>
    tpu.vector_store %arg20[%c0_63, %c0_64, %c128_65], %48 {strides = array<i32>} : memref<8x8x288xf32, #tpu.memory_space<vmem>>, vector<8x8x32xf32>,
    %50 = vector.extract_strided_slice %39 {offsets = [1, 2, 0], sizes = [8, 8, 32], strides = [1, 1, 1]} : vector<10x10x32xf32> to vector<8x8x32xf32>
    %c0_66 = arith.constant 0 : index
    %c0_67 = arith.constant 0 : index
    %c160 = arith.constant 160 : index
    %51 = vector.load %arg20[%c0_66, %c0_67, %c160] : memref<8x8x288xf32, #tpu.memory_space<vmem>>, vector<8x8x32xf32>
    tpu.vector_store %arg20[%c0_66, %c0_67, %c160], %50 {strides = array<i32>} : memref<8x8x288xf32, #tpu.memory_space<vmem>>, vector<8x8x32xf32>,
    %52 = vector.extract_strided_slice %39 {offsets = [2, 0, 0], sizes = [8, 8, 32], strides = [1, 1, 1]} : vector<10x10x32xf32> to vector<8x8x32xf32>
    %c0_68 = arith.constant 0 : index
    %c0_69 = arith.constant 0 : index
    %c192 = arith.constant 192 : index
    %53 = vector.load %arg20[%c0_68, %c0_69, %c192] : memref<8x8x288xf32, #tpu.memory_space<vmem>>, vector<8x8x32xf32>
    tpu.vector_store %arg20[%c0_68, %c0_69, %c192], %52 {strides = array<i32>} : memref<8x8x288xf32, #tpu.memory_space<vmem>>, vector<8x8x32xf32>,
    %54 = vector.extract_strided_slice %39 {offsets = [2, 1, 0], sizes = [8, 8, 32], strides = [1, 1, 1]} : vector<10x10x32xf32> to vector<8x8x32xf32>
    %c0_70 = arith.constant 0 : index
    %c0_71 = arith.constant 0 : index
    %c224 = arith.constant 224 : index
    %55 = vector.load %arg20[%c0_70, %c0_71, %c224] : memref<8x8x288xf32, #tpu.memory_space<vmem>>, vector<8x8x32xf32>
    tpu.vector_store %arg20[%c0_70, %c0_71, %c224], %54 {strides = array<i32>} : memref<8x8x288xf32, #tpu.memory_space<vmem>>, vector<8x8x32xf32>,
    %56 = vector.extract_strided_slice %39 {offsets = [2, 2, 0], sizes = [8, 8, 32], strides = [1, 1, 1]} : vector<10x10x32xf32> to vector<8x8x32xf32>
    %c0_72 = arith.constant 0 : index
    %c0_73 = arith.constant 0 : index
    %c256 = arith.constant 256 : index
    %57 = vector.load %arg20[%c0_72, %c0_73, %c256] : memref<8x8x288xf32, #tpu.memory_space<vmem>>, vector<8x8x32xf32>
    tpu.vector_store %arg20[%c0_72, %c0_73, %c256], %56 {strides = array<i32>} : memref<8x8x288xf32, #tpu.memory_space<vmem>>, vector<8x8x32xf32>,
    %c0_74 = arith.constant 0 : index
    %c0_75 = arith.constant 0 : index
    %c0_76 = arith.constant 0 : index
    %58 = vector.load %arg20[%c0_74, %c0_75, %c0_76] : memref<8x8x288xf32, #tpu.memory_space<vmem>>, vector<8x8x288xf32>
    %59 = vector.shape_cast %58 : vector<8x8x288xf32> to vector<64x288xf32>
    %c0_77 = arith.constant 0 : index
    %c0_78 = arith.constant 0 : index
    %60 = vector.load %arg5[%c0_77, %c0_78] : memref<288x16xf32, #tpu.memory_space<vmem>>, vector<288x16xf32>
    %cst_79 = arith.constant dense<0.000000e+00> : vector<64x16xf32>
    %61 = tpu.matmul %59, %60, %cst_79 {dimension_numbers = #tpu.dot_dimension_numbers<[1], [0], [0], [1], [0, 0, 1, 1], [], []>} : vector<64x288xf32>, vector<288x16xf32>, vector<64x16xf32> -> vector<64x16xf32>
    %62 = arith.addf %37, %61 : vector<64x16xf32>
    %cst_80 = arith.constant 0.000000e+00 : f32
    %63 = vector.broadcast %cst_80 : f32 to vector<64x16xf32>
    %64 = arith.maximumf %62, %63 : vector<64x16xf32>
    %65 = vector.shape_cast %64 : vector<64x16xf32> to vector<8x8x16xf32>
    %c0_81 = arith.constant 0 : index
    %c0_82 = arith.constant 0 : index
    %66 = vector.load %arg8[%c0_81, %c0_82] : memref<1x16xf32, #tpu.memory_space<vmem>>, vector<1x16xf32>
    %67 = vector.shape_cast %66 : vector<1x16xf32> to vector<1x16xf32>
    %68 = vector.broadcast %67 : vector<1x16xf32> to vector<64x16xf32>
    %c1_83 = arith.constant 1 : index
    %c1_84 = arith.constant 1 : index
    %c0_85 = arith.constant 0 : index
    %69 = vector.load %arg19[%c1_83, %c1_84, %c0_85] : memref<10x10x32xf32, #tpu.memory_space<vmem>>, vector<8x8x16xf32>
    tpu.vector_store %arg19[%c1_83, %c1_84, %c0_85], %65 {strides = array<i32>} : memref<10x10x32xf32, #tpu.memory_space<vmem>>, vector<8x8x16xf32>,
    %c0_86 = arith.constant 0 : index
    %c0_87 = arith.constant 0 : index
    %c0_88 = arith.constant 0 : index
    %70 = vector.load %arg19[%c0_86, %c0_87, %c0_88] : memref<10x10x32xf32, #tpu.memory_space<vmem>>, vector<10x10x16xf32>
    %71 = vector.extract_strided_slice %70 {offsets = [0, 0, 0], sizes = [8, 8, 16], strides = [1, 1, 1]} : vector<10x10x16xf32> to vector<8x8x16xf32>
    %c0_89 = arith.constant 0 : index
    %c0_90 = arith.constant 0 : index
    %c0_91 = arith.constant 0 : index
    %72 = vector.load %arg20[%c0_89, %c0_90, %c0_91] : memref<8x8x288xf32, #tpu.memory_space<vmem>>, vector<8x8x16xf32>
    tpu.vector_store %arg20[%c0_89, %c0_90, %c0_91], %71 {strides = array<i32>} : memref<8x8x288xf32, #tpu.memory_space<vmem>>, vector<8x8x16xf32>,
    %73 = vector.extract_strided_slice %70 {offsets = [0, 1, 0], sizes = [8, 8, 16], strides = [1, 1, 1]} : vector<10x10x16xf32> to vector<8x8x16xf32>
    %c0_92 = arith.constant 0 : index
    %c0_93 = arith.constant 0 : index
    %c16_94 = arith.constant 16 : index
    %74 = vector.load %arg20[%c0_92, %c0_93, %c16_94] : memref<8x8x288xf32, #tpu.memory_space<vmem>>, vector<8x8x16xf32>
    tpu.vector_store %arg20[%c0_92, %c0_93, %c16_94], %73 {strides = array<i32>} : memref<8x8x288xf32, #tpu.memory_space<vmem>>, vector<8x8x16xf32>,
    %75 = vector.extract_strided_slice %70 {offsets = [0, 2, 0], sizes = [8, 8, 16], strides = [1, 1, 1]} : vector<10x10x16xf32> to vector<8x8x16xf32>
    %c0_95 = arith.constant 0 : index
    %c0_96 = arith.constant 0 : index
    %c32_97 = arith.constant 32 : index
    %76 = vector.load %arg20[%c0_95, %c0_96, %c32_97] : memref<8x8x288xf32, #tpu.memory_space<vmem>>, vector<8x8x16xf32>
    tpu.vector_store %arg20[%c0_95, %c0_96, %c32_97], %75 {strides = array<i32>} : memref<8x8x288xf32, #tpu.memory_space<vmem>>, vector<8x8x16xf32>,
    %77 = vector.extract_strided_slice %70 {offsets = [1, 0, 0], sizes = [8, 8, 16], strides = [1, 1, 1]} : vector<10x10x16xf32> to vector<8x8x16xf32>
    %c0_98 = arith.constant 0 : index
    %c0_99 = arith.constant 0 : index
    %c48_100 = arith.constant 48 : index
    %78 = vector.load %arg20[%c0_98, %c0_99, %c48_100] : memref<8x8x288xf32, #tpu.memory_space<vmem>>, vector<8x8x16xf32>
    tpu.vector_store %arg20[%c0_98, %c0_99, %c48_100], %77 {strides = array<i32>} : memref<8x8x288xf32, #tpu.memory_space<vmem>>, vector<8x8x16xf32>,
    %79 = vector.extract_strided_slice %70 {offsets = [1, 1, 0], sizes = [8, 8, 16], strides = [1, 1, 1]} : vector<10x10x16xf32> to vector<8x8x16xf32>
    %c0_101 = arith.constant 0 : index
    %c0_102 = arith.constant 0 : index
    %c64_103 = arith.constant 64 : index
    %80 = vector.load %arg20[%c0_101, %c0_102, %c64_103] : memref<8x8x288xf32, #tpu.memory_space<vmem>>, vector<8x8x16xf32>
    tpu.vector_store %arg20[%c0_101, %c0_102, %c64_103], %79 {strides = array<i32>} : memref<8x8x288xf32, #tpu.memory_space<vmem>>, vector<8x8x16xf32>,
    %81 = vector.extract_strided_slice %70 {offsets = [1, 2, 0], sizes = [8, 8, 16], strides = [1, 1, 1]} : vector<10x10x16xf32> to vector<8x8x16xf32>
    %c0_104 = arith.constant 0 : index
    %c0_105 = arith.constant 0 : index
    %c80_106 = arith.constant 80 : index
    %82 = vector.load %arg20[%c0_104, %c0_105, %c80_106] : memref<8x8x288xf32, #tpu.memory_space<vmem>>, vector<8x8x16xf32>
    tpu.vector_store %arg20[%c0_104, %c0_105, %c80_106], %81 {strides = array<i32>} : memref<8x8x288xf32, #tpu.memory_space<vmem>>, vector<8x8x16xf32>,
    %83 = vector.extract_strided_slice %70 {offsets = [2, 0, 0], sizes = [8, 8, 16], strides = [1, 1, 1]} : vector<10x10x16xf32> to vector<8x8x16xf32>
    %c0_107 = arith.constant 0 : index
    %c0_108 = arith.constant 0 : index
    %c96_109 = arith.constant 96 : index
    %84 = vector.load %arg20[%c0_107, %c0_108, %c96_109] : memref<8x8x288xf32, #tpu.memory_space<vmem>>, vector<8x8x16xf32>
    tpu.vector_store %arg20[%c0_107, %c0_108, %c96_109], %83 {strides = array<i32>} : memref<8x8x288xf32, #tpu.memory_space<vmem>>, vector<8x8x16xf32>,
    %85 = vector.extract_strided_slice %70 {offsets = [2, 1, 0], sizes = [8, 8, 16], strides = [1, 1, 1]} : vector<10x10x16xf32> to vector<8x8x16xf32>
    %c0_110 = arith.constant 0 : index
    %c0_111 = arith.constant 0 : index
    %c112_112 = arith.constant 112 : index
    %86 = vector.load %arg20[%c0_110, %c0_111, %c112_112] : memref<8x8x288xf32, #tpu.memory_space<vmem>>, vector<8x8x16xf32>
    tpu.vector_store %arg20[%c0_110, %c0_111, %c112_112], %85 {strides = array<i32>} : memref<8x8x288xf32, #tpu.memory_space<vmem>>, vector<8x8x16xf32>,
    %87 = vector.extract_strided_slice %70 {offsets = [2, 2, 0], sizes = [8, 8, 16], strides = [1, 1, 1]} : vector<10x10x16xf32> to vector<8x8x16xf32>
    %c0_113 = arith.constant 0 : index
    %c0_114 = arith.constant 0 : index
    %c128_115 = arith.constant 128 : index
    %88 = vector.load %arg20[%c0_113, %c0_114, %c128_115] : memref<8x8x288xf32, #tpu.memory_space<vmem>>, vector<8x8x16xf32>
    tpu.vector_store %arg20[%c0_113, %c0_114, %c128_115], %87 {strides = array<i32>} : memref<8x8x288xf32, #tpu.memory_space<vmem>>, vector<8x8x16xf32>,
    %c0_116 = arith.constant 0 : index
    %c0_117 = arith.constant 0 : index
    %c0_118 = arith.constant 0 : index
    %89 = vector.load %arg20[%c0_116, %c0_117, %c0_118] : memref<8x8x288xf32, #tpu.memory_space<vmem>>, vector<8x8x144xf32>
    %90 = vector.shape_cast %89 : vector<8x8x144xf32> to vector<64x144xf32>
    %c0_119 = arith.constant 0 : index
    %c0_120 = arith.constant 0 : index
    %91 = vector.load %arg7[%c0_119, %c0_120] : memref<144x16xf32, #tpu.memory_space<vmem>>, vector<144x16xf32>
    %cst_121 = arith.constant dense<0.000000e+00> : vector<64x16xf32>
    %92 = tpu.matmul %90, %91, %cst_121 {dimension_numbers = #tpu.dot_dimension_numbers<[1], [0], [0], [1], [0, 0, 1, 1], [], []>} : vector<64x144xf32>, vector<144x16xf32>, vector<64x16xf32> -> vector<64x16xf32>
    %93 = arith.addf %68, %92 : vector<64x16xf32>
    %cst_122 = arith.constant 0.000000e+00 : f32
    %94 = vector.broadcast %cst_122 : f32 to vector<64x16xf32>
    %95 = arith.maximumf %93, %94 : vector<64x16xf32>
    %96 = vector.shape_cast %95 : vector<64x16xf32> to vector<8x8x16xf32>
    %cst_123 = arith.constant 0.000000e+00 : f32
    %97 = vector.broadcast %cst_123 : f32 to vector<18x18x16xf32>
    %c0_124 = arith.constant 0 : index
    %c0_125 = arith.constant 0 : index
    %c0_126 = arith.constant 0 : index
    %98 = vector.load %arg21[%c0_124, %c0_125, %c0_126] : memref<18x18x16xf32, #tpu.memory_space<vmem>>, vector<18x18x16xf32>
    tpu.vector_store %arg21[%c0_124, %c0_125, %c0_126], %97 {strides = array<i32>} : memref<18x18x16xf32, #tpu.memory_space<vmem>>, vector<18x18x16xf32>,
    %c0_127 = arith.constant 0 : index
    %c0_128 = arith.constant 0 : index
    %99 = vector.load %arg10[%c0_127, %c0_128] : memref<256x64xf32, #tpu.memory_space<vmem>>, vector<256x64xf32>
    %100 = vector.shape_cast %96 : vector<8x8x16xf32> to vector<64x16xf32>
    %cst_129 = arith.constant dense<0.000000e+00> : vector<256x16xf32>
    %101 = tpu.matmul %99, %100, %cst_129 {dimension_numbers = #tpu.dot_dimension_numbers<[1], [0], [0], [1], [0, 0, 1, 1], [], []>} : vector<256x64xf32>, vector<64x16xf32>, vector<256x16xf32> -> vector<256x16xf32>
    %102 = vector.shape_cast %101 : vector<256x16xf32> to vector<16x16x16xf32>
    %c0_130 = arith.constant 0 : index
    %c0_131 = arith.constant 0 : index
    %c0_132 = arith.constant 0 : index
    %c0_133 = arith.constant 0 : index
    %103 = vector.load %arg9[%c0_130, %c0_131, %c0_132, %c0_133] : memref<1x16x16x8xf32, #tpu.memory_space<vmem>>, vector<1x16x16x8xf32>
    %104 = vector.shape_cast %103 : vector<1x16x16x8xf32> to vector<16x16x8xf32>
    %c0_134 = arith.constant 0 : index
    %c0_135 = arith.constant 0 : index
    %105 = vector.load %arg13[%c0_134, %c0_135] : memref<1x8xf32, #tpu.memory_space<vmem>>, vector<1x8xf32>
    %106 = vector.shape_cast %105 : vector<1x8xf32> to vector<1x8xf32>
    %107 = vector.broadcast %106 : vector<1x8xf32> to vector<256x8xf32>
    %c1_136 = arith.constant 1 : index
    %c1_137 = arith.constant 1 : index
    %c0_138 = arith.constant 0 : index
    %108 = vector.load %arg21[%c1_136, %c1_137, %c0_138] : memref<18x18x16xf32, #tpu.memory_space<vmem>>, vector<16x16x8xf32>
    tpu.vector_store %arg21[%c1_136, %c1_137, %c0_138], %104 {strides = array<i32>} : memref<18x18x16xf32, #tpu.memory_space<vmem>>, vector<16x16x8xf32>,
    %c0_139 = arith.constant 0 : index
    %c0_140 = arith.constant 0 : index
    %c0_141 = arith.constant 0 : index
    %109 = vector.load %arg21[%c0_139, %c0_140, %c0_141] : memref<18x18x16xf32, #tpu.memory_space<vmem>>, vector<18x18x8xf32>
    %110 = vector.extract_strided_slice %109 {offsets = [0, 0, 0], sizes = [16, 16, 8], strides = [1, 1, 1]} : vector<18x18x8xf32> to vector<16x16x8xf32>
    %c0_142 = arith.constant 0 : index
    %c0_143 = arith.constant 0 : index
    %c0_144 = arith.constant 0 : index
    %111 = vector.load %arg22[%c0_142, %c0_143, %c0_144] : memref<16x16x144xf32, #tpu.memory_space<vmem>>, vector<16x16x8xf32>
    tpu.vector_store %arg22[%c0_142, %c0_143, %c0_144], %110 {strides = array<i32>} : memref<16x16x144xf32, #tpu.memory_space<vmem>>, vector<16x16x8xf32>,
    %112 = vector.extract_strided_slice %109 {offsets = [0, 1, 0], sizes = [16, 16, 8], strides = [1, 1, 1]} : vector<18x18x8xf32> to vector<16x16x8xf32>
    %c0_145 = arith.constant 0 : index
    %c0_146 = arith.constant 0 : index
    %c8 = arith.constant 8 : index
    %113 = vector.load %arg22[%c0_145, %c0_146, %c8] : memref<16x16x144xf32, #tpu.memory_space<vmem>>, vector<16x16x8xf32>
    tpu.vector_store %arg22[%c0_145, %c0_146, %c8], %112 {strides = array<i32>} : memref<16x16x144xf32, #tpu.memory_space<vmem>>, vector<16x16x8xf32>,
    %114 = vector.extract_strided_slice %109 {offsets = [0, 2, 0], sizes = [16, 16, 8], strides = [1, 1, 1]} : vector<18x18x8xf32> to vector<16x16x8xf32>
    %c0_147 = arith.constant 0 : index
    %c0_148 = arith.constant 0 : index
    %c16_149 = arith.constant 16 : index
    %115 = vector.load %arg22[%c0_147, %c0_148, %c16_149] : memref<16x16x144xf32, #tpu.memory_space<vmem>>, vector<16x16x8xf32>
    tpu.vector_store %arg22[%c0_147, %c0_148, %c16_149], %114 {strides = array<i32>} : memref<16x16x144xf32, #tpu.memory_space<vmem>>, vector<16x16x8xf32>,
    %116 = vector.extract_strided_slice %109 {offsets = [1, 0, 0], sizes = [16, 16, 8], strides = [1, 1, 1]} : vector<18x18x8xf32> to vector<16x16x8xf32>
    %c0_150 = arith.constant 0 : index
    %c0_151 = arith.constant 0 : index
    %c24 = arith.constant 24 : index
    %117 = vector.load %arg22[%c0_150, %c0_151, %c24] : memref<16x16x144xf32, #tpu.memory_space<vmem>>, vector<16x16x8xf32>
    tpu.vector_store %arg22[%c0_150, %c0_151, %c24], %116 {strides = array<i32>} : memref<16x16x144xf32, #tpu.memory_space<vmem>>, vector<16x16x8xf32>,
    %118 = vector.extract_strided_slice %109 {offsets = [1, 1, 0], sizes = [16, 16, 8], strides = [1, 1, 1]} : vector<18x18x8xf32> to vector<16x16x8xf32>
    %c0_152 = arith.constant 0 : index
    %c0_153 = arith.constant 0 : index
    %c32_154 = arith.constant 32 : index
    %119 = vector.load %arg22[%c0_152, %c0_153, %c32_154] : memref<16x16x144xf32, #tpu.memory_space<vmem>>, vector<16x16x8xf32>
    tpu.vector_store %arg22[%c0_152, %c0_153, %c32_154], %118 {strides = array<i32>} : memref<16x16x144xf32, #tpu.memory_space<vmem>>, vector<16x16x8xf32>,
    %120 = vector.extract_strided_slice %109 {offsets = [1, 2, 0], sizes = [16, 16, 8], strides = [1, 1, 1]} : vector<18x18x8xf32> to vector<16x16x8xf32>
    %c0_155 = arith.constant 0 : index
    %c0_156 = arith.constant 0 : index
    %c40 = arith.constant 40 : index
    %121 = vector.load %arg22[%c0_155, %c0_156, %c40] : memref<16x16x144xf32, #tpu.memory_space<vmem>>, vector<16x16x8xf32>
    tpu.vector_store %arg22[%c0_155, %c0_156, %c40], %120 {strides = array<i32>} : memref<16x16x144xf32, #tpu.memory_space<vmem>>, vector<16x16x8xf32>,
    %122 = vector.extract_strided_slice %109 {offsets = [2, 0, 0], sizes = [16, 16, 8], strides = [1, 1, 1]} : vector<18x18x8xf32> to vector<16x16x8xf32>
    %c0_157 = arith.constant 0 : index
    %c0_158 = arith.constant 0 : index
    %c48_159 = arith.constant 48 : index
    %123 = vector.load %arg22[%c0_157, %c0_158, %c48_159] : memref<16x16x144xf32, #tpu.memory_space<vmem>>, vector<16x16x8xf32>
    tpu.vector_store %arg22[%c0_157, %c0_158, %c48_159], %122 {strides = array<i32>} : memref<16x16x144xf32, #tpu.memory_space<vmem>>, vector<16x16x8xf32>,
    %124 = vector.extract_strided_slice %109 {offsets = [2, 1, 0], sizes = [16, 16, 8], strides = [1, 1, 1]} : vector<18x18x8xf32> to vector<16x16x8xf32>
    %c0_160 = arith.constant 0 : index
    %c0_161 = arith.constant 0 : index
    %c56 = arith.constant 56 : index
    %125 = vector.load %arg22[%c0_160, %c0_161, %c56] : memref<16x16x144xf32, #tpu.memory_space<vmem>>, vector<16x16x8xf32>
    tpu.vector_store %arg22[%c0_160, %c0_161, %c56], %124 {strides = array<i32>} : memref<16x16x144xf32, #tpu.memory_space<vmem>>, vector<16x16x8xf32>,
    %126 = vector.extract_strided_slice %109 {offsets = [2, 2, 0], sizes = [16, 16, 8], strides = [1, 1, 1]} : vector<18x18x8xf32> to vector<16x16x8xf32>
    %c0_162 = arith.constant 0 : index
    %c0_163 = arith.constant 0 : index
    %c64_164 = arith.constant 64 : index
    %127 = vector.load %arg22[%c0_162, %c0_163, %c64_164] : memref<16x16x144xf32, #tpu.memory_space<vmem>>, vector<16x16x8xf32>
    tpu.vector_store %arg22[%c0_162, %c0_163, %c64_164], %126 {strides = array<i32>} : memref<16x16x144xf32, #tpu.memory_space<vmem>>, vector<16x16x8xf32>,
    %c0_165 = arith.constant 0 : index
    %c0_166 = arith.constant 0 : index
    %c0_167 = arith.constant 0 : index
    %128 = vector.load %arg22[%c0_165, %c0_166, %c0_167] : memref<16x16x144xf32, #tpu.memory_space<vmem>>, vector<16x16x72xf32>
    %129 = vector.shape_cast %128 : vector<16x16x72xf32> to vector<256x72xf32>
    %c0_168 = arith.constant 0 : index
    %c0_169 = arith.constant 0 : index
    %130 = vector.load %arg11[%c0_168, %c0_169] : memref<72x8xf32, #tpu.memory_space<vmem>>, vector<72x8xf32>
    %cst_170 = arith.constant dense<0.000000e+00> : vector<256x8xf32>
    %131 = tpu.matmul %129, %130, %cst_170 {dimension_numbers = #tpu.dot_dimension_numbers<[1], [0], [0], [1], [0, 0, 1, 1], [], []>} : vector<256x72xf32>, vector<72x8xf32>, vector<256x8xf32> -> vector<256x8xf32>
    %132 = arith.addf %107, %131 : vector<256x8xf32>
    %c1_171 = arith.constant 1 : index
    %c1_172 = arith.constant 1 : index
    %c0_173 = arith.constant 0 : index
    %133 = vector.load %arg21[%c1_171, %c1_172, %c0_173] : memref<18x18x16xf32, #tpu.memory_space<vmem>>, vector<16x16x16xf32>
    tpu.vector_store %arg21[%c1_171, %c1_172, %c0_173], %102 {strides = array<i32>} : memref<18x18x16xf32, #tpu.memory_space<vmem>>, vector<16x16x16xf32>,
    %c0_174 = arith.constant 0 : index
    %c0_175 = arith.constant 0 : index
    %c0_176 = arith.constant 0 : index
    %134 = vector.load %arg21[%c0_174, %c0_175, %c0_176] : memref<18x18x16xf32, #tpu.memory_space<vmem>>, vector<18x18x16xf32>
    %135 = vector.extract_strided_slice %134 {offsets = [0, 0, 0], sizes = [16, 16, 16], strides = [1, 1, 1]} : vector<18x18x16xf32> to vector<16x16x16xf32>
    %c0_177 = arith.constant 0 : index
    %c0_178 = arith.constant 0 : index
    %c0_179 = arith.constant 0 : index
    %136 = vector.load %arg22[%c0_177, %c0_178, %c0_179] : memref<16x16x144xf32, #tpu.memory_space<vmem>>, vector<16x16x16xf32>
    tpu.vector_store %arg22[%c0_177, %c0_178, %c0_179], %135 {strides = array<i32>} : memref<16x16x144xf32, #tpu.memory_space<vmem>>, vector<16x16x16xf32>,
    %137 = vector.extract_strided_slice %134 {offsets = [0, 1, 0], sizes = [16, 16, 16], strides = [1, 1, 1]} : vector<18x18x16xf32> to vector<16x16x16xf32>
    %c0_180 = arith.constant 0 : index
    %c0_181 = arith.constant 0 : index
    %c16_182 = arith.constant 16 : index
    %138 = vector.load %arg22[%c0_180, %c0_181, %c16_182] : memref<16x16x144xf32, #tpu.memory_space<vmem>>, vector<16x16x16xf32>
    tpu.vector_store %arg22[%c0_180, %c0_181, %c16_182], %137 {strides = array<i32>} : memref<16x16x144xf32, #tpu.memory_space<vmem>>, vector<16x16x16xf32>,
    %139 = vector.extract_strided_slice %134 {offsets = [0, 2, 0], sizes = [16, 16, 16], strides = [1, 1, 1]} : vector<18x18x16xf32> to vector<16x16x16xf32>
    %c0_183 = arith.constant 0 : index
    %c0_184 = arith.constant 0 : index
    %c32_185 = arith.constant 32 : index
    %140 = vector.load %arg22[%c0_183, %c0_184, %c32_185] : memref<16x16x144xf32, #tpu.memory_space<vmem>>, vector<16x16x16xf32>
    tpu.vector_store %arg22[%c0_183, %c0_184, %c32_185], %139 {strides = array<i32>} : memref<16x16x144xf32, #tpu.memory_space<vmem>>, vector<16x16x16xf32>,
    %141 = vector.extract_strided_slice %134 {offsets = [1, 0, 0], sizes = [16, 16, 16], strides = [1, 1, 1]} : vector<18x18x16xf32> to vector<16x16x16xf32>
    %c0_186 = arith.constant 0 : index
    %c0_187 = arith.constant 0 : index
    %c48_188 = arith.constant 48 : index
    %142 = vector.load %arg22[%c0_186, %c0_187, %c48_188] : memref<16x16x144xf32, #tpu.memory_space<vmem>>, vector<16x16x16xf32>
    tpu.vector_store %arg22[%c0_186, %c0_187, %c48_188], %141 {strides = array<i32>} : memref<16x16x144xf32, #tpu.memory_space<vmem>>, vector<16x16x16xf32>,
    %143 = vector.extract_strided_slice %134 {offsets = [1, 1, 0], sizes = [16, 16, 16], strides = [1, 1, 1]} : vector<18x18x16xf32> to vector<16x16x16xf32>
    %c0_189 = arith.constant 0 : index
    %c0_190 = arith.constant 0 : index
    %c64_191 = arith.constant 64 : index
    %144 = vector.load %arg22[%c0_189, %c0_190, %c64_191] : memref<16x16x144xf32, #tpu.memory_space<vmem>>, vector<16x16x16xf32>
    tpu.vector_store %arg22[%c0_189, %c0_190, %c64_191], %143 {strides = array<i32>} : memref<16x16x144xf32, #tpu.memory_space<vmem>>, vector<16x16x16xf32>,
    %145 = vector.extract_strided_slice %134 {offsets = [1, 2, 0], sizes = [16, 16, 16], strides = [1, 1, 1]} : vector<18x18x16xf32> to vector<16x16x16xf32>
    %c0_192 = arith.constant 0 : index
    %c0_193 = arith.constant 0 : index
    %c80_194 = arith.constant 80 : index
    %146 = vector.load %arg22[%c0_192, %c0_193, %c80_194] : memref<16x16x144xf32, #tpu.memory_space<vmem>>, vector<16x16x16xf32>
    tpu.vector_store %arg22[%c0_192, %c0_193, %c80_194], %145 {strides = array<i32>} : memref<16x16x144xf32, #tpu.memory_space<vmem>>, vector<16x16x16xf32>,
    %147 = vector.extract_strided_slice %134 {offsets = [2, 0, 0], sizes = [16, 16, 16], strides = [1, 1, 1]} : vector<18x18x16xf32> to vector<16x16x16xf32>
    %c0_195 = arith.constant 0 : index
    %c0_196 = arith.constant 0 : index
    %c96_197 = arith.constant 96 : index
    %148 = vector.load %arg22[%c0_195, %c0_196, %c96_197] : memref<16x16x144xf32, #tpu.memory_space<vmem>>, vector<16x16x16xf32>
    tpu.vector_store %arg22[%c0_195, %c0_196, %c96_197], %147 {strides = array<i32>} : memref<16x16x144xf32, #tpu.memory_space<vmem>>, vector<16x16x16xf32>,
    %149 = vector.extract_strided_slice %134 {offsets = [2, 1, 0], sizes = [16, 16, 16], strides = [1, 1, 1]} : vector<18x18x16xf32> to vector<16x16x16xf32>
    %c0_198 = arith.constant 0 : index
    %c0_199 = arith.constant 0 : index
    %c112_200 = arith.constant 112 : index
    %150 = vector.load %arg22[%c0_198, %c0_199, %c112_200] : memref<16x16x144xf32, #tpu.memory_space<vmem>>, vector<16x16x16xf32>
    tpu.vector_store %arg22[%c0_198, %c0_199, %c112_200], %149 {strides = array<i32>} : memref<16x16x144xf32, #tpu.memory_space<vmem>>, vector<16x16x16xf32>,
    %151 = vector.extract_strided_slice %134 {offsets = [2, 2, 0], sizes = [16, 16, 16], strides = [1, 1, 1]} : vector<18x18x16xf32> to vector<16x16x16xf32>
    %c0_201 = arith.constant 0 : index
    %c0_202 = arith.constant 0 : index
    %c128_203 = arith.constant 128 : index
    %152 = vector.load %arg22[%c0_201, %c0_202, %c128_203] : memref<16x16x144xf32, #tpu.memory_space<vmem>>, vector<16x16x16xf32>
    tpu.vector_store %arg22[%c0_201, %c0_202, %c128_203], %151 {strides = array<i32>} : memref<16x16x144xf32, #tpu.memory_space<vmem>>, vector<16x16x16xf32>,
    %c0_204 = arith.constant 0 : index
    %c0_205 = arith.constant 0 : index
    %c0_206 = arith.constant 0 : index
    %153 = vector.load %arg22[%c0_204, %c0_205, %c0_206] : memref<16x16x144xf32, #tpu.memory_space<vmem>>, vector<16x16x144xf32>
    %154 = vector.shape_cast %153 : vector<16x16x144xf32> to vector<256x144xf32>
    %c0_207 = arith.constant 0 : index
    %c0_208 = arith.constant 0 : index
    %155 = vector.load %arg12[%c0_207, %c0_208] : memref<144x8xf32, #tpu.memory_space<vmem>>, vector<144x8xf32>
    %cst_209 = arith.constant dense<0.000000e+00> : vector<256x8xf32>
    %156 = tpu.matmul %154, %155, %cst_209 {dimension_numbers = #tpu.dot_dimension_numbers<[1], [0], [0], [1], [0, 0, 1, 1], [], []>} : vector<256x144xf32>, vector<144x8xf32>, vector<256x8xf32> -> vector<256x8xf32>
    %157 = arith.addf %132, %156 : vector<256x8xf32>
    %cst_210 = arith.constant 0.000000e+00 : f32
    %158 = vector.broadcast %cst_210 : f32 to vector<256x8xf32>
    %159 = arith.maximumf %157, %158 : vector<256x8xf32>
    %160 = vector.shape_cast %159 : vector<256x8xf32> to vector<16x16x8xf32>
    %c0_211 = arith.constant 0 : index
    %c0_212 = arith.constant 0 : index
    %161 = vector.load %arg15[%c0_211, %c0_212] : memref<1x8xf32, #tpu.memory_space<vmem>>, vector<1x8xf32>
    %162 = vector.shape_cast %161 : vector<1x8xf32> to vector<1x8xf32>
    %163 = vector.broadcast %162 : vector<1x8xf32> to vector<256x8xf32>
    %c1_213 = arith.constant 1 : index
    %c1_214 = arith.constant 1 : index
    %c0_215 = arith.constant 0 : index
    %164 = vector.load %arg21[%c1_213, %c1_214, %c0_215] : memref<18x18x16xf32, #tpu.memory_space<vmem>>, vector<16x16x8xf32>
    tpu.vector_store %arg21[%c1_213, %c1_214, %c0_215], %160 {strides = array<i32>} : memref<18x18x16xf32, #tpu.memory_space<vmem>>, vector<16x16x8xf32>,
    %c0_216 = arith.constant 0 : index
    %c0_217 = arith.constant 0 : index
    %c0_218 = arith.constant 0 : index
    %165 = vector.load %arg21[%c0_216, %c0_217, %c0_218] : memref<18x18x16xf32, #tpu.memory_space<vmem>>, vector<18x18x8xf32>
    %166 = vector.extract_strided_slice %165 {offsets = [0, 0, 0], sizes = [16, 16, 8], strides = [1, 1, 1]} : vector<18x18x8xf32> to vector<16x16x8xf32>
    %c0_219 = arith.constant 0 : index
    %c0_220 = arith.constant 0 : index
    %c0_221 = arith.constant 0 : index
    %167 = vector.load %arg22[%c0_219, %c0_220, %c0_221] : memref<16x16x144xf32, #tpu.memory_space<vmem>>, vector<16x16x8xf32>
    tpu.vector_store %arg22[%c0_219, %c0_220, %c0_221], %166 {strides = array<i32>} : memref<16x16x144xf32, #tpu.memory_space<vmem>>, vector<16x16x8xf32>,
    %168 = vector.extract_strided_slice %165 {offsets = [0, 1, 0], sizes = [16, 16, 8], strides = [1, 1, 1]} : vector<18x18x8xf32> to vector<16x16x8xf32>
    %c0_222 = arith.constant 0 : index
    %c0_223 = arith.constant 0 : index
    %c8_224 = arith.constant 8 : index
    %169 = vector.load %arg22[%c0_222, %c0_223, %c8_224] : memref<16x16x144xf32, #tpu.memory_space<vmem>>, vector<16x16x8xf32>
    tpu.vector_store %arg22[%c0_222, %c0_223, %c8_224], %168 {strides = array<i32>} : memref<16x16x144xf32, #tpu.memory_space<vmem>>, vector<16x16x8xf32>,
    %170 = vector.extract_strided_slice %165 {offsets = [0, 2, 0], sizes = [16, 16, 8], strides = [1, 1, 1]} : vector<18x18x8xf32> to vector<16x16x8xf32>
    %c0_225 = arith.constant 0 : index
    %c0_226 = arith.constant 0 : index
    %c16_227 = arith.constant 16 : index
    %171 = vector.load %arg22[%c0_225, %c0_226, %c16_227] : memref<16x16x144xf32, #tpu.memory_space<vmem>>, vector<16x16x8xf32>
    tpu.vector_store %arg22[%c0_225, %c0_226, %c16_227], %170 {strides = array<i32>} : memref<16x16x144xf32, #tpu.memory_space<vmem>>, vector<16x16x8xf32>,
    %172 = vector.extract_strided_slice %165 {offsets = [1, 0, 0], sizes = [16, 16, 8], strides = [1, 1, 1]} : vector<18x18x8xf32> to vector<16x16x8xf32>
    %c0_228 = arith.constant 0 : index
    %c0_229 = arith.constant 0 : index
    %c24_230 = arith.constant 24 : index
    %173 = vector.load %arg22[%c0_228, %c0_229, %c24_230] : memref<16x16x144xf32, #tpu.memory_space<vmem>>, vector<16x16x8xf32>
    tpu.vector_store %arg22[%c0_228, %c0_229, %c24_230], %172 {strides = array<i32>} : memref<16x16x144xf32, #tpu.memory_space<vmem>>, vector<16x16x8xf32>,
    %174 = vector.extract_strided_slice %165 {offsets = [1, 1, 0], sizes = [16, 16, 8], strides = [1, 1, 1]} : vector<18x18x8xf32> to vector<16x16x8xf32>
    %c0_231 = arith.constant 0 : index
    %c0_232 = arith.constant 0 : index
    %c32_233 = arith.constant 32 : index
    %175 = vector.load %arg22[%c0_231, %c0_232, %c32_233] : memref<16x16x144xf32, #tpu.memory_space<vmem>>, vector<16x16x8xf32>
    tpu.vector_store %arg22[%c0_231, %c0_232, %c32_233], %174 {strides = array<i32>} : memref<16x16x144xf32, #tpu.memory_space<vmem>>, vector<16x16x8xf32>,
    %176 = vector.extract_strided_slice %165 {offsets = [1, 2, 0], sizes = [16, 16, 8], strides = [1, 1, 1]} : vector<18x18x8xf32> to vector<16x16x8xf32>
    %c0_234 = arith.constant 0 : index
    %c0_235 = arith.constant 0 : index
    %c40_236 = arith.constant 40 : index
    %177 = vector.load %arg22[%c0_234, %c0_235, %c40_236] : memref<16x16x144xf32, #tpu.memory_space<vmem>>, vector<16x16x8xf32>
    tpu.vector_store %arg22[%c0_234, %c0_235, %c40_236], %176 {strides = array<i32>} : memref<16x16x144xf32, #tpu.memory_space<vmem>>, vector<16x16x8xf32>,
    %178 = vector.extract_strided_slice %165 {offsets = [2, 0, 0], sizes = [16, 16, 8], strides = [1, 1, 1]} : vector<18x18x8xf32> to vector<16x16x8xf32>
    %c0_237 = arith.constant 0 : index
    %c0_238 = arith.constant 0 : index
    %c48_239 = arith.constant 48 : index
    %179 = vector.load %arg22[%c0_237, %c0_238, %c48_239] : memref<16x16x144xf32, #tpu.memory_space<vmem>>, vector<16x16x8xf32>
    tpu.vector_store %arg22[%c0_237, %c0_238, %c48_239], %178 {strides = array<i32>} : memref<16x16x144xf32, #tpu.memory_space<vmem>>, vector<16x16x8xf32>,
    %180 = vector.extract_strided_slice %165 {offsets = [2, 1, 0], sizes = [16, 16, 8], strides = [1, 1, 1]} : vector<18x18x8xf32> to vector<16x16x8xf32>
    %c0_240 = arith.constant 0 : index
    %c0_241 = arith.constant 0 : index
    %c56_242 = arith.constant 56 : index
    %181 = vector.load %arg22[%c0_240, %c0_241, %c56_242] : memref<16x16x144xf32, #tpu.memory_space<vmem>>, vector<16x16x8xf32>
    tpu.vector_store %arg22[%c0_240, %c0_241, %c56_242], %180 {strides = array<i32>} : memref<16x16x144xf32, #tpu.memory_space<vmem>>, vector<16x16x8xf32>,
    %182 = vector.extract_strided_slice %165 {offsets = [2, 2, 0], sizes = [16, 16, 8], strides = [1, 1, 1]} : vector<18x18x8xf32> to vector<16x16x8xf32>
    %c0_243 = arith.constant 0 : index
    %c0_244 = arith.constant 0 : index
    %c64_245 = arith.constant 64 : index
    %183 = vector.load %arg22[%c0_243, %c0_244, %c64_245] : memref<16x16x144xf32, #tpu.memory_space<vmem>>, vector<16x16x8xf32>
    tpu.vector_store %arg22[%c0_243, %c0_244, %c64_245], %182 {strides = array<i32>} : memref<16x16x144xf32, #tpu.memory_space<vmem>>, vector<16x16x8xf32>,
    %c0_246 = arith.constant 0 : index
    %c0_247 = arith.constant 0 : index
    %c0_248 = arith.constant 0 : index
    %184 = vector.load %arg22[%c0_246, %c0_247, %c0_248] : memref<16x16x144xf32, #tpu.memory_space<vmem>>, vector<16x16x72xf32>
    %185 = vector.shape_cast %184 : vector<16x16x72xf32> to vector<256x72xf32>
    %c0_249 = arith.constant 0 : index
    %c0_250 = arith.constant 0 : index
    %186 = vector.load %arg14[%c0_249, %c0_250] : memref<72x8xf32, #tpu.memory_space<vmem>>, vector<72x8xf32>
    %cst_251 = arith.constant dense<0.000000e+00> : vector<256x8xf32>
    %187 = tpu.matmul %185, %186, %cst_251 {dimension_numbers = #tpu.dot_dimension_numbers<[1], [0], [0], [1], [0, 0, 1, 1], [], []>} : vector<256x72xf32>, vector<72x8xf32>, vector<256x8xf32> -> vector<256x8xf32>
    %188 = arith.addf %163, %187 : vector<256x8xf32>
    %cst_252 = arith.constant 0.000000e+00 : f32
    %189 = vector.broadcast %cst_252 : f32 to vector<256x8xf32>
    %190 = arith.maximumf %188, %189 : vector<256x8xf32>
    %191 = vector.shape_cast %190 : vector<256x8xf32> to vector<16x16x8xf32>
    %192 = vector.shape_cast %191 : vector<16x16x8xf32> to vector<256x8xf32>
    %c0_253 = arith.constant 0 : index
    %c0_254 = arith.constant 0 : index
    %193 = vector.load %arg16[%c0_253, %c0_254] : memref<3x8xf32, #tpu.memory_space<vmem>>, vector<3x8xf32>
    %cst_255 = arith.constant dense<0.000000e+00> : vector<3x256xf32>
    %194 = tpu.matmul %193, %192, %cst_255 {dimension_numbers = #tpu.dot_dimension_numbers<[1], [1], [0], [0], [0, 0, 1, 0], [], []>} : vector<3x8xf32>, vector<256x8xf32>, vector<3x256xf32> -> vector<3x256xf32>
    %c0_256 = arith.constant 0 : index
    %c0_257 = arith.constant 0 : index
    %195 = vector.load %arg17[%c0_256, %c0_257] : memref<3x1xf32, #tpu.memory_space<vmem>>, vector<3x1xf32>
    %196 = vector.broadcast %195 : vector<3x1xf32> to vector<3x256xf32>
    %197 = arith.addf %194, %196 : vector<3x256xf32>
    %c0_258 = arith.constant 0 : index
    %c0_259 = arith.constant 0 : index
    %c0_260 = arith.constant 0 : index
    %198 = vector.load %arg18[%c0_258, %c0_259, %c0_260] : memref<1x3x256xf32, #tpu.memory_space<vmem>>, vector<1x3x256xf32>
    %199 = vector.shape_cast %198 : vector<1x3x256xf32> to vector<3x256xf32>
    %200 = vector.shape_cast %197 : vector<3x256xf32> to vector<1x3x256xf32>
    tpu.vector_store %arg18[%c0_258, %c0_259, %c0_260], %200 {strides = array<i32>} : memref<1x3x256xf32, #tpu.memory_space<vmem>>, vector<1x3x256xf32>,
    return
  }
  func.func @transform_0(%arg0: i32) -> (i32, i32, i32, i32) {
    %c0_i32 = arith.constant 0 : i32
    %c0_i32_0 = arith.constant 0 : i32
    %c0_i32_1 = arith.constant 0 : i32
    %c0_i32_2 = arith.constant 0 : i32
    return %arg0, %c0_i32, %c0_i32_0, %c0_i32_1 : i32, i32, i32, i32
  }
  func.func @transform_1(%arg0: i32) -> (i32, i32, i32, i32) {
    %c0_i32 = arith.constant 0 : i32
    %c0_i32_0 = arith.constant 0 : i32
    %c0_i32_1 = arith.constant 0 : i32
    %c0_i32_2 = arith.constant 0 : i32
    return %arg0, %c0_i32, %c0_i32_0, %c0_i32_1 : i32, i32, i32, i32
  }
  func.func @transform_2(%arg0: i32) -> (i32, i32) {
    %c0_i32 = arith.constant 0 : i32
    %c0_i32_0 = arith.constant 0 : i32
    %c0_i32_1 = arith.constant 0 : i32
    return %c0_i32, %c0_i32_0 : i32, i32
  }
  func.func @transform_3(%arg0: i32) -> (i32, i32) {
    %c0_i32 = arith.constant 0 : i32
    %c0_i32_0 = arith.constant 0 : i32
    %c0_i32_1 = arith.constant 0 : i32
    return %c0_i32, %c0_i32_0 : i32, i32
  }
  func.func @transform_4(%arg0: i32) -> (i32, i32) {
    %c0_i32 = arith.constant 0 : i32
    %c0_i32_0 = arith.constant 0 : i32
    %c0_i32_1 = arith.constant 0 : i32
    return %c0_i32, %c0_i32_0 : i32, i32
  }
  func.func @transform_5(%arg0: i32) -> (i32, i32) {
    %c0_i32 = arith.constant 0 : i32
    %c0_i32_0 = arith.constant 0 : i32
    %c0_i32_1 = arith.constant 0 : i32
    return %c0_i32, %c0_i32_0 : i32, i32
  }
  func.func @transform_6(%arg0: i32) -> (i32, i32) {
    %c0_i32 = arith.constant 0 : i32
    %c0_i32_0 = arith.constant 0 : i32
    %c0_i32_1 = arith.constant 0 : i32
    return %c0_i32, %c0_i32_0 : i32, i32
  }
  func.func @transform_7(%arg0: i32) -> (i32, i32) {
    %c0_i32 = arith.constant 0 : i32
    %c0_i32_0 = arith.constant 0 : i32
    %c0_i32_1 = arith.constant 0 : i32
    return %c0_i32, %c0_i32_0 : i32, i32
  }
  func.func @transform_8(%arg0: i32) -> (i32, i32, i32, i32) {
    %c0_i32 = arith.constant 0 : i32
    %c0_i32_0 = arith.constant 0 : i32
    %c0_i32_1 = arith.constant 0 : i32
    %c0_i32_2 = arith.constant 0 : i32
    return %arg0, %c0_i32, %c0_i32_0, %c0_i32_1 : i32, i32, i32, i32
  }
  func.func @transform_9(%arg0: i32) -> (i32, i32) {
    %c0_i32 = arith.constant 0 : i32
    %c0_i32_0 = arith.constant 0 : i32
    %c0_i32_1 = arith.constant 0 : i32
    return %c0_i32, %c0_i32_0 : i32, i32
  }
  func.func @transform_10(%arg0: i32) -> (i32, i32) {
    %c0_i32 = arith.constant 0 : i32
    %c0_i32_0 = arith.constant 0 : i32
    %c0_i32_1 = arith.constant 0 : i32
    return %c0_i32, %c0_i32_0 : i32, i32
  }
  func.func @transform_11(%arg0: i32) -> (i32, i32) {
    %c0_i32 = arith.constant 0 : i32
    %c0_i32_0 = arith.constant 0 : i32
    %c0_i32_1 = arith.constant 0 : i32
    return %c0_i32, %c0_i32_0 : i32, i32
  }
  func.func @transform_12(%arg0: i32) -> (i32, i32) {
    %c0_i32 = arith.constant 0 : i32
    %c0_i32_0 = arith.constant 0 : i32
    %c0_i32_1 = arith.constant 0 : i32
    return %c0_i32, %c0_i32_0 : i32, i32
  }
  func.func @transform_13(%arg0: i32) -> (i32, i32) {
    %c0_i32 = arith.constant 0 : i32
    %c0_i32_0 = arith.constant 0 : i32
    %c0_i32_1 = arith.constant 0 : i32
    return %c0_i32, %c0_i32_0 : i32, i32
  }
  func.func @transform_14(%arg0: i32) -> (i32, i32) {
    %c0_i32 = arith.constant 0 : i32
    %c0_i32_0 = arith.constant 0 : i32
    %c0_i32_1 = arith.constant 0 : i32
    return %c0_i32, %c0_i32_0 : i32, i32
  }
  func.func @transform_15(%arg0: i32) -> (i32, i32) {
    %c0_i32 = arith.constant 0 : i32
    %c0_i32_0 = arith.constant 0 : i32
    %c0_i32_1 = arith.constant 0 : i32
    return %c0_i32, %c0_i32_0 : i32, i32
  }
  func.func @transform_16(%arg0: i32) -> (i32, i32) {
    %c0_i32 = arith.constant 0 : i32
    %c0_i32_0 = arith.constant 0 : i32
    %c0_i32_1 = arith.constant 0 : i32
    return %c0_i32, %c0_i32_0 : i32, i32
  }
  func.func @transform_17(%arg0: i32) -> (i32, i32, i32) {
    %c0_i32 = arith.constant 0 : i32
    %c0_i32_0 = arith.constant 0 : i32
    %c0_i32_1 = arith.constant 0 : i32
    return %arg0, %c0_i32, %c0_i32_0 : i32, i32, i32
  }
}

</mosaic_0001>

<bundles_post_ra>
// kernel: unet_decoder_forward.1
= control target key start
LH: loop header
LB: loop body
LE: loop exit
PB: predicated region body
PF: predicated region fallthrough
CT: control target
= control target key end

     0   :  { %s8398_s24 = smov 0   ;;  %s14297_s0 = inlined_call_operand.vmem [shape: f32[2,4,4,32], index: 0, kind: input, shape index: {}]   ;;  %s14298_s1 = inlined_call_operand.vmem [shape: f32[2,8,8,16], index: 1, kind: input, shape index: {}]   ;;  %s14299_s2 = inlined_call_operand.vmem [shape: f32[64,16], index: 2, kind: input, shape index: {}]   ;;  %s14300_s3 = inlined_call_operand.vmem [shape: f32[144,16], index: 3, kind: input, shape index: {}]   ;;  %s14301_s4 = inlined_call_operand.vmem [shape: f32[288,16], index: 4, kind: input, shape index: {}]   ;;  %s14302_s5 = inlined_call_operand.vmem [shape: f32[1,16], index: 5, kind: input, shape index: {}]   ;;  %s14303_s6 = inlined_call_operand.vmem [shape: f32[144,16], index: 6, kind: input, shape index: {}]   ;;  %s14304_s7 = inlined_call_operand.vmem [shape: f32[1,16], index: 7, kind: input, shape index: {}]   ;;  %s14305_s8 = inlined_call_operand.vmem [shape: f32[2,16,16,8], index: 8, kind: input, shape index: {}]   ;;  %s14306_s9 = inlined_call_operand.vmem [shape: f32[256,64], index: 9, kind: input, shape index: {}]   ;;  %s14307_s10 = inlined_call_operand.vmem [shape: f32[72,8], index: 10, kind: input, shape index: {}]   ;;  %s14308_s11 = inlined_call_operand.vmem [shape: f32[144,8], index: 11, kind: input, shape index: {}]   ;;  %s14309_s12 = inlined_call_operand.vmem [shape: f32[1,8], index: 12, kind: input, shape index: {}]   ;;  %s14310_s13 = inlined_call_operand.vmem [shape: f32[72,8], index: 13, kind: input, shape index: {}]   ;;  %s14311_s14 = inlined_call_operand.vmem [shape: f32[1,8], index: 14, kind: input, shape index: {}]   ;;  %s14312_s15 = inlined_call_operand.vmem [shape: f32[3,8], index: 15, kind: input, shape index: {}]   ;;  %s14313_s16 = inlined_call_operand.vmem [shape: f32[3,1], index: 16, kind: input, shape index: {}]   ;;  %s14314_s17 = inlined_call_operand.vmem [shape: f32[2,3,256], index: 17, kind: output, shape index: {}]  }
   0x1   :  { %14575 = sst [smem:[#allocation67_spill]] %s14297_s0 }
   0x2   :  { %14576 = sst [smem:[#allocation68_spill]] %s14298_s1 }
   0x3   :  { %14577 = sst [smem:[#allocation69_spill]] %s14299_s2 }
   0x4   :  { %14578 = sst [smem:[#allocation70_spill]] %s14300_s3 }
   0x5   :  { %14579 = sst [smem:[#allocation71_spill]] %s14301_s4 }
   0x6 LB: > { %s8020_s25 = sadd.s32 4294967295, %s8293_s24   ;;  %p8024_p0 = scmp.ge.s32.totalorder %s8293_s24, 1  ;;  %s8293_s24 = sphi %s8398_s24, %s27_s24  }
   0x7   : > { %p507_p1 = scmp.lt.s32.totalorder %s8293_s24, 3 }
   0x9   : > { %p508_p2 = pnand %p8024_p0, %p507_p1 }
   0xb   : > { %511 = sbr.rel (%p508_p2) target bundleno = 3373 (0xd2d), region = 88 }
  0x10   : > { %vm593_vm0 = vcmask 261120   ;;  %vm595_vm1 = vcmask 254976   ;;  %v8295_v0 = vmov 0.0   ;;  %p569_p3 = scmp.lt.s32.totalorder %s8020_s25, 1  ;;  %vm827_vm2 = vcmask 1045504   ;;  %s14408_s27 = smov 32  }
  0x11   : > { %594 = vst.msk [vmem:[#allocation2] sm:$0xff] %vm593_vm0, %v8295_v0  ;;  %vm769_vm3 = vcmask 1046528   ;;  %s14404_s28 = smov 16   ;;  %s14580_s18 = sld [smem:[#allocation67_spill]]  ;;  %vm638_vm4 = vcmask 130048   ;;  %vm818_vm5 = vcmask 261248  }
  0x12   : > { %596 = vst.msk [vmem:[#allocation2 + $0x8] sm:$0x3] %vm595_vm1, %v8295_v0  ;;  %s15086_s25 = smov (!%p569_p3, %s8020_s25), 1  ;;  %s14581_s21 = sld [smem:[#allocation68_spill]]  ;;  %vm876_vm6 = vcmask 392448   ;;  %vm910_vm7 = vcmask 523648  }
  0x13   : > { %597 = vst.msk [vmem:[#allocation2 + $0x10] sm:$0xff] %vm593_vm0, %v8295_v0  ;;  %s8229_s26 = sshll.u32 %s15086_s25, 4  ;;  %s8230_s29 = sshll.u32 %s15086_s25, 6  ;;  %vm947_vm8 = vcmask 654848   ;;  %vm983_vm9 = vcmask 786048   ;;  %vm1017_vm10 = vcmask 917248  }
  0x14   : > { %598 = vst.msk [vmem:[#allocation2 + $0x18] sm:$0x3] %vm595_vm1, %v8295_v0  ;;  %s14582_s2 = sld [smem:[#allocation69_spill]]  ;;  %s14317_s1 = smov 80   ;;  %vm1054_vm11 = vcmask 1048448   ;;  %vm1330_vm12 = vcmask 523520  }
  0x15   : > { %599 = vst.msk [vmem:[#allocation2 + $0x20] sm:$0xff] %vm593_vm0, %v8295_v0  ;;  %s14321_s20 = smov 96   ;;  %s14583_s3 = sld [smem:[#allocation70_spill]]  ;;  %vm1387_vm13 = vcmask 785920   ;;  %vm1421_vm14 = vcmask 1048320   ;;  %vm2314_vm15 = vcmask 123904  }
  0x16   : > { %600 = vst.msk [vmem:[#allocation2 + $0x28] sm:$0x3] %vm595_vm1, %v8295_v0  ;;  %s14584_s4 = sld [smem:[#allocation71_spill]]  ;;  %s8231_s23 = sshll.u32 %s15086_s25, 8 }
  0x17   : > { %601 = vst.msk [vmem:[#allocation2 + $0x30] sm:$0xff] %vm593_vm0, %v8295_v0  ;;  %s8455_s19 = scalar_lea.vmem %s14580_s18, %s8229_s26  ;;  %s9356_s0 = scalar_lea.vmem %s14305_s8, %s8231_s23 }
  0x18   : > { %v8420_v1 = vld [vmem:[#allocation2] sm:$0xff]  ;;  %602 = vst.msk [vmem:[#allocation2 + $0x38] sm:$0x3] %vm595_vm1, %v8295_v0  ;;  %s8464_s22 = scalar_lea.vmem %s14581_s21, %s8230_s29  ;;  %v589_v18 = vld [vmem:[%s8455_s19] sm:$0xf]  ;;  %s14406_s21 = smov 112  }
  0x19   : > { %v726_v2 = vld [vmem:[#allocation2 + $0x8] sm:$0x3]  ;;  %v828_v3 = vrot.slane %v8420_v1, 2  ;;  %603 = vst.msk [vmem:[#allocation2 + $0x40] sm:$0xff] %vm593_vm0, %v8295_v0  ;;  %v770_v4 = vrot.slane %v8420_v1, 1  ;;  %v705_v11 = vld [vmem:[%s8464_s22 + $0x8] sm:$0xff] }
  0x1a   : > { %v829_v5 = vrot.slane %v726_v2, 2  ;;  %604 = vst.msk [vmem:[#allocation2 + $0x48] sm:$0x3] %vm595_vm1, %v8295_v0  ;;  %v771_v6 = vrot.slane %v726_v2, 1  ;;  %v591_v9 = vld [vmem:[%s8455_s19 + $0x8] sm:$0xf] }
  0x1b   : > { %605 = vst.msk [vmem:[#allocation2 + $0x50] sm:$0xff] %vm593_vm0, %v8295_v0  ;;  %v592_v10 = vld [vmem:[%s8455_s19 + $0xc] sm:$0xf]  ;;  %v590_v19 = vld [vmem:[%s8455_s19 + $0x4] sm:$0xf]  ;;  %v707_v20 = vld [vmem:[%s8464_s22 + $0x18] sm:$0xff] }
  0x1c   : > { %v830_v7 = vsel %vm827_vm2, %v828_v3, %v829_v5  ;;  %606 = vst.msk [vmem:[#allocation2 + $0x58] sm:$0x3] %vm595_vm1, %v8295_v0  ;;  %v772_v8 = vsel %vm769_vm3, %v770_v4, %v771_v6  ;;  %v704_v21 = vld [vmem:[%s8464_s22] sm:$0xff]  ;;  %v706_v22 = vld [vmem:[%s8464_s22 + $0x10] sm:$0xff]  ;;  %v709_v24 = vld [vmem:[%s8464_s22 + $0x28] sm:$0xff]  ;;  %s14315_s19 = smov 64  }
  0x1d   : > { %852 = vrot.lane.b32.xlu2 %v830_v7, %s14408_s27  ;;  %607 = vst.msk [vmem:[#allocation2 + $0x60] sm:$0xff] %vm593_vm0, %v8295_v0  ;;  %794 = vrot.lane.b32.xlu0 %v772_v8, %s14404_s28  ;;  %v708_v23 = vld [vmem:[%s8464_s22 + $0x20] sm:$0xff]  ;;  %v710_v27 = vld [vmem:[%s8464_s22 + $0x30] sm:$0xff]  ;;  %s14639_s29 = smov 48   ;;  %s14642_s30 = smov 32  }
  0x1e   : > { %608 = vst.msk [vmem:[#allocation2 + $0x68] sm:$0x3] %vm595_vm1, %v8295_v0  ;;  %v615_v28 = vld [vmem:[%s14582_s2] sm:$0xff]  ;;  %v616_v56 = vld [vmem:[%s14582_s2 + $0x8] sm:$0xff]  ;;  %s14643_s23 = smov 16   ;;  %s8306_s26 = smov 56  }
  0x1f   : > { %609 = vst.msk [vmem:[#allocation2 + $0x70] sm:$0xff] %vm593_vm0, %v8295_v0 }
  0x20   : > { %610 = vst.msk [vmem:[#allocation2 + $0x78] sm:$0x3] %vm595_vm1, %v8295_v0 }
  0x21   : > { %611 = vst.msk [vmem:[#allocation2 + $0x80] sm:$0xff] %vm593_vm0, %v8295_v0 }
  0x22   : > { %612 = vst.msk [vmem:[#allocation2 + $0x88] sm:$0x3] %vm595_vm1, %v8295_v0 }
  0x23   : > { %613 = vst.msk [vmem:[#allocation2 + $0x90] sm:$0xff] %vm593_vm0, %v8295_v0 }
  0x24   : > { %614 = vst.msk [vmem:[#allocation2 + $0x98] sm:$0x3] %vm595_vm1, %v8295_v0  ;;  %vm2646_vm1 = vcmask 64512  }
  0x25   : > { %631 = vst [vmem:[#allocation1 + $0x10] ss:$2 sm:$0xff] %v591_v9 }
  0x26   : > { %633 = vst [vmem:[#allocation1 + $0x11] ss:$2 sm:$0xff] %v592_v10 }
  0x27   : > { %718 = vst.msk [vmem:[#allocation2 + $0x21] sm:$0xff] %vm638_vm4, %v705_v11 }
  0x28   : > { %745 = vst.msk [vmem:[#allocation3] sm:$0xff] %vm638_vm4, %v8420_v1 }
  0x29   : > { %2312 = vst.msk [vmem:[#allocation4] sm:$0xff] %vm638_vm4, %v8295_v0 }
  0x2a   : > { %2313 = vst.msk [vmem:[#allocation4 + $0x8] sm:$0xff] %vm638_vm4, %v8295_v0 }
  0x2b   : > { %2316 = vst.msk [vmem:[#allocation4 + $0x18] sm:$0xff] %vm638_vm4, %v8295_v0 }
  0x2c   : > { %2317 = vst.msk [vmem:[#allocation4 + $0x20] sm:$0xff] %vm638_vm4, %v8295_v0 }
  0x2d   : > { %v635_v12 = vld.sshfl [vmem:[#allocation1 + $0x10] sm:$0xff pattern:$0x75316420]  ;;  %2319 = vst.msk [vmem:[#allocation4 + $0x30] sm:$0xff] %vm638_vm4, %v8295_v0 }
  0x2e   : > { %677 = vmatpush.msra.mxu0 %v635_v12  ;;  %v8488_v13 = vld [vmem:[#allocation2 + $0x20] sm:$0xff]  ;;  %v730_v14 = vld [vmem:[#allocation2 + $0x28] sm:$0x3]  ;;  %2320 = vst.msk [vmem:[#allocation4 + $0x38] sm:$0xff] %vm638_vm4, %v8295_v0 }
  0x2f   : > { %v776_v15 = vrot.slane %v8488_v13, 1  ;;  %v777_v16 = vrot.slane %v730_v14, 1  ;;  %747 = vst.msk [vmem:[#allocation3 + $0x30] sm:$0xff] %vm638_vm4, %v8488_v13  ;;  %v834_v25 = vrot.slane %v8488_v13, 2  ;;  %v835_v26 = vrot.slane %v730_v14, 2 }
  0x30   : > { %2322 = vst.msk [vmem:[#allocation4 + $0x48] sm:$0xff] %vm638_vm4, %v8295_v0 }
  0x31   : > { %v8498_v17 = vsel %vm769_vm3, %v776_v15, %v777_v16  ;;  %2323 = vst.msk [vmem:[#allocation4 + $0x50] sm:$0xff] %vm638_vm4, %v8295_v0  ;;  %v8579_v29 = vsel %vm827_vm2, %v834_v25, %v835_v26  ;;  %v619_v25 = vld [vmem:[%s14582_s2 + $0x20] sm:$0xff]  ;;  %v620_v26 = vld [vmem:[%s14582_s2 + $0x28] sm:$0xff] }
  0x32   : > { %798 = vrot.lane.b32.xlu1 %v8498_v17, %s14404_s28  ;;  %2325 = vst.msk [vmem:[#allocation4 + $0x60] sm:$0xff] %vm638_vm4, %v8295_v0 }
  0x33   : > { %2326 = vst.msk [vmem:[#allocation4 + $0x68] sm:$0xff] %vm638_vm4, %v8295_v0 }
  0x34   : > { %2328 = vst.msk [vmem:[#allocation4 + $0x78] sm:$0xff] %vm638_vm4, %v8295_v0 }
  0x35   : > { %2329 = vst.msk [vmem:[#allocation4 + $0x80] sm:$0xff] %vm638_vm4, %v8295_v0 }
  0x36   : > { %2331 = vst.msk [vmem:[#allocation4 + $0x90] sm:$0xff] %vm638_vm4, %v8295_v0 }
  0x37   : > { %2332 = vst.msk [vmem:[#allocation4 + $0x98] sm:$0xff] %vm638_vm4, %v8295_v0 }
  0x38   : > { %2334 = vst.msk [vmem:[#allocation4 + $0xa8] sm:$0xff] %vm638_vm4, %v8295_v0 }
  0x39   : > { %2335 = vst.msk [vmem:[#allocation4 + $0xb0] sm:$0xff] %vm638_vm4, %v8295_v0 }
  0x3a   : > { %2337 = vst.msk [vmem:[#allocation4 + $0xc0] sm:$0xff] %vm638_vm4, %v8295_v0 }
  0x3b   : > { %2338 = vst.msk [vmem:[#allocation4 + $0xc8] sm:$0xff] %vm638_vm4, %v8295_v0 }
  0x3c   : > { %2340 = vst.msk [vmem:[#allocation4 + $0xd8] sm:$0xff] %vm638_vm4, %v8295_v0 }
  0x3d   : > { %2341 = vst.msk [vmem:[#allocation4 + $0xe0] sm:$0xff] %vm638_vm4, %v8295_v0 }
  0x3e   : > { %2343 = vst.msk [vmem:[#allocation4 + $0xf0] sm:$0xff] %vm638_vm4, %v8295_v0 }
  0x3f   : > { %2344 = vst.msk [vmem:[#allocation4 + $0xf8] sm:$0xff] %vm638_vm4, %v8295_v0 }
  0x40   : > { %2346 = vst.msk [vmem:[#allocation4 + $0x108] sm:$0xff] %vm638_vm4, %v8295_v0 }
  0x41   : > { %2347 = vst.msk [vmem:[#allocation4 + $0x110] sm:$0xff] %vm638_vm4, %v8295_v0 }
  0x42   : > { %2349 = vst.msk [vmem:[#allocation4 + $0x120] sm:$0xff] %vm638_vm4, %v8295_v0 }
  0x43   : > { %2350 = vst.msk [vmem:[#allocation4 + $0x128] sm:$0xff] %vm638_vm4, %v8295_v0 }
  0x44   : > { %2352 = vst.msk [vmem:[#allocation4 + $0x138] sm:$0xff] %vm638_vm4, %v8295_v0 }
  0x45   : > { %2353 = vst.msk [vmem:[#allocation4 + $0x140] sm:$0xff] %vm638_vm4, %v8295_v0 }
  0x46   : > { %2355 = vst.msk [vmem:[#allocation4 + $0x150] sm:$0xff] %vm638_vm4, %v8295_v0 }
  0x47   : > { %2356 = vst.msk [vmem:[#allocation4 + $0x158] sm:$0xff] %vm638_vm4, %v8295_v0 }
  0x48   : > { %2358 = vst.msk [vmem:[#allocation4 + $0x168] sm:$0xff] %vm638_vm4, %v8295_v0 }
  0x49   : > { %2359 = vst.msk [vmem:[#allocation4 + $0x170] sm:$0xff] %vm638_vm4, %v8295_v0 }
  0x4a   : > { %2361 = vst.msk [vmem:[#allocation4 + $0x180] sm:$0xff] %vm638_vm4, %v8295_v0 }
  0x4b   : > { %2362 = vst.msk [vmem:[#allocation4 + $0x188] sm:$0xff] %vm638_vm4, %v8295_v0 }
  0x4c   : > { %2364 = vst.msk [vmem:[#allocation4 + $0x198] sm:$0xff] %vm638_vm4, %v8295_v0 }
  0x4d   : > { %2365 = vst.msk [vmem:[#allocation4 + $0x1a0] sm:$0xff] %vm638_vm4, %v8295_v0 }
  0x4e   : > { %627 = vst [vmem:[#allocation1] ss:$2 sm:$0xff] %v589_v18  ;;  %v711_v18 = vld [vmem:[%s8464_s22 + $0x38] sm:$0xff]  ;;  %s14319_s22 = smov 48  }
  0x4f   : > { %629 = vst [vmem:[#allocation1 + $0x1] ss:$2 sm:$0xff] %v590_v19 }
  0x50   : > { %720 = vst.msk [vmem:[#allocation2 + $0x41] sm:$0xff] %vm638_vm4, %v707_v20  ;;  %v617_v20 = vld [vmem:[%s14582_s2 + $0x10] sm:$0xff] }
  0x51   : > { %717 = vst.msk [vmem:[#allocation2 + $0x11] sm:$0xff] %vm638_vm4, %v704_v21 }
  0x52   : > { %719 = vst.msk [vmem:[#allocation2 + $0x31] sm:$0xff] %vm638_vm4, %v706_v22 }
  0x53   : > { %721 = vst.msk [vmem:[#allocation2 + $0x51] sm:$0xff] %vm638_vm4, %v708_v23 }
  0x54   : > { %722 = vst.msk [vmem:[#allocation2 + $0x61] sm:$0xff] %vm638_vm4, %v709_v24  ;;  %v618_v24 = vld [vmem:[%s14582_s2 + $0x18] sm:$0xff] }
  0x55   : > { %723 = vst.msk [vmem:[#allocation2 + $0x71] sm:$0xff] %vm638_vm4, %v710_v27  ;;  %v621_v27 = vld [vmem:[%s14582_s2 + $0x30] sm:$0xff] }
  0x56   : > { %v634_v30 = vld.sshfl [vmem:[#allocation1] sm:$0xff pattern:$0x75316420]  ;;  %1074 = vst.msk [vmem:[#allocation3 + $0x8] sm:$0xff] %vm638_vm4, %v8579_v29 }
  0x57   : > { %678 = vmatpush.msra.mxu0 %v634_v30  ;;  %v8583_v31 = vld [vmem:[#allocation2 + $0x40] sm:$0xff]  ;;  %v734_v32 = vld [vmem:[#allocation2 + $0x48] sm:$0x3]  ;;  %724 = vst.msk [vmem:[#allocation2 + $0x81] sm:$0xff] %vm638_vm4, %v711_v18  ;;  %v622_v30 = vld [vmem:[%s14582_s2 + $0x38] sm:$0xff]  ;;  %s14644_s2 = smov 112  }
  0x58   : > { %8033 = vmatmul.msk.f32.vlgmr.msra.gmra.mxu0 %vm638_vm4, %v615_v28  ;;  %v782_v33 = vrot.slane %v8583_v31, 1  ;;  %v783_v34 = vrot.slane %v734_v32, 1  ;;  %749 = vst.msk [vmem:[#allocation3 + $0x60] sm:$0xff] %vm638_vm4, %v8583_v31  ;;  %v8589_v35 = vld [vmem:[#allocation2 + $0x10] sm:$0xff]  ;;  %v8591_v36 = vld [vmem:[#allocation2 + $0x18] sm:$0x3] }
  0x59   : > { %v773_v37 = vrot.slane %v8589_v35, 1  ;;  %v774_v38 = vrot.slane %v8591_v36, 1  ;;  %746 = vst.msk [vmem:[#allocation3 + $0x18] sm:$0xff] %vm638_vm4, %v8589_v35  ;;  %v8597_v39 = vld [vmem:[#allocation2 + $0x30] sm:$0xff]  ;;  %v732_v40 = vld [vmem:[#allocation2 + $0x38] sm:$0x3] }
  0x5a   : > { %v8600_v41 = vsel %vm769_vm3, %v782_v33, %v783_v34  ;;  %v779_v42 = vrot.slane %v8597_v39, 1  ;;  %v780_v43 = vrot.slane %v732_v40, 1  ;;  %748 = vst.msk [vmem:[#allocation3 + $0x48] sm:$0xff] %vm638_vm4, %v8597_v39  ;;  %v8605_v44 = vld [vmem:[#allocation2 + $0x50] sm:$0xff]  ;;  %v736_v45 = vld [vmem:[#allocation2 + $0x58] sm:$0x3] }
  0x5b   : > { %802 = vrot.lane.b32.xlu2 %v8600_v41, %s14404_s28  ;;  %v8610_v46 = vsel %vm769_vm3, %v773_v37, %v774_v38  ;;  %v785_v47 = vrot.slane %v8605_v44, 1  ;;  %v786_v48 = vrot.slane %v736_v45, 1  ;;  %750 = vst.msk [vmem:[#allocation3 + $0x78] sm:$0xff] %vm638_vm4, %v8605_v44  ;;  %v8615_v49 = vld [vmem:[#allocation2 + $0x60] sm:$0xff]  ;;  %v738_v50 = vld [vmem:[#allocation2 + $0x68] sm:$0x3] }
  0x5c   : > { %796 = vrot.lane.b32.xlu0 %v8610_v46, %s14404_s28  ;;  %v8620_v51 = vsel %vm769_vm3, %v779_v42, %v780_v43  ;;  %v788_v52 = vrot.slane %v8615_v49, 1  ;;  %v789_v53 = vrot.slane %v738_v50, 1  ;;  %751 = vst.msk [vmem:[#allocation3 + $0x90] sm:$0xff] %vm638_vm4, %v8615_v49  ;;  %v8625_v54 = vld [vmem:[#allocation2 + $0x70] sm:$0xff]  ;;  %v740_v55 = vld [vmem:[#allocation2 + $0x78] sm:$0x3] }
  0x5d   : > { %800 = vrot.lane.b32.xlu1 %v8620_v51, %s14404_s28  ;;  %752 = vst.msk [vmem:[#allocation3 + $0xa8] sm:$0xff] %vm638_vm4, %v8625_v54  ;;  %v837_v57 = vrot.slane %v8597_v39, 2  ;;  %v791_v58 = vrot.slane %v8625_v54, 1  ;;  %v792_v59 = vrot.slane %v740_v55, 1  ;;  %v838_v60 = vrot.slane %v732_v40, 2 }
  0x5e   : > { %v8637_v61 = vsel %vm769_vm3, %v785_v47, %v786_v48  ;;  %v846_v62 = vrot.slane %v8615_v49, 2  ;;  %v847_v63 = vrot.slane %v738_v50, 2  ;;  %v840_v2 = vrot.slane %v8583_v31, 2  ;;  %v741_v28 = vld [vmem:[#allocation2 + $0x80] sm:$0xff]  ;;  %2318 = vst.msk [vmem:[#allocation4 + $0x28] sm:$0x3] %vm2314_vm15, %v8295_v0 }
  0x5f   : > { %v8643_v5 = vsel %vm769_vm3, %v788_v52, %v789_v53  ;;  %v8646_v6 = vsel %vm827_vm2, %v837_v57, %v838_v60  ;;  %v841_v7 = vrot.slane %v734_v32, 2  ;;  %v843_v8 = vrot.slane %v8605_v44, 2  ;;  %v742_v32 = vld [vmem:[#allocation2 + $0x88] sm:$0x3]  ;;  %2315 = vst.msk [vmem:[#allocation4 + $0x10] sm:$0x3] %vm2314_vm15, %v8295_v0 }
  0x60   : > { %8034 = vmatmul.msk.f32.gmra.mxu0 %vm638_vm4, %v616_v56  ;;  %1075 = vst.msk [vmem:[#allocation3 + $0x20] sm:$0xff] %vm638_vm4, %v8646_v6  ;;  %v8652_v9 = vsel %vm827_vm2, %v846_v62, %v847_v63  ;;  %v844_v10 = vrot.slane %v736_v45, 2  ;;  %v849_v11 = vrot.slane %v8625_v54, 2  ;;  %v850_v12 = vrot.slane %v740_v55, 2  ;;  %v1239_v56 = vld [vmem:[#allocation2 + $0x8] sm:$0x3] }
  0x61   : > { %v8656_v14 = vsel %vm769_vm3, %v791_v58, %v792_v59  ;;  %1078 = vst.msk [vmem:[#allocation3 + $0x68] sm:$0xff] %vm638_vm4, %v8652_v9  ;;  %v8661_v15 = vsel %vm827_vm2, %v840_v2, %v841_v7  ;;  %v831_v21 = vrot.slane %v8589_v35, 2  ;;  %v832_v22 = vrot.slane %v8591_v36, 2 }
  0x62   : > { %1076 = vst.msk [vmem:[#allocation3 + $0x38] sm:$0xff] %vm638_vm4, %v8661_v15  ;;  %v8668_v16 = vsel %vm827_vm2, %v843_v8, %v844_v10  ;;  %v8676_v19 = vsel %vm827_vm2, %v849_v11, %v850_v12  ;;  %v956_v33 = vrot.slane %v741_v28, 2  ;;  %v957_v34 = vrot.slane %v742_v32, 2 }
  0x63   : > { %804 = vrot.lane.b32.xlu2 %v8637_v61, %s14404_s28  ;;  %1077 = vst.msk [vmem:[#allocation3 + $0x50] sm:$0xff] %vm638_vm4, %v8668_v16  ;;  %v833_v23 = vsel %vm827_vm2, %v831_v21, %v832_v22  ;;  %v920_v36 = vrot.slane %v741_v28, 1  ;;  %v921_v37 = vrot.slane %v742_v32, 1  ;;  %v1340_v12 = vrot.slane %v1239_v56, 2 }
  0x64   : > { %806 = vrot.lane.b32.xlu0 %v8643_v5, %s14404_s28  ;;  %1079 = vst.msk [vmem:[#allocation3 + $0x80] sm:$0xff] %vm638_vm4, %v8676_v19 }
  0x65   : > { %808 = vrot.lane.b32.xlu1 %v8656_v14, %s14404_s28  ;;  %v8753_v38 = vsel %vm769_vm3, %v920_v36, %v921_v37  ;;  %2321 = vst.msk [vmem:[#allocation4 + $0x40] sm:$0x3] %vm2314_vm15, %v8295_v0 }
  0x66   : > { %2324 = vst.msk [vmem:[#allocation4 + $0x58] sm:$0x3] %vm2314_vm15, %v8295_v0 }
  0x67   : > { %2327 = vst.msk [vmem:[#allocation4 + $0x70] sm:$0x3] %vm2314_vm15, %v8295_v0 }
  0x68   : > { %8035 = vmatmul.msk.f32.gmra.mxu0 %vm638_vm4, %v617_v20  ;;  %2330 = vst.msk [vmem:[#allocation4 + $0x88] sm:$0x3] %vm2314_vm15, %v8295_v0 }
  0x69   : > { %2333 = vst.msk [vmem:[#allocation4 + $0xa0] sm:$0x3] %vm2314_vm15, %v8295_v0 }
  0x6a   : > { %2336 = vst.msk [vmem:[#allocation4 + $0xb8] sm:$0x3] %vm2314_vm15, %v8295_v0 }
  0x6b   : > { %858 = vrot.lane.b32.xlu2 %v8646_v6, %s14408_s27  ;;  %2339 = vst.msk [vmem:[#allocation4 + $0xd0] sm:$0x3] %vm2314_vm15, %v8295_v0 }
  0x6c   : > { %854 = vrot.lane.b32.xlu0 %v833_v23, %s14408_s27  ;;  %2342 = vst.msk [vmem:[#allocation4 + $0xe8] sm:$0x3] %vm2314_vm15, %v8295_v0 }
  0x6d   : > { %856 = vrot.lane.b32.xlu1 %v8579_v29, %s14408_s27  ;;  %2345 = vst.msk [vmem:[#allocation4 + $0x100] sm:$0x3] %vm2314_vm15, %v8295_v0 }
  0x6e   : > { %2348 = vst.msk [vmem:[#allocation4 + $0x118] sm:$0x3] %vm2314_vm15, %v8295_v0 }
  0x6f   : > { %2351 = vst.msk [vmem:[#allocation4 + $0x130] sm:$0x3] %vm2314_vm15, %v8295_v0 }
  0x70   : > { %8036 = vmatmul.msk.f32.gmra.mxu0 %vm638_vm4, %v618_v24  ;;  %2354 = vst.msk [vmem:[#allocation4 + $0x148] sm:$0x3] %vm2314_vm15, %v8295_v0 }
  0x71   : > { %2357 = vst.msk [vmem:[#allocation4 + $0x160] sm:$0x3] %vm2314_vm15, %v8295_v0 }
  0x72   : > { %2360 = vst.msk [vmem:[#allocation4 + $0x178] sm:$0x3] %vm2314_vm15, %v8295_v0 }
  0x73   : > { %864 = vrot.lane.b32.xlu2 %v8652_v9, %s14408_s27  ;;  %2363 = vst.msk [vmem:[#allocation4 + $0x190] sm:$0x3] %vm2314_vm15, %v8295_v0 }
  0x74   : > { %860 = vrot.lane.b32.xlu0 %v8661_v15, %s14408_s27  ;;  %2366 = vst.msk [vmem:[#allocation4 + $0x1a8] sm:$0x3] %vm2314_vm15, %v8295_v0  ;;  %v2615_v0 = vld [vmem:[%s9356_s0 + $0x30] sm:$0xff]  ;;  %vm2399_vm15 = vcmask 523264  }
  0x75   : > { %862 = vrot.lane.b32.xlu1 %v8668_v16, %s14408_s27  ;;  %2653 = vst.msk [vmem:[#allocation4 + $0x61] sm:$0xff] %vm2646_vm1, %v2615_v0 }
  0x77   : > { %v853_v43 = vpop.permute.xlu2 %852 }
  0x78   : > { %8037 = vmatmul.msk.f32.gmra.mxu0 %vm638_vm4, %v619_v25 }
  0x7b   : > { %888 = vrot.lane.b32.xlu2 %v8488_v13, %s14319_s22 }
  0x7c   : > { %866 = vrot.lane.b32.xlu0 %v8676_v19, %s14408_s27 }
  0x7d   : > { %886 = vrot.lane.b32.xlu1 %v8589_v35, %s14319_s22  ;;  %v958_v35 = vsel %vm827_vm2, %v956_v33, %v957_v34 }
  0x7e   : > { %1080 = vst.msk [vmem:[#allocation3 + $0x98] sm:$0xff] %vm638_vm4, %v958_v35 }
  0x80   : > { %8038 = vmatmul.msk.f32.gmra.mxu0 %vm638_vm4, %v620_v26  ;;  %v8858_v26 = vld [vmem:[#allocation3 + $0x20] sm:$0xff] }
  0x83   : > { %894 = vrot.lane.b32.xlu2 %v8605_v44, %s14319_s22 }
  0x84   : > { %890 = vrot.lane.b32.xlu0 %v8597_v39, %s14319_s22 }
  0x85   : > { %892 = vrot.lane.b32.xlu1 %v8583_v31, %s14319_s22 }
  0x88   : > { %8039 = vmatmul.msk.f32.gmra.mxu0 %vm638_vm4, %v621_v27  ;;  %v1341_v27 = vsel %vm827_vm2, %v828_v3, %v1340_v12 }
  0x8b   : > { %900 = vrot.lane.b32.xlu2 %v741_v28, %s14319_s22 }
  0x8c   : > { %896 = vrot.lane.b32.xlu0 %v8615_v49, %s14319_s22 }
  0x8d   : > { %898 = vrot.lane.b32.xlu1 %v8625_v54, %s14319_s22  ;;  %s14585_s22 = smov 96  }
  0x8f   : > { %v795_v40 = vpop.permute.xlu0 %794 }
  0x90   : > { %8040 = vmatmul.msk.f32.gmra.mxu0 %vm638_vm4, %v622_v30  ;;  %819 = vst.msk [vmem:[#allocation3] sm:$0xff] %vm818_vm5, %v795_v40 }
  0x91   : > { %877 = vst.msk [vmem:[#allocation3] sm:$0xff] %vm876_vm6, %v853_v43  ;;  %v8885_v43 = vld [vmem:[#allocation3 + $0x38] sm:$0xff] }
  0x93   : > { %927 = vrot.lane.b32.xlu2 %v8620_v51, %s14315_s19 }
  0x94   : > { %923 = vrot.lane.b32.xlu0 %v8610_v46, %s14315_s19  ;;  %v8786_v46 = vld [vmem:[#allocation2 + $0x90] sm:$0xff] }
  0x95   : > { %925 = vrot.lane.b32.xlu1 %v8498_v17, %s14315_s19  ;;  %v1063_v47 = vrot.slane %v8786_v46, 2  ;;  %v1027_v59 = vrot.slane %v8786_v46, 1 }
  0x9b   : > { %933 = vrot.lane.b32.xlu2 %v8643_v5, %s14315_s19 }
  0x9c   : > { %929 = vrot.lane.b32.xlu0 %v8600_v41, %s14315_s19 }
  0x9d   : > { %931 = vrot.lane.b32.xlu1 %v8637_v61, %s14315_s19 }
  0xa3   : > { %959 = vrot.lane.b32.xlu2 %v833_v23, %s14317_s1 }
  0xa4   : > { %935 = vrot.lane.b32.xlu0 %v8656_v14, %s14315_s19  ;;  %v799_v42 = vpop.permute.xlu1 %798 }
  0xa5   : > { %937 = vrot.lane.b32.xlu1 %v8753_v38, %s14315_s19  ;;  %821 = vst.msk [vmem:[#allocation3 + $0x30] sm:$0xff] %vm818_vm5, %v799_v42 }
  0xab   : > { %965 = vrot.lane.b32.xlu2 %v8661_v15, %s14317_s1 }
  0xac   : > { %961 = vrot.lane.b32.xlu0 %v8579_v29, %s14317_s1 }
  0xad   : > { %963 = vrot.lane.b32.xlu1 %v8646_v6, %s14317_s1  ;;  %v8825_v6 = vld [vmem:[#allocation3 + $0x8] sm:$0xff] }
  0xb3   : > { %971 = vrot.lane.b32.xlu2 %v8676_v19, %s14317_s1 }
  0xb4   : > { %967 = vrot.lane.b32.xlu0 %v8668_v16, %s14317_s1 }
  0xb5   : > { %v803_v45 = vpop.permute.xlu2 %802  ;;  %969 = vrot.lane.b32.xlu1 %v8652_v9, %s14317_s1 }
  0xb6   : > { %823 = vst.msk [vmem:[#allocation3 + $0x60] sm:$0xff] %vm818_vm5, %v803_v45 }
  0xbb   : > { %995 = vrot.lane.b32.xlu2 %v8597_v39, %s14321_s20 }
  0xbc   : > { %973 = vrot.lane.b32.xlu0 %v958_v35, %s14317_s1  ;;  %s14641_s1 = smov 64  }
  0xbd   : > { %v805_v29 = vpop.permute.xlu2 %804  ;;  %993 = vrot.lane.b32.xlu1 %v8488_v13, %s14321_s20  ;;  %v744_v13 = vld [vmem:[#allocation2 + $0x98] sm:$0x3] }
  0xbe   : > { %824 = vst.msk [vmem:[#allocation3 + $0x78] sm:$0xff] %vm818_vm5, %v805_v29  ;;  %v1064_v48 = vrot.slane %v744_v13, 2  ;;  %v1028_v62 = vrot.slane %v744_v13, 1 }
  0xc0   : > { %v1065_v50 = vsel %vm827_vm2, %v1063_v47, %v1064_v48  ;;  %v1029_v8 = vsel %vm769_vm3, %v1027_v59, %v1028_v62 }
  0xc1   : > { %1081 = vst.msk [vmem:[#allocation3 + $0xb0] sm:$0xff] %vm638_vm4, %v1065_v50 }
  0xc3   : > { %1001 = vrot.lane.b32.xlu2 %v8615_v49, %s14321_s20 }
  0xc4   : > { %997 = vrot.lane.b32.xlu0 %v8583_v31, %s14321_s20 }
  0xc5   : > { %v859_v39 = vpop.permute.xlu2 %858  ;;  %999 = vrot.lane.b32.xlu1 %v8605_v44, %s14321_s20 }
  0xcb   : > { %1007 = vrot.lane.b32.xlu2 %v8786_v46, %s14321_s20 }
  0xcc   : > { %1003 = vrot.lane.b32.xlu0 %v8625_v54, %s14321_s20 }
  0xcd   : > { %v865_v31 = vpop.permute.xlu2 %864  ;;  %1005 = vrot.lane.b32.xlu1 %v741_v28, %s14321_s20 }
  0xce   : > { %v797_v44 = vpop.permute.xlu0 %796 }
  0xcf   : > { %820 = vst.msk [vmem:[#allocation3 + $0x18] sm:$0xff] %vm818_vm5, %v797_v44  ;;  %v801_v49 = vpop.permute.xlu1 %800 }
  0xd0   : > { %822 = vst.msk [vmem:[#allocation3 + $0x48] sm:$0xff] %vm818_vm5, %v801_v49 }
  0xd1   : > { %880 = vst.msk [vmem:[#allocation3 + $0x48] sm:$0xff] %vm876_vm6, %v859_v39 }
  0xd3   : > { %1034 = vrot.lane.b32.xlu2 %v8600_v41, %s14406_s21 }
  0xd4   : > { %1030 = vrot.lane.b32.xlu0 %v8498_v17, %s14406_s21  ;;  %v1283_v17 = vrot.slane %v1239_v56, 1 }
  0xd5   : > { %v889_v52 = vpop.permute.xlu2 %888  ;;  %v680_v53 = vpop.f32.mrf.mxu0  ;;  %1032 = vrot.lane.b32.xlu1 %v8620_v51, %s14406_s21 }
  0xd6   : > { %v807_v54 = vpop.permute.xlu0 %806  ;;  %1230 = vst.msk [vmem:[#allocation2 + $0x11] sm:$0xff] %vm593_vm0, %v680_v53 }
  0xd7   : > { %825 = vst.msk [vmem:[#allocation3 + $0x90] sm:$0xff] %vm818_vm5, %v807_v54  ;;  %v809_v55 = vpop.permute.xlu1 %808 }
  0xd8   : > { %826 = vst.msk [vmem:[#allocation3 + $0xa8] sm:$0xff] %vm818_vm5, %v809_v55  ;;  %v8911_v55 = vld [vmem:[#allocation3 + $0x50] sm:$0xff] }
  0xd9   : > { %883 = vst.msk [vmem:[#allocation3 + $0x90] sm:$0xff] %vm876_vm6, %v865_v31 }
  0xdb   : > { %1040 = vrot.lane.b32.xlu2 %v8656_v14, %s14406_s21 }
  0xdc   : > { %1036 = vrot.lane.b32.xlu0 %v8637_v61, %s14406_s21 }
  0xdd   : > { %v895_v41 = vpop.permute.xlu2 %894  ;;  %v683_v51 = vpop.f32.mrf.mxu0  ;;  %1038 = vrot.lane.b32.xlu1 %v8643_v5, %s14406_s21  ;;  %v8819_v57 = vld [vmem:[#allocation2 + $0x10] sm:$0xff]  ;;  %v1241_v58 = vld [vmem:[#allocation2 + $0x18] sm:$0x3]  ;;  %v1284_v5 = vsel %vm769_vm3, %v770_v4, %v1283_v17 }
  0xde   : > { %v855_v60 = vpop.permute.xlu0 %854  ;;  %1231 = vst.msk [vmem:[#allocation2 + $0x21] sm:$0xff] %vm593_vm0, %v683_v51  ;;  %v1285_v63 = vrot.slane %v8819_v57, 1  ;;  %v1286_v2 = vrot.slane %v1241_v58, 1  ;;  %v1342_v9 = vrot.slane %v8819_v57, 2  ;;  %v1343_v10 = vrot.slane %v1241_v58, 2 }
  0xdf   : > { %878 = vst.msk [vmem:[#allocation3 + $0x18] sm:$0xff] %vm876_vm6, %v855_v60  ;;  %v857_v61 = vpop.permute.xlu1 %856 }
  0xe0   : > { %879 = vst.msk [vmem:[#allocation3 + $0x30] sm:$0xff] %vm876_vm6, %v857_v61  ;;  %v1287_v7 = vsel %vm769_vm3, %v1285_v63, %v1286_v2  ;;  %v8850_v23 = vsel %vm827_vm2, %v1342_v9, %v1343_v10 }
  0xe1   : > { %912 = vst.msk [vmem:[#allocation3 + $0x18] sm:$0xff] %vm910_vm7, %v889_v52 }
  0xe2   : > { %1442 = vst.msk [vmem:[#allocation3 + $0x8] sm:$0xff] %vm593_vm0, %v1287_v7 }
  0xe3   : > { %1306 = vrot.lane.b32.xlu2 %v1284_v5, %s14408_s27 }
  0xe4   : > { %1042 = vrot.lane.b32.xlu0 %v8753_v38, %s14406_s21 }
  0xe5   : > { %v901_v4 = vpop.permute.xlu2 %900  ;;  %v686_v11 = vpop.f32.mrf.mxu0  ;;  %1044 = vrot.lane.b32.xlu1 %v1029_v8, %s14406_s21  ;;  %v8842_v14 = vld [vmem:[#allocation2 + $0x20] sm:$0xff]  ;;  %v1243_v15 = vld [vmem:[#allocation2 + $0x28] sm:$0x3] }
  0xe6   : > { %v861_v16 = vpop.permute.xlu0 %860  ;;  %1232 = vst.msk [vmem:[#allocation2 + $0x31] sm:$0xff] %vm593_vm0, %v686_v11  ;;  %v1345_v18 = vrot.slane %v8842_v14, 2  ;;  %v1346_v19 = vrot.slane %v1243_v15, 2  ;;  %v1288_v20 = vrot.slane %v8842_v14, 1  ;;  %v1289_v21 = vrot.slane %v1243_v15, 1  ;;  %v8937_v8 = vld [vmem:[#allocation3 + $0x68] sm:$0xff] }
  0xe7   : > { %881 = vst.msk [vmem:[#allocation3 + $0x60] sm:$0xff] %vm876_vm6, %v861_v16  ;;  %v863_v22 = vpop.permute.xlu1 %862 }
  0xe8   : > { %882 = vst.msk [vmem:[#allocation3 + $0x78] sm:$0xff] %vm876_vm6, %v863_v22  ;;  %v8853_v24 = vsel %vm827_vm2, %v1345_v18, %v1346_v19  ;;  %v8856_v25 = vsel %vm769_vm3, %v1288_v20, %v1289_v21 }
  0xe9   : > { %915 = vst.msk [vmem:[#allocation3 + $0x60] sm:$0xff] %vm910_vm7, %v895_v41 }
  0xea   : > { %1565 = vst.msk [vmem:[#allocation3 + $0x10] sm:$0xff] %vm593_vm0, %v8853_v24 }
  0xeb   : > { %1365 = vrot.lane.b32.xlu2 %v8850_v23, %s14315_s19  ;;  %1443 = vst.msk [vmem:[#allocation3 + $0x20] sm:$0xff] %vm593_vm0, %v8856_v25 }
  0xec   : > { %1308 = vrot.lane.b32.xlu0 %v1287_v7, %s14408_s27 }
  0xed   : > { %v928_v28 = vpop.permute.xlu2 %927  ;;  %v689_v30 = vpop.f32.mrf.mxu0  ;;  %1363 = vrot.lane.b32.xlu1 %v1341_v27, %s14315_s19  ;;  %v8872_v32 = vld [vmem:[#allocation2 + $0x30] sm:$0xff]  ;;  %v1245_v33 = vld [vmem:[#allocation2 + $0x38] sm:$0x3]  ;;  %v8963_v27 = vld [vmem:[#allocation3 + $0x80] sm:$0xff] }
  0xee   : > { %v867_v34 = vpop.permute.xlu0 %866  ;;  %1233 = vst.msk [vmem:[#allocation2 + $0x41] sm:$0xff] %vm593_vm0, %v689_v30  ;;  %v1291_v3 = vrot.slane %v8872_v32, 1  ;;  %v1292_v35 = vrot.slane %v1245_v33, 1  ;;  %v1348_v36 = vrot.slane %v8872_v32, 2  ;;  %v1349_v37 = vrot.slane %v1245_v33, 2 }
  0xef   : > { %884 = vst.msk [vmem:[#allocation3 + $0xa8] sm:$0xff] %vm876_vm6, %v867_v34  ;;  %v887_v38 = vpop.permute.xlu1 %886 }
  0xf0   : > { %911 = vst.msk [vmem:[#allocation3] sm:$0xff] %vm910_vm7, %v887_v38  ;;  %v8880_v40 = vsel %vm769_vm3, %v1291_v3, %v1292_v35  ;;  %v8883_v42 = vsel %vm827_vm2, %v1348_v36, %v1349_v37 }
  0xf1   : > { %918 = vst.msk [vmem:[#allocation3 + $0xa8] sm:$0xff] %vm910_vm7, %v901_v4 }
  0xf2   : > { %1566 = vst.msk [vmem:[#allocation3 + $0x28] sm:$0xff] %vm593_vm0, %v8883_v42 }
  0xf3   : > { %1312 = vrot.lane.b32.xlu2 %v8880_v40, %s14408_s27  ;;  %1444 = vst.msk [vmem:[#allocation3 + $0x38] sm:$0xff] %vm593_vm0, %v8880_v40 }
  0xf4   : > { %1367 = vrot.lane.b32.xlu0 %v8853_v24, %s14315_s19 }
  0xf5   : > { %v934_v45 = vpop.permute.xlu2 %933  ;;  %v692_v29 = vpop.f32.mrf.mxu0  ;;  %1310 = vrot.lane.b32.xlu1 %v8856_v25, %s14408_s27  ;;  %v8898_v39 = vld [vmem:[#allocation2 + $0x40] sm:$0xff]  ;;  %v1247_v13 = vld [vmem:[#allocation2 + $0x48] sm:$0x3] }
  0xf6   : > { %v891_v48 = vpop.permute.xlu0 %890  ;;  %1234 = vst.msk [vmem:[#allocation2 + $0x51] sm:$0xff] %vm593_vm0, %v692_v29  ;;  %v1351_v50 = vrot.slane %v8898_v39, 2  ;;  %v1352_v31 = vrot.slane %v1247_v13, 2  ;;  %v1294_v44 = vrot.slane %v8898_v39, 1  ;;  %v1295_v49 = vrot.slane %v1247_v13, 1  ;;  %v1113_v29 = vld [vmem:[%s14583_s3 + $0x78] sm:$0xff] }
  0xf7   : > { %913 = vst.msk [vmem:[#allocation3 + $0x30] sm:$0xff] %vm910_vm7, %v891_v48  ;;  %v893_v52 = vpop.permute.xlu1 %892  ;;  %v1112_v13 = vld [vmem:[%s14583_s3 + $0x70] sm:$0xff]  ;;  %1140 = vmatpush.msra.mxu1 %v1113_v29  ;;  %v1098_v29 = vld [vmem:[%s14583_s3] sm:$0xff] }
  0xf8   : > { %914 = vst.msk [vmem:[#allocation3 + $0x48] sm:$0xff] %vm910_vm7, %v893_v52  ;;  %v8906_v53 = vsel %vm827_vm2, %v1351_v50, %v1352_v31  ;;  %v8909_v54 = vsel %vm769_vm3, %v1294_v44, %v1295_v49  ;;  %v8995_v31 = vld [vmem:[#allocation3 + $0x98] sm:$0xff]  ;;  %v1111_v44 = vld [vmem:[%s14583_s3 + $0x68] sm:$0xff] }
  0xf9   : > { %1567 = vst.msk [vmem:[#allocation3 + $0x40] sm:$0xff] %vm593_vm0, %v8906_v53  ;;  %1141 = vmatpush.msra.mxu1 %v1112_v13  ;;  %v1110_v49 = vld [vmem:[%s14583_s3 + $0x60] sm:$0xff] }
  0xfa   : > { %950 = vst.msk [vmem:[#allocation3 + $0x30] sm:$0xff] %vm947_vm8, %v928_v28 }
  0xfb   : > { %1401 = vrot.lane.b32.xlu2 %v8872_v32, %s14321_s20  ;;  %1445 = vst.msk [vmem:[#allocation3 + $0x50] sm:$0xff] %vm593_vm0, %v8909_v54  ;;  %1142 = vmatpush.msra.mxu1 %v1111_v44 }
  0xfc   : > { %1397 = vrot.lane.b32.xlu0 %v8819_v57, %s14321_s20 }
  0xfd   : > { %v960_v56 = vpop.permute.xlu2 %959  ;;  %v695_v17 = vpop.f32.mrf.mxu0  ;;  %1369 = vrot.lane.b32.xlu1 %v8883_v42, %s14315_s19  ;;  %v8924_v41 = vld [vmem:[#allocation2 + $0x50] sm:$0xff]  ;;  %v1249_v51 = vld [vmem:[#allocation2 + $0x58] sm:$0x3]  ;;  %1143 = vmatpush.msra.mxu1 %v1110_v49 }
  0xfe   : > { %v897_v58 = vpop.permute.xlu0 %896  ;;  %1235 = vst.msk [vmem:[#allocation2 + $0x61] sm:$0xff] %vm593_vm0, %v695_v17  ;;  %v1354_v60 = vrot.slane %v8924_v41, 2  ;;  %v1355_v62 = vrot.slane %v1249_v51, 2  ;;  %v1297_v63 = vrot.slane %v8924_v41, 1  ;;  %v1298_v2 = vrot.slane %v1249_v51, 1 }
  0xff   : > { %916 = vst.msk [vmem:[#allocation3 + $0x78] sm:$0xff] %vm910_vm7, %v897_v58  ;;  %v899_v61 = vpop.permute.xlu1 %898 }
 0x100   : > { %917 = vst.msk [vmem:[#allocation3 + $0x90] sm:$0xff] %vm910_vm7, %v899_v61  ;;  %v8932_v5 = vsel %vm827_vm2, %v1354_v60, %v1355_v62  ;;  %v8935_v7 = vsel %vm769_vm3, %v1297_v63, %v1298_v2  ;;  %v1109_v61 = vld [vmem:[%s14583_s3 + $0x58] sm:$0xff] }
 0x101   : > { %953 = vst.msk [vmem:[#allocation3 + $0x78] sm:$0xff] %vm947_vm8, %v934_v45  ;;  %1144 = vmatpush.msra.mxu1 %v1109_v61  ;;  %v1605_v61 = vld [vmem:[%s14584_s4 + $0x40] sm:$0xff] }
 0x102   : > { %1568 = vst.msk [vmem:[#allocation3 + $0x58] sm:$0xff] %vm593_vm0, %v8932_v5 }
 0x103   : > { %1371 = vrot.lane.b32.xlu2 %v8906_v53, %s14315_s19  ;;  %1446 = vst.msk [vmem:[#allocation3 + $0x68] sm:$0xff] %vm593_vm0, %v8935_v7 }
 0x104   : > { %1314 = vrot.lane.b32.xlu0 %v8909_v54, %s14408_s27 }
 0x105   : > { %v966_v9 = vpop.permute.xlu2 %965  ;;  %1399 = vrot.lane.b32.xlu1 %v8842_v14, %s14321_s20  ;;  %v8950_v10 = vld [vmem:[#allocation2 + $0x60] sm:$0xff]  ;;  %v1251_v4 = vld [vmem:[#allocation2 + $0x68] sm:$0x3]  ;;  %v698_v11 = vpop.f32.mrf.mxu0 }
 0x106   : > { %v924_v12 = vpop.permute.xlu0 %923  ;;  %v1300_v15 = vrot.slane %v8950_v10, 1  ;;  %v1301_v16 = vrot.slane %v1251_v4, 1  ;;  %1236 = vst.msk [vmem:[#allocation2 + $0x71] sm:$0xff] %vm593_vm0, %v698_v11  ;;  %v1357_v18 = vrot.slane %v8950_v10, 2  ;;  %v1358_v19 = vrot.slane %v1251_v4, 2 }
 0x107   : > { %948 = vst.msk [vmem:[#allocation3] sm:$0xff] %vm947_vm8, %v924_v12  ;;  %v926_v20 = vpop.permute.xlu1 %925  ;;  %v1107_v12 = vld [vmem:[%s14583_s3 + $0x48] sm:$0xff] }
 0x108   : > { %949 = vst.msk [vmem:[#allocation3 + $0x18] sm:$0xff] %vm947_vm8, %v926_v20  ;;  %v8958_v21 = vsel %vm769_vm3, %v1300_v15, %v1301_v16  ;;  %v8961_v22 = vsel %vm827_vm2, %v1357_v18, %v1358_v19  ;;  %v9036_v15 = vld [vmem:[#allocation3 + $0xb0] sm:$0xff]  ;;  %v1106_v16 = vld [vmem:[%s14583_s3 + $0x40] sm:$0xff] }
 0x109   : > { %1569 = vst.msk [vmem:[#allocation3 + $0x70] sm:$0xff] %vm593_vm0, %v8961_v22 }
 0x10a   : > { %984 = vst.msk [vmem:[#allocation3] sm:$0xff] %vm983_vm9, %v960_v56 }
 0x10b   : > { %1318 = vrot.lane.b32.xlu2 %v8958_v21, %s14408_s27  ;;  %1447 = vst.msk [vmem:[#allocation3 + $0x80] sm:$0xff] %vm593_vm0, %v8958_v21 }
 0x10c   : > { %1373 = vrot.lane.b32.xlu0 %v8932_v5, %s14315_s19 }
 0x10d   : > { %v972_v28 = vpop.permute.xlu2 %971  ;;  %1316 = vrot.lane.b32.xlu1 %v8935_v7, %s14408_s27  ;;  %v8976_v30 = vld [vmem:[#allocation2 + $0x70] sm:$0xff]  ;;  %v1253_v33 = vld [vmem:[#allocation2 + $0x78] sm:$0x3]  ;;  %v701_v34 = vpop.f32.mrf.mxu0 }
 0x10e   : > { %v930_v3 = vpop.permute.xlu0 %929  ;;  %v1360_v35 = vrot.slane %v8976_v30, 2  ;;  %v1361_v36 = vrot.slane %v1253_v33, 2  ;;  %v1303_v37 = vrot.slane %v8976_v30, 1  ;;  %v1304_v38 = vrot.slane %v1253_v33, 1  ;;  %1237 = vst.msk [vmem:[#allocation2 + $0x81] sm:$0xff] %vm593_vm0, %v701_v34  ;;  %v1104_v33 = vld [vmem:[%s14583_s3 + $0x30] sm:$0xff] }
 0x10f   : > { %951 = vst.msk [vmem:[#allocation3 + $0x48] sm:$0xff] %vm947_vm8, %v930_v3  ;;  %v932_v45 = vpop.permute.xlu1 %931  ;;  %v1103_v34 = vld [vmem:[%s14583_s3 + $0x28] sm:$0xff]  ;;  %v1102_v3 = vld [vmem:[%s14583_s3 + $0x20] sm:$0xff] }
 0x110   : > { %952 = vst.msk [vmem:[#allocation3 + $0x60] sm:$0xff] %vm947_vm8, %v932_v45  ;;  %v8990_v48 = vsel %vm827_vm2, %v1360_v35, %v1361_v36  ;;  %v8993_v50 = vsel %vm769_vm3, %v1303_v37, %v1304_v38  ;;  %v1100_v38 = vld [vmem:[%s14583_s3 + $0x10] sm:$0xff]  ;;  %v1099_v45 = vld [vmem:[%s14583_s3 + $0x8] sm:$0xff] }
 0x111   : > { %1570 = vst.msk [vmem:[#allocation3 + $0x88] sm:$0xff] %vm593_vm0, %v8990_v48 }
 0x112   : > { %987 = vst.msk [vmem:[#allocation3 + $0x48] sm:$0xff] %vm983_vm9, %v966_v9  ;;  %v1108_v9 = vld [vmem:[%s14583_s3 + $0x50] sm:$0xff] }
 0x113   : > { %1407 = vrot.lane.b32.xlu2 %v8950_v10, %s14321_s20  ;;  %1448 = vst.msk [vmem:[#allocation3 + $0x98] sm:$0xff] %vm593_vm0, %v8993_v50  ;;  %1145 = vmatpush.msra.mxu1 %v1108_v9 }
 0x114   : > { %1403 = vrot.lane.b32.xlu0 %v8898_v39, %s14321_s20 }
 0x115   : > { %v996_v52 = vpop.permute.xlu2 %995  ;;  %1375 = vrot.lane.b32.xlu1 %v8961_v22, %s14315_s19  ;;  %v9014_v56 = vld [vmem:[#allocation2 + $0x80] sm:$0xff]  ;;  %v1255_v17 = vld [vmem:[#allocation2 + $0x88] sm:$0x3]  ;;  %1146 = vmatpush.msra.mxu1 %v1107_v12  ;;  %v1604_v12 = vld [vmem:[%s14584_s4 + $0x38] sm:$0xff] }
 0x116   : > { %v936_v51 = vpop.permute.xlu0 %935  ;;  %v1450_v58 = vrot.slane %v9014_v56, 2  ;;  %v1451_v60 = vrot.slane %v1255_v17, 2  ;;  %v1431_v62 = vrot.slane %v9014_v56, 1  ;;  %v1432_v63 = vrot.slane %v1255_v17, 1 }
 0x117   : > { %954 = vst.msk [vmem:[#allocation3 + $0x90] sm:$0xff] %vm947_vm8, %v936_v51  ;;  %v938_v2 = vpop.permute.xlu1 %937  ;;  %1147 = vmatpush.msra.mxu1 %v1106_v16  ;;  %v1603_v16 = vld [vmem:[%s14584_s4 + $0x30] sm:$0xff] }
 0x118   : > { %955 = vst.msk [vmem:[#allocation3 + $0xa8] sm:$0xff] %vm947_vm8, %v938_v2  ;;  %v9027_v4 = vsel %vm827_vm2, %v1450_v58, %v1451_v60  ;;  %v9030_v11 = vsel %vm769_vm3, %v1431_v62, %v1432_v63  ;;  %v1608_v62 = vld [vmem:[%s14584_s4 + $0x58] sm:$0xff]  ;;  %v1607_v63 = vld [vmem:[%s14584_s4 + $0x50] sm:$0xff]  ;;  %v1606_v2 = vld [vmem:[%s14584_s4 + $0x48] sm:$0xff] }
 0x119   : > { %990 = vst.msk [vmem:[#allocation3 + $0x90] sm:$0xff] %vm983_vm9, %v972_v28  ;;  %v1105_v28 = vld [vmem:[%s14583_s3 + $0x38] sm:$0xff] }
 0x11a   : > { %1571 = vst.msk [vmem:[#allocation3 + $0xa0] sm:$0xff] %vm593_vm0, %v9027_v4  ;;  %1148 = vmatpush.msra.mxu1 %v1105_v28 }
 0x11b   : > { %1377 = vrot.lane.b32.xlu2 %v8990_v48, %s14315_s19  ;;  %1449 = vst.msk [vmem:[#allocation3 + $0xb0] sm:$0xff] %vm593_vm0, %v9030_v11 }
 0x11c   : > { %1320 = vrot.lane.b32.xlu0 %v8993_v50, %s14408_s27  ;;  %1149 = vmatpush.msra.mxu1 %v1104_v33 }
 0x11d   : > { %v1002_v18 = vpop.permute.xlu2 %1001  ;;  %1405 = vrot.lane.b32.xlu1 %v8924_v41, %s14321_s20 }
 0x11e   : > { %v962_v19 = vpop.permute.xlu0 %961  ;;  %1150 = vmatpush.msra.mxu1 %v1103_v34 }
 0x11f   : > { %985 = vst.msk [vmem:[#allocation3 + $0x18] sm:$0xff] %vm983_vm9, %v962_v19  ;;  %v964_v20 = vpop.permute.xlu1 %963  ;;  %v1602_v19 = vld [vmem:[%s14584_s4 + $0x28] sm:$0xff] }
 0x120   : > { %986 = vst.msk [vmem:[#allocation3 + $0x30] sm:$0xff] %vm983_vm9, %v964_v20  ;;  %1151 = vmatpush.msra.mxu1 %v1102_v3  ;;  %v1601_v20 = vld [vmem:[%s14584_s4 + $0x20] sm:$0xff] }
 0x121   : > { %1019 = vst.msk [vmem:[#allocation3 + $0x18] sm:$0xff] %vm1017_vm10, %v996_v52  ;;  %v1612_v52 = vld [vmem:[%s14584_s4 + $0x78] sm:$0xff] }
 0x122   : > { %1657 = vmatpush.msra.mxu3 %v1612_v52 }
 0x123   : > { %1453 = vrot.lane.b32.xlu2 %v8850_v23, %s14408_s27  ;;  %v1101_v23 = vld [vmem:[%s14583_s3 + $0x18] sm:$0xff] }
 0x124   : > { %1409 = vrot.lane.b32.xlu0 %v8976_v30, %s14321_s20  ;;  %1152 = vmatpush.msra.mxu1 %v1101_v23 }
 0x125   : > { %v1008_v35 = vpop.permute.xlu2 %1007  ;;  %1411 = vrot.lane.b32.xlu1 %v9014_v56, %s14321_s20 }
 0x126   : > { %v968_v36 = vpop.permute.xlu0 %967  ;;  %1153 = vmatpush.msra.mxu1 %v1100_v38 }
 0x127   : > { %988 = vst.msk [vmem:[#allocation3 + $0x60] sm:$0xff] %vm983_vm9, %v968_v36  ;;  %v970_v37 = vpop.permute.xlu1 %969  ;;  %v1599_v36 = vld [vmem:[%s14584_s4 + $0x10] sm:$0xff] }
 0x128   : > { %989 = vst.msk [vmem:[#allocation3 + $0x78] sm:$0xff] %vm983_vm9, %v970_v37  ;;  %1154 = vmatpush.msra.mxu1 %v1099_v45  ;;  %v1598_v37 = vld [vmem:[%s14584_s4 + $0x8] sm:$0xff] }
 0x129   : > { %1022 = vst.msk [vmem:[#allocation3 + $0x60] sm:$0xff] %vm1017_vm10, %v1002_v18 }
 0x12a   : > { %1155 = vmatpush.msra.mxu1 %v1098_v29  ;;  %v1114_v29 = vld [vmem:[%s14583_s3 + $0x80] sm:$0xff] }
 0x12b   : > { %1459 = vrot.lane.b32.xlu2 %v8906_v53, %s14408_s27 }
 0x12c   : > { %1455 = vrot.lane.b32.xlu0 %v8853_v24, %s14408_s27 }
 0x12d   : > { %v1035_v13 = vpop.permute.xlu2 %1034  ;;  %1457 = vrot.lane.b32.xlu1 %v8883_v42, %s14408_s27 }
 0x12e   : > { %v974_v44 = vpop.permute.xlu0 %973 }
 0x12f   : > { %991 = vst.msk [vmem:[#allocation3 + $0xa8] sm:$0xff] %vm983_vm9, %v974_v44  ;;  %v994_v49 = vpop.permute.xlu1 %993 }
 0x130   : > { %1018 = vst.msk [vmem:[#allocation3] sm:$0xff] %vm1017_vm10, %v994_v49 }
 0x131   : > { %1025 = vst.msk [vmem:[#allocation3 + $0xa8] sm:$0xff] %vm1017_vm10, %v1008_v35  ;;  %v1600_v35 = vld [vmem:[%s14584_s4 + $0x18] sm:$0xff] }
 0x133   : > { %1465 = vrot.lane.b32.xlu2 %v8990_v48, %s14408_s27  ;;  %v1611_v48 = vld [vmem:[%s14584_s4 + $0x70] sm:$0xff] }
 0x134   : > { %1461 = vrot.lane.b32.xlu0 %v8932_v5, %s14408_s27  ;;  %v1610_v5 = vld [vmem:[%s14584_s4 + $0x68] sm:$0xff]  ;;  %1658 = vmatpush.msra.mxu3 %v1611_v48 }
 0x135   : > { %v1041_v24 = vpop.permute.xlu2 %1040  ;;  %1463 = vrot.lane.b32.xlu1 %v8961_v22, %s14408_s27  ;;  %v1609_v22 = vld [vmem:[%s14584_s4 + $0x60] sm:$0xff] }
 0x136   : > { %v998_v42 = vpop.permute.xlu0 %997  ;;  %1659 = vmatpush.msra.mxu3 %v1610_v5 }
 0x137   : > { %1020 = vst.msk [vmem:[#allocation3 + $0x30] sm:$0xff] %vm1017_vm10, %v998_v42  ;;  %v1000_v53 = vpop.permute.xlu1 %999 }
 0x138   : > { %1057 = vst.msk [vmem:[#allocation3 + $0x30] sm:$0xff] %vm1054_vm11, %v1035_v13  ;;  %1660 = vmatpush.msra.mxu3 %v1609_v22  ;;  %v1257_v13 = vld [vmem:[#allocation2 + $0x98] sm:$0x3] }
 0x139   : > { %1021 = vst.msk [vmem:[#allocation3 + $0x48] sm:$0xff] %vm1017_vm10, %v1000_v53 }
 0x13a   : > { %1661 = vmatpush.msra.mxu3 %v1608_v62 }
 0x13b   : > { %1488 = vrot.lane.b32.xlu2 %v8872_v32, %s14315_s19 }
 0x13c   : > { %1467 = vrot.lane.b32.xlu0 %v9027_v4, %s14408_s27  ;;  %1662 = vmatpush.msra.mxu3 %v1607_v63 }
 0x13d   : > { %v1307_v17 = vpop.permute.xlu2 %1306  ;;  %1486 = vrot.lane.b32.xlu1 %v8842_v14, %s14315_s19 }
 0x13e   : > { %v1004_v51 = vpop.permute.xlu0 %1003  ;;  %1663 = vmatpush.msra.mxu3 %v1606_v2 }
 0x13f   : > { %1023 = vst.msk [vmem:[#allocation3 + $0x78] sm:$0xff] %vm1017_vm10, %v1004_v51  ;;  %v1006_v58 = vpop.permute.xlu1 %1005  ;;  %v9124_v60 = vld [vmem:[#allocation3 + $0x30] sm:$0xff] }
 0x140   : > { %1060 = vst.msk [vmem:[#allocation3 + $0x78] sm:$0xff] %vm1054_vm11, %v1041_v24  ;;  %1664 = vmatpush.msra.mxu3 %v1605_v61  ;;  %v1628_v61 = vld [vmem:[%s14584_s4 + $0xf8] sm:$0xff] }
 0x141   : > { %1024 = vst.msk [vmem:[#allocation3 + $0x90] sm:$0xff] %vm1017_vm10, %v1006_v58  ;;  %1698 = vmatpush.msrb.mxu0 %v1628_v61  ;;  %v1581_v61 = vld [vmem:[#allocation3 + $0x40] sm:$0xff] }
 0x142   : > { %1260 = vst.msk [vmem:[#allocation3 + $0x30] sm:$0xff] %vm593_vm0, %v8842_v14  ;;  %1665 = vmatpush.msra.mxu3 %v1604_v12 }
 0x143   : > { %1494 = vrot.lane.b32.xlu2 %v8950_v10, %s14315_s19 }
 0x144   : > { %1490 = vrot.lane.b32.xlu0 %v8898_v39, %s14315_s19  ;;  %1666 = vmatpush.msra.mxu3 %v1603_v16 }
 0x145   : > { %v9146_v9 = vpop.permute.xlu2 %1365  ;;  %1492 = vrot.lane.b32.xlu1 %v8924_v41, %s14315_s19 }
 0x146   : > { %v1031_v4 = vpop.permute.xlu0 %1030  ;;  %1667 = vmatpush.msra.mxu3 %v1602_v19 }
 0x147   : > { %1055 = vst.msk [vmem:[#allocation3] sm:$0xff] %vm1054_vm11, %v1031_v4  ;;  %v1033_v14 = vpop.permute.xlu1 %1032  ;;  %v9158_v18 = vld [vmem:[#allocation3 + $0x78] sm:$0xff]  ;;  %v1626_v4 = vld [vmem:[%s14584_s4 + $0xe8] sm:$0xff] }
 0x148   : > { %1056 = vst.msk [vmem:[#allocation3 + $0x18] sm:$0xff] %vm1054_vm11, %v1033_v14  ;;  %1668 = vmatpush.msra.mxu3 %v1601_v20  ;;  %v1625_v14 = vld [vmem:[%s14584_s4 + $0xe0] sm:$0xff]  ;;  %v1624_v20 = vld [vmem:[%s14584_s4 + $0xd8] sm:$0xff] }
 0x149   : > { %1263 = vst.msk [vmem:[#allocation3 + $0x78] sm:$0xff] %vm593_vm0, %v8924_v41 }
 0x14a   : > { %1669 = vmatpush.msra.mxu3 %v1600_v35 }
 0x14b   : > { %1500 = vrot.lane.b32.xlu2 %v8786_v46, %s14315_s19 }
 0x14c   : > { %1496 = vrot.lane.b32.xlu0 %v8976_v30, %s14315_s19  ;;  %1670 = vmatpush.msra.mxu3 %v1599_v36 }
 0x14d   : > { %v1313_v28 = vpop.permute.xlu2 %1312  ;;  %1498 = vrot.lane.b32.xlu1 %v9014_v56, %s14315_s19  ;;  %v1115_v56 = vld [vmem:[%s14583_s3 + $0x88] sm:$0xff]  ;;  %s14640_s19 = smov 80   ;;  %s8304_s3 = smov 24  }
 0x14e   : > { %v1037_v33 = vpop.permute.xlu0 %1036  ;;  %v1082_v34 = vld [vmem:[#allocation3] sm:$0xff]  ;;  %8233 = vmatpush.msra.mxu2 %v1115_v56  ;;  %1195 = vmatpush.msrb.mxu1 %v1115_v56 }
 0x14f   : > { %1058 = vst.msk [vmem:[#allocation3 + $0x48] sm:$0xff] %vm1054_vm11, %v1037_v33  ;;  %1156 = vmatmul.f32.vlgmr.msra.gmra.mxu1 %v1082_v34  ;;  %v1039_v41 = vpop.permute.xlu1 %1038  ;;  %v1084_v3 = vld [vmem:[#allocation3 + $0x18] sm:$0xff]  ;;  %1671 = vmatpush.msra.mxu3 %v1598_v37  ;;  %v1623_v33 = vld [vmem:[%s14584_s4 + $0xd0] sm:$0xff]  ;;  %v1622_v34 = vld [vmem:[%s14584_s4 + $0xc8] sm:$0xff] }
 0x150   : > { %1258 = vst.msk [vmem:[#allocation3] sm:$0xff] %vm593_vm0, %v8420_v1  ;;  %v1597_v1 = vld [vmem:[%s14584_s4] sm:$0xff]  ;;  %8234 = vmatpush.msra.mxu2 %v1114_v29  ;;  %1196 = vmatpush.msrb.mxu1 %v1114_v29  ;;  %v1620_v37 = vld [vmem:[%s14584_s4 + $0xb8] sm:$0xff] }
 0x151   : > { %1059 = vst.msk [vmem:[#allocation3 + $0x60] sm:$0xff] %vm1054_vm11, %v1039_v41  ;;  %1672 = vmatpush.msra.mxu3 %v1597_v1  ;;  %8047 = vmatmul.msk.f32.vlgmr.msra.gmra.mxu2 %vm638_vm4, %v8995_v31  ;;  %v1629_v41 = vld [vmem:[%s14584_s4 + $0x100] sm:$0xff]  ;;  %v1619_v1 = vld [vmem:[%s14584_s4 + $0xb0] sm:$0xff] }
 0x152   : > { %1259 = vst.msk [vmem:[#allocation3 + $0x18] sm:$0xff] %vm593_vm0, %v8819_v57 }
 0x153   : > { %1526 = vrot.lane.b32.xlu2 %v8909_v54, %s14321_s20  ;;  %1331 = vst.msk [vmem:[#allocation3] sm:$0xff] %vm1330_vm12, %v1307_v17 }
 0x154   : > { %1522 = vrot.lane.b32.xlu0 %v8856_v25, %s14321_s20 }
 0x155   : > { %v1402_v23 = vpop.permute.xlu2 %1401  ;;  %1524 = vrot.lane.b32.xlu1 %v8880_v40, %s14321_s20 }
 0x156   : > { %v1043_v57 = vpop.permute.xlu0 %1042  ;;  %v1088_v38 = vld [vmem:[#allocation3 + $0x48] sm:$0xff] }
 0x157   : > { %1061 = vst.msk [vmem:[#allocation3 + $0x90] sm:$0xff] %vm1054_vm11, %v1043_v57  ;;  %1159 = vmatmul.f32.gmra.mxu1 %v1084_v3  ;;  %v1045_v54 = vpop.permute.xlu1 %1044  ;;  %v1621_v3 = vld [vmem:[%s14584_s4 + $0xc0] sm:$0xff] }
 0x158   : > { %1062 = vst.msk [vmem:[#allocation3 + $0xa8] sm:$0xff] %vm1054_vm11, %v1045_v54  ;;  %v1090_v45 = vld [vmem:[#allocation3 + $0x60] sm:$0xff]  ;;  %v1617_v57 = vld [vmem:[%s14584_s4 + $0xa0] sm:$0xff] }
 0x159   : > { %1261 = vst.msk [vmem:[#allocation3 + $0x48] sm:$0xff] %vm593_vm0, %v8872_v32  ;;  %8048 = vmatmul.msk.f32.gmra.mxu2 %vm638_vm4, %v9036_v15  ;;  %v1555_v15 = vrot.slane %v1257_v13, 2 }
 0x15a   : > { %1334 = vst.msk [vmem:[#allocation3 + $0x48] sm:$0xff] %vm1330_vm12, %v1313_v28  ;;  %v1631_v28 = vld [vmem:[%s14584_s4 + $0x110] sm:$0xff] }
 0x15b   : > { %1532 = vrot.lane.b32.xlu2 %v8993_v50, %s14321_s20  ;;  %1262 = vst.msk [vmem:[#allocation3 + $0x60] sm:$0xff] %vm593_vm0, %v8898_v39 }
 0x15c   : > { %1528 = vrot.lane.b32.xlu0 %v8935_v7, %s14321_s20 }
 0x15d   : > { %v1372_v25 = vpop.permute.xlu2 %1371  ;;  %1530 = vrot.lane.b32.xlu1 %v8958_v21, %s14321_s20 }
 0x15e   : > { %v1309_v32 = vpop.permute.xlu0 %1308  ;;  %v1094_v31 = vld [vmem:[#allocation3 + $0x90] sm:$0xff] }
 0x15f   : > { %1332 = vst.msk [vmem:[#allocation3 + $0x18] sm:$0xff] %vm1330_vm12, %v1309_v32  ;;  %1162 = vmatmul.f32.gmra.mxu1 %v9124_v60  ;;  %v1364_v40 = vpop.permute.xlu1 %1363  ;;  %v1096_v50 = vld [vmem:[#allocation3 + $0xa8] sm:$0xff] }
 0x160   : > { %1388 = vst.msk [vmem:[#allocation3] sm:$0xff] %vm1387_vm13, %v1364_v40  ;;  %v1613_v40 = vld [vmem:[%s14584_s4 + $0x80] sm:$0xff] }
 0x161   : > { %1389 = vst.msk [vmem:[#allocation3 + $0x18] sm:$0xff] %vm1387_vm13, %v9146_v9  ;;  %v1627_v9 = vld [vmem:[%s14584_s4 + $0xf0] sm:$0xff] }
 0x162   : > { %1264 = vst.msk [vmem:[#allocation3 + $0x90] sm:$0xff] %vm593_vm0, %v8950_v10  ;;  %v1520_v10 = vrot.slane %v1257_v13, 1  ;;  %1699 = vmatpush.msrb.mxu0 %v1627_v9 }
 0x163   : > { %1265 = vst.msk [vmem:[#allocation3 + $0xa8] sm:$0xff] %vm593_vm0, %v8976_v30 }
 0x164   : > { %1534 = vrot.lane.b32.xlu0 %v9030_v11, %s14321_s20  ;;  %v1521_v30 = vsel %vm769_vm3, %v1027_v59, %v1520_v10  ;;  %v1556_v11 = vsel %vm827_vm2, %v1063_v47, %v1555_v15  ;;  %1700 = vmatpush.msrb.mxu0 %v1626_v4  ;;  %v1808_v10 = vld [vmem:[#allocation2] sm:$0xff]  ;;  %v1809_v15 = vld [vmem:[#allocation2 + $0x8] sm:$0x3] }
 0x165   : > { %v1319_v39 = vpop.permute.xlu2 %1318  ;;  %1572 = vst.msk [vmem:[#allocation3 + $0xb8] sm:$0xff] %vm593_vm0, %v1556_v11  ;;  %1536 = vrot.lane.b32.xlu1 %v1521_v30, %s14321_s20  ;;  %v1908_v30 = vrot.slane %v1808_v10, 2  ;;  %v1909_v11 = vrot.slane %v1809_v15, 2  ;;  %s14402_s20 = smov 8  }
 0x166   : > { %v1368_v7 = vpop.permute.xlu0 %1367  ;;  %1337 = vst.msk [vmem:[#allocation3 + $0x90] sm:$0xff] %vm1330_vm12, %v1319_v39  ;;  %1701 = vmatpush.msrb.mxu0 %v1625_v14 }
 0x167   : > { %1165 = vmatmul.f32.gmra.mxu1 %v1088_v38  ;;  %v1311_v21 = vpop.permute.xlu1 %1310 }
 0x168   : > { %1333 = vst.msk [vmem:[#allocation3 + $0x30] sm:$0xff] %vm1330_vm12, %v1311_v21  ;;  %1702 = vmatpush.msrb.mxu0 %v1624_v20 }
 0x169   : > { %1390 = vst.msk [vmem:[#allocation3 + $0x30] sm:$0xff] %vm1387_vm13, %v1368_v7 }
 0x16a   : > { %1424 = vst.msk [vmem:[#allocation3 + $0x30] sm:$0xff] %vm1421_vm14, %v1402_v23  ;;  %1703 = vmatpush.msrb.mxu0 %v1623_v33 }
 0x16c   : > { %1704 = vmatpush.msrb.mxu0 %v1622_v34 }
 0x16d   : > { %v1408_v44 = vpop.permute.xlu2 %1407 }
 0x16e   : > { %v1398_v49 = vpop.permute.xlu0 %1397  ;;  %1705 = vmatpush.msrb.mxu0 %v1621_v3  ;;  %v1584_v3 = vld [vmem:[#allocation3 + $0x58] sm:$0xff] }
 0x16f   : > { %1422 = vst.msk [vmem:[#allocation3] sm:$0xff] %vm1421_vm14, %v1398_v49  ;;  %1168 = vmatmul.f32.gmra.mxu1 %v1090_v45  ;;  %v1370_v24 = vpop.permute.xlu1 %1369  ;;  %v1616_v45 = vld [vmem:[%s14584_s4 + $0x98] sm:$0xff]  ;;  %v9360_v49 = vld [vmem:[#allocation2 + $0x98] sm:$0x3] }
 0x170   : > { %1391 = vst.msk [vmem:[#allocation3 + $0x48] sm:$0xff] %vm1387_vm13, %v1370_v24  ;;  %1706 = vmatpush.msrb.mxu0 %v1620_v37 }
 0x171   : > { %v1579_v58 = vld [vmem:[#allocation3 + $0x30] sm:$0xff] }
 0x172   : > { %1707 = vmatpush.msrb.mxu0 %v1619_v1  ;;  %v1587_v1 = vld [vmem:[#allocation3 + $0x70] sm:$0xff] }
 0x175   : > { %v1378_v42 = vpop.permute.xlu2 %1377 }
 0x176   : > { %v1315_v53 = vpop.permute.xlu0 %1314  ;;  %v1573_v52 = vld [vmem:[#allocation3] sm:$0xff] }
 0x177   : > { %1335 = vst.msk [vmem:[#allocation3 + $0x60] sm:$0xff] %vm1330_vm12, %v1315_v53  ;;  %1171 = vmatmul.f32.gmra.mxu1 %v9158_v18  ;;  %1673 = vmatmul.f32.vlgmr.msra.gmra.mxu3 %v1573_v52  ;;  %v1400_v46 = vpop.permute.xlu1 %1399 }
 0x178   : > { %1392 = vst.msk [vmem:[#allocation3 + $0x60] sm:$0xff] %vm1387_vm13, %v1372_v25  ;;  %v1615_v25 = vld [vmem:[%s14584_s4 + $0x90] sm:$0xff] }
 0x179   : > { %1423 = vst.msk [vmem:[#allocation3 + $0x18] sm:$0xff] %vm1421_vm14, %v1400_v46 }
 0x17a   : > { %1828 = vst.msk [vmem:[#allocation3] sm:$0xff] %vm638_vm4, %v1808_v10 }
 0x17d   : > { %v1454_v47 = vpop.permute.xlu2 %1453 }
 0x17e   : > { %v1374_v59 = vpop.permute.xlu0 %1373  ;;  %1477 = vst.msk [vmem:[#allocation3 + $0x8] sm:$0xff] %vm1330_vm12, %v1454_v47 }
 0x17f   : > { %1174 = vmatmul.f32.gmra.mxu1 %v1094_v31  ;;  %v1317_v48 = vpop.permute.xlu1 %1316 }
 0x180   : > { %1336 = vst.msk [vmem:[#allocation3 + $0x78] sm:$0xff] %vm1330_vm12, %v1317_v48  ;;  %v1576_v5 = vld [vmem:[#allocation3 + $0x18] sm:$0xff]  ;;  %v1853_v48 = vrot.slane %v1809_v15, 1  ;;  %v1593_v15 = vld [vmem:[#allocation3 + $0xa0] sm:$0xff] }
 0x181   : > { %1393 = vst.msk [vmem:[#allocation3 + $0x78] sm:$0xff] %vm1387_vm13, %v1374_v59  ;;  %1676 = vmatmul.f32.gmra.mxu3 %v1576_v5  ;;  %v1852_v59 = vrot.slane %v1808_v10, 1  ;;  %v2609_v5 = vld [vmem:[%s9356_s0] sm:$0xff] }
 0x182   : > { %1427 = vst.msk [vmem:[#allocation3 + $0x78] sm:$0xff] %vm1421_vm14, %v1408_v44  ;;  %v1910_v44 = vsel %vm827_vm2, %v1908_v30, %v1909_v11 }
 0x183   : > { %1932 = vrot.lane.b32.xlu1 %v1910_v44, %s14408_s27  ;;  %2647 = vst.msk [vmem:[#allocation4 + $0x19] sm:$0xff] %vm2646_vm1, %v2609_v5 }
 0x185   : > { %v1460_v22 = vpop.permute.xlu2 %1459 }
 0x186   : > { %v1404_v17 = vpop.permute.xlu0 %1403  ;;  %1480 = vst.msk [vmem:[#allocation3 + $0x50] sm:$0xff] %vm1330_vm12, %v1460_v22  ;;  %v1578_v22 = vld [vmem:[#allocation3 + $0x28] sm:$0xff] }
 0x187   : > { %1425 = vst.msk [vmem:[#allocation3 + $0x48] sm:$0xff] %vm1421_vm14, %v1404_v17  ;;  %1177 = vmatmul.f32.gmra.mxu1 %v1096_v50  ;;  %v1376_v51 = vpop.permute.xlu1 %1375  ;;  %v2610_v17 = vld [vmem:[%s9356_s0 + $0x8] sm:$0xff] }
 0x188   : > { %1394 = vst.msk [vmem:[#allocation3 + $0x90] sm:$0xff] %vm1387_vm13, %v1376_v51  ;;  %v1854_v51 = vsel %vm769_vm3, %v1852_v59, %v1853_v48 }
 0x189   : > { %1679 = vmatmul.f32.gmra.mxu3 %v1579_v58  ;;  %v1588_v56 = vld [vmem:[#allocation3 + $0x78] sm:$0xff]  ;;  %1876 = vrot.lane.b32.xlu2 %v1854_v51, %s14404_s28  ;;  %2648 = vst.msk [vmem:[#allocation4 + $0x21] sm:$0xff] %vm2646_vm1, %v2610_v17  ;;  %v2138_v51 = vrot.slane %v9360_v49, 2 }
 0x18a   : > { %v9400_v14 = vld [vmem:[#allocation4 + $0x18] sm:$0xff] }
 0x18b   : > { %2735 = vst.msk [vmem:[#allocation5 + $0x20] sm:$0xff] %vm2646_vm1, %v9400_v14 }
 0x18d   : > { %v1466_v60 = vpop.permute.xlu2 %1465 }
 0x18e   : > { %1483 = vst.msk [vmem:[#allocation3 + $0x98] sm:$0xff] %vm1330_vm12, %v1466_v60  ;;  %v1321_v62 = vpop.permute.xlu0 %1320  ;;  %v1582_v2 = vld [vmem:[#allocation3 + $0x48] sm:$0xff] }
 0x18f   : > { %1338 = vst.msk [vmem:[#allocation3 + $0xa8] sm:$0xff] %vm1330_vm12, %v1321_v62  ;;  %8041 = vmatmul.msk.f32.vlgmr.msrb.gmra.mxu1 %vm638_vm4, %v8825_v6  ;;  %v1406_v63 = vpop.permute.xlu1 %1405  ;;  %v1632_v6 = vld [vmem:[%s14584_s4 + $0x118] sm:$0xff]  ;;  %v9389_v62 = vld [vmem:[#allocation4 + $0x8] sm:$0xff] }
 0x190   : > { %1395 = vst.msk [vmem:[#allocation3 + $0xa8] sm:$0xff] %vm1387_vm13, %v1378_v42  ;;  %1751 = vmatpush.msrb.mxu3 %v1632_v6  ;;  %v2103_v42 = vrot.slane %v9360_v49, 1  ;;  %v2814_v9 = vrot.slane %v9389_v62, 1 }
 0x191   : > { %1426 = vst.msk [vmem:[#allocation3 + $0x60] sm:$0xff] %vm1421_vm14, %v1406_v63  ;;  %1682 = vmatmul.f32.gmra.mxu3 %v1582_v2  ;;  %v9391_v63 = vld [vmem:[#allocation4 + $0x10] sm:$0x3]  ;;  %v9393_v2 = vld [vmem:[#allocation4] sm:$0xff] }
 0x192   : > { %1752 = vmatpush.msrb.mxu3 %v1631_v28  ;;  %v2816_v6 = vrot.slane %v9391_v63, 1  ;;  %v2813_v4 = vrot.slane %v9393_v2, 1  ;;  %2734 = vst.msk [vmem:[#allocation5 + $0x10] sm:$0xff] %vm2646_vm1, %v9389_v62 }
 0x193   : > { %2733 = vst.msk [vmem:[#allocation5] sm:$0xff] %vm2646_vm1, %v9393_v2 }
 0x195   : > { %v1489_v16 = vpop.permute.xlu2 %1488 }
 0x196   : > { %v1410_v12 = vpop.permute.xlu0 %1409 }
 0x197   : > { %1428 = vst.msk [vmem:[#allocation3 + $0x90] sm:$0xff] %vm1421_vm14, %v1410_v12  ;;  %8042 = vmatmul.msk.f32.gmra.mxu1 %vm638_vm4, %v8858_v26  ;;  %v1412_v18 = vpop.permute.xlu1 %1411  ;;  %v1630_v26 = vld [vmem:[%s14584_s4 + $0x108] sm:$0xff] }
 0x198   : > { %1429 = vst.msk [vmem:[#allocation3 + $0xa8] sm:$0xff] %vm1421_vm14, %v1412_v18  ;;  %v1585_v19 = vld [vmem:[#allocation3 + $0x60] sm:$0xff]  ;;  %1753 = vmatpush.msrb.mxu3 %v1630_v26  ;;  %v2817_v18 = vsel %vm769_vm3, %v2814_v9, %v2816_v6 }
 0x199   : > { %1685 = vmatmul.f32.gmra.mxu3 %v1585_v19  ;;  %v9404_v12 = vld [vmem:[#allocation4 + $0x20] sm:$0xff]  ;;  %v2815_v19 = vsel %vm769_vm3, %v2813_v4, %v2814_v9  ;;  %2895 = vrot.lane.b32.xlu2 %v2817_v18, %s14402_s20  ;;  %v2619_v9 = vld [vmem:[%s9356_s0 + $0x50] sm:$0xff]  ;;  %v2620_v18 = vld [vmem:[%s9356_s0 + $0x58] sm:$0xff] }
 0x19a   : > { %1754 = vmatpush.msrb.mxu3 %v1629_v41  ;;  %v2819_v20 = vrot.slane %v9404_v12, 1  ;;  %v9428_v41 = vld [vmem:[#allocation4 + $0x28] sm:$0x3]  ;;  %2736 = vst.msk [vmem:[#allocation5 + $0x30] sm:$0xff] %vm2646_vm1, %v9404_v12 }
 0x19b   : > { %2657 = vst.msk [vmem:[#allocation4 + $0x91] sm:$0xff] %vm2646_vm1, %v2619_v9 }
 0x19c   : > { %2658 = vst.msk [vmem:[#allocation4 + $0x99] sm:$0xff] %vm2646_vm1, %v2620_v18 }
 0x19d   : > { %v1495_v23 = vpop.permute.xlu2 %1494 }
 0x19e   : > { %v1456_v35 = vpop.permute.xlu0 %1455  ;;  %v1591_v29 = vld [vmem:[#allocation3 + $0x90] sm:$0xff] }
 0x19f   : > { %1478 = vst.msk [vmem:[#allocation3 + $0x20] sm:$0xff] %vm1330_vm12, %v1456_v35  ;;  %8043 = vmatmul.msk.f32.gmra.mxu1 %vm638_vm4, %v8885_v43  ;;  %v1458_v36 = vpop.permute.xlu1 %1457  ;;  %v1618_v43 = vld [vmem:[%s14584_s4 + $0xa8] sm:$0xff]  ;;  %v1594_v39 = vld [vmem:[#allocation3 + $0xa8] sm:$0xff]  ;;  %v2821_v35 = vrot.slane %v9428_v41, 1 }
 0x1a0   : > { %1511 = vst.msk [vmem:[#allocation3 + $0x20] sm:$0xff] %vm1387_vm13, %v1489_v16  ;;  %1708 = vmatpush.msrb.mxu0 %v1618_v43  ;;  %v2818_v16 = vrot.slane %v9400_v14, 1  ;;  %v2612_v43 = vld [vmem:[%s9356_s0 + $0x18] sm:$0xff] }
 0x1a1   : > { %1479 = vst.msk [vmem:[#allocation3 + $0x38] sm:$0xff] %vm1330_vm12, %v1458_v36  ;;  %1688 = vmatmul.f32.gmra.mxu3 %v1588_v56  ;;  %v9438_v36 = vsel %vm769_vm3, %v2819_v20, %v2821_v35 }
 0x1a2   : > { %1709 = vmatpush.msrb.mxu0 %v1617_v57  ;;  %v9419_v28 = vsel %vm769_vm3, %v2818_v16, %v2819_v20  ;;  %14587 = vst [vmem:[#allocation7_spill] sm:$0xff] %v9438_v36  ;;  %v2616_v57 = vld [vmem:[%s9356_s0 + $0x38] sm:$0xff]  ;;  %v1596_v16 = vld [vmem:[#allocation3 + $0xb8] sm:$0xff] }
 0x1a3   : > { %14586 = vst [vmem:[#allocation6_spill] sm:$0xff] %v9419_v28 }
 0x1a4   : > { %1710 = vmatpush.msrb.mxu0 %v1616_v45  ;;  %2650 = vst.msk [vmem:[#allocation4 + $0x39] sm:$0xff] %vm2646_vm1, %v2612_v43  ;;  %v2614_v45 = vld [vmem:[%s9356_s0 + $0x28] sm:$0xff] }
 0x1a5   : > { %v1501_v32 = vpop.permute.xlu2 %1500  ;;  %2654 = vst.msk [vmem:[#allocation4 + $0x69] sm:$0xff] %vm2646_vm1, %v2616_v57 }
 0x1a6   : > { %v1462_v38 = vpop.permute.xlu0 %1461  ;;  %1711 = vmatpush.msrb.mxu0 %v1615_v25  ;;  %v2617_v25 = vld [vmem:[%s9356_s0 + $0x40] sm:$0xff]  ;;  %2652 = vst.msk [vmem:[#allocation4 + $0x51] sm:$0xff] %vm2646_vm1, %v2614_v45  ;;  %v9600_v45 = vld [vmem:[#allocation4 + $0x90] sm:$0xff] }
 0x1a7   : > { %1481 = vst.msk [vmem:[#allocation3 + $0x68] sm:$0xff] %vm1330_vm12, %v1462_v38  ;;  %8044 = vmatmul.msk.f32.gmra.mxu1 %vm638_vm4, %v8911_v55  ;;  %v1464_v54 = vpop.permute.xlu1 %1463  ;;  %v1614_v55 = vld [vmem:[%s14584_s4 + $0x88] sm:$0xff]  ;;  %s8305_s4 = smov 40  }
 0x1a8   : > { %1514 = vst.msk [vmem:[#allocation3 + $0x68] sm:$0xff] %vm1387_vm13, %v1495_v23  ;;  %1712 = vmatpush.msrb.mxu0 %v1614_v55  ;;  %v2611_v23 = vld [vmem:[%s9356_s0 + $0x10] sm:$0xff] }
 0x1a9   : > { %1482 = vst.msk [vmem:[#allocation3 + $0x80] sm:$0xff] %vm1330_vm12, %v1464_v54  ;;  %1691 = vmatmul.f32.gmra.mxu3 %v1591_v29  ;;  %v2613_v54 = vld [vmem:[%s9356_s0 + $0x20] sm:$0xff]  ;;  %v1590_v29 = vld [vmem:[#allocation3 + $0x88] sm:$0xff] }
 0x1aa   : > { %1713 = vmatpush.msrb.mxu0 %v1613_v40  ;;  %2649 = vst.msk [vmem:[#allocation4 + $0x31] sm:$0xff] %vm2646_vm1, %v2611_v23 }
 0x1ab   : > { %2651 = vst.msk [vmem:[#allocation4 + $0x49] sm:$0xff] %vm2646_vm1, %v2613_v54 }
 0x1ac   : > { %2655 = vst.msk [vmem:[#allocation4 + $0x79] sm:$0xff] %vm2646_vm1, %v2617_v25  ;;  %v9494_v10 = vld [vmem:[#allocation4 + $0x68] sm:$0xff]  ;;  %v9529_v5 = vld [vmem:[#allocation4 + $0x70] sm:$0x3]  ;;  %v9604_v25 = vld [vmem:[#allocation4 + $0x98] sm:$0xff] }
 0x1ad   : > { %v1527_v7 = vpop.permute.xlu2 %1526  ;;  %2742 = vst.msk [vmem:[#allocation5 + $0x90] sm:$0xff] %vm2646_vm1, %v9494_v10  ;;  %v2836_v4 = vrot.slane %v9529_v5, 1 }
 0x1ae   : > { %v1468_v31 = vpop.permute.xlu0 %1467  ;;  %2745 = vst.msk [vmem:[#allocation5 + $0xc0] sm:$0xff] %vm2646_vm1, %v9600_v45 }
 0x1af   : > { %1484 = vst.msk [vmem:[#allocation3 + $0xb0] sm:$0xff] %vm1330_vm12, %v1468_v31  ;;  %8045 = vmatmul.msk.f32.gmra.mxu1 %vm638_vm4, %v8937_v8  ;;  %v1487_v50 = vpop.permute.xlu1 %1486  ;;  %v1575_v8 = vld [vmem:[#allocation3 + $0x10] sm:$0xff]  ;;  %v9483_v31 = vld [vmem:[#allocation4 + $0x40] sm:$0x3]  ;;  %vm3198_vm12 = vcmask 195712  }
 0x1b0   : > { %1517 = vst.msk [vmem:[#allocation3 + $0xb0] sm:$0xff] %vm1387_vm13, %v1501_v32  ;;  %v2618_v32 = vld [vmem:[%s9356_s0 + $0x48] sm:$0xff] }
 0x1b1   : > { %1510 = vst.msk [vmem:[#allocation3 + $0x8] sm:$0xff] %vm1387_vm13, %v1487_v50  ;;  %1694 = vmatmul.f32.gmra.mxu3 %v1594_v39  ;;  %v9478_v55 = vld [vmem:[#allocation4 + $0x30] sm:$0xff]  ;;  %v9481_v40 = vld [vmem:[#allocation4 + $0x38] sm:$0xff] }
 0x1b2   : > { %2656 = vst.msk [vmem:[#allocation4 + $0x81] sm:$0xff] %vm2646_vm1, %v2618_v32  ;;  %v2823_v50 = vrot.slane %v9478_v55, 1  ;;  %v9506_v11 = vld [vmem:[#allocation4 + $0x48] sm:$0xff]  ;;  %v2699_v32 = vld [vmem:[#allocation4 + $0xa0] sm:$0x3] }
 0x1b3   : > { %2737 = vst.msk [vmem:[#allocation5 + $0x40] sm:$0xff] %vm2646_vm1, %v9478_v55 }
 0x1b4   : > { %2738 = vst.msk [vmem:[#allocation5 + $0x50] sm:$0xff] %vm2646_vm1, %v9481_v40 }
 0x1b5   : > { %v1533_v52 = vpop.permute.xlu2 %1532  ;;  %2739 = vst.msk [vmem:[#allocation5 + $0x60] sm:$0xff] %vm2646_vm1, %v9506_v11 }
 0x1b6   : > { %v1491_v21 = vpop.permute.xlu0 %1490  ;;  %2746 = vst.msk [vmem:[#allocation5 + $0xd0] sm:$0xff] %vm2646_vm1, %v9604_v25 }
 0x1b7   : > { %1512 = vst.msk [vmem:[#allocation3 + $0x38] sm:$0xff] %vm1387_vm13, %v1491_v21  ;;  %8046 = vmatmul.msk.f32.gmra.mxu1 %vm638_vm4, %v8963_v27  ;;  %v1493_v13 = vpop.permute.xlu1 %1492  ;;  %v9358_v27 = vld [vmem:[#allocation2 + $0x90] sm:$0xff]  ;;  %v2826_v21 = vrot.slane %v9483_v31, 1 }
 0x1b8   : > { %1548 = vst.msk [vmem:[#allocation3 + $0x38] sm:$0xff] %vm1421_vm14, %v1527_v7  ;;  %v2102_v24 = vrot.slane %v9358_v27, 1  ;;  %2083 = vrot.lane.b32.xlu1 %v9358_v27, %s14585_s22  ;;  %v2824_v7 = vrot.slane %v9481_v40, 1  ;;  %v2137_v17 = vrot.slane %v9358_v27, 2 }
 0x1b9   : > { %1513 = vst.msk [vmem:[#allocation3 + $0x50] sm:$0xff] %vm1387_vm13, %v1493_v13  ;;  %8049 = vmatmul.msk.f32.vlgmr.msrb.gmra.mxu3 %vm593_vm0, %v1575_v8  ;;  %v9492_v13 = vld [vmem:[#allocation4 + $0x60] sm:$0xff]  ;;  %v9558_v20 = vld [vmem:[#allocation4 + $0x88] sm:$0x3] }
 0x1ba   : > { %v2104_v47 = vsel %vm769_vm3, %v2102_v24, %v2103_v42  ;;  %2741 = vst.msk [vmem:[#allocation5 + $0x80] sm:$0xff] %vm2646_vm1, %v9492_v13  ;;  %v9499_v8 = vsel %vm769_vm3, %v2824_v7, %v2826_v21  ;;  %v9502_v30 = vsel %vm769_vm3, %v2823_v50, %v2824_v7  ;;  %v9511_v24 = vld [vmem:[#allocation4 + $0x50] sm:$0xff]  ;;  %v9513_v42 = vld [vmem:[#allocation4 + $0x58] sm:$0x3]  ;;  %v9526_v48 = vld [vmem:[#allocation4 + $0x80] sm:$0xff]  ;;  %v2841_v35 = vrot.slane %v9558_v20, 1 }
 0x1bb   : > { %2119 = vrot.lane.b32.xlu0 %v2104_v47, %s14406_s21  ;;  %14588 = vst [vmem:[#allocation8_spill] sm:$0xff] %v9499_v8  ;;  %2901 = vrot.lane.b32.xlu2 %v9502_v30, %s14402_s20  ;;  %v2829_v47 = vrot.slane %v9511_v24, 1  ;;  %v2831_v59 = vrot.slane %v9513_v42, 1  ;;  %v2843_v50 = vrot.slane %v9600_v45, 1  ;;  %v2844_v7 = vrot.slane %v9604_v25, 1 }
 0x1bc   : > { %14589 = vst [vmem:[#allocation9_spill] sm:$0xff] %v9502_v30 }
 0x1bd   : > { %2740 = vst.msk [vmem:[#allocation5 + $0x70] sm:$0xff] %vm2646_vm1, %v9511_v24 }
 0x1be   : > { %v1497_v53 = vpop.permute.xlu0 %1496  ;;  %2744 = vst.msk [vmem:[#allocation5 + $0xb0] sm:$0xff] %vm2646_vm1, %v9526_v48 }
 0x1bf   : > { %1515 = vst.msk [vmem:[#allocation3 + $0x80] sm:$0xff] %vm1387_vm13, %v1497_v53  ;;  %v1499_v46 = vpop.permute.xlu1 %1498  ;;  %v1580_v38 = vld [vmem:[#allocation3 + $0x38] sm:$0xff]  ;;  %v2828_v53 = vrot.slane %v9506_v11, 1 }
 0x1c0   : > { %1551 = vst.msk [vmem:[#allocation3 + $0x80] sm:$0xff] %vm1421_vm14, %v1533_v52  ;;  %2893 = vrot.lane.b32.xlu1 %v2815_v19, %s14402_s20  ;;  %v2833_v52 = vrot.slane %v9492_v13, 1  ;;  %v9556_v19 = vsel %vm769_vm3, %v2829_v47, %v2831_v59  ;;  %v2625_v59 = vld [vmem:[%s9356_s0 + $0x80] sm:$0xff] }
 0x1c1   : > { %1516 = vst.msk [vmem:[#allocation3 + $0x98] sm:$0xff] %vm1387_vm13, %v1499_v46  ;;  %8050 = vmatmul.msk.f32.gmra.mxu3 %vm593_vm0, %v1578_v22  ;;  %v2834_v46 = vrot.slane %v9494_v10, 1  ;;  %v2621_v22 = vld [vmem:[%s9356_s0 + $0x60] sm:$0xff]  ;;  %vm14425_vm13 = vcmask 261312  }
 0x1c2   : > { %2659 = vst.msk [vmem:[#allocation4 + $0xa9] sm:$0xff] %vm2646_vm1, %v2621_v22 }
 0x1c3   : > { %2897 = vrot.lane.b32.xlu0 %v9419_v28, %s14402_s20  ;;  %v9550_v6 = vsel %vm769_vm3, %v2833_v52, %v2834_v46  ;;  %14592 = vst [vmem:[#allocation12_spill] sm:$0xff] %v9556_v19  ;;  %2907 = vrot.lane.b32.xlu2 %v9556_v19, %s14402_s20  ;;  %v9624_v52 = vsel %vm769_vm3, %v2843_v50, %v2844_v7 }
 0x1c4   : > { %14591 = vst [vmem:[#allocation11_spill] sm:$0xff] %v9550_v6 }
 0x1c5   : > { %14596 = vst [vmem:[#allocation16_spill] sm:$0xff] %v9624_v52 }
 0x1c6   : > { %v1523_v58 = vpop.permute.xlu0 %1522  ;;  %2663 = vst.msk [vmem:[#allocation4 + $0xd9] sm:$0xff] %vm2646_vm1, %v2625_v59 }
 0x1c7   : > { %1546 = vst.msk [vmem:[#allocation3 + $0x8] sm:$0xff] %vm1421_vm14, %v1523_v58  ;;  %v1525_v60 = vpop.permute.xlu1 %1524  ;;  %v9535_v58 = vsel %vm769_vm3, %v2828_v53, %v2829_v47  ;;  %v1589_v0 = vld [vmem:[#allocation3 + $0x80] sm:$0xff]  ;;  %v2846_v53 = vrot.slane %v2699_v32, 1  ;;  %v2631_v32 = vld [vmem:[%s9356_s0 + $0xb0] sm:$0xff] }
 0x1c8   : > { %1547 = vst.msk [vmem:[#allocation3 + $0x20] sm:$0xff] %vm1421_vm14, %v1525_v60  ;;  %2899 = vrot.lane.b32.xlu1 %v9438_v36, %s14402_s20  ;;  %v9539_v60 = vld [vmem:[#allocation4 + $0x78] sm:$0xff] }
 0x1c9   : > { %8051 = vmatmul.msk.f32.gmra.mxu3 %vm593_vm0, %v1581_v61  ;;  %14590 = vst [vmem:[#allocation10_spill] sm:$0xff] %v9535_v58  ;;  %v2622_v61 = vld [vmem:[%s9356_s0 + $0x68] sm:$0xff]  ;;  %v2838_v23 = vrot.slane %v9539_v60, 1  ;;  %v9585_v43 = vld [vmem:[#allocation4 + $0xa8] sm:$0xff]  ;;  %v9648_v18 = vsel %vm769_vm3, %v2844_v7, %v2846_v53 }
 0x1ca   : > { %2743 = vst.msk [vmem:[#allocation5 + $0xa0] sm:$0xff] %vm2646_vm1, %v9539_v60 }
 0x1cb   : > { %2903 = vrot.lane.b32.xlu0 %v9499_v8, %s14402_s20  ;;  %2660 = vst.msk [vmem:[#allocation4 + $0xb1] sm:$0xff] %vm2646_vm1, %v2622_v61  ;;  %v2629_v61 = vld [vmem:[%s9356_s0 + $0xa0] sm:$0xff] }
 0x1cc   : > { %v9547_v27 = vpop.f32.mrf.mxu1  ;;  %2747 = vst.msk [vmem:[#allocation5 + $0xe0] sm:$0xff] %vm2646_vm1, %v9585_v43 }
 0x1cd   : > { %14599 = vst [vmem:[#allocation19_spill] sm:$0xff] %v9648_v18  ;;  %v9677_v7 = vld [vmem:[#allocation4 + $0xd8] sm:$0xff] }
 0x1ce   : > { %v1529_v33 = vpop.permute.xlu0 %1528  ;;  %v1574_v26 = vld [vmem:[#allocation3 + $0x8] sm:$0xff]  ;;  %2667 = vst.msk [vmem:[#allocation4 + $0x109] sm:$0xff] %vm2646_vm1, %v2629_v61  ;;  %v2858_v53 = vrot.slane %v9677_v7, 1 }
 0x1cf   : > { %1549 = vst.msk [vmem:[#allocation3 + $0x50] sm:$0xff] %vm1421_vm14, %v1529_v33  ;;  %1714 = vmatmul.f32.vlgmr.msrb.gmra.mxu0 %v1574_v26  ;;  %v1531_v34 = vpop.permute.xlu1 %1530  ;;  %v1577_v37 = vld [vmem:[#allocation3 + $0x20] sm:$0xff]  ;;  %v2623_v33 = vld [vmem:[%s9356_s0 + $0x70] sm:$0xff]  ;;  %v2139_v26 = vsel %vm827_vm2, %v2137_v17, %v2138_v51 }
 0x1d0   : > { %1550 = vst.msk [vmem:[#allocation3 + $0x68] sm:$0xff] %vm1421_vm14, %v1531_v34  ;;  %2905 = vrot.lane.b32.xlu1 %v9535_v58, %s14402_s20  ;;  %v2624_v34 = vld [vmem:[%s9356_s0 + $0x78] sm:$0xff]  ;;  %v2626_v51 = vld [vmem:[%s9356_s0 + $0x88] sm:$0xff] }
 0x1d1   : > { %8052 = vmatmul.msk.f32.gmra.mxu3 %vm593_vm0, %v1584_v3  ;;  %v2839_v3 = vrot.slane %v9526_v48, 1  ;;  %2661 = vst.msk [vmem:[#allocation4 + $0xc1] sm:$0xff] %vm2646_vm1, %v2623_v33 }
 0x1d2   : > { %2662 = vst.msk [vmem:[#allocation4 + $0xc9] sm:$0xff] %vm2646_vm1, %v2624_v34  ;;  %v2702_v47 = vld [vmem:[#allocation4 + $0xb8] sm:$0x3]  ;;  %v2634_v34 = vld [vmem:[%s9356_s0 + $0xc8] sm:$0xff] }
 0x1d3   : > { %2909 = vrot.lane.b32.xlu0 %v9550_v6, %s14402_s20  ;;  %v9589_v57 = vsel %vm769_vm3, %v2839_v3, %v2841_v35  ;;  %v9596_v54 = vsel %vm769_vm3, %v2838_v23, %v2839_v3  ;;  %2664 = vst.msk [vmem:[#allocation4 + $0xe1] sm:$0xff] %vm2646_vm1, %v2626_v51 }
 0x1d4   : > { %14594 = vst [vmem:[#allocation14_spill] sm:$0xff] %v9589_v57  ;;  %2913 = vrot.lane.b32.xlu2 %v9596_v54, %s14402_s20 }
 0x1d5   : > { %14595 = vst [vmem:[#allocation15_spill] sm:$0xff] %v9596_v54  ;;  %v9695_v51 = vld [vmem:[#allocation4 + $0x108] sm:$0xff] }
 0x1d6   : > { %v1535_v56 = vpop.permute.xlu0 %1534  ;;  %v1583_v39 = vld [vmem:[#allocation3 + $0x50] sm:$0xff]  ;;  %2672 = vst.msk [vmem:[#allocation4 + $0x141] sm:$0xff] %vm2646_vm1, %v2634_v34 }
 0x1d7   : > { %1552 = vst.msk [vmem:[#allocation3 + $0x98] sm:$0xff] %vm1421_vm14, %v1535_v56  ;;  %1717 = vmatmul.f32.gmra.mxu0 %v1577_v37  ;;  %v1537_v44 = vpop.permute.xlu1 %1536  ;;  %v1586_v49 = vld [vmem:[#allocation3 + $0x68] sm:$0xff]  ;;  %v9574_v56 = vsel %vm769_vm3, %v2834_v46, %v2836_v4  ;;  %v2851_v4 = vrot.slane %v2702_v47, 1 }
 0x1d8   : > { %1553 = vst.msk [vmem:[#allocation3 + $0xb0] sm:$0xff] %vm1421_vm14, %v1537_v44  ;;  %2911 = vrot.lane.b32.xlu1 %v9574_v56, %s14402_s20  ;;  %v9615_v21 = vld [vmem:[#allocation4 + $0xc0] sm:$0xff]  ;;  %vm14426_vm14 = vcmask 326912  }
 0x1d9   : > { %8053 = vmatmul.msk.f32.gmra.mxu3 %vm593_vm0, %v1587_v1  ;;  %14593 = vst [vmem:[#allocation13_spill] sm:$0xff] %v9574_v56  ;;  %v2627_v1 = vld [vmem:[%s9356_s0 + $0x90] sm:$0xff]  ;;  %v2705_v33 = vld [vmem:[#allocation4 + $0xd0] sm:$0x3]  ;;  %v2853_v50 = vrot.slane %v9615_v21, 1  ;;  %v2638_v56 = vld [vmem:[%s9356_s0 + $0xe8] sm:$0xff] }
 0x1da   : > { %2665 = vst.msk [vmem:[#allocation4 + $0xf1] sm:$0xff] %vm2646_vm1, %v2627_v1  ;;  %v9626_v46 = vld [vmem:[#allocation4 + $0xc8] sm:$0xff]  ;;  %v2856_v1 = vrot.slane %v2705_v33, 1 }
 0x1db   : > { %2915 = vrot.lane.b32.xlu0 %v9589_v57, %s14402_s20  ;;  %2749 = vst.msk [vmem:[#allocation5 + $0x100] sm:$0xff] %vm2646_vm1, %v9615_v21  ;;  %v2854_v35 = vrot.slane %v9626_v46, 1  ;;  %v2708_v61 = vld [vmem:[#allocation4 + $0xe8] sm:$0x3] }
 0x1dc   : > { %2750 = vst.msk [vmem:[#allocation5 + $0x110] sm:$0xff] %vm2646_vm1, %v9626_v46  ;;  %2919 = vrot.lane.b32.xlu2 %v9648_v18, %s14402_s20  ;;  %v2861_v34 = vrot.slane %v2708_v61, 1  ;;  %v2637_v18 = vld [vmem:[%s9356_s0 + $0xe0] sm:$0xff] }
 0x1dd   : > { %2669 = vst.msk [vmem:[#allocation4 + $0x121] sm:$0xff] %vm2646_vm1, %v2631_v32  ;;  %v9690_v47 = vsel %vm769_vm3, %v2853_v50, %v2854_v35  ;;  %v2635_v32 = vld [vmem:[%s9356_s0 + $0xd0] sm:$0xff] }
 0x1de   : > { %v1592_v9 = vld [vmem:[#allocation3 + $0x98] sm:$0xff]  ;;  %2751 = vst.msk [vmem:[#allocation5 + $0x120] sm:$0xff] %vm2646_vm1, %v9677_v7  ;;  %v2720_v58 = vld [vmem:[#allocation4 + $0x148] sm:$0x3] }
 0x1df   : > { %1720 = vmatmul.f32.gmra.mxu0 %v1580_v38  ;;  %v9576_v37 = vld [vmem:[#allocation3 + $0xb0] sm:$0xff]  ;;  %14603 = vst [vmem:[#allocation23_spill] sm:$0xff] %v9690_v47  ;;  %v2881_v36 = vrot.slane %v2720_v58, 1 }
 0x1e0   : > { %2155 = vst.msk [vmem:[#allocation3 + $0xb0] sm:$0xff] %vm638_vm4, %v2139_v26  ;;  %v9591_v38 = vld [vmem:[#allocation4 + $0xb0] sm:$0xff]  ;;  %2917 = vrot.lane.b32.xlu1 %v9624_v52, %s14402_s20  ;;  %v2633_v26 = vld [vmem:[%s9356_s0 + $0xc0] sm:$0xff] }
 0x1e1   : > { %8054 = vmatmul.msk.f32.gmra.mxu3 %vm593_vm0, %v1590_v29  ;;  %2748 = vst.msk [vmem:[#allocation5 + $0xf0] sm:$0xff] %vm2646_vm1, %v9591_v38  ;;  %v9602_v29 = vpop.f32.mrf.mxu1  ;;  %v2849_v44 = vrot.slane %v9591_v38, 1  ;;  %v9634_v17 = vld [vmem:[#allocation4 + $0xf0] sm:$0xff] }
 0x1e2   : > { %14597 = vst [vmem:[#allocation17_spill] sm:$0xff] %v9634_v17 }
 0x1e3   : > { %2753 = vst.msk [vmem:[#allocation5 + $0x140] sm:$0xff] %vm2646_vm1, %v9634_v17  ;;  %v9663_v23 = vsel %vm769_vm3, %v2849_v44, %v2851_v4  ;;  %v2632_v4 = vld [vmem:[%s9356_s0 + $0xb8] sm:$0xff] }
 0x1e4   : > { %14600 = vst [vmem:[#allocation20_spill] sm:$0xff] %v9663_v23  ;;  %2925 = vrot.lane.b32.xlu2 %v9690_v47, %s14402_s20  ;;  %v2636_v47 = vld [vmem:[%s9356_s0 + $0xd8] sm:$0xff] }
 0x1e5   : > { %2671 = vst.msk [vmem:[#allocation4 + $0x139] sm:$0xff] %vm2646_vm1, %v2633_v26 }
 0x1e6   : > { %14604 = vst [vmem:[#allocation24_spill] sm:$0xff] %v9695_v51 }
 0x1e7   : > { %1723 = vmatmul.f32.gmra.mxu0 %v1583_v39  ;;  %v2628_v39 = vld [vmem:[%s9356_s0 + $0x98] sm:$0xff]  ;;  %2755 = vst.msk [vmem:[#allocation5 + $0x160] sm:$0xff] %vm2646_vm1, %v9695_v51 }
 0x1e8   : > { %2666 = vst.msk [vmem:[#allocation4 + $0xf9] sm:$0xff] %vm2646_vm1, %v2628_v39  ;;  %2923 = vrot.lane.b32.xlu1 %v9663_v23, %s14402_s20 }
 0x1e9   : > { %8055 = vmatmul.msk.f32.gmra.mxu3 %vm593_vm0, %v1593_v15  ;;  %v2848_v15 = vrot.slane %v9585_v43, 1  ;;  %v9657_v3 = vpop.f32.mrf.mxu1  ;;  %2670 = vst.msk [vmem:[#allocation4 + $0x129] sm:$0xff] %vm2646_vm1, %v2632_v4 }
 0x1ea   : > { %2673 = vst.msk [vmem:[#allocation4 + $0x151] sm:$0xff] %vm2646_vm1, %v2635_v32 }
 0x1eb   : > { %2674 = vst.msk [vmem:[#allocation4 + $0x159] sm:$0xff] %vm2646_vm1, %v2636_v47  ;;  %v2868_v47 = vrot.slane %v9695_v51, 1 }
 0x1ec   : > { %2675 = vst.msk [vmem:[#allocation4 + $0x169] sm:$0xff] %vm2646_vm1, %v2637_v18 }
 0x1ed   : > { %2676 = vst.msk [vmem:[#allocation4 + $0x171] sm:$0xff] %vm2646_vm1, %v2638_v56 }
 0x1ef   : > { %1726 = vmatmul.f32.gmra.mxu0 %v1586_v49  ;;  %v9643_v49 = vsel %vm769_vm3, %v2848_v15, %v2849_v44  ;;  %v9681_v15 = vsel %vm769_vm3, %v2854_v35, %v2856_v1  ;;  %v9683_v44 = vld [vmem:[#allocation4 + $0xe0] sm:$0xff] }
 0x1f0   : > { %14598 = vst [vmem:[#allocation18_spill] sm:$0xff] %v9643_v49  ;;  %2921 = vrot.lane.b32.xlu0 %v9643_v49, %s14402_s20  ;;  %v2859_v59 = vrot.slane %v9683_v44, 1  ;;  %v2711_v35 = vld [vmem:[#allocation4 + $0x100] sm:$0x3] }
 0x1f1   : > { %8056 = vmatmul.msk.f32.gmra.mxu3 %vm593_vm0, %v1596_v16  ;;  %v2630_v16 = vld [vmem:[%s9356_s0 + $0xa8] sm:$0xff]  ;;  %14601 = vst [vmem:[#allocation21_spill] sm:$0xff] %v9681_v15  ;;  %v9721_v50 = vpop.f32.mrf.mxu1  ;;  %v2866_v4 = vrot.slane %v2711_v35, 1  ;;  %v9763_v56 = vld [vmem:[#allocation4 + $0x150] sm:$0xff]  ;;  %vm2989_vm0 = vcmask 130112  }
 0x1f2   : > { %2668 = vst.msk [vmem:[#allocation4 + $0x111] sm:$0xff] %vm2646_vm1, %v2630_v16  ;;  %v2863_v16 = vrot.slane %v9634_v17, 1  ;;  %v9713_v26 = vsel %vm769_vm3, %v2858_v53, %v2859_v59  ;;  %v9717_v1 = vld [vmem:[#allocation4 + $0x140] sm:$0xff]  ;;  %v9739_v52 = vsel %vm769_vm3, %v2859_v59, %v2861_v34  ;;  %v9754_v34 = vld [vmem:[#allocation4 + $0x128] sm:$0xff]  ;;  %v2883_v58 = vrot.slane %v9763_v56, 1 }
 0x1f3   : > { %14602 = vst [vmem:[#allocation22_spill] sm:$0xff] %v9683_v44  ;;  %v9727_v53 = vld [vmem:[#allocation4 + $0x120] sm:$0xff]  ;;  %2929 = vrot.lane.b32.xlu1 %v9713_v26, %s14402_s20  ;;  %2931 = vrot.lane.b32.xlu2 %v9739_v52, %s14402_s20 }
 0x1f4   : > { %2752 = vst.msk [vmem:[#allocation5 + $0x130] sm:$0xff] %vm2646_vm1, %v9683_v44  ;;  %v2723_v6 = vld [vmem:[#allocation4 + $0x160] sm:$0x3] }
 0x1f5   : > { %14607 = vst [vmem:[#allocation27_spill] sm:$0xff] %v9713_v26  ;;  %v9772_v26 = vld [vmem:[#allocation4 + $0x158] sm:$0xff] }
 0x1f6   : > { %14608 = vst [vmem:[#allocation28_spill] sm:$0xff] %v9717_v1 }
 0x1f7   : > { %1729 = vmatmul.f32.gmra.mxu0 %v1589_v0  ;;  %v9665_v0 = vld [vmem:[#allocation4 + $0xf8] sm:$0xff]  ;;  %2760 = vst.msk [vmem:[#allocation5 + $0x1b0] sm:$0xff] %vm2646_vm1, %v9717_v1 }
 0x1f8   : > { %2754 = vst.msk [vmem:[#allocation5 + $0x150] sm:$0xff] %vm2646_vm1, %v9665_v0  ;;  %2927 = vrot.lane.b32.xlu0 %v9681_v15, %s14402_s20  ;;  %v2864_v33 = vrot.slane %v9665_v0, 1 }
 0x1f9   : > { %14609 = vst [vmem:[#allocation29_spill] sm:$0xff] %v9727_v53  ;;  %v2714_v15 = vld [vmem:[#allocation4 + $0x118] sm:$0x3]  ;;  %v9765_v32 = vpop.f32.mrf.mxu1 }
 0x1fa   : > { %v9630_v22 = vpop.f32.mrf.mxu3  ;;  %2757 = vst.msk [vmem:[#allocation5 + $0x180] sm:$0xff] %vm2646_vm1, %v9727_v53  ;;  %v9735_v61 = vsel %vm769_vm3, %v2863_v16, %v2864_v33  ;;  %v2871_v35 = vrot.slane %v2714_v15, 1  ;;  %v9752_v59 = vsel %vm769_vm3, %v2864_v33, %v2866_v4  ;;  %v2874_v33 = vrot.slane %v9754_v34, 1 }
 0x1fb   : > { %14610 = vst [vmem:[#allocation30_spill] sm:$0xff] %v9735_v61  ;;  %2935 = vrot.lane.b32.xlu1 %v9752_v59, %s14402_s20  ;;  %v2873_v4 = vrot.slane %v9727_v53, 1 }
 0x1fc   : > { %14611 = vst [vmem:[#allocation31_spill] sm:$0xff] %v9739_v52 }
 0x1fd   : > { %14612 = vst [vmem:[#allocation32_spill] sm:$0xff] %v9752_v59  ;;  %v9781_v59 = vld [vmem:[#allocation4 + $0x168] sm:$0xff]  ;;  %v9796_v49 = vsel %vm769_vm3, %v2873_v4, %v2874_v33 }
 0x1fe   : > { %14613 = vst [vmem:[#allocation33_spill] sm:$0xff] %v9754_v34 }
 0x1ff   : > { %1732 = vmatmul.f32.gmra.mxu0 %v1592_v9  ;;  %v9697_v9 = vld [vmem:[#allocation4 + $0x110] sm:$0xff]  ;;  %2758 = vst.msk [vmem:[#allocation5 + $0x190] sm:$0xff] %vm2646_vm1, %v9754_v34 }
 0x200   : > { %14605 = vst [vmem:[#allocation25_spill] sm:$0xff] %v9697_v9  ;;  %2933 = vrot.lane.b32.xlu0 %v9735_v61, %s14402_s20  ;;  %v2869_v16 = vrot.slane %v9697_v9, 1  ;;  %v2717_v61 = vld [vmem:[#allocation4 + $0x130] sm:$0x3] }
 0x201   : > { %2756 = vst.msk [vmem:[#allocation5 + $0x170] sm:$0xff] %vm2646_vm1, %v9697_v9  ;;  %v2876_v54 = vrot.slane %v2717_v61, 1  ;;  %v9809_v4 = vpop.f32.mrf.mxu1  ;;  %v2884_v61 = vrot.slane %v9772_v26, 1 }
 0x202   : > { %14614 = vst [vmem:[#allocation34_spill] sm:$0xff] %v9763_v56  ;;  %v9768_v15 = vsel %vm769_vm3, %v2869_v16, %v2871_v35  ;;  %v9777_v52 = vsel %vm769_vm3, %v2868_v47, %v2869_v16  ;;  %v9783_v35 = vld [vmem:[#allocation4 + $0x170] sm:$0xff]  ;;  %v2879_v47 = vrot.slane %v9717_v1, 1 }
 0x203   : > { %14615 = vst [vmem:[#allocation35_spill] sm:$0xff] %v9768_v15  ;;  %2937 = vrot.lane.b32.xlu2 %v9777_v52, %s14402_s20  ;;  %2941 = vrot.lane.b32.xlu1 %v9796_v49, %s14402_s20 }
 0x204   : > { %v9672_v39 = vpop.f32.mrf.mxu3  ;;  %14616 = vst [vmem:[#allocation36_spill] sm:$0xff] %v9772_v26 }
 0x205   : > { %2761 = vst.msk [vmem:[#allocation5 + $0x1c0] sm:$0xff] %vm2646_vm1, %v9763_v56 }
 0x206   : > { %14617 = vst [vmem:[#allocation37_spill] sm:$0xff] %v9777_v52  ;;  %v9807_v52 = vsel %vm769_vm3, %v2874_v33, %v2876_v54 }
 0x207   : > { %1735 = vmatmul.f32.gmra.mxu0 %v9576_v37  ;;  %v9706_v37 = vld [vmem:[#allocation4 + $0x138] sm:$0xff]  ;;  %2762 = vst.msk [vmem:[#allocation5 + $0x1d0] sm:$0xff] %vm2646_vm1, %v9772_v26 }
 0x208   : > { %14606 = vst [vmem:[#allocation26_spill] sm:$0xff] %v9706_v37  ;;  %2939 = vrot.lane.b32.xlu0 %v9768_v15, %s14402_s20  ;;  %v2878_v16 = vrot.slane %v9706_v37, 1  ;;  %v1877_v15 = vpop.permute.xlu2 %1876 }
 0x209   : > { %2759 = vst.msk [vmem:[#allocation5 + $0x1a0] sm:$0xff] %vm2646_vm1, %v9706_v37 }
 0x20a   : > { %14618 = vst [vmem:[#allocation38_spill] sm:$0xff] %v9781_v59  ;;  %v9803_v19 = vsel %vm769_vm3, %v2878_v16, %v2879_v47  ;;  %v9817_v16 = vsel %vm769_vm3, %v2879_v47, %v2881_v36  ;;  %v9831_v36 = vsel %vm769_vm3, %v2883_v58, %v2884_v61  ;;  %v9835_v47 = vpop.f32.mrf.mxu1 }
 0x20b   : > { %14619 = vst [vmem:[#allocation39_spill] sm:$0xff] %v9783_v35  ;;  %2943 = vrot.lane.b32.xlu2 %v9807_v52, %s14402_s20  ;;  %2947 = vrot.lane.b32.xlu1 %v9817_v16, %s14402_s20 }
 0x20c   : > { %v9723_v23 = vpop.f32.mrf.mxu3  ;;  %2763 = vst.msk [vmem:[#allocation5 + $0x1e0] sm:$0xff] %vm2646_vm1, %v9781_v59 }
 0x20d   : > { %2764 = vst.msk [vmem:[#allocation5 + $0x1f0] sm:$0xff] %vm2646_vm1, %v9783_v35 }
 0x20e   : > { %14620 = vst [vmem:[#allocation40_spill] sm:$0xff] %v9796_v49  ;;  %v2886_v49 = vrot.slane %v2723_v6, 1  ;;  %v2726_v6 = vld [vmem:[#allocation4 + $0x178] sm:$0x3] }
 0x20f   : > { %14621 = vst [vmem:[#allocation41_spill] sm:$0xff] %v9803_v19 }
 0x210   : > { %1900 = vst.msk [vmem:[#allocation3] sm:$0xff] %vm818_vm5, %v1877_v15  ;;  %2945 = vrot.lane.b32.xlu0 %v9803_v19, %s14402_s20  ;;  %v2896_v15 = vpop.permute.xlu2 %2895  ;;  %v9825_v33 = vsel %vm769_vm3, %v2884_v61, %v2886_v49  ;;  %v2888_v19 = vrot.slane %v9781_v59, 1  ;;  %v3022_v49 = vrot.slane %v9393_v2, 2  ;;  %v1933_v61 = vpop.permute.xlu1 %1932 }
 0x211   : > { %14622 = vst [vmem:[#allocation42_spill] sm:$0xff] %v9807_v52  ;;  %v2889_v52 = vrot.slane %v9783_v35, 1 }
 0x212   : > { %14623 = vst [vmem:[#allocation43_spill] sm:$0xff] %v9817_v16  ;;  %v3023_v16 = vrot.slane %v9389_v62, 2  ;;  %v3028_v62 = vrot.slane %v9404_v12, 2 }
 0x213   : > { %14624 = vst [vmem:[#allocation44_spill] sm:$0xff] %v9825_v33  ;;  %2949 = vrot.lane.b32.xlu2 %v9831_v36, %s14402_s20  ;;  %v9842_v30 = vsel %vm769_vm3, %v2888_v19, %v2889_v52  ;;  %v3030_v19 = vrot.slane %v9428_v41, 2 }
 0x214   : > { %v9759_v18 = vpop.f32.mrf.mxu3  ;;  %2991 = vst.msk [vmem:[#allocation5 + $0x10] sm:$0xff] %vm2989_vm0, %v2896_v15  ;;  %v2891_v15 = vrot.slane %v2726_v6, 1  ;;  %2953 = vrot.lane.b32.xlu1 %v9842_v30, %s14402_s20  ;;  %v3024_v58 = vsel %vm827_vm2, %v3022_v49, %v3023_v16  ;;  %v3027_v49 = vrot.slane %v9400_v14, 2 }
 0x215   : > { %14625 = vst [vmem:[#allocation45_spill] sm:$0xff] %v9831_v36 }
 0x216   : > { %14626 = vst [vmem:[#allocation46_spill] sm:$0xff] %v9842_v30  ;;  %v9852_v2 = vsel %vm769_vm3, %v2889_v52, %v2891_v15  ;;  %v9861_v30 = vpop.f32.mrf.mxu1  ;;  %v9869_v15 = vsel %vm827_vm2, %v3028_v62, %v3030_v19  ;;  %v3038_v19 = vrot.slane %v9511_v24, 2 }
 0x217   : > { %1956 = vst.msk [vmem:[#allocation3] sm:$0xff] %vm876_vm6, %v1933_v61  ;;  %v3033_v61 = vrot.slane %v9481_v40, 2 }
 0x218   : > { %2951 = vrot.lane.b32.xlu0 %v9825_v33, %s14402_s20  ;;  %v3025_v33 = vrot.slane %v9391_v63, 2  ;;  %14627 = vst [vmem:[#allocation47_spill] sm:$0xff] %v9852_v2 }
 0x219   : > { %14628 = vst [vmem:[#allocation48_spill] sm:$0xff] %v9869_v15 }
 0x21a   : > { %v3026_v6 = vsel %vm827_vm2, %v3023_v16, %v3025_v33  ;;  %v9876_v16 = vsel %vm827_vm2, %v3027_v49, %v3028_v62  ;;  %v3037_v33 = vrot.slane %v9506_v11, 2 }
 0x21b   : > { %2955 = vrot.lane.b32.xlu2 %v9852_v2, %s14402_s20  ;;  %14629 = vst [vmem:[#allocation49_spill] sm:$0xff] %v9876_v16  ;;  %v3035_v2 = vrot.slane %v9483_v31, 2  ;;  %v3043_v31 = vrot.slane %v9494_v10, 2 }
 0x21c   : > { %v9798_v57 = vpop.f32.mrf.mxu3  ;;  %3104 = vrot.lane.b32.xlu1 %v3026_v6, %s14404_s28  ;;  %v9891_v36 = vsel %vm827_vm2, %v3037_v33, %v3038_v19  ;;  %v3045_v33 = vrot.slane %v9529_v5, 2 }
 0x21d   : > { %14631 = vst [vmem:[#allocation51_spill] sm:$0xff] %v9891_v36 }
 0x21e   : > { %v1198_v49 = vpop.f32.mrf.mxu1 }
 0x220   : > { %3102 = vrot.lane.b32.xlu0 %v3024_v58, %s14404_s28  ;;  %v3032_v58 = vrot.slane %v9478_v55, 2 }
 0x222   : > { %v9885_v6 = vsel %vm827_vm2, %v3032_v58, %v3033_v61 }
 0x223   : > { %3106 = vrot.lane.b32.xlu2 %v9876_v16, %s14404_s28  ;;  %14630 = vst [vmem:[#allocation50_spill] sm:$0xff] %v9885_v6  ;;  %v9896_v16 = vsel %vm827_vm2, %v3033_v61, %v3035_v2  ;;  %v3042_v2 = vrot.slane %v9492_v13, 2  ;;  %v2902_v61 = vpop.permute.xlu2 %2901 }
 0x224   : > { %v9820_v54 = vpop.f32.mrf.mxu3  ;;  %3110 = vrot.lane.b32.xlu1 %v9885_v6, %s14404_s28  ;;  %14632 = vst [vmem:[#allocation52_spill] sm:$0xff] %v9896_v16  ;;  %v3048_v6 = vrot.slane %v9526_v48, 2 }
 0x225   : > { %2994 = vst.msk [vmem:[#allocation5 + $0x40] sm:$0xff] %vm2989_vm0, %v2902_v61  ;;  %v9919_v5 = vsel %vm827_vm2, %v3042_v2, %v3043_v31  ;;  %v14395_v61 = vrot.slane %v9604_v25, 2 }
 0x226   : > { %14635 = vst [vmem:[#allocation55_spill] sm:$0xff] %v9919_v5 }
 0x228   : > { %3108 = vrot.lane.b32.xlu0 %v9869_v15, %s14404_s28  ;;  %v3040_v15 = vrot.slane %v9513_v42, 2 }
 0x22a   : > { %v9864_v63 = vpop.permute.xlu1 %2083  ;;  %v9906_v42 = vsel %vm827_vm2, %v3038_v19, %v3040_v15  ;;  %v1201_v15 = vpop.f32.mrf.mxu1 }
 0x22b   : > { %3112 = vrot.lane.b32.xlu2 %v9896_v16, %s14404_s28  ;;  %14633 = vst [vmem:[#allocation53_spill] sm:$0xff] %v9906_v42  ;;  %v3047_v16 = vrot.slane %v9539_v60, 2 }
 0x22c   : > { %v9844_v8 = vpop.f32.mrf.mxu3  ;;  %3116 = vrot.lane.b32.xlu1 %v9906_v42, %s14404_s28 }
 0x22d   : > { %v9873_v41 = vpop.permute.xlu0 %2119  ;;  %v9928_v42 = vsel %vm827_vm2, %v3047_v16, %v3048_v6 }
 0x22e   : > { %14636 = vst [vmem:[#allocation56_spill] sm:$0xff] %v9928_v42 }
 0x230   : > { %3114 = vrot.lane.b32.xlu0 %v9891_v36, %s14404_s28 }
 0x232   : > { %v2894_v62 = vpop.permute.xlu1 %2893 }
 0x233   : > { %2990 = vst.msk [vmem:[#allocation5] sm:$0xff] %vm2989_vm0, %v2894_v62  ;;  %3118 = vrot.lane.b32.xlu2 %v9919_v5, %s14404_s28  ;;  %v2908_v5 = vpop.permute.xlu2 %2907 }
 0x234   : > { %v9866_v52 = vpop.f32.mrf.mxu3  ;;  %3122 = vrot.lane.b32.xlu1 %v9928_v42, %s14404_s28  ;;  %2997 = vst.msk [vmem:[#allocation5 + $0x70] sm:$0xff] %vm2989_vm0, %v2908_v5  ;;  %v2188_v5 = vld [vmem:[%s14303_s6 + $0x80] sm:$0xff] }
 0x235   : > { %v2898_v58 = vpop.permute.xlu0 %2897 }
 0x236   : > { %2992 = vst.msk [vmem:[#allocation5 + $0x20] sm:$0xff] %vm2989_vm0, %v2898_v58  ;;  %v9913_v58 = vsel %vm827_vm2, %v3043_v31, %v3045_v33  ;;  %v3052_v33 = vrot.slane %v9600_v45, 2  ;;  %v3050_v31 = vrot.slane %v9558_v20, 2 }
 0x237   : > { %14634 = vst [vmem:[#allocation54_spill] sm:$0xff] %v9913_v58 }
 0x238   : > { %3120 = vrot.lane.b32.xlu0 %v9913_v58, %s14404_s28  ;;  %v9935_v58 = vld [vmem:[%s14302_s5] ss:$0 sm:$0xff] }
 0x23a   : > { %v2900_v62 = vpop.permute.xlu1 %2899 }
 0x23b   : > { %2993 = vst.msk [vmem:[#allocation5 + $0x30] sm:$0xff] %vm2989_vm0, %v2900_v62  ;;  %v1199_v62 = vadd.f32 %v1198_v49, %v9547_v27  ;;  %v9944_v27 = vsel %vm827_vm2, %v3052_v33, %v14395_v61  ;;  %v9948_v49 = vsel %vm827_vm2, %v3048_v6, %v3050_v31  ;;  %v1204_v33 = vpop.f32.mrf.mxu1 }
 0x23c   : > { %v1756_v28 = vpop.f32.mrf.mxu3  ;;  %14637 = vst [vmem:[#allocation57_spill] sm:$0xff] %v9944_v27  ;;  %3124 = vrot.lane.b32.xlu2 %v9948_v49, %s14404_s28  ;;  %v1205_v42 = vadd.f32 %v1204_v33, %v9657_v3 }
 0x23d   : > { %v1222_v20 = vadd.f32 %v9935_v58, %v1199_v62  ;;  %14638 = vst [vmem:[#allocation58_spill] sm:$0xff] %v9948_v49 }
 0x23e   : > { %v1224_v3 = vadd.f32 %v9935_v58, %v1205_v42 }
 0x240   : > { %3126 = vrot.lane.b32.xlu0 %v9944_v27, %s14404_s28 }
 0x243   : > { %v1207_v27 = vpop.f32.mrf.mxu1 }
 0x244   : > { %v1759_v19 = vpop.f32.mrf.mxu3 }
 0x24c   : > { %v1715_v2 = vpop.f32.mrf.mxu0  ;;  %v1762_v6 = vpop.f32.mrf.mxu3 }
 0x24d   : > { %v1716_v36 = vadd.f32 %v1715_v2, %v9630_v22  ;;  %v2189_v22 = vld [vmem:[%s14303_s6 + $0x88] sm:$0xff] }
 0x24e   : > { %2269 = vmatpush.msra.mxu3 %v2189_v22 }
 0x24f   : > { %v1757_v16 = vadd.f32 %v1756_v28, %v1716_v36  ;;  %v1202_v28 = vadd.f32 %v1201_v15, %v9602_v29 }
 0x250   : > { %2270 = vmatpush.msra.mxu3 %v2188_v5  ;;  %v2904_v5 = vpop.permute.xlu0 %2903 }
 0x251   : > { %v1780_v2 = vadd.f32 %v1757_v16, %v1222_v20  ;;  %v2914_v20 = vpop.permute.xlu2 %2913  ;;  %v1223_v16 = vadd.f32 %v9935_v58, %v1202_v28  ;;  %2995 = vst.msk [vmem:[#allocation5 + $0x50] sm:$0xff] %vm2989_vm0, %v2904_v5 }
 0x252   : > { %3000 = vst.msk [vmem:[#allocation5 + $0xa0] sm:$0xff] %vm2989_vm0, %v2914_v20 }
 0x253   : > { %v1788_v36 = vmax.f32 %v1780_v2, 0.0 }
 0x254   : > { %v1718_v62 = vpop.f32.mrf.mxu0 }
 0x255   : > { %1800 = vst.msk [vmem:[#allocation2 + $0x11] sm:$0xff] %vm638_vm4, %v1788_v36  ;;  %v1719_v31 = vadd.f32 %v1718_v62, %v9672_v39  ;;  %v1765_v62 = vpop.f32.mrf.mxu3 }
 0x257   : > { %v1760_v22 = vadd.f32 %v1759_v19, %v1719_v31  ;;  %v2906_v31 = vpop.permute.xlu1 %2905 }
 0x258   : > { %2996 = vst.msk [vmem:[#allocation5 + $0x60] sm:$0xff] %vm2989_vm0, %v2906_v31  ;;  %v2910_v5 = vpop.permute.xlu0 %2909 }
 0x259   : > { %v1781_v61 = vadd.f32 %v1760_v22, %v1223_v16  ;;  %v2920_v19 = vpop.permute.xlu2 %2919  ;;  %v1208_v16 = vadd.f32 %v1207_v27, %v9721_v50  ;;  %2998 = vst.msk [vmem:[#allocation5 + $0x80] sm:$0xff] %vm2989_vm0, %v2910_v5 }
 0x25a   : > { %3003 = vst.msk [vmem:[#allocation5 + $0xd0] sm:$0xff] %vm2989_vm0, %v2920_v19 }
 0x25b   : > { %v1789_v49 = vmax.f32 %v1781_v61, 0.0  ;;  %v1225_v27 = vadd.f32 %v9935_v58, %v1208_v16 }
 0x25c   : > { %v1721_v29 = vpop.f32.mrf.mxu0  ;;  %v1810_v15 = vld [vmem:[#allocation2 + $0x10] sm:$0xff]  ;;  %v1811_v2 = vld [vmem:[#allocation2 + $0x18] sm:$0x3] }
 0x25d   : > { %1801 = vst.msk [vmem:[#allocation2 + $0x21] sm:$0xff] %vm638_vm4, %v1789_v49  ;;  %v1722_v39 = vadd.f32 %v1721_v29, %v9723_v23  ;;  %v1911_v36 = vrot.slane %v1810_v15, 2  ;;  %1965 = vrot.lane.b32.xlu0 %v1810_v15, %s14639_s29  ;;  %v1912_v28 = vrot.slane %v1811_v2, 2  ;;  %v1855_v20 = vrot.slane %v1810_v15, 1 }
 0x25e   : > { %1829 = vst.msk [vmem:[#allocation3 + $0x18] sm:$0xff] %vm638_vm4, %v1810_v15  ;;  %v1856_v23 = vrot.slane %v1811_v2, 1 }
 0x25f   : > { %v1763_v61 = vadd.f32 %v1762_v6, %v1722_v39  ;;  %v1913_v33 = vsel %vm827_vm2, %v1911_v36, %v1912_v28  ;;  %v1210_v28 = vpop.f32.mrf.mxu1 }
 0x260   : > { %2036 = vrot.lane.b32.xlu1 %v1913_v33, %s14640_s19  ;;  %1934 = vrot.lane.b32.xlu2 %v1913_v33, %s14408_s27  ;;  %v1857_v6 = vsel %vm769_vm3, %v1855_v20, %v1856_v23  ;;  %v1211_v31 = vadd.f32 %v1210_v28, %v9765_v32  ;;  %v2916_v23 = vpop.permute.xlu0 %2915 }
 0x261   : > { %v1782_v49 = vadd.f32 %v1763_v61, %v1224_v3  ;;  %v2926_v2 = vpop.permute.xlu2 %2925  ;;  %v2912_v3 = vpop.permute.xlu1 %2911  ;;  %3001 = vst.msk [vmem:[#allocation5 + $0xb0] sm:$0xff] %vm2989_vm0, %v2916_v23 }
 0x262   : > { %3006 = vst.msk [vmem:[#allocation5 + $0x100] sm:$0xff] %vm2989_vm0, %v2926_v2  ;;  %v1768_v61 = vpop.f32.mrf.mxu3 }
 0x263   : > { %v1790_v22 = vmax.f32 %v1782_v49, 0.0  ;;  %2999 = vst.msk [vmem:[#allocation5 + $0x90] sm:$0xff] %vm2989_vm0, %v2912_v3 }
 0x264   : > { %v1724_v42 = vpop.f32.mrf.mxu0  ;;  %v1812_v29 = vld [vmem:[#allocation2 + $0x20] sm:$0xff]  ;;  %v1813_v39 = vld [vmem:[#allocation2 + $0x28] sm:$0x3] }
 0x265   : > { %1802 = vst.msk [vmem:[#allocation2 + $0x31] sm:$0xff] %vm638_vm4, %v1790_v22  ;;  %v1725_v15 = vadd.f32 %v1724_v42, %v9759_v18  ;;  %1878 = vrot.lane.b32.xlu0 %v1857_v6, %s14404_s28  ;;  %v1914_v36 = vrot.slane %v1812_v29, 2  ;;  %v1915_v50 = vrot.slane %v1813_v39, 2  ;;  %v1859_v49 = vrot.slane %v1813_v39, 1 }
 0x266   : > { %1830 = vst.msk [vmem:[#allocation3 + $0x30] sm:$0xff] %vm638_vm4, %v1812_v29  ;;  %v1226_v39 = vadd.f32 %v9935_v58, %v1211_v31 }
 0x267   : > { %v1766_v19 = vadd.f32 %v1765_v62, %v1725_v15  ;;  %v1916_v18 = vsel %vm827_vm2, %v1914_v36, %v1915_v50  ;;  %v1858_v62 = vrot.slane %v1812_v29, 1 }
 0x268   : > { %1967 = vrot.lane.b32.xlu1 %v1812_v29, %s14639_s29  ;;  %2001 = vrot.lane.b32.xlu2 %v1857_v6, %s14641_s1  ;;  %2148 = vst.msk [vmem:[#allocation3 + $0x8] sm:$0xff] %vm638_vm4, %v1916_v18 }
 0x269   : > { %v1783_v33 = vadd.f32 %v1766_v19, %v1225_v27  ;;  %v2932_v6 = vpop.permute.xlu2 %2931  ;;  %v1860_v36 = vsel %vm769_vm3, %v1858_v62, %v1859_v49 }
 0x26a   : > { %3009 = vst.msk [vmem:[#allocation5 + $0x130] sm:$0xff] %vm2989_vm0, %v2932_v6  ;;  %v1771_v19 = vpop.f32.mrf.mxu3 }
 0x26b   : > { %v1791_v20 = vmax.f32 %v1783_v33, 0.0  ;;  %v2922_v33 = vpop.permute.xlu0 %2921 }
 0x26c   : > { %v1727_v16 = vpop.f32.mrf.mxu0  ;;  %v9993_v22 = vld [vmem:[#allocation2 + $0x30] sm:$0xff]  ;;  %v9995_v5 = vld [vmem:[#allocation2 + $0x38] sm:$0x3]  ;;  %3004 = vst.msk [vmem:[#allocation5 + $0xe0] sm:$0xff] %vm2989_vm0, %v2922_v33 }
 0x26d   : > { %1803 = vst.msk [vmem:[#allocation2 + $0x41] sm:$0xff] %vm638_vm4, %v1791_v20  ;;  %v1728_v42 = vadd.f32 %v1727_v16, %v9798_v57  ;;  %2069 = vrot.lane.b32.xlu0 %v1812_v29, %s14585_s22  ;;  %v1917_v32 = vrot.slane %v9993_v22, 2  ;;  %v1918_v15 = vrot.slane %v9995_v5, 2  ;;  %v2918_v57 = vpop.permute.xlu1 %2917  ;;  %v1213_v29 = vpop.f32.mrf.mxu1 }
 0x26e   : > { %1831 = vst.msk [vmem:[#allocation3 + $0x48] sm:$0xff] %vm638_vm4, %v9993_v22  ;;  %v1214_v3 = vadd.f32 %v1213_v29, %v9809_v4 }
 0x26f   : > { %v1769_v2 = vadd.f32 %v1768_v61, %v1728_v42  ;;  %v10006_v28 = vsel %vm827_vm2, %v1917_v32, %v1918_v15  ;;  %v2157_v50 = vld [vmem:[#allocation3 + $0x8] sm:$0xff]  ;;  %3002 = vst.msk [vmem:[#allocation5 + $0xc0] sm:$0xff] %vm2989_vm0, %v2918_v57  ;;  %v1216_v42 = vpop.f32.mrf.mxu2 }
 0x270   : > { %1880 = vrot.lane.b32.xlu1 %v1860_v36, %s14404_s28  ;;  %2038 = vrot.lane.b32.xlu2 %v1916_v18, %s14640_s19  ;;  %2149 = vst.msk [vmem:[#allocation3 + $0x20] sm:$0xff] %vm638_vm4, %v10006_v28  ;;  %v1227_v6 = vadd.f32 %v9935_v58, %v1214_v3 }
 0x271   : > { %v1784_v27 = vadd.f32 %v1769_v2, %v1226_v39  ;;  %8057 = vmatmul.msk.f32.vlgmr.msra.gmra.mxu3 %vm638_vm4, %v2157_v50  ;;  %v2938_v49 = vpop.permute.xlu2 %2937  ;;  %v1217_v2 = vadd.f32 %v1216_v42, %v9835_v47 }
 0x272   : > { %3012 = vst.msk [vmem:[#allocation5 + $0x160] sm:$0xff] %vm2989_vm0, %v2938_v49  ;;  %v1774_v50 = vpop.f32.mrf.mxu3 }
 0x273   : > { %v1792_v61 = vmax.f32 %v1784_v27, 0.0  ;;  %v2928_v29 = vpop.permute.xlu0 %2927 }
 0x274   : > { %v1730_v31 = vpop.f32.mrf.mxu0  ;;  %v10018_v20 = vld [vmem:[#allocation2 + $0x40] sm:$0xff]  ;;  %v10020_v23 = vld [vmem:[#allocation2 + $0x48] sm:$0x3]  ;;  %3007 = vst.msk [vmem:[#allocation5 + $0x110] sm:$0xff] %vm2989_vm0, %v2928_v29 }
 0x275   : > { %1804 = vst.msk [vmem:[#allocation2 + $0x51] sm:$0xff] %vm638_vm4, %v1792_v61  ;;  %v1731_v62 = vadd.f32 %v1730_v31, %v9820_v54  ;;  %1936 = vrot.lane.b32.xlu0 %v1916_v18, %s14408_s27  ;;  %v1920_v16 = vrot.slane %v10018_v20, 2  ;;  %v1921_v4 = vrot.slane %v10020_v23, 2  ;;  %v2924_v54 = vpop.permute.xlu1 %2923 }
 0x276   : > { %1832 = vst.msk [vmem:[#allocation3 + $0x60] sm:$0xff] %vm638_vm4, %v10018_v20 }
 0x277   : > { %v1772_v32 = vadd.f32 %v1771_v19, %v1731_v62  ;;  %v2159_v15 = vld [vmem:[#allocation3 + $0x20] sm:$0xff]  ;;  %v10030_v39 = vsel %vm827_vm2, %v1920_v16, %v1921_v4  ;;  %3005 = vst.msk [vmem:[#allocation5 + $0xf0] sm:$0xff] %vm2989_vm0, %v2924_v54  ;;  %v1228_v62 = vadd.f32 %v9935_v58, %v1217_v2  ;;  %v1219_v42 = vpop.f32.mrf.mxu2  ;;  %v1861_v54 = vrot.slane %v9993_v22, 1 }
 0x278   : > { %2071 = vrot.lane.b32.xlu1 %v9993_v22, %s14585_s22  ;;  %2105 = vrot.lane.b32.xlu2 %v1860_v36, %s14406_s21  ;;  %2150 = vst.msk [vmem:[#allocation3 + $0x38] sm:$0xff] %vm638_vm4, %v10030_v39 }
 0x279   : > { %v1785_v18 = vadd.f32 %v1772_v32, %v1227_v6  ;;  %8058 = vmatmul.msk.f32.gmra.mxu3 %vm638_vm4, %v2159_v15  ;;  %v2944_v33 = vpop.permute.xlu2 %2943  ;;  %v1220_v6 = vadd.f32 %v1219_v42, %v9861_v30 }
 0x27a   : > { %3015 = vst.msk [vmem:[#allocation5 + $0x190] sm:$0xff] %vm2989_vm0, %v2944_v33 }
 0x27b   : > { %v1793_v57 = vmax.f32 %v1785_v18, 0.0  ;;  %v2934_v15 = vpop.permute.xlu0 %2933  ;;  %v1862_v18 = vrot.slane %v9995_v5, 1 }
 0x27c   : > { %v1733_v27 = vpop.f32.mrf.mxu0  ;;  %v10043_v19 = vld [vmem:[#allocation2 + $0x50] sm:$0xff]  ;;  %v10045_v3 = vld [vmem:[#allocation2 + $0x58] sm:$0x3]  ;;  %3010 = vst.msk [vmem:[#allocation5 + $0x140] sm:$0xff] %vm2989_vm0, %v2934_v15 }
 0x27d   : > { %1805 = vst.msk [vmem:[#allocation2 + $0x61] sm:$0xff] %vm638_vm4, %v1793_v57  ;;  %v1734_v61 = vadd.f32 %v1733_v27, %v9844_v8  ;;  %2003 = vrot.lane.b32.xlu0 %v1860_v36, %s14641_s1  ;;  %v1923_v31 = vrot.slane %v10043_v19, 2  ;;  %v1924_v47 = vrot.slane %v10045_v3, 2  ;;  %v2930_v8 = vpop.permute.xlu1 %2929  ;;  %v1777_v57 = vpop.f32.mrf.mxu3 }
 0x27e   : > { %1833 = vst.msk [vmem:[#allocation3 + $0x78] sm:$0xff] %vm638_vm4, %v10043_v19 }
 0x27f   : > { %v1775_v49 = vadd.f32 %v1774_v50, %v1734_v61  ;;  %v2161_v16 = vld [vmem:[#allocation3 + $0x38] sm:$0xff]  ;;  %v10055_v4 = vsel %vm827_vm2, %v1923_v31, %v1924_v47  ;;  %3008 = vst.msk [vmem:[#allocation5 + $0x120] sm:$0xff] %vm2989_vm0, %v2930_v8  ;;  %v1229_v61 = vadd.f32 %v9935_v58, %v1220_v6  ;;  %v1863_v31 = vsel %vm769_vm3, %v1861_v54, %v1862_v18 }
 0x280   : > { %1938 = vrot.lane.b32.xlu1 %v10006_v28, %s14408_s27  ;;  %1969 = vrot.lane.b32.xlu2 %v9993_v22, %s14639_s29  ;;  %2151 = vst.msk [vmem:[#allocation3 + $0x50] sm:$0xff] %vm638_vm4, %v10055_v4 }
 0x281   : > { %v1786_v36 = vadd.f32 %v1775_v49, %v1228_v62  ;;  %8059 = vmatmul.msk.f32.gmra.mxu3 %vm638_vm4, %v2161_v16  ;;  %v2950_v30 = vpop.permute.xlu2 %2949 }
 0x282   : > { %3018 = vst.msk [vmem:[#allocation5 + $0x1c0] sm:$0xff] %vm2989_vm0, %v2950_v30  ;;  %v1864_v30 = vrot.slane %v10018_v20, 1 }
 0x283   : > { %v1794_v32 = vmax.f32 %v1786_v36, 0.0  ;;  %v2940_v49 = vpop.permute.xlu0 %2939 }
 0x284   : > { %v1736_v2 = vpop.f32.mrf.mxu0  ;;  %v10071_v29 = vld [vmem:[#allocation2 + $0x60] sm:$0xff]  ;;  %v10073_v50 = vld [vmem:[#allocation2 + $0x68] sm:$0x3]  ;;  %3013 = vst.msk [vmem:[#allocation5 + $0x170] sm:$0xff] %vm2989_vm0, %v2940_v49 }
 0x285   : > { %1806 = vst.msk [vmem:[#allocation2 + $0x71] sm:$0xff] %vm638_vm4, %v1794_v32  ;;  %v1737_v27 = vadd.f32 %v1736_v2, %v9866_v52  ;;  %2040 = vrot.lane.b32.xlu0 %v10006_v28, %s14640_s19  ;;  %v1926_v22 = vrot.slane %v10071_v29, 2  ;;  %v1927_v5 = vrot.slane %v10073_v50, 2  ;;  %v2936_v52 = vpop.permute.xlu1 %2935 }
 0x286   : > { %1834 = vst.msk [vmem:[#allocation3 + $0x90] sm:$0xff] %vm638_vm4, %v10071_v29 }
 0x287   : > { %v1778_v33 = vadd.f32 %v1777_v57, %v1737_v27  ;;  %v2163_v47 = vld [vmem:[#allocation3 + $0x50] sm:$0xff]  ;;  %v10085_v62 = vsel %vm827_vm2, %v1926_v22, %v1927_v5  ;;  %3011 = vst.msk [vmem:[#allocation5 + $0x150] sm:$0xff] %vm2989_vm0, %v2936_v52  ;;  %v1865_v22 = vrot.slane %v10020_v23, 1 }
 0x288   : > { %2005 = vrot.lane.b32.xlu1 %v1863_v31, %s14641_s1  ;;  %1882 = vrot.lane.b32.xlu2 %v1863_v31, %s14404_s28  ;;  %2152 = vst.msk [vmem:[#allocation3 + $0x68] sm:$0xff] %vm638_vm4, %v10085_v62 }
 0x289   : > { %v1787_v28 = vadd.f32 %v1778_v33, %v1229_v61  ;;  %8060 = vmatmul.msk.f32.gmra.mxu3 %vm638_vm4, %v2163_v47  ;;  %v2956_v42 = vpop.permute.xlu2 %2955  ;;  %v1866_v52 = vsel %vm769_vm3, %v1864_v30, %v1865_v22  ;;  %v2185_v30 = vld [vmem:[%s14303_s6 + $0x68] sm:$0xff] }
 0x28a   : > { %3021 = vst.msk [vmem:[#allocation5 + $0x1f0] sm:$0xff] %vm2989_vm0, %v2956_v42 }
 0x28b   : > { %v1795_v58 = vmax.f32 %v1787_v28, 0.0  ;;  %v2946_v27 = vpop.permute.xlu0 %2945 }
 0x28c   : > { %v10096_v16 = vld [vmem:[#allocation2 + $0x70] sm:$0xff]  ;;  %v1823_v8 = vld [vmem:[#allocation2 + $0x78] sm:$0x3]  ;;  %3016 = vst.msk [vmem:[#allocation5 + $0x1a0] sm:$0xff] %vm2989_vm0, %v2946_v27 }
 0x28d   : > { %1807 = vst.msk [vmem:[#allocation2 + $0x81] sm:$0xff] %vm638_vm4, %v1795_v58  ;;  %2107 = vrot.lane.b32.xlu0 %v1863_v31, %s14406_s21  ;;  %v1929_v36 = vrot.slane %v10096_v16, 2  ;;  %v1930_v6 = vrot.slane %v1823_v8, 2  ;;  %v1873_v32 = vrot.slane %v10096_v16, 1  ;;  %v1874_v15 = vrot.slane %v1823_v8, 1  ;;  %v2942_v2 = vpop.permute.xlu1 %2941 }
 0x28e   : > { %1835 = vst.msk [vmem:[#allocation3 + $0xa8] sm:$0xff] %vm638_vm4, %v10096_v16 }
 0x28f   : > { %v2165_v54 = vld [vmem:[#allocation3 + $0x68] sm:$0xff]  ;;  %v10104_v18 = vsel %vm827_vm2, %v1929_v36, %v1930_v6  ;;  %v10109_v57 = vsel %vm769_vm3, %v1873_v32, %v1874_v15  ;;  %3014 = vst.msk [vmem:[#allocation5 + $0x180] sm:$0xff] %vm2989_vm0, %v2942_v2  ;;  %v1867_v36 = vrot.slane %v10043_v19, 1  ;;  %v1868_v6 = vrot.slane %v10045_v3, 1  ;;  %v2187_v3 = vld [vmem:[%s14303_s6 + $0x78] sm:$0xff] }
 0x290   : > { %2073 = vrot.lane.b32.xlu2 %v10018_v20, %s14585_s22  ;;  %2042 = vrot.lane.b32.xlu1 %v10030_v39, %s14640_s19  ;;  %2153 = vst.msk [vmem:[#allocation3 + $0x80] sm:$0xff] %vm638_vm4, %v10104_v18 }
 0x291   : > { %8061 = vmatmul.msk.f32.gmra.mxu3 %vm638_vm4, %v2165_v54  ;;  %v3107_v33 = vpop.permute.xlu2 %3106  ;;  %v1869_v15 = vsel %vm769_vm3, %v1867_v36, %v1868_v6  ;;  %2214 = vmatpush.msra.mxu1 %v2187_v3  ;;  %v2178_v36 = vld [vmem:[%s14303_s6 + $0x30] sm:$0xff]  ;;  %v2177_v6 = vld [vmem:[%s14303_s6 + $0x28] sm:$0xff] }
 0x292   : > { %3201 = vst.msk [vmem:[#allocation5 + $0x20] sm:$0xff] %vm3198_vm12, %v3107_v33  ;;  %v2183_v33 = vld [vmem:[%s14303_s6 + $0x58] sm:$0xff]  ;;  %v2174_v3 = vld [vmem:[%s14303_s6 + $0x10] sm:$0xff] }
 0x294   : > { %v10122_v5 = vld [vmem:[#allocation2 + $0x80] sm:$0xff]  ;;  %v10124_v61 = vld [vmem:[#allocation2 + $0x88] sm:$0x3] }
 0x295   : > { %1971 = vrot.lane.b32.xlu0 %v10018_v20, %s14639_s29  ;;  %v2033_v31 = vrot.slane %v10122_v5, 2  ;;  %v2034_v47 = vrot.slane %v10124_v61, 2  ;;  %v2948_v58 = vpop.permute.xlu1 %2947  ;;  %v2952_v20 = vpop.permute.xlu0 %2951 }
 0x296   : > { %3017 = vst.msk [vmem:[#allocation5 + $0x1b0] sm:$0xff] %vm2989_vm0, %v2948_v58  ;;  %v2180_v58 = vld [vmem:[%s14303_s6 + $0x40] sm:$0xff] }
 0x297   : > { %v2167_v23 = vld [vmem:[#allocation3 + $0x80] sm:$0xff]  ;;  %v10133_v28 = vsel %vm827_vm2, %v2033_v31, %v2034_v47  ;;  %3019 = vst.msk [vmem:[#allocation5 + $0x1d0] sm:$0xff] %vm2989_vm0, %v2952_v20  ;;  %v2182_v47 = vld [vmem:[%s14303_s6 + $0x50] sm:$0xff] }
 0x298   : > { %1940 = vrot.lane.b32.xlu2 %v10030_v39, %s14408_s27  ;;  %2109 = vrot.lane.b32.xlu1 %v1866_v52, %s14406_s21  ;;  %2154 = vst.msk [vmem:[#allocation3 + $0x98] sm:$0xff] %vm638_vm4, %v10133_v28 }
 0x299   : > { %8062 = vmatmul.msk.f32.gmra.mxu3 %vm638_vm4, %v2167_v23  ;;  %v3113_v49 = vpop.permute.xlu2 %3112 }
 0x29a   : > { %3204 = vst.msk [vmem:[#allocation5 + $0x50] sm:$0xff] %vm3198_vm12, %v3113_v49  ;;  %v2179_v49 = vld [vmem:[%s14303_s6 + $0x38] sm:$0xff] }
 0x29d   : > { %1884 = vrot.lane.b32.xlu0 %v1866_v52, %s14404_s28  ;;  %v2954_v42 = vpop.permute.xlu1 %2953  ;;  %v3103_v39 = vpop.permute.xlu0 %3102 }
 0x29e   : > { %3020 = vst.msk [vmem:[#allocation5 + $0x1e0] sm:$0xff] %vm2989_vm0, %v2954_v42  ;;  %v1870_v42 = vrot.slane %v10071_v29, 1 }
 0x29f   : > { %v2169_v8 = vld [vmem:[#allocation3 + $0x98] sm:$0xff]  ;;  %3199 = vst.msk [vmem:[#allocation5] sm:$0xff] %vm3198_vm12, %v3103_v39  ;;  %v1871_v39 = vrot.slane %v10073_v50, 1 }
 0x2a0   : > { %1973 = vrot.lane.b32.xlu1 %v10043_v19, %s14639_s29  ;;  %2007 = vrot.lane.b32.xlu2 %v1866_v52, %s14641_s1  ;;  %v2181_v52 = vld [vmem:[%s14303_s6 + $0x48] sm:$0xff]  ;;  %v2176_v50 = vld [vmem:[%s14303_s6 + $0x20] sm:$0xff] }
 0x2a1   : > { %8063 = vmatmul.msk.f32.gmra.mxu3 %vm638_vm4, %v2169_v8  ;;  %v3119_v32 = vpop.permute.xlu2 %3118 }
 0x2a2   : > { %3207 = vst.msk [vmem:[#allocation5 + $0x80] sm:$0xff] %vm3198_vm12, %v3119_v32  ;;  %v1872_v32 = vsel %vm769_vm3, %v1870_v42, %v1871_v39  ;;  %v1999_v42 = vrot.slane %v10124_v61, 1  ;;  %v3062_v39 = vrot.slane %v9615_v21, 2  ;;  %v8271_v61 = vld [vmem:[#allocation4 + $0xb8] sm:$0x3] }
 0x2a5   : > { %2075 = vrot.lane.b32.xlu0 %v10043_v19, %s14585_s22  ;;  %v3105_v54 = vpop.permute.xlu1 %3104  ;;  %v2186_v19 = vld [vmem:[%s14303_s6 + $0x70] sm:$0xff]  ;;  %v3109_v2 = vpop.permute.xlu0 %3108 }
 0x2a6   : > { %3200 = vst.msk [vmem:[#allocation5 + $0x10] sm:$0xff] %vm3198_vm12, %v3105_v54  ;;  %2215 = vmatpush.msra.mxu1 %v2186_v19  ;;  %v2173_v19 = vld [vmem:[%s14303_s6 + $0x8] sm:$0xff] }
 0x2a7   : > { %3202 = vst.msk [vmem:[#allocation5 + $0x30] sm:$0xff] %vm3198_vm12, %v3109_v2  ;;  %v2172_v2 = vld [vmem:[%s14303_s6] sm:$0xff] }
 0x2a8   : > { %1886 = vrot.lane.b32.xlu1 %v1869_v15, %s14404_s28  ;;  %2044 = vrot.lane.b32.xlu2 %v10055_v4, %s14640_s19 }
 0x2a9   : > { %v3125_v27 = vpop.permute.xlu2 %3124  ;;  %2216 = vmatpush.msra.mxu1 %v2185_v30 }
 0x2aa   : > { %3210 = vst.msk [vmem:[#allocation5 + $0xb0] sm:$0xff] %vm3198_vm12, %v3125_v27 }
 0x2ad   : > { %1942 = vrot.lane.b32.xlu0 %v10055_v4, %s14408_s27  ;;  %v3111_v22 = vpop.permute.xlu1 %3110  ;;  %v2184_v4 = vld [vmem:[%s14303_s6 + $0x60] sm:$0xff]  ;;  %v3115_v31 = vpop.permute.xlu0 %3114 }
 0x2ae   : > { %3203 = vst.msk [vmem:[#allocation5 + $0x40] sm:$0xff] %vm3198_vm12, %v3111_v22  ;;  %2217 = vmatpush.msra.mxu1 %v2184_v4 }
 0x2af   : > { %3205 = vst.msk [vmem:[#allocation5 + $0x60] sm:$0xff] %vm3198_vm12, %v3115_v31  ;;  %v8270_v31 = vld [vmem:[#allocation4 + $0xa0] sm:$0x3] }
 0x2b0   : > { %2077 = vrot.lane.b32.xlu1 %v10071_v29, %s14585_s22  ;;  %2111 = vrot.lane.b32.xlu2 %v1869_v15, %s14406_s21 }
 0x2b1   : > { %2218 = vmatpush.msra.mxu1 %v2183_v33 }
 0x2b3   : > { %2219 = vmatpush.msra.mxu1 %v2182_v47  ;;  %v3055_v47 = vrot.slane %v8270_v31, 2  ;;  %v8273_v31 = vld [vmem:[#allocation4 + $0xd0] sm:$0x3] }
 0x2b5   : > { %2009 = vrot.lane.b32.xlu0 %v1869_v15, %s14641_s1  ;;  %v3117_v23 = vpop.permute.xlu1 %3116  ;;  %2220 = vmatpush.msra.mxu1 %v2181_v52  ;;  %v3121_v8 = vpop.permute.xlu0 %3120  ;;  %v2175_v15 = vld [vmem:[%s14303_s6 + $0x18] sm:$0xff] }
 0x2b6   : > { %3206 = vst.msk [vmem:[#allocation5 + $0x70] sm:$0xff] %vm3198_vm12, %v3117_v23 }
 0x2b7   : > { %2221 = vmatpush.msra.mxu1 %v2180_v58  ;;  %3208 = vst.msk [vmem:[#allocation5 + $0x90] sm:$0xff] %vm3198_vm12, %v3121_v8  ;;  %v14645_v58 = vrot.slane %v9604_v25, 2  ;;  %v1998_v8 = vrot.slane %v10122_v5, 1 }
 0x2b8   : > { %1944 = vrot.lane.b32.xlu1 %v10085_v62, %s14642_s30  ;;  %1975 = vrot.lane.b32.xlu2 %v10071_v29, %s14639_s29 }
 0x2b9   : > { %2222 = vmatpush.msra.mxu1 %v2179_v49 }
 0x2ba   : > { %v1935_v20 = vpop.permute.xlu2 %1934 }
 0x2bb   : > { %2223 = vmatpush.msra.mxu1 %v2178_v36  ;;  %v3063_v36 = vrot.slane %v9626_v46, 2 }
 0x2bd   : > { %2046 = vrot.lane.b32.xlu0 %v10085_v62, %s14640_s19  ;;  %v3123_v29 = vpop.permute.xlu1 %3122  ;;  %2224 = vmatpush.msra.mxu1 %v2177_v6  ;;  %v3127_v54 = vpop.permute.xlu0 %3126 }
 0x2be   : > { %3209 = vst.msk [vmem:[#allocation5 + $0xa0] sm:$0xff] %vm3198_vm12, %v3123_v29  ;;  %v2000_v29 = vsel %vm769_vm3, %v1998_v8, %v1999_v42  ;;  %v3073_v8 = vrot.slane %v9665_v0, 2  ;;  %v8274_v42 = vld [vmem:[#allocation4 + $0x100] sm:$0x3] }
 0x2bf   : > { %2225 = vmatpush.msra.mxu1 %v2176_v50  ;;  %3211 = vst.msk [vmem:[#allocation5 + $0xc0] sm:$0xff] %vm3198_vm12, %v3127_v54  ;;  %v3060_v50 = vrot.slane %v8271_v61, 2  ;;  %v3068_v54 = vrot.slane %v9683_v44, 2 }
 0x2c0   : > { %2011 = vrot.lane.b32.xlu1 %v1872_v32, %s14641_s1  ;;  %1888 = vrot.lane.b32.xlu2 %v1872_v32, %s14643_s23 }
 0x2c1   : > { %2226 = vmatpush.msra.mxu1 %v2175_v15 }
 0x2c2   : > { %v2002_v62 = vpop.permute.xlu2 %2001 }
 0x2c3   : > { %2227 = vmatpush.msra.mxu1 %v2174_v3  ;;  %v8272_v3 = vld [vmem:[#allocation4 + $0xe8] sm:$0x3] }
 0x2c5   : > { %2113 = vrot.lane.b32.xlu0 %v1872_v32, %s14644_s2  ;;  %2228 = vmatpush.msra.mxu1 %v2173_v19  ;;  %v3070_v19 = vrot.slane %v8272_v3, 2 }
 0x2c7   : > { %2229 = vmatpush.msra.mxu1 %v2172_v2 }
 0x2c8   : > { %2079 = vrot.lane.b32.xlu2 %v10096_v16, %s14585_s22  ;;  %2048 = vrot.lane.b32.xlu1 %v10104_v18, %s14640_s19 }
 0x2ca   : > { %v10239_v27 = vpop.permute.xlu2 %2038 }
 0x2cd   : > { %1977 = vrot.lane.b32.xlu0 %v10096_v16, %s14639_s29  ;;  %v3057_v16 = vrot.slane %v9585_v43, 2 }
 0x2cf   : > { %v1966_v30 = vpop.permute.xlu0 %1965 }
 0x2d0   : > { %1989 = vst.msk [vmem:[#allocation3] sm:$0xff] %vm910_vm7, %v1966_v30  ;;  %1946 = vrot.lane.b32.xlu2 %v10104_v18, %s14642_s30  ;;  %2115 = vrot.lane.b32.xlu1 %v10109_v57, %s14644_s2  ;;  %v3058_v18 = vrot.slane %v9591_v38, 2 }
 0x2d1   : > { %2025 = vst.msk [vmem:[#allocation3] sm:$0xff] %vm947_vm8, %v2002_v62 }
 0x2d2   : > { %v2037_v22 = vpop.permute.xlu1 %2036  ;;  %v2106_v4 = vpop.permute.xlu2 %2105 }
 0x2d3   : > { %2060 = vst.msk [vmem:[#allocation3] sm:$0xff] %vm983_vm9, %v2037_v22  ;;  %v10296_v22 = vsel %vm827_vm2, %v3058_v18, %v3060_v50  ;;  %v3072_v50 = vrot.slane %v9634_v17, 2 }
 0x2d4   : > { %14646 = vst [vmem:[#allocation59_spill] sm:$0xff] %v10296_v22 }
 0x2d5   : > { %1890 = vrot.lane.b32.xlu0 %v10109_v57, %s14643_s23  ;;  %v10346_v3 = vsel %vm827_vm2, %v3072_v50, %v3073_v8 }
 0x2d7   : > { %v1879_v33 = vpop.permute.xlu0 %1878 }
 0x2d8   : > { %1901 = vst.msk [vmem:[#allocation3 + $0x18] sm:$0xff] %vm818_vm5, %v1879_v33  ;;  %2013 = vrot.lane.b32.xlu2 %v10109_v57, %s14641_s1  ;;  %1979 = vrot.lane.b32.xlu1 %v10122_v5, %s14639_s29  ;;  %v10264_v57 = vsel %vm827_vm2, %v3057_v16, %v3058_v18  ;;  %v3077_v16 = vrot.slane %v9695_v51, 2  ;;  %v3078_v18 = vrot.slane %v9697_v9, 2 }
 0x2d9   : > { %1957 = vst.msk [vmem:[#allocation3 + $0x18] sm:$0xff] %vm876_vm6, %v1935_v20  ;;  %v10269_v20 = vsel %vm827_vm2, %v14645_v58, %v3055_v47  ;;  %v3065_v47 = vrot.slane %v8273_v31, 2 }
 0x2da   : > { %v1968_v52 = vpop.permute.xlu1 %1967  ;;  %v1970_v23 = vpop.permute.xlu2 %1969 }
 0x2db   : > { %1990 = vst.msk [vmem:[#allocation3 + $0x18] sm:$0xff] %vm910_vm7, %v1968_v52 }
 0x2dd   : > { %2081 = vrot.lane.b32.xlu0 %v10122_v5, %s14585_s22  ;;  %v10286_v5 = vsel %vm827_vm2, %v3062_v39, %v3063_v36  ;;  %v3075_v39 = vrot.slane %v8274_v42, 2 }
 0x2df   : > { %v2070_v49 = vpop.permute.xlu0 %2069 }
 0x2e0   : > { %2093 = vst.msk [vmem:[#allocation3] sm:$0xff] %vm1017_vm10, %v2070_v49  ;;  %3130 = vrot.lane.b32.xlu2 %v10264_v57, %s14643_s23  ;;  %3128 = vrot.lane.b32.xlu1 %v10269_v20, %s14643_s23  ;;  %v10325_v49 = vsel %vm827_vm2, %v3063_v36, %v3065_v47  ;;  %v8276_v47 = vld [vmem:[#allocation4 + $0x118] sm:$0x3] }
 0x2e1   : > { %2129 = vst.msk [vmem:[#allocation3] sm:$0xff] %vm1054_vm11, %v2106_v4  ;;  %v10301_v4 = vsel %vm827_vm2, %v3068_v54, %v3070_v19  ;;  %v3082_v19 = vrot.slane %v9727_v53, 2 }
 0x2e2   : > { %v1881_v6 = vpop.permute.xlu1 %1880  ;;  %v1883_v32 = vpop.permute.xlu2 %1882 }
 0x2e3   : > { %1902 = vst.msk [vmem:[#allocation3 + $0x30] sm:$0xff] %vm818_vm5, %v1881_v6 }
 0x2e4   : > { %1903 = vst.msk [vmem:[#allocation3 + $0x48] sm:$0xff] %vm818_vm5, %v1883_v32  ;;  %v3083_v32 = vrot.slane %v9754_v34, 2 }
 0x2e5   : > { %2015 = vrot.lane.b32.xlu0 %v2000_v29, %s14641_s1 }
 0x2e6   : > { %v10359_v31 = vsel %vm827_vm2, %v3082_v19, %v3083_v32 }
 0x2e7   : > { %v1937_v62 = vpop.permute.xlu0 %1936 }
 0x2e8   : > { %1958 = vst.msk [vmem:[#allocation3 + $0x30] sm:$0xff] %vm876_vm6, %v1937_v62  ;;  %3134 = vrot.lane.b32.xlu1 %v10286_v5, %s14643_s23  ;;  %2050 = vrot.lane.b32.xlu2 %v10133_v28, %s14640_s19  ;;  %v2156_v15 = vld [vmem:[#allocation3] sm:$0xff]  ;;  %v3067_v28 = vrot.slane %v9677_v7, 2 }
 0x2e9   : > { %1991 = vst.msk [vmem:[#allocation3 + $0x30] sm:$0xff] %vm910_vm7, %v1970_v23  ;;  %2230 = vmatmul.f32.vlgmr.msra.gmra.mxu1 %v2156_v15  ;;  %v10335_v15 = vsel %vm827_vm2, %v3073_v8, %v3075_v39  ;;  %v3088_v39 = vrot.slane %v9717_v1, 2 }
 0x2ea   : > { %v2072_v2 = vpop.permute.xlu1 %2071  ;;  %v2074_v30 = vpop.permute.xlu2 %2073  ;;  %v10316_v58 = vsel %vm827_vm2, %v3067_v28, %v3068_v54  ;;  %v3093_v28 = vrot.slane %v9772_v26, 2 }
 0x2ed   : > { %3132 = vrot.lane.b32.xlu0 %v10296_v22, %s14643_s23 }
 0x2ef   : > { %v2004_v33 = vpop.permute.xlu0 %2003 }
 0x2f0   : > { %2026 = vst.msk [vmem:[#allocation3 + $0x18] sm:$0xff] %vm947_vm8, %v2004_v33  ;;  %3140 = vrot.lane.b32.xlu1 %v10301_v4, %s14643_s23  ;;  %2117 = vrot.lane.b32.xlu2 %v2000_v29, %s14644_s2  ;;  %v8275_v29 = vld [vmem:[#allocation4 + $0x130] sm:$0x3] }
 0x2f1   : > { %2061 = vst.msk [vmem:[#allocation3 + $0x18] sm:$0xff] %vm983_vm9, %v10239_v27  ;;  %v10322_v27 = vsel %vm827_vm2, %v3077_v16, %v3078_v18  ;;  %v3085_v61 = vrot.slane %v8275_v29, 2 }
 0x2f2   : > { %2094 = vst.msk [vmem:[#allocation3 + $0x18] sm:$0xff] %vm1017_vm10, %v2072_v2  ;;  %v1939_v52 = vpop.permute.xlu1 %1938  ;;  %v10313_v23 = vpop.permute.xlu2 %1940 }
 0x2f3   : > { %1959 = vst.msk [vmem:[#allocation3 + $0x48] sm:$0xff] %vm876_vm6, %v1939_v52  ;;  %v10343_v54 = vsel %vm827_vm2, %v3083_v32, %v3085_v61  ;;  %v3080_v52 = vrot.slane %v8276_v47, 2  ;;  %v8278_v32 = vld [vmem:[#allocation4 + $0x178] sm:$0x3]  ;;  %v3087_v47 = vrot.slane %v9706_v37, 2 }
 0x2f5   : > { %3138 = vrot.lane.b32.xlu0 %v10316_v58, %s14643_s23  ;;  %v10367_v42 = vsel %vm827_vm2, %v3078_v18, %v3080_v52  ;;  %v3098_v18 = vrot.slane %v9783_v35, 2  ;;  %v10389_v52 = vsel %vm827_vm2, %v3087_v47, %v3088_v39 }
 0x2f7   : > { %v2041_v6 = vpop.permute.xlu0 %2040 }
 0x2f8   : > { %3146 = vrot.lane.b32.xlu1 %v10322_v27, %s14643_s23  ;;  %3136 = vrot.lane.b32.xlu2 %v10325_v49, %s14643_s23 }
 0x2fa   : > { %v2006_v62 = vpop.permute.xlu1 %2005  ;;  %v2008_v36 = vpop.permute.xlu2 %2007 }
 0x2fb   : > { %2027 = vst.msk [vmem:[#allocation3 + $0x30] sm:$0xff] %vm947_vm8, %v2006_v62  ;;  %v3100_v62 = vrot.slane %v8278_v32, 2  ;;  %v8279_v32 = vld [vmem:[#allocation4 + $0x160] sm:$0x3] }
 0x2fc   : > { %2062 = vst.msk [vmem:[#allocation3 + $0x30] sm:$0xff] %vm983_vm9, %v2041_v6  ;;  %v8277_v6 = vld [vmem:[#allocation4 + $0x148] sm:$0x3] }
 0x2fd   : > { %2095 = vst.msk [vmem:[#allocation3 + $0x30] sm:$0xff] %vm1017_vm10, %v2074_v30  ;;  %3144 = vrot.lane.b32.xlu0 %v10335_v15, %s14643_s23  ;;  %v3092_v30 = vrot.slane %v9763_v56, 2  ;;  %v3090_v29 = vrot.slane %v8277_v6, 2 }
 0x2ff   : > { %v2108_v2 = vpop.permute.xlu0 %2107  ;;  %v10364_v8 = vsel %vm827_vm2, %v3092_v30, %v3093_v28  ;;  %v10379_v30 = vsel %vm827_vm2, %v3088_v39, %v3090_v29 }
 0x300   : > { %2130 = vst.msk [vmem:[#allocation3 + $0x18] sm:$0xff] %vm1054_vm11, %v2108_v2  ;;  %3152 = vrot.lane.b32.xlu1 %v10343_v54, %s14643_s23  ;;  %3142 = vrot.lane.b32.xlu2 %v10346_v3, %s14643_s23 }
 0x302   : > { %v2043_v33 = vpop.permute.xlu1 %2042  ;;  %v10356_v16 = vpop.permute.xlu2 %2044 }
 0x305   : > { %3150 = vrot.lane.b32.xlu0 %v10359_v31, %s14643_s23 }
 0x307   : > { %v1972_v61 = vpop.permute.xlu0 %1971  ;;  %v2158_v50 = vld [vmem:[#allocation3 + $0x18] sm:$0xff] }
 0x308   : > { %1992 = vst.msk [vmem:[#allocation3 + $0x48] sm:$0xff] %vm910_vm7, %v1972_v61  ;;  %2233 = vmatmul.f32.gmra.mxu1 %v2158_v50  ;;  %3158 = vrot.lane.b32.xlu1 %v10364_v8, %s14643_s23 }
 0x309   : > { %2028 = vst.msk [vmem:[#allocation3 + $0x48] sm:$0xff] %vm947_vm8, %v2008_v36  ;;  %3148 = vrot.lane.b32.xlu2 %v10367_v42, %s14643_s23  ;;  %v10386_v36 = vsel %vm827_vm2, %v3098_v18, %v3100_v62  ;;  %v3095_v62 = vrot.slane %v8279_v32, 2 }
 0x30a   : > { %2063 = vst.msk [vmem:[#allocation3 + $0x48] sm:$0xff] %vm983_vm9, %v2043_v33  ;;  %v2110_v19 = vpop.permute.xlu1 %2109  ;;  %v2112_v2 = vpop.permute.xlu2 %2111  ;;  %v3097_v33 = vrot.slane %v9781_v59, 2 }
 0x30b   : > { %2131 = vst.msk [vmem:[#allocation3 + $0x30] sm:$0xff] %vm1054_vm11, %v2110_v19  ;;  %v10406_v19 = vsel %vm827_vm2, %v3093_v28, %v3095_v62 }
 0x30c   : > { %v10400_v39 = vsel %vm827_vm2, %v3097_v33, %v3098_v18 }
 0x30d   : > { %3156 = vrot.lane.b32.xlu0 %v10379_v30, %s14643_s23 }
 0x30f   : > { %v1885_v6 = vpop.permute.xlu0 %1884 }
 0x310   : > { %1904 = vst.msk [vmem:[#allocation3 + $0x60] sm:$0xff] %vm818_vm5, %v1885_v6  ;;  %3164 = vrot.lane.b32.xlu1 %v10386_v36, %s14643_s23 }
 0x311   : > { %1960 = vst.msk [vmem:[#allocation3 + $0x60] sm:$0xff] %vm876_vm6, %v10313_v23  ;;  %3154 = vrot.lane.b32.xlu2 %v10389_v52, %s14643_s23 }
 0x312   : > { %v1974_v29 = vpop.permute.xlu1 %1973  ;;  %v1976_v61 = vpop.permute.xlu2 %1975  ;;  %v2160_v50 = vld [vmem:[#allocation3 + $0x30] sm:$0xff] }
 0x313   : > { %1993 = vst.msk [vmem:[#allocation3 + $0x60] sm:$0xff] %vm910_vm7, %v1974_v29  ;;  %2236 = vmatmul.f32.gmra.mxu1 %v2160_v50 }
 0x315   : > { %3162 = vrot.lane.b32.xlu0 %v10400_v39, %s14643_s23 }
 0x317   : > { %v2076_v23 = vpop.permute.xlu0 %2075 }
 0x318   : > { %2096 = vst.msk [vmem:[#allocation3 + $0x48] sm:$0xff] %vm1017_vm10, %v2076_v23  ;;  %3237 = vrot.lane.b32.xlu1 %v9478_v55, %s8304_s3 }
 0x319   : > { %2132 = vst.msk [vmem:[#allocation3 + $0x48] sm:$0xff] %vm1054_vm11, %v2112_v2  ;;  %3160 = vrot.lane.b32.xlu2 %v10406_v19, %s14643_s23 }
 0x31a   : > { %v1887_v18 = vpop.permute.xlu1 %1886  ;;  %v1889_v47 = vpop.permute.xlu2 %1888 }
 0x31b   : > { %1905 = vst.msk [vmem:[#allocation3 + $0x78] sm:$0xff] %vm818_vm5, %v1887_v18  ;;  %v2171_v18 = vld [vmem:[#allocation3 + $0xb0] sm:$0xff] }
 0x31c   : > { %1906 = vst.msk [vmem:[#allocation3 + $0x90] sm:$0xff] %vm818_vm5, %v1889_v47  ;;  %8064 = vmatmul.msk.f32.gmra.mxu3 %vm638_vm4, %v2171_v18 }
 0x31d   : > { %3235 = vrot.lane.b32.xlu0 %v9404_v12, %s8304_s3 }
 0x31f   : > { %v1943_v28 = vpop.permute.xlu0 %1942 }
 0x320   : > { %1961 = vst.msk [vmem:[#allocation3 + $0x78] sm:$0xff] %vm876_vm6, %v1943_v28  ;;  %3243 = vrot.lane.b32.xlu1 %v9511_v24, %s8304_s3  ;;  %v2162_v33 = vld [vmem:[#allocation3 + $0x48] sm:$0xff] }
 0x321   : > { %1994 = vst.msk [vmem:[#allocation3 + $0x78] sm:$0xff] %vm910_vm7, %v1976_v61  ;;  %3233 = vrot.lane.b32.xlu2 %v9400_v14, %s8304_s3  ;;  %2239 = vmatmul.f32.gmra.mxu1 %v2162_v33 }
 0x322   : > { %v2078_v2 = vpop.permute.xlu1 %2077  ;;  %v2080_v6 = vpop.permute.xlu2 %2079 }
 0x325   : > { %3241 = vrot.lane.b32.xlu0 %v9506_v11, %s8304_s3 }
 0x327   : > { %v2010_v29 = vpop.permute.xlu0 %2009 }
 0x328   : > { %2029 = vst.msk [vmem:[#allocation3 + $0x60] sm:$0xff] %vm947_vm8, %v2010_v29  ;;  %3249 = vrot.lane.b32.xlu1 %v9539_v60, %s8304_s3  ;;  %v2639_v29 = vld [vmem:[%s9356_s0 + $0xf0] sm:$0xff] }
 0x329   : > { %2064 = vst.msk [vmem:[#allocation3 + $0x60] sm:$0xff] %vm983_vm9, %v10356_v16  ;;  %3239 = vrot.lane.b32.xlu2 %v9481_v40, %s8304_s3 }
 0x32a   : > { %2097 = vst.msk [vmem:[#allocation3 + $0x60] sm:$0xff] %vm1017_vm10, %v2078_v2  ;;  %v1945_v14 = vpop.permute.xlu1 %1944  ;;  %v1947_v12 = vpop.permute.xlu2 %1946 }
 0x32b   : > { %1962 = vst.msk [vmem:[#allocation3 + $0x90] sm:$0xff] %vm876_vm6, %v1945_v14  ;;  %v2640_v14 = vld [vmem:[%s9356_s0 + $0xf8] sm:$0xff] }
 0x32c   : > { %2677 = vst.msk [vmem:[#allocation4 + $0x181] sm:$0xff] %vm2646_vm1, %v2639_v29  ;;  %v14647_v29 = vld [vmem:[#allocation6_spill] sm:$0xff] }
 0x32d   : > { %3247 = vrot.lane.b32.xlu0 %v9494_v10, %s8304_s3  ;;  %2678 = vst.msk [vmem:[#allocation4 + $0x189] sm:$0xff] %vm2646_vm1, %v2640_v14 }
 0x32f   : > { %v2047_v61 = vpop.permute.xlu0 %2046 }
 0x330   : > { %3255 = vrot.lane.b32.xlu1 %v9604_v25, %s8304_s3 }
 0x331   : > { %3245 = vrot.lane.b32.xlu2 %v9492_v13, %s8304_s3 }
 0x332   : > { %v2012_v16 = vpop.permute.xlu1 %2011  ;;  %v2014_v50 = vpop.permute.xlu2 %2013 }
 0x333   : > { %2030 = vst.msk [vmem:[#allocation3 + $0x78] sm:$0xff] %vm947_vm8, %v2012_v16 }
 0x334   : > { %2065 = vst.msk [vmem:[#allocation3 + $0x78] sm:$0xff] %vm983_vm9, %v2047_v61 }
 0x335   : > { %2098 = vst.msk [vmem:[#allocation3 + $0x78] sm:$0xff] %vm1017_vm10, %v2080_v6  ;;  %3253 = vrot.lane.b32.xlu0 %v9600_v45, %s8304_s3 }
 0x337   : > { %v2114_v32 = vpop.permute.xlu0 %2113 }
 0x338   : > { %2133 = vst.msk [vmem:[#allocation3 + $0x60] sm:$0xff] %vm1054_vm11, %v2114_v32  ;;  %3261 = vrot.lane.b32.xlu1 %v9615_v21, %s8304_s3 }
 0x339   : > { %3251 = vrot.lane.b32.xlu2 %v9526_v48, %s8304_s3 }
 0x33a   : > { %v2049_v62 = vpop.permute.xlu1 %2048  ;;  %v3131_v23 = vpop.permute.xlu2 %3130 }
 0x33b   : > { %3213 = vst.msk [vmem:[#allocation5 + $0xe0] sm:$0xff] %vm3198_vm12, %v3131_v23 }
 0x33d   : > { %3259 = vrot.lane.b32.xlu0 %v9591_v38, %s8304_s3 }
 0x33f   : > { %v1978_v47 = vpop.permute.xlu0 %1977  ;;  %v2164_v28 = vld [vmem:[#allocation3 + $0x60] sm:$0xff] }
 0x340   : > { %1995 = vst.msk [vmem:[#allocation3 + $0x90] sm:$0xff] %vm910_vm7, %v1978_v47  ;;  %2242 = vmatmul.f32.gmra.mxu1 %v2164_v28  ;;  %3267 = vrot.lane.b32.xlu1 %v9683_v44, %s8304_s3 }
 0x341   : > { %2031 = vst.msk [vmem:[#allocation3 + $0x90] sm:$0xff] %vm947_vm8, %v2014_v50  ;;  %3257 = vrot.lane.b32.xlu2 %v9585_v43, %s8304_s3 }
 0x342   : > { %2066 = vst.msk [vmem:[#allocation3 + $0x90] sm:$0xff] %vm983_vm9, %v2049_v62  ;;  %v2116_v33 = vpop.permute.xlu1 %2115  ;;  %v2051_v2 = vpop.permute.xlu2 %2050 }
 0x343   : > { %2134 = vst.msk [vmem:[#allocation3 + $0x78] sm:$0xff] %vm1054_vm11, %v2116_v33 }
 0x345   : > { %3265 = vrot.lane.b32.xlu0 %v9677_v7, %s8304_s3 }
 0x347   : > { %v1891_v6 = vpop.permute.xlu0 %1890 }
 0x348   : > { %1907 = vst.msk [vmem:[#allocation3 + $0xa8] sm:$0xff] %vm818_vm5, %v1891_v6  ;;  %3273 = vrot.lane.b32.xlu1 %v9695_v51, %s8304_s3 }
 0x349   : > { %1963 = vst.msk [vmem:[#allocation3 + $0xa8] sm:$0xff] %vm876_vm6, %v1947_v12  ;;  %3263 = vrot.lane.b32.xlu2 %v9626_v46, %s8304_s3 }
 0x34a   : > { %v1980_v61 = vpop.permute.xlu1 %1979  ;;  %v2118_v16 = vpop.permute.xlu2 %2117  ;;  %v2166_v50 = vld [vmem:[#allocation3 + $0x78] sm:$0xff] }
 0x34b   : > { %1996 = vst.msk [vmem:[#allocation3 + $0xa8] sm:$0xff] %vm910_vm7, %v1980_v61  ;;  %2245 = vmatmul.f32.gmra.mxu1 %v2166_v50  ;;  %v10516_v61 = vld [vmem:[#allocation4 + $0x188] sm:$0xff]  ;;  %v10522_v50 = vld [vmem:[#allocation4 + $0x180] sm:$0xff] }
 0x34d   : > { %3271 = vrot.lane.b32.xlu0 %v9665_v0, %s8304_s3 }
 0x34f   : > { %v2082_v32 = vpop.permute.xlu0 %2081 }
 0x350   : > { %2099 = vst.msk [vmem:[#allocation3 + $0x90] sm:$0xff] %vm1017_vm10, %v2082_v32  ;;  %3279 = vrot.lane.b32.xlu1 %v9754_v34, %s8304_s3 }
 0x351   : > { %2135 = vst.msk [vmem:[#allocation3 + $0x90] sm:$0xff] %vm1054_vm11, %v2118_v16  ;;  %3269 = vrot.lane.b32.xlu2 %v9634_v17, %s8304_s3 }
 0x352   : > { %v3129_v12 = vpop.permute.xlu1 %3128  ;;  %v3137_v62 = vpop.permute.xlu2 %3136 }
 0x353   : > { %3212 = vst.msk [vmem:[#allocation5 + $0xd0] sm:$0xff] %vm3198_vm12, %v3129_v12  ;;  %v14648_v12 = vld [vmem:[#allocation8_spill] sm:$0xff] }
 0x354   : > { %3216 = vst.msk [vmem:[#allocation5 + $0x110] sm:$0xff] %vm3198_vm12, %v3137_v62 }
 0x355   : > { %3277 = vrot.lane.b32.xlu0 %v9727_v53, %s8304_s3 }
 0x357   : > { %v2016_v23 = vpop.permute.xlu0 %2015 }
 0x358   : > { %2032 = vst.msk [vmem:[#allocation3 + $0xa8] sm:$0xff] %vm947_vm8, %v2016_v23  ;;  %3285 = vrot.lane.b32.xlu1 %v9763_v56, %s8304_s3  ;;  %v2168_v18 = vld [vmem:[#allocation3 + $0x90] sm:$0xff] }
 0x359   : > { %2067 = vst.msk [vmem:[#allocation3 + $0xa8] sm:$0xff] %vm983_vm9, %v2051_v2  ;;  %3275 = vrot.lane.b32.xlu2 %v9697_v9, %s8304_s3  ;;  %2248 = vmatmul.f32.gmra.mxu1 %v2168_v18  ;;  %v14649_v18 = vld [vmem:[#allocation9_spill] sm:$0xff] }
 0x35a   : > { %2100 = vst.msk [vmem:[#allocation3 + $0xa8] sm:$0xff] %vm1017_vm10, %v9864_v63  ;;  %v3135_v47 = vpop.permute.xlu1 %3134  ;;  %v3143_v28 = vpop.permute.xlu2 %3142 }
 0x35b   : > { %2136 = vst.msk [vmem:[#allocation3 + $0xa8] sm:$0xff] %vm1054_vm11, %v9873_v41 }
 0x35c   : > { %3215 = vst.msk [vmem:[#allocation5 + $0x100] sm:$0xff] %vm3198_vm12, %v3135_v47 }
 0x35d   : > { %3219 = vst.msk [vmem:[#allocation5 + $0x140] sm:$0xff] %vm3198_vm12, %v3143_v28  ;;  %3283 = vrot.lane.b32.xlu0 %v9717_v1, %s8304_s3  ;;  %v14650_v28 = vld [vmem:[#allocation11_spill] sm:$0xff] }
 0x35f   : > { %v3133_v33 = vpop.permute.xlu0 %3132 }
 0x360   : > { %3214 = vst.msk [vmem:[#allocation5 + $0xf0] sm:$0xff] %vm3198_vm12, %v3133_v33  ;;  %3291 = vrot.lane.b32.xlu1 %v9783_v35, %s8304_s3  ;;  %v14651_v33 = vld [vmem:[#allocation7_spill] sm:$0xff] }
 0x361   : > { %3281 = vrot.lane.b32.xlu2 %v9706_v37, %s8304_s3 }
 0x362   : > { %v3141_v63 = vpop.permute.xlu1 %3140  ;;  %v2170_v2 = vld [vmem:[#allocation3 + $0xa8] sm:$0xff] }
 0x363   : > { %3218 = vst.msk [vmem:[#allocation5 + $0x130] sm:$0xff] %vm3198_vm12, %v3141_v63  ;;  %v3149_v41 = vpop.permute.xlu2 %3148  ;;  %2251 = vmatmul.f32.gmra.mxu1 %v2170_v2 }
 0x364   : > { %3222 = vst.msk [vmem:[#allocation5 + $0x170] sm:$0xff] %vm3198_vm12, %v3149_v41  ;;  %v14652_v41 = vld [vmem:[#allocation12_spill] sm:$0xff] }
 0x365   : > { %3289 = vrot.lane.b32.xlu0 %v9781_v59, %s8304_s3 }
 0x367   : > { %v3139_v6 = vpop.permute.xlu0 %3138 }
 0x368   : > { %3217 = vst.msk [vmem:[#allocation5 + $0x120] sm:$0xff] %vm3198_vm12, %v3139_v6  ;;  %3368 = vrot.lane.b32.xlu1 %v14647_v29, %s14642_s30  ;;  %v14653_v29 = vld [vmem:[#allocation14_spill] sm:$0xff] }
 0x369   : > { %3287 = vrot.lane.b32.xlu2 %v9772_v26, %s8304_s3  ;;  %v14679_v26 = vld [vmem:[#allocation49_spill] sm:$0xff] }
 0x36a   : > { %v3147_v14 = vpop.permute.xlu1 %3146 }
 0x36b   : > { %3221 = vst.msk [vmem:[#allocation5 + $0x160] sm:$0xff] %vm3198_vm12, %v3147_v14  ;;  %v3155_v16 = vpop.permute.xlu2 %3154  ;;  %v14654_v14 = vld [vmem:[#allocation10_spill] sm:$0xff] }
 0x36c   : > { %3225 = vst.msk [vmem:[#allocation5 + $0x1a0] sm:$0xff] %vm3198_vm12, %v3155_v16 }
 0x36d   : > { %3295 = vrot.lane.b32.xlu0 %v10516_v61, %s8304_s3 }
 0x36f   : > { %v3145_v32 = vpop.permute.xlu0 %3144 }
 0x370   : > { %3220 = vst.msk [vmem:[#allocation5 + $0x150] sm:$0xff] %vm3198_vm12, %v3145_v32  ;;  %3374 = vrot.lane.b32.xlu1 %v14648_v12, %s14642_s30 }
 0x371   : > { %3293 = vrot.lane.b32.xlu2 %v10522_v50, %s8304_s3 }
 0x372   : > { %v3153_v62 = vpop.permute.xlu1 %3152 }
 0x373   : > { %3224 = vst.msk [vmem:[#allocation5 + $0x190] sm:$0xff] %vm3198_vm12, %v3153_v62  ;;  %v3161_v23 = vpop.permute.xlu2 %3160  ;;  %v14655_v62 = vld [vmem:[#allocation15_spill] sm:$0xff] }
 0x374   : > { %3228 = vst.msk [vmem:[#allocation5 + $0x1d0] sm:$0xff] %vm3198_vm12, %v3161_v23 }
 0x375   : > { %3372 = vrot.lane.b32.xlu0 %v14649_v18, %s14642_s30  ;;  %v10633_v18 = vld [vmem:[#allocation4 + $0x190] sm:$0x3] }
 0x377   : > { %v3151_v47 = vpop.permute.xlu0 %3150 }
 0x378   : > { %3223 = vst.msk [vmem:[#allocation5 + $0x180] sm:$0xff] %vm3198_vm12, %v3151_v47  ;;  %3380 = vrot.lane.b32.xlu1 %v14650_v28, %s14642_s30  ;;  %v14656_v47 = vld [vmem:[#allocation18_spill] sm:$0xff]  ;;  %v10574_v28 = vpop.f32.mrf.mxu3 }
 0x379   : > { %3370 = vrot.lane.b32.xlu2 %v14651_v33, %s14642_s30  ;;  %v14657_v33 = vld [vmem:[#allocation13_spill] sm:$0xff] }
 0x37a   : > { %v3159_v63 = vpop.permute.xlu1 %3158 }
 0x37b   : > { %3227 = vst.msk [vmem:[#allocation5 + $0x1c0] sm:$0xff] %vm3198_vm12, %v3159_v63  ;;  %v3234_v2 = vpop.permute.xlu2 %3233 }
 0x37c   : > { %3330 = vst.msk [vmem:[#allocation5] sm:$0xff] %vm14425_vm13, %v3234_v2 }
 0x37d   : > { %3378 = vrot.lane.b32.xlu0 %v14652_v41, %s14642_s30 }
 0x37f   : > { %v3157_v6 = vpop.permute.xlu0 %3156 }
 0x380   : > { %3226 = vst.msk [vmem:[#allocation5 + $0x1b0] sm:$0xff] %vm3198_vm12, %v3157_v6  ;;  %3386 = vrot.lane.b32.xlu1 %v14653_v29, %s14642_s30  ;;  %v14658_v6 = vld [vmem:[#allocation19_spill] sm:$0xff] }
 0x381   : > { %3376 = vrot.lane.b32.xlu2 %v14654_v14, %s14642_s30  ;;  %v14673_v14 = vld [vmem:[#allocation45_spill] sm:$0xff] }
 0x382   : > { %v3165_v16 = vpop.permute.xlu1 %3164 }
 0x383   : > { %3230 = vst.msk [vmem:[#allocation5 + $0x1f0] sm:$0xff] %vm3198_vm12, %v3165_v16  ;;  %v3240_v32 = vpop.permute.xlu2 %3239 }
 0x384   : > { %3333 = vst.msk [vmem:[#allocation5 + $0x30] sm:$0xff] %vm14425_vm13, %v3240_v32  ;;  %v14659_v32 = vld [vmem:[#allocation21_spill] sm:$0xff] }
 0x385   : > { %3384 = vrot.lane.b32.xlu0 %v14655_v62, %s14642_s30 }
 0x387   : > { %v3163_v23 = vpop.permute.xlu0 %3162 }
 0x388   : > { %3229 = vst.msk [vmem:[#allocation5 + $0x1e0] sm:$0xff] %vm3198_vm12, %v3163_v23  ;;  %3392 = vrot.lane.b32.xlu1 %v14656_v47, %s14642_s30  ;;  %v14660_v23 = vld [vmem:[#allocation16_spill] sm:$0xff] }
 0x389   : > { %3382 = vrot.lane.b32.xlu2 %v14657_v33, %s14642_s30  ;;  %v10591_v33 = vpop.f32.mrf.mxu1 }
 0x38a   : > { %v3238_v63 = vpop.permute.xlu1 %3237 }
 0x38b   : > { %3332 = vst.msk [vmem:[#allocation5 + $0x20] sm:$0xff] %vm14425_vm13, %v3238_v63  ;;  %v3246_v2 = vpop.permute.xlu2 %3245  ;;  %v14661_v63 = vld [vmem:[#allocation23_spill] sm:$0xff] }
 0x38c   : > { %3336 = vst.msk [vmem:[#allocation5 + $0x60] sm:$0xff] %vm14425_vm13, %v3246_v2 }
 0x38d   : > { %3390 = vrot.lane.b32.xlu0 %v14658_v6, %s14642_s30 }
 0x38f   : > { %v3236_v16 = vpop.permute.xlu0 %3235 }
 0x390   : > { %3331 = vst.msk [vmem:[#allocation5 + $0x10] sm:$0xff] %vm14425_vm13, %v3236_v16  ;;  %3398 = vrot.lane.b32.xlu1 %v14659_v32, %s14642_s30  ;;  %v14662_v16 = vld [vmem:[#allocation30_spill] sm:$0xff]  ;;  %v14663_v32 = vld [vmem:[#allocation20_spill] sm:$0xff] }
 0x391   : > { %3388 = vrot.lane.b32.xlu2 %v14660_v23, %s14642_s30  ;;  %v10604_v62 = vpop.f32.mrf.mxu1 }
 0x392   : > { %v3244_v47 = vpop.permute.xlu1 %3243 }
 0x393   : > { %3335 = vst.msk [vmem:[#allocation5 + $0x50] sm:$0xff] %vm14425_vm13, %v3244_v47  ;;  %v3252_v29 = vpop.permute.xlu2 %3251 }
 0x394   : > { %3339 = vst.msk [vmem:[#allocation5 + $0x90] sm:$0xff] %vm14425_vm13, %v3252_v29  ;;  %v14664_v29 = vld [vmem:[#allocation31_spill] sm:$0xff] }
 0x395   : > { %3396 = vrot.lane.b32.xlu0 %v14661_v63, %s14642_s30 }
 0x397   : > { %v3242_v2 = vpop.permute.xlu0 %3241 }
 0x398   : > { %3334 = vst.msk [vmem:[#allocation5 + $0x40] sm:$0xff] %vm14425_vm13, %v3242_v2  ;;  %3404 = vrot.lane.b32.xlu1 %v14662_v16, %s14642_s30  ;;  %v14665_v2 = vld [vmem:[#allocation35_spill] sm:$0xff] }
 0x399   : > { %3394 = vrot.lane.b32.xlu2 %v14663_v32, %s14642_s30  ;;  %v14666_v16 = vld [vmem:[#allocation27_spill] sm:$0xff] }
 0x39a   : > { %v3250_v23 = vpop.permute.xlu1 %3249 }
 0x39b   : > { %3338 = vst.msk [vmem:[#allocation5 + $0x80] sm:$0xff] %vm14425_vm13, %v3250_v23  ;;  %v3258_v47 = vpop.permute.xlu2 %3257  ;;  %v10586_v23 = vpop.f32.mrf.mxu3 }
 0x39c   : > { %3342 = vst.msk [vmem:[#allocation5 + $0xc0] sm:$0xff] %vm14425_vm13, %v3258_v47  ;;  %v14667_v47 = vld [vmem:[#allocation37_spill] sm:$0xff] }
 0x39d   : > { %3402 = vrot.lane.b32.xlu0 %v14664_v29, %s14642_s30 }
 0x39f   : > { %v3248_v63 = vpop.permute.xlu0 %3247 }
 0x3a0   : > { %3337 = vst.msk [vmem:[#allocation5 + $0x70] sm:$0xff] %vm14425_vm13, %v3248_v63  ;;  %3410 = vrot.lane.b32.xlu1 %v14665_v2, %s14642_s30  ;;  %v14668_v63 = vld [vmem:[#allocation41_spill] sm:$0xff]  ;;  %v14669_v2 = vld [vmem:[#allocation32_spill] sm:$0xff] }
 0x3a1   : > { %3400 = vrot.lane.b32.xlu2 %v14666_v16, %s14642_s30 }
 0x3a2   : > { %v3256_v32 = vpop.permute.xlu1 %3255 }
 0x3a3   : > { %3341 = vst.msk [vmem:[#allocation5 + $0xb0] sm:$0xff] %vm14425_vm13, %v3256_v32  ;;  %v3264_v6 = vpop.permute.xlu2 %3263 }
 0x3a4   : > { %3345 = vst.msk [vmem:[#allocation5 + $0xf0] sm:$0xff] %vm14425_vm13, %v3264_v6  ;;  %v14670_v6 = vld [vmem:[#allocation42_spill] sm:$0xff] }
 0x3a5   : > { %3408 = vrot.lane.b32.xlu0 %v14667_v47, %s14642_s30  ;;  %v10602_v47 = vpop.f32.mrf.mxu3 }
 0x3a7   : > { %v3254_v29 = vpop.permute.xlu0 %3253 }
 0x3a8   : > { %3340 = vst.msk [vmem:[#allocation5 + $0xa0] sm:$0xff] %vm14425_vm13, %v3254_v29  ;;  %3416 = vrot.lane.b32.xlu1 %v14668_v63, %s14642_s30  ;;  %v14671_v29 = vld [vmem:[#allocation44_spill] sm:$0xff] }
 0x3a9   : > { %3406 = vrot.lane.b32.xlu2 %v14669_v2, %s14642_s30  ;;  %v14672_v63 = vld [vmem:[#allocation40_spill] sm:$0xff] }
 0x3aa   : > { %v3262_v32 = vpop.permute.xlu1 %3261 }
 0x3ab   : > { %3344 = vst.msk [vmem:[#allocation5 + $0xe0] sm:$0xff] %vm14425_vm13, %v3262_v32  ;;  %v3270_v16 = vpop.permute.xlu2 %3269  ;;  %v3363_v32 = vrot.slane %v10522_v50, 1 }
 0x3ac   : > { %3348 = vst.msk [vmem:[#allocation5 + $0x120] sm:$0xff] %vm14425_vm13, %v3270_v16  ;;  %v3364_v16 = vrot.slane %v10516_v61, 1 }
 0x3ad   : > { %3414 = vrot.lane.b32.xlu0 %v14670_v6, %s14642_s30  ;;  %v10620_v41 = vpop.f32.mrf.mxu3 }
 0x3af   : > { %v3260_v12 = vpop.permute.xlu0 %3259 }
 0x3b0   : > { %3343 = vst.msk [vmem:[#allocation5 + $0xd0] sm:$0xff] %vm14425_vm13, %v3260_v12  ;;  %3422 = vrot.lane.b32.xlu1 %v14671_v29, %s14642_s30  ;;  %v10618_v12 = vsel %vm769_vm3, %v3363_v32, %v3364_v16  ;;  %v14676_v32 = vld [vmem:[#allocation47_spill] sm:$0xff] }
 0x3b1   : > { %3412 = vrot.lane.b32.xlu2 %v14672_v63, %s14642_s30  ;;  %14674 = vst [vmem:[#allocation6_spill] sm:$0xff] %v10618_v12  ;;  %v10622_v63 = vpop.f32.mrf.mxu1 }
 0x3b2   : > { %v3268_v2 = vpop.permute.xlu1 %3267 }
 0x3b3   : > { %3347 = vst.msk [vmem:[#allocation5 + $0x110] sm:$0xff] %vm14425_vm13, %v3268_v2  ;;  %v3276_v6 = vpop.permute.xlu2 %3275  ;;  %v14675_v2 = vld [vmem:[#allocation43_spill] sm:$0xff] }
 0x3b4   : > { %3351 = vst.msk [vmem:[#allocation5 + $0x150] sm:$0xff] %vm14425_vm13, %v3276_v6 }
 0x3b5   : > { %3420 = vrot.lane.b32.xlu0 %v14673_v14, %s14642_s30 }
 0x3b7   : > { %v3266_v29 = vpop.permute.xlu0 %3265 }
 0x3b8   : > { %3346 = vst.msk [vmem:[#allocation5 + $0x100] sm:$0xff] %vm14425_vm13, %v3266_v29  ;;  %3428 = vrot.lane.b32.xlu1 %v10618_v12, %s14642_s30  ;;  %v14677_v29 = vld [vmem:[#allocation48_spill] sm:$0xff]  ;;  %v14678_v12 = vld [vmem:[#allocation46_spill] sm:$0xff] }
 0x3b9   : > { %3418 = vrot.lane.b32.xlu2 %v14675_v2, %s14642_s30  ;;  %v10635_v56 = vpop.f32.mrf.mxu1 }
 0x3ba   : > { %v3274_v6 = vpop.permute.xlu1 %3273 }
 0x3bb   : > { %3350 = vst.msk [vmem:[#allocation5 + $0x140] sm:$0xff] %vm14425_vm13, %v3274_v6  ;;  %v3282_v14 = vpop.permute.xlu2 %3281  ;;  %v2284_v6 = vpop.f32.mrf.mxu3 }
 0x3bc   : > { %3354 = vst.msk [vmem:[#allocation5 + $0x180] sm:$0xff] %vm14425_vm13, %v3282_v14  ;;  %v3366_v14 = vrot.slane %v10633_v18, 1 }
 0x3bd   : > { %3426 = vrot.lane.b32.xlu0 %v14676_v32, %s14642_s30 }
 0x3bf   : > { %v3272_v35 = vpop.permute.xlu0 %3271 }
 0x3c0   : > { %3349 = vst.msk [vmem:[#allocation5 + $0x130] sm:$0xff] %vm14425_vm13, %v3272_v35  ;;  %3504 = vrot.lane.b32.xlu1 %v14677_v29, %s8305_s4  ;;  %v10648_v35 = vsel %vm769_vm3, %v3364_v16, %v3366_v14 }
 0x3c1   : > { %3424 = vrot.lane.b32.xlu2 %v14678_v12, %s14642_s30  ;;  %14680 = vst [vmem:[#allocation7_spill] sm:$0xff] %v10648_v35  ;;  %v2243_v29 = vpop.f32.mrf.mxu1  ;;  %v14681_v12 = vld [vmem:[#allocation51_spill] sm:$0xff] }
 0x3c2   : > { %v3280_v2 = vpop.permute.xlu1 %3279 }
 0x3c3   : > { %3353 = vst.msk [vmem:[#allocation5 + $0x170] sm:$0xff] %vm14425_vm13, %v3280_v2  ;;  %v3288_v32 = vpop.permute.xlu2 %3287  ;;  %v2287_v59 = vpop.f32.mrf.mxu3 }
 0x3c4   : > { %3357 = vst.msk [vmem:[#allocation5 + $0x1b0] sm:$0xff] %vm14425_vm13, %v3288_v32 }
 0x3c5   : > { %3502 = vrot.lane.b32.xlu0 %v14679_v26, %s8305_s4  ;;  %v14682_v26 = vld [vmem:[#allocation52_spill] sm:$0xff] }
 0x3c7   : > { %v3278_v34 = vpop.permute.xlu0 %3277 }
 0x3c8   : > { %3352 = vst.msk [vmem:[#allocation5 + $0x160] sm:$0xff] %vm14425_vm13, %v3278_v34  ;;  %3510 = vrot.lane.b32.xlu1 %v14681_v12, %s8305_s4  ;;  %v14683_v34 = vld [vmem:[#allocation54_spill] sm:$0xff] }
 0x3c9   : > { %3430 = vrot.lane.b32.xlu2 %v10648_v35, %s14642_s30  ;;  %v2246_v14 = vpop.f32.mrf.mxu1  ;;  %v14684_v12 = vld [vmem:[#allocation50_spill] sm:$0xff] }
 0x3ca   : > { %v3286_v2 = vpop.permute.xlu1 %3285 }
 0x3cb   : > { %3356 = vst.msk [vmem:[#allocation5 + $0x1a0] sm:$0xff] %vm14425_vm13, %v3286_v2  ;;  %v3294_v32 = vpop.permute.xlu2 %3293 }
 0x3cc   : > { %3360 = vst.msk [vmem:[#allocation5 + $0x1e0] sm:$0xff] %vm14425_vm13, %v3294_v32  ;;  %v14685_v32 = vld [vmem:[#allocation55_spill] sm:$0xff] }
 0x3cd   : > { %3508 = vrot.lane.b32.xlu0 %v14682_v26, %s8305_s4  ;;  %v2290_v26 = vpop.f32.mrf.mxu3 }
 0x3cf   : > { %v3284_v16 = vpop.permute.xlu0 %3283 }
 0x3d0   : > { %3355 = vst.msk [vmem:[#allocation5 + $0x190] sm:$0xff] %vm14425_vm13, %v3284_v16  ;;  %3516 = vrot.lane.b32.xlu1 %v14683_v34, %s8305_s4  ;;  %v14686_v16 = vld [vmem:[#allocation57_spill] sm:$0xff] }
 0x3d1   : > { %3506 = vrot.lane.b32.xlu2 %v14684_v12, %s8305_s4  ;;  %v14687_v34 = vld [vmem:[#allocation53_spill] sm:$0xff] }
 0x3d2   : > { %v3292_v35 = vpop.permute.xlu1 %3291 }
 0x3d3   : > { %3359 = vst.msk [vmem:[#allocation5 + $0x1d0] sm:$0xff] %vm14425_vm13, %v3292_v35  ;;  %v3371_v2 = vpop.permute.xlu2 %3370 }
 0x3d4   : > { %3466 = vst.msk [vmem:[#allocation5 + $0x10] sm:$0xff] %vm14426_vm14, %v3371_v2  ;;  %v14688_v2 = vld [vmem:[#allocation58_spill] sm:$0xff] }
 0x3d5   : > { %3514 = vrot.lane.b32.xlu0 %v14685_v32, %s8305_s4  ;;  %v2293_v32 = vpop.f32.mrf.mxu3 }
 0x3d6   : > { %v2249_v51 = vpop.f32.mrf.mxu1 }
 0x3d7   : > { %v3290_v37 = vpop.permute.xlu0 %3289  ;;  %v2291_v1 = vadd.f32 %v2290_v26, %v2249_v51  ;;  %v2282_v26 = vadd.f32 %v10620_v41, %v10635_v56 }
 0x3d8   : > { %3358 = vst.msk [vmem:[#allocation5 + $0x1c0] sm:$0xff] %vm14425_vm13, %v3290_v37  ;;  %3522 = vrot.lane.b32.xlu1 %v14686_v16, %s8305_s4  ;;  %v8267_v16 = vld [vmem:[%s14304_s7] ss:$0 sm:$0xff] }
 0x3d9   : > { %3512 = vrot.lane.b32.xlu2 %v14687_v34, %s8305_s4  ;;  %v14689_v34 = vld [vmem:[#allocation56_spill] sm:$0xff]  ;;  %v2302_v53 = vadd.f32 %v8267_v16, %v2291_v1  ;;  %v2299_v56 = vadd.f32 %v8267_v16, %v2282_v26 }
 0x3da   : > { %v3369_v12 = vpop.permute.xlu1 %3368  ;;  %v2368_v26 = vld [vmem:[%s14306_s9 + $0x8] sm:$0xff] }
 0x3db   : > { %3465 = vst.msk [vmem:[#allocation5] sm:$0xff] %vm14426_vm14, %v3369_v12  ;;  %v3377_v35 = vpop.permute.xlu2 %3376  ;;  %v2288_v12 = vadd.f32 %v2287_v59, %v2246_v14  ;;  %v2279_v59 = vadd.f32 %v10602_v47, %v10622_v63 }
 0x3dc   : > { %3469 = vst.msk [vmem:[#allocation5 + $0x40] sm:$0xff] %vm14426_vm14, %v3377_v35 }
 0x3dd   : > { %3520 = vrot.lane.b32.xlu0 %v14688_v2, %s8305_s4  ;;  %v2285_v2 = vadd.f32 %v2284_v6, %v2243_v29  ;;  %v2310_v6 = vmax.f32 %v2302_v53, 0.0  ;;  %v2298_v53 = vadd.f32 %v8267_v16, %v2279_v59 }
 0x3df   : > { %v3296_v9 = vpop.permute.xlu0 %3295  ;;  %v2300_v14 = vadd.f32 %v8267_v16, %v2285_v2 }
 0x3e0   : > { %3361 = vst.msk [vmem:[#allocation5 + $0x1f0] sm:$0xff] %vm14425_vm13, %v3296_v9  ;;  %3528 = vrot.lane.b32.xlu1 %v10296_v22, %s8305_s4  ;;  %v2252_v37 = vpop.f32.mrf.mxu1  ;;  %v2301_v22 = vadd.f32 %v8267_v16, %v2288_v12  ;;  %v2367_v12 = vld [vmem:[%s14306_s9] sm:$0xff]  ;;  %vm14427_vm13 = vcmask 392512  }
 0x3e1   : > { %3518 = vrot.lane.b32.xlu2 %v14689_v34, %s8305_s4  ;;  %v2294_v35 = vadd.f32 %v2293_v32, %v2252_v37  ;;  %v2308_v29 = vmax.f32 %v2300_v14, 0.0 }
 0x3e2   : > { %v3375_v44 = vpop.permute.xlu1 %3374  ;;  %v2309_v41 = vmax.f32 %v2301_v22, 0.0  ;;  %v2307_v22 = vmax.f32 %v2299_v56, 0.0  ;;  %v3498_v56 = vrot.slane %v10516_v61, 2 }
 0x3e3   : > { %v2303_v51 = vadd.f32 %v8267_v16, %v2294_v35  ;;  %3468 = vst.msk [vmem:[#allocation5 + $0x30] sm:$0xff] %vm14426_vm14, %v3375_v44  ;;  %v3383_v9 = vpop.permute.xlu2 %3382  ;;  %v2276_v44 = vadd.f32 %v10586_v23, %v10604_v62 }
 0x3e4   : > { %3472 = vst.msk [vmem:[#allocation5 + $0x70] sm:$0xff] %vm14426_vm14, %v3383_v9 }
 0x3e5   : > { %v2311_v17 = vmax.f32 %v2303_v51, 0.0  ;;  %3526 = vrot.lane.b32.xlu0 %v10264_v57, %s8305_s4  ;;  %v2297_v62 = vadd.f32 %v8267_v16, %v2276_v44 }
 0x3e7   : > { %2504 = vmatpush.msra.mxu0 %v2311_v17  ;;  %8235 = vmatpush.msrb.mxu2 %v2311_v17  ;;  %v3373_v1 = vpop.permute.xlu0 %3372  ;;  %v2273_v17 = vadd.f32 %v10574_v28, %v10591_v33  ;;  %v2306_v28 = vmax.f32 %v2298_v53, 0.0  ;;  %v2305_v33 = vmax.f32 %v2297_v62, 0.0  ;;  %v2370_v53 = vld [vmem:[%s14306_s9 + $0x18] sm:$0xff] }
 0x3e8   : > { %3467 = vst.msk [vmem:[#allocation5 + $0x20] sm:$0xff] %vm14426_vm14, %v3373_v1  ;;  %3534 = vrot.lane.b32.xlu1 %v10316_v58, %s8305_s4 }
 0x3e9   : > { %3524 = vrot.lane.b32.xlu2 %v10269_v20, %s8305_s4  ;;  %2505 = vmatpush.msra.mxu0 %v2310_v6  ;;  %v2296_v23 = vadd.f32 %v8267_v16, %v2273_v17 }
 0x3ea   : > { %8236 = vmatpush.msrb.mxu2 %v2310_v6  ;;  %v3381_v47 = vpop.permute.xlu1 %3380  ;;  %v2369_v6 = vld [vmem:[%s14306_s9 + $0x10] sm:$0xff] }
 0x3eb   : > { %3471 = vst.msk [vmem:[#allocation5 + $0x60] sm:$0xff] %vm14426_vm14, %v3381_v47  ;;  %v3389_v63 = vpop.permute.xlu2 %3388  ;;  %2506 = vmatpush.msra.mxu0 %v2309_v41  ;;  %v2304_v16 = vmax.f32 %v2296_v23, 0.0 }
 0x3ec   : > { %3475 = vst.msk [vmem:[#allocation5 + $0xa0] sm:$0xff] %vm14426_vm14, %v3389_v63  ;;  %8237 = vmatpush.msrb.mxu2 %v2309_v41  ;;  %v3500_v41 = vrot.slane %v10633_v18, 2  ;;  %v3497_v18 = vrot.slane %v10522_v50, 2 }
 0x3ed   : > { %3532 = vrot.lane.b32.xlu0 %v10325_v49, %s8305_s4  ;;  %2507 = vmatpush.msra.mxu0 %v2308_v29 }
 0x3ee   : > { %8238 = vmatpush.msrb.mxu2 %v2308_v29  ;;  %v10760_v63 = vsel %vm827_vm2, %v3498_v56, %v3500_v41  ;;  %v14692_v41 = vld [vmem:[#allocation22_spill] sm:$0xff] }
 0x3ef   : > { %2508 = vmatpush.msra.mxu0 %v2307_v22  ;;  %v3379_v32 = vpop.permute.xlu0 %3378 }
 0x3f0   : > { %8239 = vmatpush.msrb.mxu2 %v2307_v22  ;;  %3470 = vst.msk [vmem:[#allocation5 + $0x50] sm:$0xff] %vm14426_vm14, %v3379_v32  ;;  %3540 = vrot.lane.b32.xlu1 %v10335_v15, %s8305_s4  ;;  %v10770_v22 = vsel %vm827_vm2, %v3497_v18, %v3498_v56  ;;  %v2371_v32 = vld [vmem:[%s14306_s9 + $0x20] sm:$0xff]  ;;  %v14691_v56 = vld [vmem:[#allocation29_spill] sm:$0xff] }
 0x3f1   : > { %3530 = vrot.lane.b32.xlu2 %v10286_v5, %s8305_s4  ;;  %2509 = vmatpush.msra.mxu0 %v2306_v28  ;;  %v2383_v18 = vld [vmem:[%s14306_s9 + $0x80] sm:$0xff] }
 0x3f2   : > { %8240 = vmatpush.msrb.mxu2 %v2306_v28  ;;  %v3387_v2 = vpop.permute.xlu1 %3386 }
 0x3f3   : > { %3474 = vst.msk [vmem:[#allocation5 + $0x90] sm:$0xff] %vm14426_vm14, %v3387_v2  ;;  %v3395_v37 = vpop.permute.xlu2 %3394  ;;  %2510 = vmatpush.msra.mxu0 %v2305_v33 }
 0x3f4   : > { %3478 = vst.msk [vmem:[#allocation5 + $0xd0] sm:$0xff] %vm14426_vm14, %v3395_v37  ;;  %8241 = vmatpush.msrb.mxu2 %v2305_v33  ;;  %v2372_v37 = vld [vmem:[%s14306_s9 + $0x28] sm:$0xff] }
 0x3f5   : > { %3538 = vrot.lane.b32.xlu0 %v10346_v3, %s8305_s4  ;;  %2511 = vmatpush.msra.mxu0 %v2304_v16 }
 0x3f6   : > { %8242 = vmatpush.msrb.mxu2 %v2304_v16  ;;  %8065 = vmatmul.msk.f32.vlgmr.msra.gmra.mxu0 %vm2399_vm15, %v2367_v12 }
 0x3f7   : > { %v3385_v35 = vpop.permute.xlu0 %3384 }
 0x3f8   : > { %3473 = vst.msk [vmem:[#allocation5 + $0x80] sm:$0xff] %vm14426_vm14, %v3385_v35  ;;  %3546 = vrot.lane.b32.xlu1 %v10359_v31, %s8305_s4  ;;  %v2373_v35 = vld [vmem:[%s14306_s9 + $0x30] sm:$0xff] }
 0x3f9   : > { %3536 = vrot.lane.b32.xlu2 %v10301_v4, %s8305_s4 }
 0x3fa   : > { %v3393_v51 = vpop.permute.xlu1 %3392 }
 0x3fb   : > { %3477 = vst.msk [vmem:[#allocation5 + $0xc0] sm:$0xff] %vm14426_vm14, %v3393_v51  ;;  %v3401_v9 = vpop.permute.xlu2 %3400  ;;  %v2374_v51 = vld [vmem:[%s14306_s9 + $0x38] sm:$0xff] }
 0x3fc   : > { %3481 = vst.msk [vmem:[#allocation5 + $0x100] sm:$0xff] %vm14426_vm14, %v3401_v9 }
 0x3fd   : > { %3544 = vrot.lane.b32.xlu0 %v10367_v42, %s8305_s4 }
 0x3fe   : > { %8066 = vmatmul.msk.f32.gmra.mxu0 %vm2399_vm15, %v2368_v26  ;;  %v2375_v26 = vld [vmem:[%s14306_s9 + $0x40] sm:$0xff] }
 0x3ff   : > { %v3391_v59 = vpop.permute.xlu0 %3390 }
 0x400   : > { %3476 = vst.msk [vmem:[#allocation5 + $0xb0] sm:$0xff] %vm14426_vm14, %v3391_v59  ;;  %3552 = vrot.lane.b32.xlu1 %v10379_v30, %s8305_s4 }
 0x401   : > { %3542 = vrot.lane.b32.xlu2 %v10322_v27, %s8305_s4 }
 0x402   : > { %v3399_v14 = vpop.permute.xlu1 %3398 }
 0x403   : > { %3480 = vst.msk [vmem:[#allocation5 + $0xf0] sm:$0xff] %vm14426_vm14, %v3399_v14  ;;  %v3407_v1 = vpop.permute.xlu2 %3406  ;;  %v2376_v14 = vld [vmem:[%s14306_s9 + $0x48] sm:$0xff] }
 0x404   : > { %3484 = vst.msk [vmem:[#allocation5 + $0x130] sm:$0xff] %vm14426_vm14, %v3407_v1 }
 0x405   : > { %3550 = vrot.lane.b32.xlu0 %v10389_v52, %s8305_s4 }
 0x406   : > { %8067 = vmatmul.msk.f32.gmra.mxu0 %vm2399_vm15, %v2369_v6  ;;  %v2377_v6 = vld [vmem:[%s14306_s9 + $0x50] sm:$0xff] }
 0x407   : > { %v3397_v44 = vpop.permute.xlu0 %3396 }
 0x408   : > { %3479 = vst.msk [vmem:[#allocation5 + $0xe0] sm:$0xff] %vm14426_vm14, %v3397_v44  ;;  %3558 = vrot.lane.b32.xlu1 %v10400_v39, %s8305_s4  ;;  %v14690_v44 = vld [vmem:[#allocation17_spill] sm:$0xff] }
 0x409   : > { %3548 = vrot.lane.b32.xlu2 %v10343_v54, %s8305_s4 }
 0x40a   : > { %v3405_v47 = vpop.permute.xlu1 %3404 }
 0x40b   : > { %3483 = vst.msk [vmem:[#allocation5 + $0x120] sm:$0xff] %vm14426_vm14, %v3405_v47  ;;  %v3413_v17 = vpop.permute.xlu2 %3412 }
 0x40c   : > { %3487 = vst.msk [vmem:[#allocation5 + $0x160] sm:$0xff] %vm14426_vm14, %v3413_v17 }
 0x40d   : > { %3556 = vrot.lane.b32.xlu0 %v10406_v19, %s8305_s4 }
 0x40e   : > { %8068 = vmatmul.msk.f32.gmra.mxu0 %vm2399_vm15, %v2370_v53  ;;  %v14693_v53 = vld [vmem:[#allocation25_spill] sm:$0xff] }
 0x40f   : > { %v3403_v29 = vpop.permute.xlu0 %3402 }
 0x410   : > { %3482 = vst.msk [vmem:[#allocation5 + $0x110] sm:$0xff] %vm14426_vm14, %v3403_v29  ;;  %3564 = vrot.lane.b32.xlu1 %v10760_v63, %s8305_s4 }
 0x411   : > { %3554 = vrot.lane.b32.xlu2 %v10364_v8, %s8305_s4 }
 0x412   : > { %v3411_v62 = vpop.permute.xlu1 %3410 }
 0x413   : > { %3486 = vst.msk [vmem:[#allocation5 + $0x150] sm:$0xff] %vm14426_vm14, %v3411_v62  ;;  %v3419_v23 = vpop.permute.xlu2 %3418  ;;  %v14694_v62 = vld [vmem:[#allocation28_spill] sm:$0xff] }
 0x414   : > { %3490 = vst.msk [vmem:[#allocation5 + $0x190] sm:$0xff] %vm14426_vm14, %v3419_v23  ;;  %v14695_v23 = vld [vmem:[#allocation24_spill] sm:$0xff] }
 0x415   : > { %3562 = vrot.lane.b32.xlu0 %v10770_v22, %s8305_s4 }
 0x416   : > { %8069 = vmatmul.msk.f32.gmra.mxu0 %vm2399_vm15, %v2371_v32 }
 0x417   : > { %v3409_v28 = vpop.permute.xlu0 %3408 }
 0x418   : > { %3485 = vst.msk [vmem:[#allocation5 + $0x140] sm:$0xff] %vm14426_vm14, %v3409_v28  ;;  %3637 = vrot.lane.b32.xlu1 %v9506_v11, %s14639_s29 }
 0x419   : > { %3560 = vrot.lane.b32.xlu2 %v10386_v36, %s8305_s4 }
 0x41a   : > { %v3417_v33 = vpop.permute.xlu1 %3416 }
 0x41b   : > { %3489 = vst.msk [vmem:[#allocation5 + $0x180] sm:$0xff] %vm14426_vm14, %v3417_v33  ;;  %v3425_v2 = vpop.permute.xlu2 %3424  ;;  %v14696_v33 = vld [vmem:[#allocation26_spill] sm:$0xff] }
 0x41c   : > { %3493 = vst.msk [vmem:[#allocation5 + $0x1c0] sm:$0xff] %vm14426_vm14, %v3425_v2  ;;  %v2384_v2 = vld [vmem:[%s14306_s9 + $0x88] sm:$0xff] }
 0x41d   : > { %3635 = vrot.lane.b32.xlu0 %v9481_v40, %s14639_s29  ;;  %v2378_v40 = vld [vmem:[%s14306_s9 + $0x58] sm:$0xff] }
 0x41e   : > { %8070 = vmatmul.msk.f32.gmra.mxu0 %vm2399_vm15, %v2372_v37  ;;  %8076 = vmatmul.msk.f32.vlgmr.msrb.gmra.mxu2 %vm2399_vm15, %v2378_v40  ;;  %v14699_v40 = vld [vmem:[#allocation36_spill] sm:$0xff] }
 0x41f   : > { %v3415_v16 = vpop.permute.xlu0 %3414 }
 0x420   : > { %3488 = vst.msk [vmem:[#allocation5 + $0x170] sm:$0xff] %vm14426_vm14, %v3415_v16  ;;  %3643 = vrot.lane.b32.xlu1 %v9494_v10, %s14639_s29  ;;  %v14697_v16 = vld [vmem:[#allocation38_spill] sm:$0xff] }
 0x421   : > { %3633 = vrot.lane.b32.xlu2 %v9478_v55, %s14639_s29 }
 0x422   : > { %v3423_v11 = vpop.permute.xlu1 %3422 }
 0x423   : > { %3492 = vst.msk [vmem:[#allocation5 + $0x1b0] sm:$0xff] %vm14426_vm14, %v3423_v11  ;;  %v3431_v12 = vpop.permute.xlu2 %3430  ;;  %v14698_v11 = vld [vmem:[#allocation33_spill] sm:$0xff] }
 0x424   : > { %3496 = vst.msk [vmem:[#allocation5 + $0x1f0] sm:$0xff] %vm14426_vm14, %v3431_v12 }
 0x425   : > { %3641 = vrot.lane.b32.xlu0 %v9492_v13, %s14639_s29 }
 0x426   : > { %8071 = vmatmul.msk.f32.gmra.mxu0 %vm2399_vm15, %v2373_v35 }
 0x427   : > { %v3421_v55 = vpop.permute.xlu0 %3420 }
 0x428   : > { %3491 = vst.msk [vmem:[#allocation5 + $0x1a0] sm:$0xff] %vm14426_vm14, %v3421_v55  ;;  %3649 = vrot.lane.b32.xlu1 %v9600_v45, %s14639_s29  ;;  %v2379_v45 = vld [vmem:[%s14306_s9 + $0x60] sm:$0xff]  ;;  %v2385_v55 = vld [vmem:[%s14306_s9 + $0x90] sm:$0xff] }
 0x429   : > { %3639 = vrot.lane.b32.xlu2 %v9511_v24, %s14639_s29  ;;  %8077 = vmatmul.msk.f32.gmra.mxu2 %vm2399_vm15, %v2379_v45 }
 0x42a   : > { %v3429_v10 = vpop.permute.xlu1 %3428 }
 0x42b   : > { %3495 = vst.msk [vmem:[#allocation5 + $0x1e0] sm:$0xff] %vm14426_vm14, %v3429_v10  ;;  %v3507_v13 = vpop.permute.xlu2 %3506 }
 0x42c   : > { %3601 = vst.msk [vmem:[#allocation5 + $0x20] sm:$0xff] %vm14427_vm13, %v3507_v13  ;;  %v14700_v13 = vld [vmem:[#allocation34_spill] sm:$0xff] }
 0x42d   : > { %3647 = vrot.lane.b32.xlu0 %v9526_v48, %s14639_s29 }
 0x42e   : > { %8072 = vmatmul.msk.f32.gmra.mxu0 %vm2399_vm15, %v2374_v51 }
 0x42f   : > { %v3427_v24 = vpop.permute.xlu0 %3426 }
 0x430   : > { %3494 = vst.msk [vmem:[#allocation5 + $0x1d0] sm:$0xff] %vm14426_vm14, %v3427_v24  ;;  %3655 = vrot.lane.b32.xlu1 %v9591_v38, %s14639_s29  ;;  %v2380_v38 = vld [vmem:[%s14306_s9 + $0x68] sm:$0xff]  ;;  %vm3729_vm14 = vcmask 458112  }
 0x431   : > { %3645 = vrot.lane.b32.xlu2 %v9539_v60, %s14639_s29  ;;  %8078 = vmatmul.msk.f32.gmra.mxu2 %vm2399_vm15, %v2380_v38  ;;  %v10935_v38 = vld [vmem:[#allocation4 + $0x1a0] sm:$0xff] }
 0x432   : > { %v3505_v9 = vpop.permute.xlu1 %3504 }
 0x433   : > { %3600 = vst.msk [vmem:[#allocation5 + $0x10] sm:$0xff] %vm14427_vm13, %v3505_v9  ;;  %v3513_v48 = vpop.permute.xlu2 %3512  ;;  %v14701_v9 = vld [vmem:[#allocation9_spill] sm:$0xff] }
 0x434   : > { %3604 = vst.msk [vmem:[#allocation5 + $0x50] sm:$0xff] %vm14427_vm13, %v3513_v48  ;;  %v14702_v48 = vld [vmem:[#allocation39_spill] sm:$0xff] }
 0x435   : > { %3653 = vrot.lane.b32.xlu0 %v9585_v43, %s14639_s29 }
 0x436   : > { %8073 = vmatmul.msk.f32.gmra.mxu0 %vm2399_vm15, %v2375_v26 }
 0x437   : > { %v3503_v60 = vpop.permute.xlu0 %3502 }
 0x438   : > { %3599 = vst.msk [vmem:[#allocation5] sm:$0xff] %vm14427_vm13, %v3503_v60  ;;  %3661 = vrot.lane.b32.xlu1 %v9677_v7, %s14639_s29  ;;  %v2381_v7 = vld [vmem:[%s14306_s9 + $0x70] sm:$0xff]  ;;  %v10941_v60 = vld [vmem:[#allocation4 + $0x198] sm:$0xff] }
 0x439   : > { %3651 = vrot.lane.b32.xlu2 %v9604_v25, %s14639_s29  ;;  %8079 = vmatmul.msk.f32.gmra.mxu2 %vm2399_vm15, %v2381_v7 }
 0x43a   : > { %v3511_v59 = vpop.permute.xlu1 %3510 }
 0x43b   : > { %3603 = vst.msk [vmem:[#allocation5 + $0x40] sm:$0xff] %vm14427_vm13, %v3511_v59  ;;  %v3519_v43 = vpop.permute.xlu2 %3518 }
 0x43c   : > { %3607 = vst.msk [vmem:[#allocation5 + $0x80] sm:$0xff] %vm14427_vm13, %v3519_v43  ;;  %v14703_v43 = vld [vmem:[#allocation12_spill] sm:$0xff] }
 0x43d   : > { %3659 = vrot.lane.b32.xlu0 %v9626_v46, %s14639_s29 }
 0x43e   : > { %8074 = vmatmul.msk.f32.gmra.mxu0 %vm2399_vm15, %v2376_v14  ;;  %v2387_v14 = vld [vmem:[%s14306_s9 + $0xa0] sm:$0xff] }
 0x43f   : > { %v3509_v25 = vpop.permute.xlu0 %3508 }
 0x440   : > { %3602 = vst.msk [vmem:[#allocation5 + $0x30] sm:$0xff] %vm14427_vm13, %v3509_v25  ;;  %3667 = vrot.lane.b32.xlu1 %v9665_v0, %s14639_s29  ;;  %v2382_v0 = vld [vmem:[%s14306_s9 + $0x78] sm:$0xff] }
 0x441   : > { %3657 = vrot.lane.b32.xlu2 %v9615_v21, %s14639_s29  ;;  %8080 = vmatmul.msk.f32.gmra.mxu2 %vm2399_vm15, %v2382_v0  ;;  %v2388_v0 = vld [vmem:[%s14306_s9 + $0xa8] sm:$0xff] }
 0x442   : > { %v3517_v1 = vpop.permute.xlu1 %3516 }
 0x443   : > { %3606 = vst.msk [vmem:[#allocation5 + $0x70] sm:$0xff] %vm14427_vm13, %v3517_v1  ;;  %v3525_v46 = vpop.permute.xlu2 %3524 }
 0x444   : > { %3610 = vst.msk [vmem:[#allocation5 + $0xb0] sm:$0xff] %vm14427_vm13, %v3525_v46  ;;  %v14704_v46 = vld [vmem:[#allocation10_spill] sm:$0xff] }
 0x445   : > { %3665 = vrot.lane.b32.xlu0 %v14690_v44, %s14639_s29  ;;  %v14705_v44 = vld [vmem:[#allocation15_spill] sm:$0xff] }
 0x446   : > { %8075 = vmatmul.msk.f32.gmra.mxu0 %vm2399_vm15, %v2377_v6 }
 0x447   : > { %v3515_v21 = vpop.permute.xlu0 %3514 }
 0x448   : > { %3605 = vst.msk [vmem:[#allocation5 + $0x60] sm:$0xff] %vm14427_vm13, %v3515_v21  ;;  %3673 = vrot.lane.b32.xlu1 %v14691_v56, %s14639_s29  ;;  %v14706_v21 = vld [vmem:[#allocation8_spill] sm:$0xff] }
 0x449   : > { %3663 = vrot.lane.b32.xlu2 %v14692_v41, %s14639_s29  ;;  %8081 = vmatmul.msk.f32.gmra.mxu2 %vm2399_vm15, %v2383_v18 }
 0x44a   : > { %v3523_v47 = vpop.permute.xlu1 %3522 }
 0x44b   : > { %3609 = vst.msk [vmem:[#allocation5 + $0xa0] sm:$0xff] %vm14427_vm13, %v3523_v47  ;;  %v3531_v17 = vpop.permute.xlu2 %3530 }
 0x44c   : > { %3613 = vst.msk [vmem:[#allocation5 + $0xe0] sm:$0xff] %vm14427_vm13, %v3531_v17  ;;  %v14707_v17 = vld [vmem:[#allocation13_spill] sm:$0xff] }
 0x44d   : > { %3671 = vrot.lane.b32.xlu0 %v14693_v53, %s14639_s29  ;;  %v5707_v53 = vld [vmem:[%s14308_s11 + $0x88] sm:$0xff] }
 0x44e   : > { %5931 = vmatpush.msrb.mxu3 %v5707_v53 }
 0x44f   : > { %v3521_v29 = vpop.permute.xlu0 %3520 }
 0x450   : > { %3608 = vst.msk [vmem:[#allocation5 + $0x90] sm:$0xff] %vm14427_vm13, %v3521_v29  ;;  %3679 = vrot.lane.b32.xlu1 %v14694_v62, %s14639_s29  ;;  %v14708_v29 = vld [vmem:[#allocation19_spill] sm:$0xff]  ;;  %v2389_v62 = vld [vmem:[%s14306_s9 + $0xb0] sm:$0xff] }
 0x451   : > { %3669 = vrot.lane.b32.xlu2 %v14695_v23, %s14639_s29  ;;  %8082 = vmatmul.msk.f32.gmra.mxu2 %vm2399_vm15, %v2384_v2  ;;  %v5706_v23 = vld [vmem:[%s14308_s11 + $0x80] sm:$0xff] }
 0x452   : > { %v3529_v32 = vpop.permute.xlu1 %3528  ;;  %5932 = vmatpush.msrb.mxu3 %v5706_v23 }
 0x453   : > { %3612 = vst.msk [vmem:[#allocation5 + $0xd0] sm:$0xff] %vm14427_vm13, %v3529_v32  ;;  %v3537_v28 = vpop.permute.xlu2 %3536  ;;  %v14709_v32 = vld [vmem:[#allocation11_spill] sm:$0xff] }
 0x454   : > { %3616 = vst.msk [vmem:[#allocation5 + $0x110] sm:$0xff] %vm14427_vm13, %v3537_v28 }
 0x455   : > { %3677 = vrot.lane.b32.xlu0 %v14696_v33, %s14639_s29 }
 0x457   : > { %v3527_v37 = vpop.permute.xlu0 %3526 }
 0x458   : > { %3611 = vst.msk [vmem:[#allocation5 + $0xc0] sm:$0xff] %vm14427_vm13, %v3527_v37  ;;  %3685 = vrot.lane.b32.xlu1 %v14697_v16, %s14639_s29  ;;  %v14710_v37 = vld [vmem:[#allocation16_spill] sm:$0xff] }
 0x459   : > { %3675 = vrot.lane.b32.xlu2 %v14698_v11, %s14639_s29  ;;  %8083 = vmatmul.msk.f32.gmra.mxu2 %vm2399_vm15, %v2385_v55  ;;  %v14711_v11 = vld [vmem:[#allocation23_spill] sm:$0xff] }
 0x45a   : > { %v3535_v12 = vpop.permute.xlu1 %3534 }
 0x45b   : > { %3615 = vst.msk [vmem:[#allocation5 + $0x100] sm:$0xff] %vm14427_vm13, %v3535_v12  ;;  %v3543_v35 = vpop.permute.xlu2 %3542  ;;  %v2390_v12 = vld [vmem:[%s14306_s9 + $0xb8] sm:$0xff] }
 0x45c   : > { %3619 = vst.msk [vmem:[#allocation5 + $0x140] sm:$0xff] %vm14427_vm13, %v3543_v35  ;;  %v14712_v35 = vld [vmem:[#allocation14_spill] sm:$0xff] }
 0x45d   : > { %3683 = vrot.lane.b32.xlu0 %v14699_v40, %s14639_s29 }
 0x45f   : > { %v3533_v10 = vpop.permute.xlu0 %3532 }
 0x460   : > { %3614 = vst.msk [vmem:[#allocation5 + $0xf0] sm:$0xff] %vm14427_vm13, %v3533_v10  ;;  %3691 = vrot.lane.b32.xlu1 %v10516_v61, %s14639_s29  ;;  %v2386_v61 = vld [vmem:[%s14306_s9 + $0x98] sm:$0xff] }
 0x461   : > { %3681 = vrot.lane.b32.xlu2 %v14700_v13, %s14639_s29  ;;  %8084 = vmatmul.msk.f32.gmra.mxu2 %vm2399_vm15, %v2386_v61  ;;  %v14713_v13 = vld [vmem:[#allocation20_spill] sm:$0xff]  ;;  %v14716_v61 = vld [vmem:[#allocation18_spill] sm:$0xff] }
 0x462   : > { %v3541_v51 = vpop.permute.xlu1 %3540 }
 0x463   : > { %3618 = vst.msk [vmem:[#allocation5 + $0x130] sm:$0xff] %vm14427_vm13, %v3541_v51  ;;  %v3549_v45 = vpop.permute.xlu2 %3548 }
 0x464   : > { %3622 = vst.msk [vmem:[#allocation5 + $0x170] sm:$0xff] %vm14427_vm13, %v3549_v45 }
 0x465   : > { %3689 = vrot.lane.b32.xlu0 %v10522_v50, %s14639_s29 }
 0x467   : > { %v3539_v24 = vpop.permute.xlu0 %3538 }
 0x468   : > { %3617 = vst.msk [vmem:[#allocation5 + $0x120] sm:$0xff] %vm14427_vm13, %v3539_v24  ;;  %3768 = vrot.lane.b32.xlu1 %v14701_v9, %s8306_s26  ;;  %v14715_v24 = vld [vmem:[#allocation31_spill] sm:$0xff] }
 0x469   : > { %3687 = vrot.lane.b32.xlu2 %v14702_v48, %s14639_s29  ;;  %8085 = vmatmul.msk.f32.gmra.mxu2 %vm2399_vm15, %v2387_v14  ;;  %v2391_v9 = vld [vmem:[%s14306_s9 + $0xc0] sm:$0xff] }
 0x46a   : > { %v3547_v26 = vpop.permute.xlu1 %3546 }
 0x46b   : > { %3621 = vst.msk [vmem:[#allocation5 + $0x160] sm:$0xff] %vm14427_vm13, %v3547_v26  ;;  %v3555_v50 = vpop.permute.xlu2 %3554 }
 0x46c   : > { %3625 = vst.msk [vmem:[#allocation5 + $0x1a0] sm:$0xff] %vm14427_vm13, %v3555_v50 }
 0x46d   : > { %3695 = vrot.lane.b32.xlu0 %v10935_v38, %s14639_s29 }
 0x46f   : > { %v3545_v59 = vpop.permute.xlu0 %3544 }
 0x470   : > { %3620 = vst.msk [vmem:[#allocation5 + $0x150] sm:$0xff] %vm14427_vm13, %v3545_v59  ;;  %3774 = vrot.lane.b32.xlu1 %v14703_v43, %s8306_s26 }
 0x471   : > { %3693 = vrot.lane.b32.xlu2 %v10941_v60, %s14639_s29  ;;  %8086 = vmatmul.msk.f32.gmra.mxu2 %vm2399_vm15, %v2388_v0 }
 0x472   : > { %v3553_v7 = vpop.permute.xlu1 %3552 }
 0x473   : > { %3624 = vst.msk [vmem:[#allocation5 + $0x190] sm:$0xff] %vm14427_vm13, %v3553_v7  ;;  %v3561_v25 = vpop.permute.xlu2 %3560  ;;  %v2513_v1 = vpop.f32.mrf.mxu0 }
 0x474   : > { %3628 = vst.msk [vmem:[#allocation5 + $0x1d0] sm:$0xff] %vm14427_vm13, %v3561_v25  ;;  %v14718_v25 = vld [vmem:[#allocation27_spill] sm:$0xff] }
 0x475   : > { %4314 = vst.msk [vmem:[#allocation4 + $0x19] sm:$0xff] %vm638_vm4, %v2513_v1  ;;  %3772 = vrot.lane.b32.xlu0 %v14704_v46, %s8306_s26  ;;  %v3764_v46 = vrot.slane %v10935_v38, 1 }
 0x477   : > { %v3551_v6 = vpop.permute.xlu0 %3550 }
 0x478   : > { %3623 = vst.msk [vmem:[#allocation5 + $0x180] sm:$0xff] %vm14427_vm13, %v3551_v6  ;;  %3780 = vrot.lane.b32.xlu1 %v14705_v44, %s8306_s26  ;;  %v3763_v6 = vrot.slane %v10941_v60, 1 }
 0x479   : > { %3770 = vrot.lane.b32.xlu2 %v14706_v21, %s8306_s26  ;;  %8087 = vmatmul.msk.f32.gmra.mxu2 %vm2399_vm15, %v2389_v62  ;;  %v14721_v62 = vld [vmem:[#allocation32_spill] sm:$0xff] }
 0x47a   : > { %v3559_v56 = vpop.permute.xlu1 %3558  ;;  %v11052_v53 = vsel %vm769_vm3, %v3763_v6, %v3764_v46 }
 0x47b   : > { %3627 = vst.msk [vmem:[#allocation5 + $0x1c0] sm:$0xff] %vm14427_vm13, %v3559_v56  ;;  %v3634_v41 = vpop.permute.xlu2 %3633  ;;  %v2516_v47 = vpop.f32.mrf.mxu0  ;;  %v14719_v56 = vld [vmem:[#allocation37_spill] sm:$0xff] }
 0x47c   : > { %3730 = vst.msk [vmem:[#allocation5] sm:$0xff] %vm3729_vm14, %v3634_v41  ;;  %v2392_v41 = vld [vmem:[%s14306_s9 + $0xc8] sm:$0xff] }
 0x47d   : > { %4315 = vst.msk [vmem:[#allocation4 + $0x21] sm:$0xff] %vm638_vm4, %v2516_v47  ;;  %3778 = vrot.lane.b32.xlu0 %v14707_v17, %s8306_s26  ;;  %v14720_v47 = vld [vmem:[#allocation21_spill] sm:$0xff] }
 0x47f   : > { %v3557_v18 = vpop.permute.xlu0 %3556 }
 0x480   : > { %3626 = vst.msk [vmem:[#allocation5 + $0x1b0] sm:$0xff] %vm14427_vm13, %v3557_v18  ;;  %3786 = vrot.lane.b32.xlu1 %v14708_v29, %s8306_s26 }
 0x481   : > { %3776 = vrot.lane.b32.xlu2 %v14709_v32, %s8306_s26  ;;  %8088 = vmatmul.msk.f32.gmra.mxu2 %vm2399_vm15, %v2390_v12 }
 0x482   : > { %v3565_v28 = vpop.permute.xlu1 %3564 }
 0x483   : > { %3630 = vst.msk [vmem:[#allocation5 + $0x1f0] sm:$0xff] %vm14427_vm13, %v3565_v28  ;;  %v3640_v33 = vpop.permute.xlu2 %3639  ;;  %v2519_v2 = vpop.f32.mrf.mxu0 }
 0x484   : > { %3733 = vst.msk [vmem:[#allocation5 + $0x30] sm:$0xff] %vm3729_vm14, %v3640_v33  ;;  %v14722_v33 = vld [vmem:[#allocation42_spill] sm:$0xff] }
 0x485   : > { %4316 = vst.msk [vmem:[#allocation4 + $0x31] sm:$0xff] %vm638_vm4, %v2519_v2  ;;  %3784 = vrot.lane.b32.xlu0 %v14710_v37, %s8306_s26  ;;  %v2393_v2 = vld [vmem:[%s14306_s9 + $0xd0] sm:$0xff]  ;;  %v14723_v37 = vld [vmem:[#allocation30_spill] sm:$0xff] }
 0x487   : > { %v3563_v16 = vpop.permute.xlu0 %3562 }
 0x488   : > { %3629 = vst.msk [vmem:[#allocation5 + $0x1e0] sm:$0xff] %vm14427_vm13, %v3563_v16  ;;  %3792 = vrot.lane.b32.xlu1 %v14711_v11, %s8306_s26  ;;  %vm14476_vm13 = vcmask 523712  }
 0x489   : > { %3782 = vrot.lane.b32.xlu2 %v14712_v35, %s8306_s26  ;;  %8089 = vmatmul.msk.f32.gmra.mxu2 %vm2399_vm15, %v2391_v9 }
 0x48a   : > { %v3638_v40 = vpop.permute.xlu1 %3637 }
 0x48b   : > { %3732 = vst.msk [vmem:[#allocation5 + $0x20] sm:$0xff] %vm3729_vm14, %v3638_v40  ;;  %v3646_v55 = vpop.permute.xlu2 %3645  ;;  %v2522_v10 = vpop.f32.mrf.mxu0 }
 0x48c   : > { %3736 = vst.msk [vmem:[#allocation5 + $0x60] sm:$0xff] %vm3729_vm14, %v3646_v55  ;;  %v11005_v45 = vld [vmem:[#allocation4 + $0x30] sm:$0xff] }
 0x48d   : > { %4317 = vst.msk [vmem:[#allocation4 + $0x39] sm:$0xff] %vm638_vm4, %v2522_v10  ;;  %3790 = vrot.lane.b32.xlu0 %v14713_v13, %s8306_s26  ;;  %v4698_v26 = vrot.slane %v11005_v45, 2  ;;  %v14724_v13 = vld [vmem:[#allocation40_spill] sm:$0xff] }
 0x48e   : > { %14714 = vst [vmem:[#allocation48_spill] sm:$0xff] %v11005_v45 }
 0x48f   : > { %v3636_v51 = vpop.permute.xlu0 %3635 }
 0x490   : > { %3731 = vst.msk [vmem:[#allocation5 + $0x10] sm:$0xff] %vm3729_vm14, %v3636_v51  ;;  %3798 = vrot.lane.b32.xlu1 %v14715_v24, %s8306_s26 }
 0x491   : > { %3788 = vrot.lane.b32.xlu2 %v14716_v61, %s8306_s26  ;;  %8090 = vmatmul.msk.f32.gmra.mxu2 %vm2399_vm15, %v2392_v41  ;;  %v2395_v41 = vld [vmem:[%s14306_s9 + $0xe0] sm:$0xff] }
 0x492   : > { %v3644_v48 = vpop.permute.xlu1 %3643 }
 0x493   : > { %3735 = vst.msk [vmem:[#allocation5 + $0x50] sm:$0xff] %vm3729_vm14, %v3644_v48  ;;  %v3652_v50 = vpop.permute.xlu2 %3651  ;;  %v2525_v59 = vpop.f32.mrf.mxu0 }
 0x494   : > { %v11018_v43 = vld [vmem:[#allocation4 + $0x38] sm:$0xff]  ;;  %v11020_v14 = vld [vmem:[#allocation4 + $0x40] sm:$0x3]  ;;  %3739 = vst.msk [vmem:[#allocation5 + $0x90] sm:$0xff] %vm3729_vm14, %v3652_v50  ;;  %v14725_v50 = vld [vmem:[#allocation45_spill] sm:$0xff] }
 0x495   : > { %14717 = vst [vmem:[#allocation49_spill] sm:$0xff] %v11018_v43  ;;  %v4701_v7 = vrot.slane %v11020_v14, 2  ;;  %3796 = vrot.lane.b32.xlu0 %v14718_v25, %s8306_s26  ;;  %v4699_v1 = vrot.slane %v11018_v43, 2 }
 0x496   : > { %4318 = vst.msk [vmem:[#allocation4 + $0x49] sm:$0xff] %vm638_vm4, %v2525_v59  ;;  %v14726_v59 = vld [vmem:[#allocation35_spill] sm:$0xff] }
 0x497   : > { %v3642_v44 = vpop.permute.xlu0 %3641  ;;  %v11031_v0 = vsel %vm827_vm2, %v4698_v26, %v4699_v1  ;;  %v11034_v21 = vsel %vm827_vm2, %v4699_v1, %v4701_v7  ;;  %v2394_v26 = vld [vmem:[%s14306_s9 + $0xd8] sm:$0xff] }
 0x498   : > { %3734 = vst.msk [vmem:[#allocation5 + $0x40] sm:$0xff] %vm3729_vm14, %v3642_v44  ;;  %3804 = vrot.lane.b32.xlu1 %v14719_v56, %s8306_s26  ;;  %v14727_v44 = vld [vmem:[#allocation43_spill] sm:$0xff] }
 0x499   : > { %3794 = vrot.lane.b32.xlu2 %v14720_v47, %s8306_s26  ;;  %5594 = vst.msk [vmem:[#allocation5 + $0x8] sm:$0xff] %vm638_vm4, %v11031_v0  ;;  %8091 = vmatmul.msk.f32.gmra.mxu2 %vm2399_vm15, %v2393_v2 }
 0x49a   : > { %v3650_v17 = vpop.permute.xlu1 %3649  ;;  %5595 = vst.msk [vmem:[#allocation5 + $0x18] sm:$0xff] %vm638_vm4, %v11034_v21 }
 0x49b   : > { %3738 = vst.msk [vmem:[#allocation5 + $0x80] sm:$0xff] %vm3729_vm14, %v3650_v17  ;;  %v3658_v18 = vpop.permute.xlu2 %3657  ;;  %v2528_v29 = vpop.f32.mrf.mxu0 }
 0x49c   : > { %3742 = vst.msk [vmem:[#allocation5 + $0xc0] sm:$0xff] %vm3729_vm14, %v3658_v18  ;;  %v14729_v18 = vld [vmem:[#allocation47_spill] sm:$0xff] }
 0x49d   : > { %4319 = vst.msk [vmem:[#allocation4 + $0x51] sm:$0xff] %vm638_vm4, %v2528_v29  ;;  %3802 = vrot.lane.b32.xlu0 %v14721_v62, %s8306_s26  ;;  %v11059_v32 = vld [vmem:[#allocation4 + $0x48] sm:$0xff] }
 0x49e   : > { %v4703_v35 = vrot.slane %v11059_v32, 2  ;;  %v14730_v29 = vld [vmem:[#allocation41_spill] sm:$0xff] }
 0x49f   : > { %v3648_v23 = vpop.permute.xlu0 %3647 }
 0x4a0   : > { %v5627_v28 = vld [vmem:[#allocation5 + $0x8] sm:$0xff]  ;;  %3737 = vst.msk [vmem:[#allocation5 + $0x70] sm:$0xff] %vm3729_vm14, %v3648_v23  ;;  %3810 = vrot.lane.b32.xlu1 %v14722_v33, %s8306_s26 }
 0x4a1   : > { %8129 = vmatmul.msk.f32.vlgmr.msrb.gmra.mxu3 %vm638_vm4, %v5627_v28  ;;  %3800 = vrot.lane.b32.xlu2 %v14723_v37, %s8306_s26  ;;  %v5629_v24 = vld [vmem:[#allocation5 + $0x18] sm:$0xff]  ;;  %v2546_v7 = vpop.f32.mrf.mxu2 }
 0x4a2   : > { %v3656_v16 = vpop.permute.xlu1 %3655  ;;  %8092 = vmatmul.msk.f32.gmra.mxu2 %vm2399_vm15, %v2394_v26  ;;  %4325 = vst.msk [vmem:[#allocation4 + $0x99] sm:$0xff] %vm638_vm4, %v2546_v7  ;;  %v14733_v26 = vld [vmem:[#allocation44_spill] sm:$0xff] }
 0x4a3   : > { %3741 = vst.msk [vmem:[#allocation5 + $0xb0] sm:$0xff] %vm3729_vm14, %v3656_v16  ;;  %v3664_v11 = vpop.permute.xlu2 %3663  ;;  %v2531_v12 = vpop.f32.mrf.mxu0 }
 0x4a4   : > { %v11073_v40 = vld [vmem:[#allocation4 + $0x50] sm:$0xff]  ;;  %v11075_v55 = vld [vmem:[#allocation4 + $0x58] sm:$0x3]  ;;  %3745 = vst.msk [vmem:[#allocation5 + $0xf0] sm:$0xff] %vm3729_vm14, %v3664_v11 }
 0x4a5   : > { %v4706_v10 = vrot.slane %v11075_v55, 2  ;;  %4320 = vst.msk [vmem:[#allocation4 + $0x61] sm:$0xff] %vm638_vm4, %v2531_v12  ;;  %3808 = vrot.lane.b32.xlu0 %v14724_v13, %s8306_s26  ;;  %v4704_v51 = vrot.slane %v11073_v40, 2  ;;  %v14731_v12 = vld [vmem:[#allocation46_spill] sm:$0xff] }
 0x4a7   : > { %v3654_v9 = vpop.permute.xlu0 %3653  ;;  %v11084_v61 = vsel %vm827_vm2, %v4703_v35, %v4704_v51  ;;  %v11087_v48 = vsel %vm827_vm2, %v4704_v51, %v4706_v10 }
 0x4a8   : > { %3740 = vst.msk [vmem:[#allocation5 + $0xa0] sm:$0xff] %vm3729_vm14, %v3654_v9  ;;  %3816 = vrot.lane.b32.xlu1 %v14725_v50, %s8306_s26  ;;  %v2396_v9 = vld [vmem:[%s14306_s9 + $0xe8] sm:$0xff] }
 0x4a9   : > { %8130 = vmatmul.msk.f32.gmra.mxu3 %vm638_vm4, %v5629_v24  ;;  %3806 = vrot.lane.b32.xlu2 %v14726_v59, %s8306_s26  ;;  %5596 = vst.msk [vmem:[#allocation5 + $0x28] sm:$0xff] %vm638_vm4, %v11084_v61 }
 0x4aa   : > { %v3662_v25 = vpop.permute.xlu1 %3661  ;;  %5597 = vst.msk [vmem:[#allocation5 + $0x38] sm:$0xff] %vm638_vm4, %v11087_v48  ;;  %8093 = vmatmul.msk.f32.gmra.mxu2 %vm2399_vm15, %v2395_v41  ;;  %v14735_v41 = vld [vmem:[#allocation52_spill] sm:$0xff] }
 0x4ab   : > { %3744 = vst.msk [vmem:[#allocation5 + $0xe0] sm:$0xff] %vm3729_vm14, %v3662_v25  ;;  %v3670_v1 = vpop.permute.xlu2 %3669  ;;  %v2534_v6 = vpop.f32.mrf.mxu0 }
 0x4ac   : > { %3748 = vst.msk [vmem:[#allocation5 + $0x120] sm:$0xff] %vm3729_vm14, %v3670_v1  ;;  %v11112_v47 = vld [vmem:[#allocation4 + $0x60] sm:$0xff]  ;;  %v2549_v62 = vpop.f32.mrf.mxu2 }
 0x4ad   : > { %4321 = vst.msk [vmem:[#allocation4 + $0x69] sm:$0xff] %vm638_vm4, %v2534_v6  ;;  %3814 = vrot.lane.b32.xlu0 %v14727_v44, %s8306_s26  ;;  %v4708_v2 = vrot.slane %v11112_v47, 2  ;;  %v11160_v6 = vld [vmem:[#allocation4 + $0x1a8] sm:$0x3] }
 0x4ae   : > { %14728 = vst [vmem:[#allocation56_spill] sm:$0xff] %v11112_v47 }
 0x4af   : > { %v3660_v56 = vpop.permute.xlu0 %3659  ;;  %4326 = vst.msk [vmem:[#allocation4 + $0xa9] sm:$0xff] %vm638_vm4, %v2549_v62  ;;  %v3766_v62 = vrot.slane %v11160_v6, 1 }
 0x4b0   : > { %v5631_v17 = vld [vmem:[#allocation5 + $0x28] sm:$0xff]  ;;  %3743 = vst.msk [vmem:[#allocation5 + $0xd0] sm:$0xff] %vm3729_vm14, %v3660_v56  ;;  %3822 = vrot.lane.b32.xlu1 %v14729_v18, %s8306_s26 }
 0x4b1   : > { %8131 = vmatmul.msk.f32.gmra.mxu3 %vm638_vm4, %v5631_v17  ;;  %3812 = vrot.lane.b32.xlu2 %v14730_v29, %s8306_s26  ;;  %v5633_v10 = vld [vmem:[#allocation5 + $0x38] sm:$0xff]  ;;  %v14736_v17 = vld [vmem:[#allocation6_spill] sm:$0xff] }
 0x4b2   : > { %v3668_v23 = vpop.permute.xlu1 %3667  ;;  %8094 = vmatmul.msk.f32.gmra.mxu2 %vm2399_vm15, %v2396_v9 }
 0x4b3   : > { %3747 = vst.msk [vmem:[#allocation5 + $0x110] sm:$0xff] %vm3729_vm14, %v3668_v23  ;;  %v3676_v28 = vpop.permute.xlu2 %3675  ;;  %v2537_v33 = vpop.f32.mrf.mxu0 }
 0x4b4   : > { %v11124_v37 = vld [vmem:[#allocation4 + $0x68] sm:$0xff]  ;;  %v11126_v16 = vld [vmem:[#allocation4 + $0x70] sm:$0x3]  ;;  %3751 = vst.msk [vmem:[#allocation5 + $0x150] sm:$0xff] %vm3729_vm14, %v3676_v28  ;;  %v2552_v50 = vpop.f32.mrf.mxu2 }
 0x4b5   : > { %v4711_v11 = vrot.slane %v11126_v16, 2  ;;  %4322 = vst.msk [vmem:[#allocation4 + $0x79] sm:$0xff] %vm638_vm4, %v2537_v33  ;;  %3820 = vrot.lane.b32.xlu0 %v14731_v12, %s8306_s26  ;;  %v4709_v35 = vrot.slane %v11124_v37, 2 }
 0x4b6   : > { %4327 = vst.msk [vmem:[#allocation4 + $0xb1] sm:$0xff] %vm638_vm4, %v2552_v50  ;;  %v11179_v12 = vld [vmem:[#allocation4 + $0xa8] sm:$0xff] }
 0x4b7   : > { %v3666_v13 = vpop.permute.xlu0 %3665  ;;  %v11135_v51 = vsel %vm827_vm2, %v4708_v2, %v4709_v35  ;;  %v11138_v24 = vsel %vm827_vm2, %v4709_v35, %v4711_v11 }
 0x4b8   : > { %14732 = vst [vmem:[#allocation17_spill] sm:$0xff] %v11138_v24  ;;  %3828 = vrot.lane.b32.xlu1 %v11052_v53, %s8306_s26  ;;  %v14734_v53 = vld [vmem:[#allocation7_spill] sm:$0xff] }
 0x4b9   : > { %3746 = vst.msk [vmem:[#allocation5 + $0x100] sm:$0xff] %vm3729_vm14, %v3666_v13  ;;  %8132 = vmatmul.msk.f32.gmra.mxu3 %vm638_vm4, %v5633_v10  ;;  %3818 = vrot.lane.b32.xlu2 %v14733_v26, %s8306_s26  ;;  %v14737_v10 = vld [vmem:[#allocation50_spill] sm:$0xff] }
 0x4ba   : > { %5598 = vst.msk [vmem:[#allocation5 + $0x48] sm:$0xff] %vm638_vm4, %v11135_v51  ;;  %v3674_v59 = vpop.permute.xlu1 %3673 }
 0x4bb   : > { %5599 = vst.msk [vmem:[#allocation5 + $0x58] sm:$0xff] %vm638_vm4, %v11138_v24  ;;  %v3682_v7 = vpop.permute.xlu2 %3681  ;;  %v2540_v25 = vpop.f32.mrf.mxu0 }
 0x4bc   : > { %3750 = vst.msk [vmem:[#allocation5 + $0x140] sm:$0xff] %vm3729_vm14, %v3674_v59  ;;  %v11162_v44 = vld [vmem:[#allocation4 + $0x78] sm:$0xff]  ;;  %v2555_v18 = vpop.f32.mrf.mxu2  ;;  %v3767_v59 = vsel %vm769_vm3, %v3764_v46, %v3766_v62 }
 0x4bd   : > { %3754 = vst.msk [vmem:[#allocation5 + $0x180] sm:$0xff] %vm3729_vm14, %v3682_v7  ;;  %3826 = vrot.lane.b32.xlu0 %v14734_v53, %s8306_s26  ;;  %v4713_v33 = vrot.slane %v11162_v44, 2  ;;  %v11186_v9 = vld [vmem:[#allocation4 + $0xb0] sm:$0xff]  ;;  %v11188_v26 = vld [vmem:[#allocation4 + $0xb8] sm:$0x3] }
 0x4be   : > { %4323 = vst.msk [vmem:[#allocation4 + $0x81] sm:$0xff] %vm638_vm4, %v2540_v25  ;;  %v4726_v46 = vrot.slane %v11188_v26, 2 }
 0x4bf   : > { %v3672_v1 = vpop.permute.xlu0 %3671  ;;  %4328 = vst.msk [vmem:[#allocation4 + $0xc1] sm:$0xff] %vm638_vm4, %v2555_v18 }
 0x4c0   : > { %3749 = vst.msk [vmem:[#allocation5 + $0x130] sm:$0xff] %vm3729_vm14, %v3672_v1  ;;  %3904 = vrot.lane.b32.xlu1 %v14735_v41, %s14641_s1  ;;  %v4723_v1 = vrot.slane %v11179_v12, 2  ;;  %v14739_v41 = vld [vmem:[#allocation55_spill] sm:$0xff] }
 0x4c1   : > { %v5635_v56 = vld [vmem:[#allocation5 + $0x48] sm:$0xff]  ;;  %3824 = vrot.lane.b32.xlu2 %v14736_v17, %s8306_s26  ;;  %v11204_v17 = vld [vmem:[#allocation4 + $0xa0] sm:$0x3] }
 0x4c2   : > { %8133 = vmatmul.msk.f32.gmra.mxu3 %vm638_vm4, %v5635_v56  ;;  %v3680_v29 = vpop.permute.xlu1 %3679  ;;  %v5637_v50 = vld [vmem:[#allocation5 + $0x58] sm:$0xff]  ;;  %v4724_v56 = vrot.slane %v11186_v9, 2  ;;  %v4721_v62 = vrot.slane %v11204_v17, 2 }
 0x4c3   : > { %3753 = vst.msk [vmem:[#allocation5 + $0x170] sm:$0xff] %vm3729_vm14, %v3680_v29  ;;  %v3688_v23 = vpop.permute.xlu2 %3687  ;;  %v2543_v28 = vpop.f32.mrf.mxu0 }
 0x4c4   : > { %3757 = vst.msk [vmem:[#allocation5 + $0x1b0] sm:$0xff] %vm3729_vm14, %v3688_v23  ;;  %v2558_v18 = vpop.f32.mrf.mxu2 }
 0x4c5   : > { %v11174_v2 = vld [vmem:[#allocation4 + $0x80] sm:$0xff]  ;;  %v11176_v11 = vld [vmem:[#allocation4 + $0x88] sm:$0x3]  ;;  %3902 = vrot.lane.b32.xlu0 %v14737_v10, %s14641_s1  ;;  %4324 = vst.msk [vmem:[#allocation4 + $0x91] sm:$0xff] %vm638_vm4, %v2543_v28  ;;  %v11216_v28 = vsel %vm827_vm2, %v4723_v1, %v4724_v56  ;;  %v11224_v10 = vsel %vm827_vm2, %v4724_v56, %v4726_v46  ;;  %v14745_v46 = vld [vmem:[#allocation58_spill] sm:$0xff] }
 0x4c6   : > { %v4716_v35 = vrot.slane %v11176_v11, 2  ;;  %v4714_v13 = vrot.slane %v11174_v2, 2  ;;  %14740 = vst [vmem:[#allocation22_spill] sm:$0xff] %v11216_v28 }
 0x4c7   : > { %v3678_v7 = vpop.permute.xlu0 %3677  ;;  %14741 = vst [vmem:[#allocation25_spill] sm:$0xff] %v11224_v10 }
 0x4c8   : > { %v11194_v25 = vsel %vm827_vm2, %v4713_v33, %v4714_v13  ;;  %v11197_v53 = vsel %vm827_vm2, %v4714_v13, %v4716_v35  ;;  %3752 = vst.msk [vmem:[#allocation5 + $0x160] sm:$0xff] %vm3729_vm14, %v3678_v7  ;;  %3910 = vrot.lane.b32.xlu1 %v14739_v41, %s14641_s1  ;;  %v14742_v13 = vld [vmem:[#allocation53_spill] sm:$0xff] }
 0x4c9   : > { %14738 = vst [vmem:[#allocation29_spill] sm:$0xff] %v11194_v25  ;;  %3830 = vrot.lane.b32.xlu2 %v3767_v59, %s8306_s26 }
 0x4ca   : > { %8134 = vmatmul.msk.f32.gmra.mxu3 %vm638_vm4, %v5637_v50  ;;  %5600 = vst.msk [vmem:[#allocation5 + $0x68] sm:$0xff] %vm638_vm4, %v11194_v25  ;;  %v3686_v29 = vpop.permute.xlu1 %3685 }
 0x4cb   : > { %5601 = vst.msk [vmem:[#allocation5 + $0x78] sm:$0xff] %vm638_vm4, %v11197_v53  ;;  %v3694_v23 = vpop.permute.xlu2 %3693 }
 0x4cc   : > { %3756 = vst.msk [vmem:[#allocation5 + $0x1a0] sm:$0xff] %vm3729_vm14, %v3686_v29  ;;  %v11219_v33 = vld [vmem:[#allocation4 + $0x90] sm:$0xff]  ;;  %v11221_v35 = vld [vmem:[#allocation4 + $0x98] sm:$0xff]  ;;  %v2561_v29 = vpop.f32.mrf.mxu2 }
 0x4cd   : > { %3760 = vst.msk [vmem:[#allocation5 + $0x1e0] sm:$0xff] %vm3729_vm14, %v3694_v23  ;;  %3908 = vrot.lane.b32.xlu0 %v14742_v13, %s14641_s1  ;;  %v4718_v50 = vrot.slane %v11219_v33, 2  ;;  %v4719_v59 = vrot.slane %v11221_v35, 2  ;;  %v11249_v23 = vld [vmem:[#allocation4 + $0xc0] sm:$0xff] }
 0x4ce   : > { %4329 = vst.msk [vmem:[#allocation4 + $0xc9] sm:$0xff] %vm638_vm4, %v2558_v18  ;;  %v14746_v18 = vld [vmem:[#allocation51_spill] sm:$0xff] }
 0x4cf   : > { %5604 = vst.msk [vmem:[#allocation5 + $0xa8] sm:$0xff] %vm638_vm4, %v11216_v28  ;;  %v3684_v7 = vpop.permute.xlu0 %3683  ;;  %v11234_v1 = vsel %vm827_vm2, %v4718_v50, %v4719_v59  ;;  %v11237_v41 = vsel %vm827_vm2, %v4719_v59, %v4721_v62 }
 0x4d0   : > { %14743 = vst [vmem:[#allocation28_spill] sm:$0xff] %v11234_v1  ;;  %3916 = vrot.lane.b32.xlu1 %v14745_v46, %s14641_s1 }
 0x4d1   : > { %14744 = vst [vmem:[#allocation24_spill] sm:$0xff] %v11237_v41  ;;  %v5639_v56 = vld [vmem:[#allocation5 + $0x68] sm:$0xff]  ;;  %3906 = vrot.lane.b32.xlu2 %v14746_v18, %s14641_s1 }
 0x4d2   : > { %5605 = vst.msk [vmem:[#allocation5 + $0xb8] sm:$0xff] %vm638_vm4, %v11224_v10  ;;  %8135 = vmatmul.msk.f32.gmra.mxu3 %vm638_vm4, %v5639_v56  ;;  %v3692_v62 = vpop.permute.xlu1 %3691  ;;  %v5641_v46 = vld [vmem:[#allocation5 + $0x78] sm:$0xff] }
 0x4d3   : > { %3755 = vst.msk [vmem:[#allocation5 + $0x190] sm:$0xff] %vm3729_vm14, %v3684_v7  ;;  %v3771_v13 = vpop.permute.xlu2 %3770  ;;  %v4728_v7 = vrot.slane %v11249_v23, 2 }
 0x4d4   : > { %5602 = vst.msk [vmem:[#allocation5 + $0x88] sm:$0xff] %vm638_vm4, %v11234_v1 }
 0x4d5   : > { %5603 = vst.msk [vmem:[#allocation5 + $0x98] sm:$0xff] %vm638_vm4, %v11237_v41  ;;  %v11255_v50 = vld [vmem:[#allocation4 + $0xc8] sm:$0xff]  ;;  %v11257_v59 = vld [vmem:[#allocation4 + $0xd0] sm:$0x3]  ;;  %3914 = vrot.lane.b32.xlu0 %v14689_v34, %s14641_s1 }
 0x4d6   : > { %3759 = vst.msk [vmem:[#allocation5 + $0x1d0] sm:$0xff] %vm3729_vm14, %v3692_v62  ;;  %v4729_v56 = vrot.slane %v11255_v50, 2  ;;  %v4731_v18 = vrot.slane %v11257_v59, 2  ;;  %v14749_v34 = vld [vmem:[#allocation54_spill] sm:$0xff] }
 0x4d7   : > { %3866 = vst.msk [vmem:[#allocation5 + $0x10] sm:$0xff] %vm14476_vm13, %v3771_v13  ;;  %v3690_v62 = vpop.permute.xlu0 %3689 }
 0x4d8   : > { %14747 = vst [vmem:[#allocation26_spill] sm:$0xff] %v11255_v50  ;;  %v11266_v41 = vsel %vm827_vm2, %v4728_v7, %v4729_v56  ;;  %3922 = vrot.lane.b32.xlu1 %v10264_v57, %s14641_s1  ;;  %v11278_v7 = vsel %vm827_vm2, %v4729_v56, %v4731_v18  ;;  %v14751_v56 = vld [vmem:[#allocation57_spill] sm:$0xff] }
 0x4d9   : > { %4330 = vst.msk [vmem:[#allocation4 + $0xd9] sm:$0xff] %vm638_vm4, %v2561_v29  ;;  %3912 = vrot.lane.b32.xlu2 %v14749_v34, %s14641_s1  ;;  %v2564_v29 = vpop.f32.mrf.mxu2 }
 0x4da   : > { %14748 = vst [vmem:[#allocation38_spill] sm:$0xff] %v11266_v41  ;;  %8136 = vmatmul.msk.f32.gmra.mxu3 %vm638_vm4, %v5641_v46  ;;  %v3769_v13 = vpop.permute.xlu1 %3768 }
 0x4db   : > { %3758 = vst.msk [vmem:[#allocation5 + $0x1c0] sm:$0xff] %vm3729_vm14, %v3690_v62  ;;  %v3777_v62 = vpop.permute.xlu2 %3776  ;;  %v5643_v57 = vld [vmem:[#allocation5 + $0x88] sm:$0xff] }
 0x4dc   : > { %5606 = vst.msk [vmem:[#allocation5 + $0xc8] sm:$0xff] %vm638_vm4, %v11266_v41 }
 0x4dd   : > { %4331 = vst.msk [vmem:[#allocation4 + $0xe1] sm:$0xff] %vm638_vm4, %v2564_v29  ;;  %3920 = vrot.lane.b32.xlu0 %v10269_v20, %s14641_s1 }
 0x4de   : > { %14750 = vst [vmem:[#allocation33_spill] sm:$0xff] %v11278_v7 }
 0x4df   : > { %3865 = vst.msk [vmem:[#allocation5] sm:$0xff] %vm14476_vm13, %v3769_v13  ;;  %v3696_v46 = vpop.permute.xlu0 %3695 }
 0x4e0   : > { %3869 = vst.msk [vmem:[#allocation5 + $0x40] sm:$0xff] %vm14476_vm13, %v3777_v62  ;;  %3928 = vrot.lane.b32.xlu1 %v10325_v49, %s14641_s1  ;;  %v11294_v20 = vld [vmem:[#allocation4 + $0xd8] sm:$0xff] }
 0x4e1   : > { %5607 = vst.msk [vmem:[#allocation5 + $0xd8] sm:$0xff] %vm638_vm4, %v11278_v7  ;;  %3918 = vrot.lane.b32.xlu2 %v14751_v56, %s14641_s1  ;;  %v2567_v34 = vpop.f32.mrf.mxu2 }
 0x4e2   : > { %3761 = vst.msk [vmem:[#allocation5 + $0x1f0] sm:$0xff] %vm3729_vm14, %v3696_v46  ;;  %8137 = vmatmul.msk.f32.gmra.mxu3 %vm638_vm4, %v5643_v57  ;;  %v3775_v29 = vpop.permute.xlu1 %3774  ;;  %v4733_v57 = vrot.slane %v11294_v20, 2 }
 0x4e3   : > { %14752 = vst [vmem:[#allocation36_spill] sm:$0xff] %v11294_v20  ;;  %v3783_v62 = vpop.permute.xlu2 %3782 }
 0x4e4   : > { %v11292_v18 = vld [vmem:[#allocation4 + $0xe8] sm:$0x3]  ;;  %v11296_v13 = vld [vmem:[#allocation4 + $0xe0] sm:$0xff]  ;;  %4332 = vst.msk [vmem:[#allocation4 + $0xf1] sm:$0xff] %vm638_vm4, %v2567_v34 }
 0x4e5   : > { %3868 = vst.msk [vmem:[#allocation5 + $0x30] sm:$0xff] %vm14476_vm13, %v3775_v29  ;;  %v4736_v49 = vrot.slane %v11292_v18, 2  ;;  %3926 = vrot.lane.b32.xlu0 %v10286_v5, %s14641_s1  ;;  %v4734_v46 = vrot.slane %v11296_v13, 2  ;;  %v5645_v29 = vld [vmem:[#allocation5 + $0x98] sm:$0xff]  ;;  %v14755_v5 = vld [vmem:[#allocation59_spill] sm:$0xff] }
 0x4e6   : > { %3872 = vst.msk [vmem:[#allocation5 + $0x70] sm:$0xff] %vm14476_vm13, %v3783_v62 }
 0x4e7   : > { %v3773_v56 = vpop.permute.xlu0 %3772  ;;  %v11307_v41 = vsel %vm827_vm2, %v4733_v57, %v4734_v46  ;;  %v11310_v34 = vsel %vm827_vm2, %v4734_v46, %v4736_v49  ;;  %v3897_v46 = vrot.slane %v10941_v60, 2 }
 0x4e8   : > { %14753 = vst [vmem:[#allocation34_spill] sm:$0xff] %v11307_v41  ;;  %3934 = vrot.lane.b32.xlu1 %v10346_v3, %s14641_s1 }
 0x4e9   : > { %14754 = vst [vmem:[#allocation9_spill] sm:$0xff] %v11310_v34  ;;  %3924 = vrot.lane.b32.xlu2 %v14755_v5, %s14641_s1  ;;  %v2570_v57 = vpop.f32.mrf.mxu2 }
 0x4ea   : > { %3867 = vst.msk [vmem:[#allocation5 + $0x20] sm:$0xff] %vm14476_vm13, %v3773_v56  ;;  %8138 = vmatmul.msk.f32.gmra.mxu3 %vm638_vm4, %v5645_v29  ;;  %v3781_v62 = vpop.permute.xlu1 %3780  ;;  %v5647_v56 = vld [vmem:[#allocation5 + $0xa8] sm:$0xff]  ;;  %v3898_v29 = vrot.slane %v10935_v38, 2  ;;  %v2397_v38 = vld [vmem:[%s14306_s9 + $0xf0] sm:$0xff] }
 0x4eb   : > { %5608 = vst.msk [vmem:[#allocation5 + $0xe8] sm:$0xff] %vm638_vm4, %v11307_v41  ;;  %v3789_v49 = vpop.permute.xlu2 %3788  ;;  %8095 = vmatmul.msk.f32.gmra.mxu2 %vm2399_vm15, %v2397_v38 }
 0x4ec   : > { %5609 = vst.msk [vmem:[#allocation5 + $0xf8] sm:$0xff] %vm638_vm4, %v11310_v34 }
 0x4ed   : > { %3871 = vst.msk [vmem:[#allocation5 + $0x60] sm:$0xff] %vm14476_vm13, %v3781_v62  ;;  %3932 = vrot.lane.b32.xlu0 %v10301_v4, %s14641_s1  ;;  %v11335_v4 = vld [vmem:[#allocation4 + $0xf0] sm:$0xff] }
 0x4ee   : > { %3875 = vst.msk [vmem:[#allocation5 + $0xa0] sm:$0xff] %vm14476_vm13, %v3789_v49 }
 0x4ef   : > { %4333 = vst.msk [vmem:[#allocation4 + $0xf9] sm:$0xff] %vm638_vm4, %v2570_v57  ;;  %v3779_v3 = vpop.permute.xlu0 %3778  ;;  %v11346_v57 = vsel %vm827_vm2, %v3897_v46, %v3898_v29  ;;  %v5649_v46 = vld [vmem:[#allocation5 + $0xb8] sm:$0xff] }
 0x4f0   : > { %3870 = vst.msk [vmem:[#allocation5 + $0x50] sm:$0xff] %vm14476_vm13, %v3779_v3  ;;  %3940 = vrot.lane.b32.xlu1 %v10367_v42, %s14641_s1  ;;  %v4738_v3 = vrot.slane %v11335_v4, 2 }
 0x4f1   : > { %3930 = vrot.lane.b32.xlu2 %v10316_v58, %s14641_s1  ;;  %v2573_v42 = vpop.f32.mrf.mxu2 }
 0x4f2   : > { %8139 = vmatmul.msk.f32.gmra.mxu3 %vm638_vm4, %v5647_v56  ;;  %v3787_v5 = vpop.permute.xlu1 %3786  ;;  %4334 = vst.msk [vmem:[#allocation4 + $0x109] sm:$0xff] %vm638_vm4, %v2573_v42 }
 0x4f3   : > { %3874 = vst.msk [vmem:[#allocation5 + $0x90] sm:$0xff] %vm14476_vm13, %v3787_v5  ;;  %v3795_v62 = vpop.permute.xlu2 %3794  ;;  %v5657_v41 = vld [vmem:[#allocation5 + $0xf8] sm:$0xff] }
 0x4f4   : > { %3878 = vst.msk [vmem:[#allocation5 + $0xd0] sm:$0xff] %vm14476_vm13, %v3795_v62 }
 0x4f5   : > { %3938 = vrot.lane.b32.xlu0 %v10322_v27, %s14641_s1 }
 0x4f6   : > { %v11339_v60 = vld [vmem:[#allocation4 + $0xf8] sm:$0xff]  ;;  %v11341_v49 = vld [vmem:[#allocation4 + $0x100] sm:$0x3] }
 0x4f7   : > { %14756 = vst [vmem:[#allocation39_spill] sm:$0xff] %v11339_v60  ;;  %v4741_v58 = vrot.slane %v11341_v49, 2  ;;  %v4739_v56 = vrot.slane %v11339_v60, 2  ;;  %v3785_v5 = vpop.permute.xlu0 %3784 }
 0x4f8   : > { %3873 = vst.msk [vmem:[#allocation5 + $0x80] sm:$0xff] %vm14476_vm13, %v3785_v5  ;;  %3946 = vrot.lane.b32.xlu1 %v10389_v52, %s14641_s1 }
 0x4f9   : > { %v11355_v62 = vsel %vm827_vm2, %v4738_v3, %v4739_v56  ;;  %v11358_v34 = vsel %vm827_vm2, %v4739_v56, %v4741_v58  ;;  %3936 = vrot.lane.b32.xlu2 %v10335_v15, %s14641_s1  ;;  %v2576_v58 = vpop.f32.mrf.mxu2  ;;  %v5651_v15 = vld [vmem:[#allocation5 + $0xc8] sm:$0xff]  ;;  %v11381_v56 = vld [vmem:[#allocation4 + $0x108] sm:$0xff] }
 0x4fa   : > { %14757 = vst [vmem:[#allocation12_spill] sm:$0xff] %v11355_v62  ;;  %8140 = vmatmul.msk.f32.gmra.mxu3 %vm638_vm4, %v5649_v46  ;;  %v3793_v27 = vpop.permute.xlu1 %3792 }
 0x4fb   : > { %14758 = vst [vmem:[#allocation10_spill] sm:$0xff] %v11358_v34  ;;  %v3801_v42 = vpop.permute.xlu2 %3800 }
 0x4fc   : > { %5610 = vst.msk [vmem:[#allocation5 + $0x108] sm:$0xff] %vm638_vm4, %v11355_v62 }
 0x4fd   : > { %5611 = vst.msk [vmem:[#allocation5 + $0x118] sm:$0xff] %vm638_vm4, %v11358_v34  ;;  %3944 = vrot.lane.b32.xlu0 %v10343_v54, %s14641_s1 }
 0x4fe   : > { %3877 = vst.msk [vmem:[#allocation5 + $0xc0] sm:$0xff] %vm14476_vm13, %v3793_v27 }
 0x4ff   : > { %3881 = vst.msk [vmem:[#allocation5 + $0x100] sm:$0xff] %vm14476_vm13, %v3801_v42  ;;  %v3791_v52 = vpop.permute.xlu0 %3790 }
 0x500   : > { %4335 = vst.msk [vmem:[#allocation4 + $0x111] sm:$0xff] %vm638_vm4, %v2576_v58  ;;  %3952 = vrot.lane.b32.xlu1 %v10406_v19, %s14641_s1 }
 0x501   : > { %3876 = vst.msk [vmem:[#allocation5 + $0xb0] sm:$0xff] %vm14476_vm13, %v3791_v52  ;;  %3942 = vrot.lane.b32.xlu2 %v10359_v31, %s14641_s1  ;;  %v2579_v27 = vpop.f32.mrf.mxu2  ;;  %v4743_v31 = vrot.slane %v11381_v56, 2 }
 0x502   : > { %8141 = vmatmul.msk.f32.gmra.mxu3 %vm638_vm4, %v5651_v15  ;;  %v3799_v3 = vpop.permute.xlu1 %3798  ;;  %4336 = vst.msk [vmem:[#allocation4 + $0x121] sm:$0xff] %vm638_vm4, %v2579_v27 }
 0x503   : > { %3880 = vst.msk [vmem:[#allocation5 + $0xf0] sm:$0xff] %vm14476_vm13, %v3799_v3  ;;  %v3807_v54 = vpop.permute.xlu2 %3806  ;;  %v5653_v3 = vld [vmem:[#allocation5 + $0xd8] sm:$0xff] }
 0x504   : > { %3884 = vst.msk [vmem:[#allocation5 + $0x130] sm:$0xff] %vm14476_vm13, %v3807_v54 }
 0x505   : > { %3950 = vrot.lane.b32.xlu0 %v10364_v8, %s14641_s1  ;;  %v3900_v8 = vrot.slane %v11160_v6, 2  ;;  %v4071_v6 = vld [vmem:[%s14307_s10 + $0x40] sm:$0xff] }
 0x506   : > { %4176 = vmatpush.msra.mxu2 %v4071_v6 }
 0x507   : > { %v11385_v5 = vld [vmem:[#allocation4 + $0x110] sm:$0xff]  ;;  %v11387_v46 = vld [vmem:[#allocation4 + $0x118] sm:$0x3]  ;;  %v3797_v58 = vpop.permute.xlu0 %3796 }
 0x508   : > { %v4746_v19 = vrot.slane %v11387_v46, 2  ;;  %v4744_v42 = vrot.slane %v11385_v5, 2  ;;  %3879 = vst.msk [vmem:[#allocation5 + $0xe0] sm:$0xff] %vm14476_vm13, %v3797_v58  ;;  %3958 = vrot.lane.b32.xlu1 %v10770_v22, %s14641_s1 }
 0x509   : > { %3948 = vrot.lane.b32.xlu2 %v10379_v30, %s14641_s1  ;;  %v2582_v22 = vpop.f32.mrf.mxu2  ;;  %v3901_v30 = vsel %vm827_vm2, %v3898_v29, %v3900_v8  ;;  %v4070_v29 = vld [vmem:[%s14307_s10 + $0x38] sm:$0xff] }
 0x50a   : > { %v11396_v52 = vsel %vm827_vm2, %v4743_v31, %v4744_v42  ;;  %v11399_v15 = vsel %vm827_vm2, %v4744_v42, %v4746_v19  ;;  %8142 = vmatmul.msk.f32.gmra.mxu3 %vm638_vm4, %v5653_v3  ;;  %v3805_v54 = vpop.permute.xlu1 %3804  ;;  %4337 = vst.msk [vmem:[#allocation4 + $0x129] sm:$0xff] %vm638_vm4, %v2582_v22  ;;  %v5655_v31 = vld [vmem:[#allocation5 + $0xe8] sm:$0xff]  ;;  %v11438_v3 = vld [vmem:[#allocation4 + $0x120] sm:$0xff]  ;;  %v11446_v22 = vld [vmem:[#allocation4 + $0x10] sm:$0x3]  ;;  %4177 = vmatpush.msra.mxu2 %v4070_v29 }
 0x50b   : > { %14759 = vst [vmem:[#allocation15_spill] sm:$0xff] %v11396_v52  ;;  %v3813_v27 = vpop.permute.xlu2 %3812  ;;  %v11425_v42 = vld [vmem:[#allocation4 + $0x18] sm:$0xff]  ;;  %v4068_v29 = vld [vmem:[%s14307_s10 + $0x28] sm:$0xff] }
 0x50c   : > { %14760 = vst [vmem:[#allocation8_spill] sm:$0xff] %v11399_v15 }
 0x50d   : > { %5612 = vst.msk [vmem:[#allocation5 + $0x128] sm:$0xff] %vm638_vm4, %v11396_v52  ;;  %3956 = vrot.lane.b32.xlu0 %v10386_v36, %s14641_s1  ;;  %v11427_v36 = vld [vmem:[#allocation4 + $0x20] sm:$0xff]  ;;  %v4483_v52 = vrot.slane %v11446_v22, 1 }
 0x50e   : > { %5613 = vst.msk [vmem:[#allocation5 + $0x138] sm:$0xff] %vm638_vm4, %v11399_v15  ;;  %v14771_v28 = vrot.slane %v11427_v36, 1 }
 0x50f   : > { %3883 = vst.msk [vmem:[#allocation5 + $0x120] sm:$0xff] %vm14476_vm13, %v3805_v54  ;;  %v3803_v19 = vpop.permute.xlu0 %3802  ;;  %v4485_v54 = vrot.slane %v11425_v42, 1 }
 0x510   : > { %3887 = vst.msk [vmem:[#allocation5 + $0x160] sm:$0xff] %vm14476_vm13, %v3813_v27  ;;  %3964 = vrot.lane.b32.xlu1 %v3901_v30, %s14641_s1  ;;  %v11444_v27 = vld [vmem:[#allocation4 + $0x8] sm:$0xff] }
 0x511   : > { %3882 = vst.msk [vmem:[#allocation5 + $0x110] sm:$0xff] %vm14476_vm13, %v3803_v19  ;;  %3954 = vrot.lane.b32.xlu2 %v10400_v39, %s14641_s1  ;;  %v11449_v30 = vld [vmem:[#allocation4 + $0x128] sm:$0xff]  ;;  %v11451_v6 = vld [vmem:[#allocation4 + $0x130] sm:$0x3]  ;;  %v2585_v19 = vpop.f32.mrf.mxu2  ;;  %v4481_v39 = vrot.slane %v11444_v27, 1 }
 0x512   : > { %8143 = vmatmul.msk.f32.gmra.mxu3 %vm638_vm4, %v5655_v31  ;;  %v3811_v58 = vpop.permute.xlu1 %3810  ;;  %v4069_v31 = vld [vmem:[%s14307_s10 + $0x30] sm:$0xff]  ;;  %v4751_v38 = vrot.slane %v11451_v6, 2  ;;  %4338 = vst.msk [vmem:[#allocation4 + $0x139] sm:$0xff] %vm638_vm4, %v2585_v19  ;;  %v11472_v19 = vld [vmem:[#allocation4] sm:$0xff] }
 0x513   : > { %3886 = vst.msk [vmem:[#allocation5 + $0x150] sm:$0xff] %vm14476_vm13, %v3811_v58  ;;  %v3819_v8 = vpop.permute.xlu2 %3818  ;;  %4178 = vmatpush.msra.mxu2 %v4069_v31  ;;  %v4748_v58 = vrot.slane %v11438_v3, 2  ;;  %v4067_v31 = vld [vmem:[%s14307_s10 + $0x20] sm:$0xff] }
 0x514   : > { %3890 = vst.msk [vmem:[#allocation5 + $0x190] sm:$0xff] %vm14476_vm13, %v3819_v8  ;;  %v4749_v8 = vrot.slane %v11449_v30, 2 }
 0x515   : > { %3962 = vrot.lane.b32.xlu0 %v11346_v57, %s14641_s1  ;;  %v14761_v57 = vrot.slane %v11427_v36, 1  ;;  %4179 = vmatpush.msra.mxu2 %v4068_v29  ;;  %v4484_v29 = vsel %vm769_vm3, %v4481_v39, %v4483_v52  ;;  %v4065_v52 = vld [vmem:[%s14307_s10 + $0x10] sm:$0xff] }
 0x516   : > { %v11478_v34 = vsel %vm827_vm2, %v4748_v58, %v4749_v8  ;;  %v11481_v7 = vsel %vm827_vm2, %v4749_v8, %v4751_v38  ;;  %v4066_v38 = vld [vmem:[%s14307_s10 + $0x18] sm:$0xff]  ;;  %v4480_v58 = vrot.slane %v11472_v19, 1  ;;  %v4493_v8 = vrot.slane %v11020_v14, 1 }
 0x517   : > { %v3809_v15 = vpop.permute.xlu0 %3808  ;;  %v11470_v62 = vsel %vm769_vm3, %v4485_v54, %v14761_v57  ;;  %14763 = vst [vmem:[#allocation19_spill] sm:$0xff] %v11478_v34  ;;  %v2398_v54 = vld [vmem:[%s14306_s9 + $0xf8] sm:$0xff]  ;;  %4180 = vmatpush.msra.mxu2 %v4067_v31  ;;  %v4064_v31 = vld [vmem:[%s14307_s10 + $0x8] sm:$0xff] }
 0x518   : > { %14762 = vst [vmem:[#allocation13_spill] sm:$0xff] %v11470_v62  ;;  %4564 = vrot.lane.b32.xlu1 %v11470_v62, %s14643_s23  ;;  %8096 = vmatmul.msk.f32.gmra.mxu2 %vm2399_vm15, %v2398_v54  ;;  %v4482_v14 = vsel %vm769_vm3, %v4480_v58, %v4481_v39  ;;  %v11527_v39 = vld [vmem:[#allocation4 + $0x28] sm:$0x3]  ;;  %vm3998_vm15 = vcmask 589312  }
 0x519   : > { %14764 = vst [vmem:[#allocation11_spill] sm:$0xff] %v11481_v7  ;;  %3960 = vrot.lane.b32.xlu2 %v10760_v63, %s14641_s1  ;;  %v2588_v57 = vpop.f32.mrf.mxu2  ;;  %4181 = vmatpush.msra.mxu2 %v4066_v38  ;;  %v4063_v38 = vld [vmem:[%s14307_s10] sm:$0xff] }
 0x51a   : > { %3885 = vst.msk [vmem:[#allocation5 + $0x140] sm:$0xff] %vm14476_vm13, %v3809_v15  ;;  %8144 = vmatmul.msk.f32.gmra.mxu3 %vm638_vm4, %v5657_v41  ;;  %v3817_v15 = vpop.permute.xlu1 %3816  ;;  %v4491_v41 = vrot.slane %v11018_v43, 1 }
 0x51b   : > { %5614 = vst.msk [vmem:[#allocation5 + $0x148] sm:$0xff] %vm638_vm4, %v11478_v34  ;;  %v3825_v63 = vpop.permute.xlu2 %3824  ;;  %4182 = vmatpush.msra.mxu2 %v4065_v52  ;;  %v4500_v52 = vrot.slane %v11112_v47, 1  ;;  %v5661_v34 = vld [vmem:[#allocation5 + $0x118] sm:$0xff] }
 0x51c   : > { %5615 = vst.msk [vmem:[#allocation5 + $0x158] sm:$0xff] %vm638_vm4, %v11481_v7 }
 0x51d   : > { %3889 = vst.msk [vmem:[#allocation5 + $0x180] sm:$0xff] %vm14476_vm13, %v3817_v15  ;;  %4562 = vrot.lane.b32.xlu0 %v4484_v29, %s14643_s23  ;;  %v11516_v15 = vsel %vm769_vm3, %v4491_v41, %v4493_v8  ;;  %v4490_v29 = vrot.slane %v11005_v45, 1  ;;  %4183 = vmatpush.msra.mxu2 %v4064_v31  ;;  %v11529_v8 = vld [vmem:[#allocation4 + $0x138] sm:$0xff] }
 0x51e   : > { %3893 = vst.msk [vmem:[#allocation5 + $0x1c0] sm:$0xff] %vm14476_vm13, %v3825_v63  ;;  %v5659_v63 = vld [vmem:[#allocation5 + $0x108] sm:$0xff]  ;;  %v4753_v62 = vrot.slane %v11529_v8, 2 }
 0x51f   : > { %4339 = vst.msk [vmem:[#allocation4 + $0x141] sm:$0xff] %vm638_vm4, %v2588_v57  ;;  %v3815_v54 = vpop.permute.xlu0 %3814  ;;  %4184 = vmatpush.msra.mxu2 %v4063_v38  ;;  %v11536_v31 = vsel %vm769_vm3, %v4490_v29, %v4491_v41  ;;  %v14767_v29 = vrot.slane %v11124_v37, 1 }
 0x520   : > { %14765 = vst [vmem:[#allocation16_spill] sm:$0xff] %v11516_v15  ;;  %4570 = vrot.lane.b32.xlu1 %v11516_v15, %s14643_s23 }
 0x521   : > { %3888 = vst.msk [vmem:[#allocation5 + $0x170] sm:$0xff] %vm14476_vm13, %v3815_v54  ;;  %4560 = vrot.lane.b32.xlu2 %v4482_v14, %s14643_s23  ;;  %v4488_v14 = vrot.slane %v11527_v39, 1 }
 0x522   : > { %8145 = vmatmul.msk.f32.gmra.mxu3 %vm638_vm4, %v5659_v63  ;;  %v3823_v58 = vpop.permute.xlu1 %3822  ;;  %14766 = vst [vmem:[#allocation23_spill] sm:$0xff] %v11536_v31 }
 0x523   : > { %3892 = vst.msk [vmem:[#allocation5 + $0x1b0] sm:$0xff] %vm14476_vm13, %v3823_v58  ;;  %v3831_v57 = vpop.permute.xlu2 %3830  ;;  %v2591_v58 = vpop.f32.mrf.mxu2  ;;  %v11564_v25 = vsel %vm769_vm3, %v14771_v28, %v4488_v14  ;;  %v4495_v14 = vrot.slane %v11059_v32, 1 }
 0x524   : > { %3896 = vst.msk [vmem:[#allocation5 + $0x1f0] sm:$0xff] %vm14476_vm13, %v3831_v57  ;;  %v11552_v57 = vsel %vm769_vm3, %v4500_v52, %v14767_v29  ;;  %v4496_v52 = vrot.slane %v11073_v40, 1 }
 0x525   : > { %4568 = vrot.lane.b32.xlu0 %v11536_v31, %s14643_s23  ;;  %4340 = vst.msk [vmem:[#allocation4 + $0x151] sm:$0xff] %vm638_vm4, %v2591_v58  ;;  %v4498_v58 = vrot.slane %v11075_v55, 1  ;;  %v4508_v55 = vrot.slane %v11176_v11, 1 }
 0x526   : > { %v11539_v63 = vld [vmem:[#allocation4 + $0x140] sm:$0xff]  ;;  %v11541_v15 = vld [vmem:[#allocation4 + $0x148] sm:$0x3]  ;;  %14768 = vst [vmem:[#allocation14_spill] sm:$0xff] %v11552_v57  ;;  %v11593_v11 = vsel %vm769_vm3, %v4495_v14, %v4496_v52 }
 0x527   : > { %v4756_v38 = vrot.slane %v11541_v15, 2  ;;  %v4754_v54 = vrot.slane %v11539_v63, 2  ;;  %v3821_v41 = vpop.permute.xlu0 %3820  ;;  %14772 = vst [vmem:[#allocation18_spill] sm:$0xff] %v11564_v25 }
 0x528   : > { %3891 = vst.msk [vmem:[#allocation5 + $0x1a0] sm:$0xff] %vm14476_vm13, %v3821_v41  ;;  %4576 = vrot.lane.b32.xlu1 %v11552_v57, %s14643_s23 }
 0x529   : > { %v11555_v7 = vsel %vm827_vm2, %v4753_v62, %v4754_v54  ;;  %v11558_v31 = vsel %vm827_vm2, %v4754_v54, %v4756_v38  ;;  %4566 = vrot.lane.b32.xlu2 %v11564_v25, %s14643_s23  ;;  %v4506_v54 = vrot.slane %v11174_v2, 1  ;;  %14775 = vst [vmem:[#allocation21_spill] sm:$0xff] %v11593_v11  ;;  %v5665_v25 = vld [vmem:[#allocation5 + $0x138] sm:$0xff] }
 0x52a   : > { %14769 = vst [vmem:[#allocation20_spill] sm:$0xff] %v11555_v7  ;;  %8146 = vmatmul.msk.f32.gmra.mxu3 %vm638_vm4, %v5661_v34  ;;  %v3829_v62 = vpop.permute.xlu1 %3828  ;;  %v11582_v34 = vsel %vm769_vm3, %v4496_v52, %v4498_v58  ;;  %v4505_v58 = vrot.slane %v11162_v44, 1 }
 0x52b   : > { %14770 = vst [vmem:[#allocation31_spill] sm:$0xff] %v11558_v31  ;;  %v3907_v28 = vpop.permute.xlu2 %3906  ;;  %v2594_v38 = vpop.f32.mrf.mxu2  ;;  %v11589_v29 = vsel %vm769_vm3, %v4506_v54, %v4508_v55 }
 0x52c   : > { %5616 = vst.msk [vmem:[#allocation5 + $0x168] sm:$0xff] %vm638_vm4, %v11555_v7  ;;  %v14779_v7 = vrot.slane %v11124_v37, 1 }
 0x52d   : > { %5617 = vst.msk [vmem:[#allocation5 + $0x178] sm:$0xff] %vm638_vm4, %v11558_v31  ;;  %4574 = vrot.lane.b32.xlu0 %v11582_v34, %s14643_s23 }
 0x52e   : > { %3895 = vst.msk [vmem:[#allocation5 + $0x1e0] sm:$0xff] %vm14476_vm13, %v3829_v62  ;;  %v5663_v62 = vld [vmem:[#allocation5 + $0x128] sm:$0xff] }
 0x52f   : > { %4001 = vst.msk [vmem:[#allocation5 + $0x20] sm:$0xff] %vm3998_vm15, %v3907_v28  ;;  %v3827_v41 = vpop.permute.xlu0 %3826 }
 0x530   : > { %14773 = vst [vmem:[#allocation27_spill] sm:$0xff] %v11582_v34  ;;  %4582 = vrot.lane.b32.xlu1 %v11589_v29, %s14643_s23  ;;  %v4513_v34 = vrot.slane %v11204_v17, 1 }
 0x531   : > { %4341 = vst.msk [vmem:[#allocation4 + $0x159] sm:$0xff] %vm638_vm4, %v2594_v38  ;;  %4572 = vrot.lane.b32.xlu2 %v11593_v11, %s14643_s23  ;;  %v11601_v38 = vld [vmem:[#allocation4 + $0x150] sm:$0xff] }
 0x532   : > { %14774 = vst [vmem:[#allocation37_spill] sm:$0xff] %v11589_v29  ;;  %8147 = vmatmul.msk.f32.gmra.mxu3 %vm638_vm4, %v5663_v62  ;;  %v3905_v28 = vpop.permute.xlu1 %3904  ;;  %v11610_v29 = vsel %vm769_vm3, %v4505_v58, %v4506_v54  ;;  %v4503_v62 = vrot.slane %v11126_v16, 1  ;;  %v4758_v52 = vrot.slane %v11601_v38, 2 }
 0x533   : > { %3894 = vst.msk [vmem:[#allocation5 + $0x1d0] sm:$0xff] %vm14476_vm13, %v3827_v41  ;;  %v3913_v55 = vpop.permute.xlu2 %3912  ;;  %v4515_v41 = vrot.slane %v11179_v12, 1  ;;  %vm4072_vm13 = vcmask 588800  }
 0x534   : > { %4000 = vst.msk [vmem:[#allocation5 + $0x10] sm:$0xff] %vm3998_vm15, %v3905_v28  ;;  %v2597_v28 = vpop.f32.mrf.mxu2  ;;  %v11635_v31 = vsel %vm769_vm3, %v14779_v7, %v4503_v62  ;;  %v4523_v62 = vrot.slane %v11257_v59, 1 }
 0x535   : > { %4004 = vst.msk [vmem:[#allocation5 + $0x50] sm:$0xff] %vm3998_vm15, %v3913_v55  ;;  %4580 = vrot.lane.b32.xlu0 %v11610_v29, %s14643_s23  ;;  %v14777_v55 = vrot.slane %v11186_v9, 1 }
 0x536   : > { %v11606_v14 = vld [vmem:[#allocation5 + $0x20] sm:$0xff]  ;;  %14776 = vst [vmem:[#allocation32_spill] sm:$0xff] %v11610_v29 }
 0x537   : > { %4402 = vst.msk [vmem:[#allocation5 + $0x20] sm:$0xff] %vm638_vm4, %v11425_v42  ;;  %v3903_v16 = vpop.permute.xlu0 %3902  ;;  %v11628_v29 = vsel %vm769_vm3, %v4515_v41, %v14777_v55 }
 0x538   : > { %v11615_v57 = vld [vmem:[#allocation4 + $0x158] sm:$0xff]  ;;  %v11620_v11 = vld [vmem:[#allocation4 + $0x160] sm:$0x3]  ;;  %4342 = vst.msk [vmem:[#allocation4 + $0x169] sm:$0xff] %vm638_vm4, %v2597_v28  ;;  %4588 = vrot.lane.b32.xlu1 %v11628_v29, %s14643_s23  ;;  %v4511_v28 = vrot.slane %v11221_v35, 1 }
 0x539   : > { %v4759_v54 = vrot.slane %v11615_v57, 2  ;;  %v4761_v58 = vrot.slane %v11620_v11, 2  ;;  %14778 = vst [vmem:[#allocation42_spill] sm:$0xff] %v11628_v29  ;;  %4578 = vrot.lane.b32.xlu2 %v11635_v31, %s14643_s23 }
 0x53a   : > { %3999 = vst.msk [vmem:[#allocation5] sm:$0xff] %vm3998_vm15, %v3903_v16  ;;  %8148 = vmatmul.msk.f32.gmra.mxu3 %vm638_vm4, %v5665_v25  ;;  %v3911_v17 = vpop.permute.xlu1 %3910  ;;  %v11658_v25 = vsel %vm769_vm3, %v4511_v28, %v4513_v34 }
 0x53b   : > { %14780 = vst [vmem:[#allocation30_spill] sm:$0xff] %v11635_v31  ;;  %v11641_v10 = vsel %vm827_vm2, %v4758_v52, %v4759_v54  ;;  %v11644_v41 = vsel %vm827_vm2, %v4759_v54, %v4761_v58  ;;  %v3919_v7 = vpop.permute.xlu2 %3918  ;;  %v4521_v52 = vrot.slane %v11255_v50, 1  ;;  %v4510_v54 = vrot.slane %v11219_v33, 1  ;;  %v4032_v58 = vld [vmem:[#allocation5 + $0x10] sm:$0xff] }
 0x53c   : > { %14781 = vst [vmem:[#allocation40_spill] sm:$0xff] %v11641_v10  ;;  %v11661_v16 = vld [vmem:[#allocation5 + $0x50] sm:$0xff]  ;;  %v2600_v55 = vpop.f32.mrf.mxu2 }
 0x53d   : > { %14782 = vst [vmem:[#allocation45_spill] sm:$0xff] %v11644_v41  ;;  %4586 = vrot.lane.b32.xlu0 %v11658_v25, %s14643_s23  ;;  %v11677_v29 = vsel %vm769_vm3, %v4510_v54, %v4511_v28  ;;  %v4530_v28 = vrot.slane %v11335_v4, 1 }
 0x53e   : > { %5618 = vst.msk [vmem:[#allocation5 + $0x188] sm:$0xff] %vm638_vm4, %v11641_v10  ;;  %v14789_v10 = vrot.slane %v11186_v9, 1 }
 0x53f   : > { %5619 = vst.msk [vmem:[#allocation5 + $0x198] sm:$0xff] %vm638_vm4, %v11644_v41  ;;  %v3909_v59 = vpop.permute.xlu0 %3908 }
 0x540   : > { %4003 = vst.msk [vmem:[#allocation5 + $0x40] sm:$0xff] %vm3998_vm15, %v3911_v17  ;;  %v11669_v17 = vsel %vm769_vm3, %v4521_v52, %v4523_v62 }
 0x541   : > { %4007 = vst.msk [vmem:[#allocation5 + $0x80] sm:$0xff] %vm3998_vm15, %v3919_v7  ;;  %v4031_v34 = vld [vmem:[#allocation5] sm:$0xff]  ;;  %v5667_v7 = vld [vmem:[#allocation5 + $0x148] sm:$0xff]  ;;  %4594 = vrot.lane.b32.xlu1 %v11669_v17, %s14643_s23  ;;  %4584 = vrot.lane.b32.xlu2 %v11677_v29, %s14643_s23 }
 0x542   : > { %14783 = vst [vmem:[#allocation35_spill] sm:$0xff] %v11658_v25  ;;  %8097 = vmatmul.msk.f32.vlgmr.msra.gmra.mxu2 %vm4072_vm13, %v4031_v34  ;;  %8149 = vmatmul.msk.f32.gmra.mxu3 %vm638_vm4, %v5667_v7  ;;  %v3917_v62 = vpop.permute.xlu1 %3916  ;;  %v11691_v34 = vld [vmem:[#allocation4 + $0x168] sm:$0xff] }
 0x543   : > { %4401 = vst.msk [vmem:[#allocation5 + $0x10] sm:$0xff] %vm638_vm4, %v11444_v27  ;;  %v4763_v31 = vrot.slane %v11691_v34, 2 }
 0x544   : > { %4343 = vst.msk [vmem:[#allocation4 + $0x171] sm:$0xff] %vm638_vm4, %v2600_v55  ;;  %v4520_v55 = vrot.slane %v11249_v23, 1 }
 0x545   : > { %14784 = vst [vmem:[#allocation43_spill] sm:$0xff] %v11669_v17  ;;  %v3925_v17 = vpop.permute.xlu2 %3924 }
 0x546   : > { %4405 = vst.msk [vmem:[#allocation5 + $0x50] sm:$0xff] %vm638_vm4, %v11018_v43  ;;  %v11697_v7 = vsel %vm769_vm3, %v4520_v55, %v4521_v52 }
 0x547   : > { %4002 = vst.msk [vmem:[#allocation5 + $0x30] sm:$0xff] %vm3998_vm15, %v3909_v59  ;;  %v11686_v59 = vld [vmem:[#allocation5 + $0x40] sm:$0xff]  ;;  %4592 = vrot.lane.b32.xlu0 %v11697_v7, %s14643_s23  ;;  %v3915_v52 = vpop.permute.xlu0 %3914 }
 0x548   : > { %14785 = vst [vmem:[#allocation47_spill] sm:$0xff] %v11677_v29  ;;  %v11693_v25 = vld [vmem:[#allocation5 + $0x80] sm:$0xff]  ;;  %v4518_v29 = vrot.slane %v11188_v26, 1  ;;  %v14787_v26 = vrot.slane %v11339_v60, 1 }
 0x549   : > { %4400 = vst.msk [vmem:[#allocation5] sm:$0xff] %vm638_vm4, %v11472_v19 }
 0x54a   : > { %4006 = vst.msk [vmem:[#allocation5 + $0x70] sm:$0xff] %vm3998_vm15, %v3917_v62  ;;  %v11724_v41 = vsel %vm769_vm3, %v14789_v10, %v4518_v29  ;;  %8098 = vmatmul.msk.f32.gmra.mxu2 %vm4072_vm13, %v4032_v58 }
 0x54b   : > { %4010 = vst.msk [vmem:[#allocation5 + $0xb0] sm:$0xff] %vm3998_vm15, %v3925_v17  ;;  %v11704_v62 = vld [vmem:[#allocation4 + $0x170] sm:$0xff]  ;;  %v11706_v54 = vld [vmem:[#allocation4 + $0x178] sm:$0x3]  ;;  %v11715_v17 = vsel %vm769_vm3, %v4530_v28, %v14787_v26  ;;  %v4528_v28 = vrot.slane %v11292_v18, 1  ;;  %4590 = vrot.lane.b32.xlu2 %v11724_v41, %s14643_s23 }
 0x54c   : > { %14786 = vst [vmem:[#allocation41_spill] sm:$0xff] %v11697_v7  ;;  %v4764_v43 = vrot.slane %v11704_v62, 2  ;;  %v4766_v7 = vrot.slane %v11706_v54, 2  ;;  %4600 = vrot.lane.b32.xlu1 %v11715_v17, %s14643_s23 }
 0x54d   : > { %4404 = vst.msk [vmem:[#allocation5 + $0x40] sm:$0xff] %vm638_vm4, %v11005_v45  ;;  %v5669_v45 = vld [vmem:[#allocation5 + $0x158] sm:$0xff]  ;;  %v3931_v18 = vpop.permute.xlu2 %3930 }
 0x54e   : > { %4408 = vst.msk [vmem:[#allocation5 + $0x80] sm:$0xff] %vm638_vm4, %v11112_v47  ;;  %v4034_v55 = vld [vmem:[#allocation5 + $0x30] sm:$0xff]  ;;  %v4526_v47 = vrot.slane %v11296_v13, 1  ;;  %v11730_v26 = vsel %vm827_vm2, %v4763_v31, %v4764_v43  ;;  %8150 = vmatmul.msk.f32.gmra.mxu3 %vm638_vm4, %v5669_v45  ;;  %v11738_v10 = vsel %vm827_vm2, %v4764_v43, %v4766_v7  ;;  %v4536_v31 = vrot.slane %v11385_v5, 1 }
 0x54f   : > { %14788 = vst [vmem:[#allocation46_spill] sm:$0xff] %v11715_v17  ;;  %v4538_v45 = vrot.slane %v11387_v46, 1  ;;  %v4525_v43 = vrot.slane %v11294_v20, 1  ;;  %v3921_v46 = vpop.permute.xlu0 %3920 }
 0x550   : > { %4005 = vst.msk [vmem:[#allocation5 + $0x60] sm:$0xff] %vm3998_vm15, %v3915_v52  ;;  %v3923_v52 = vpop.permute.xlu1 %3922  ;;  %v11749_v58 = vsel %vm769_vm3, %v4526_v47, %v4528_v28  ;;  %v5671_v28 = vld [vmem:[#allocation5 + $0x168] sm:$0xff] }
 0x551   : > { %14790 = vst [vmem:[#allocation44_spill] sm:$0xff] %v11724_v41  ;;  %v11745_v29 = vld [vmem:[#allocation5 + $0x70] sm:$0xff]  ;;  %4598 = vrot.lane.b32.xlu0 %v11749_v58, %s14643_s23  ;;  %v11771_v17 = vsel %vm769_vm3, %v4525_v43, %v4526_v47  ;;  %v4545_v43 = vrot.slane %v11529_v8, 1 }
 0x552   : > { %4403 = vst.msk [vmem:[#allocation5 + $0x30] sm:$0xff] %vm638_vm4, %v11427_v36  ;;  %v11752_v7 = vld [vmem:[#allocation5 + $0xb0] sm:$0xff]  ;;  %8099 = vmatmul.msk.f32.gmra.mxu2 %vm4072_vm13, %v11606_v14  ;;  %v14511_v14 = vrot.slane %v11539_v63, 1 }
 0x553   : > { %5620 = vst.msk [vmem:[#allocation5 + $0x1a8] sm:$0xff] %vm638_vm4, %v11730_v26  ;;  %4596 = vrot.lane.b32.xlu2 %v11771_v17, %s14643_s23 }
 0x554   : > { %4009 = vst.msk [vmem:[#allocation5 + $0xa0] sm:$0xff] %vm3998_vm15, %v3923_v52  ;;  %v11761_v52 = vsel %vm769_vm3, %v4536_v31, %v4538_v45  ;;  %v4535_v45 = vrot.slane %v11381_v56, 1  ;;  %v11802_v41 = vsel %vm769_vm3, %v4545_v43, %v14511_v14  ;;  %v4543_v43 = vrot.slane %v11451_v6, 1 }
 0x555   : > { %4013 = vst.msk [vmem:[#allocation5 + $0xe0] sm:$0xff] %vm3998_vm15, %v3931_v18  ;;  %4606 = vrot.lane.b32.xlu1 %v11761_v52, %s14643_s23  ;;  %v3937_v47 = vpop.permute.xlu2 %3936  ;;  %v4553_v6 = vrot.slane %v11620_v11, 1 }
 0x556   : > { %14791 = vst [vmem:[#allocation7_spill] sm:$0xff] %v11749_v58  ;;  %8151 = vmatmul.msk.f32.gmra.mxu3 %vm638_vm4, %v5671_v28  ;;  %v11790_v28 = vsel %vm769_vm3, %v4535_v45, %v4536_v31  ;;  %v5673_v31 = vld [vmem:[#allocation5 + $0x178] sm:$0xff] }
 0x557   : > { %5621 = vst.msk [vmem:[#allocation5 + $0x1b8] sm:$0xff] %vm638_vm4, %v11738_v10  ;;  %v11763_v18 = vld [vmem:[#allocation5 + $0x60] sm:$0xff] }
 0x558   : > { %4407 = vst.msk [vmem:[#allocation5 + $0x70] sm:$0xff] %vm638_vm4, %v11073_v40 }
 0x559   : > { %14792 = vst [vmem:[#allocation52_spill] sm:$0xff] %v11761_v52  ;;  %4604 = vrot.lane.b32.xlu0 %v11790_v28, %s14643_s23 }
 0x55a   : > { %4411 = vst.msk [vmem:[#allocation5 + $0xb0] sm:$0xff] %vm638_vm4, %v11174_v2  ;;  %8100 = vmatmul.msk.f32.gmra.mxu2 %vm4072_vm13, %v4034_v55  ;;  %v4551_v55 = vrot.slane %v11615_v57, 1 }
 0x55b   : > { %4008 = vst.msk [vmem:[#allocation5 + $0x90] sm:$0xff] %vm3998_vm15, %v3921_v46  ;;  %v3929_v46 = vpop.permute.xlu1 %3928  ;;  %v11781_v58 = vld [vmem:[#allocation5 + $0xa0] sm:$0xff] }
 0x55c   : > { %14793 = vst [vmem:[#allocation6_spill] sm:$0xff] %v11771_v17  ;;  %v11786_v52 = vld [vmem:[#allocation5 + $0xe0] sm:$0xff]  ;;  %v4533_v17 = vrot.slane %v11341_v49, 1  ;;  %v14796_v49 = vrot.slane %v11339_v60, 1  ;;  %v11843_v11 = vsel %vm769_vm3, %v4551_v55, %v4553_v6  ;;  %v4688_v6 = vrot.slane %v11472_v19, 2 }
 0x55d   : > { %4406 = vst.msk [vmem:[#allocation5 + $0x60] sm:$0xff] %vm638_vm4, %v11059_v32  ;;  %4612 = vrot.lane.b32.xlu1 %v11802_v41, %s14643_s23  ;;  %v4548_v19 = vrot.slane %v11541_v15, 1  ;;  %v14804_v15 = vrot.slane %v11539_v63, 1 }
 0x55e   : > { %4012 = vst.msk [vmem:[#allocation5 + $0xd0] sm:$0xff] %vm3998_vm15, %v3929_v46  ;;  %v3927_v46 = vpop.permute.xlu0 %3926  ;;  %v11812_v45 = vsel %vm769_vm3, %v14796_v49, %v4533_v17  ;;  %8152 = vmatmul.msk.f32.gmra.mxu3 %vm638_vm4, %v5673_v31  ;;  %v3943_v17 = vpop.permute.xlu2 %3942 }
 0x55f   : > { %4016 = vst.msk [vmem:[#allocation5 + $0x110] sm:$0xff] %vm3998_vm15, %v3937_v47  ;;  %4602 = vrot.lane.b32.xlu2 %v11812_v45, %s14643_s23 }
 0x560   : > { %14794 = vst [vmem:[#allocation50_spill] sm:$0xff] %v11790_v28  ;;  %v4541_v28 = vrot.slane %v11449_v30, 1 }
 0x561   : > { %4410 = vst.msk [vmem:[#allocation5 + $0xa0] sm:$0xff] %vm638_vm4, %v11162_v44 }
 0x562   : > { %4414 = vst.msk [vmem:[#allocation5 + $0xe0] sm:$0xff] %vm638_vm4, %v11179_v12  ;;  %v11804_v47 = vld [vmem:[#allocation5 + $0x90] sm:$0xff]  ;;  %v11833_v31 = vsel %vm769_vm3, %v4541_v28, %v4543_v43  ;;  %8101 = vmatmul.msk.f32.gmra.mxu2 %vm4072_vm13, %v11686_v59 }
 0x563   : > { %14795 = vst [vmem:[#allocation55_spill] sm:$0xff] %v11802_v41  ;;  %v11824_v41 = vpop.f32.mrf.mxu3  ;;  %4610 = vrot.lane.b32.xlu0 %v11833_v31, %s14643_s23 }
 0x564   : > { %4011 = vst.msk [vmem:[#allocation5 + $0xc0] sm:$0xff] %vm3998_vm15, %v3927_v46  ;;  %v3935_v46 = vpop.permute.xlu1 %3934 }
 0x565   : > { %14797 = vst [vmem:[#allocation53_spill] sm:$0xff] %v11812_v45  ;;  %v11822_v14 = vld [vmem:[#allocation5 + $0xd0] sm:$0xff]  ;;  %v4540_v45 = vrot.slane %v11438_v3, 1  ;;  %4618 = vrot.lane.b32.xlu1 %v11843_v11, %s14643_s23 }
 0x566   : > { %4409 = vst.msk [vmem:[#allocation5 + $0x90] sm:$0xff] %vm638_vm4, %v11124_v37  ;;  %v11829_v49 = vld [vmem:[#allocation5 + $0x110] sm:$0xff]  ;;  %v3949_v59 = vpop.permute.xlu2 %3948 }
 0x567   : > { %14798 = vst [vmem:[#allocation58_spill] sm:$0xff] %v11824_v41  ;;  %v11851_v43 = vsel %vm769_vm3, %v4540_v45, %v4541_v28 }
 0x568   : > { %4015 = vst.msk [vmem:[#allocation5 + $0x100] sm:$0xff] %vm3998_vm15, %v3935_v46  ;;  %v3933_v46 = vpop.permute.xlu0 %3932  ;;  %4608 = vrot.lane.b32.xlu2 %v11851_v43, %s14643_s23 }
 0x569   : > { %4019 = vst.msk [vmem:[#allocation5 + $0x140] sm:$0xff] %vm3998_vm15, %v3943_v17  ;;  %v5675_v17 = vld [vmem:[#allocation5 + $0x188] sm:$0xff] }
 0x56a   : > { %14799 = vst [vmem:[#allocation51_spill] sm:$0xff] %v11833_v31  ;;  %v4550_v31 = vrot.slane %v11601_v38, 1  ;;  %8153 = vmatmul.msk.f32.gmra.mxu3 %vm638_vm4, %v5675_v17  ;;  %8102 = vmatmul.msk.f32.gmra.mxu2 %vm4072_vm13, %v11661_v16  ;;  %v4694_v16 = vrot.slane %v11427_v36, 2 }
 0x56b   : > { %4413 = vst.msk [vmem:[#allocation5 + $0xd0] sm:$0xff] %vm638_vm4, %v11221_v35  ;;  %v11845_v41 = vld [vmem:[#allocation5 + $0xc0] sm:$0xff] }
 0x56c   : > { %4417 = vst.msk [vmem:[#allocation5 + $0x110] sm:$0xff] %vm638_vm4, %v11255_v50  ;;  %v11870_v17 = vsel %vm769_vm3, %v4550_v31, %v4551_v55  ;;  %v5677_v31 = vld [vmem:[#allocation5 + $0x198] sm:$0xff] }
 0x56d   : > { %14800 = vst [vmem:[#allocation54_spill] sm:$0xff] %v11843_v11  ;;  %v3941_v11 = vpop.permute.xlu1 %3940  ;;  %4616 = vrot.lane.b32.xlu0 %v11870_v17, %s14643_s23 }
 0x56e   : > { %4014 = vst.msk [vmem:[#allocation5 + $0xf0] sm:$0xff] %vm3998_vm15, %v3933_v46  ;;  %v14524_v46 = vrot.slane %v11444_v27, 2 }
 0x56f   : > { %14801 = vst [vmem:[#allocation57_spill] sm:$0xff] %v11851_v43  ;;  %v11863_v28 = vld [vmem:[#allocation5 + $0x100] sm:$0xff]  ;;  %v11873_v43 = vpop.f32.mrf.mxu3 }
 0x570   : > { %4412 = vst.msk [vmem:[#allocation5 + $0xc0] sm:$0xff] %vm638_vm4, %v11219_v33  ;;  %v11866_v45 = vld [vmem:[#allocation5 + $0x140] sm:$0xff]  ;;  %v4690_v50 = vsel %vm827_vm2, %v4688_v6, %v14524_v46  ;;  %v4556_v6 = vrot.slane %v11704_v62, 1  ;;  %v4558_v46 = vrot.slane %v11706_v54, 1 }
 0x571   : > { %4018 = vst.msk [vmem:[#allocation5 + $0x130] sm:$0xff] %vm3998_vm15, %v3941_v11  ;;  %v3939_v11 = vpop.permute.xlu0 %3938  ;;  %4768 = vrot.lane.b32.xlu1 %v4690_v50, %s14642_s30 }
 0x572   : > { %4022 = vst.msk [vmem:[#allocation5 + $0x170] sm:$0xff] %vm3998_vm15, %v3949_v59  ;;  %v11891_v59 = vsel %vm769_vm3, %v14804_v15, %v4548_v19  ;;  %8154 = vmatmul.msk.f32.gmra.mxu3 %vm638_vm4, %v5677_v31  ;;  %v3955_v19 = vpop.permute.xlu2 %3954  ;;  %v4696_v15 = vrot.slane %v11527_v39, 2  ;;  %v11911_v54 = vsel %vm769_vm3, %v4556_v6, %v4558_v46  ;;  %v4555_v31 = vrot.slane %v11691_v34, 1  ;;  %v5679_v46 = vld [vmem:[#allocation5 + $0x1a8] sm:$0xff]  ;;  %8103 = vmatmul.msk.f32.gmra.mxu2 %vm4072_vm13, %v11763_v18 }
 0x573   : > { %14802 = vst [vmem:[#allocation59_spill] sm:$0xff] %v11870_v17  ;;  %4614 = vrot.lane.b32.xlu2 %v11891_v59, %s14643_s23 }
 0x574   : > { %14803 = vst [vmem:[#allocation60_spill] sm:$0xff] %v11873_v43 }
 0x575   : > { %4416 = vst.msk [vmem:[#allocation5 + $0x100] sm:$0xff] %vm638_vm4, %v11249_v23  ;;  %v11884_v55 = vld [vmem:[#allocation5 + $0xf0] sm:$0xff]  ;;  %v3947_v50 = vpop.permute.xlu1 %3946  ;;  %4622 = vrot.lane.b32.xlu0 %v11911_v54, %s14643_s23 }
 0x576   : > { %4420 = vst.msk [vmem:[#allocation5 + $0x140] sm:$0xff] %vm638_vm4, %v11335_v4 }
 0x577   : > { %4017 = vst.msk [vmem:[#allocation5 + $0x120] sm:$0xff] %vm3998_vm15, %v3939_v11 }
 0x578   : > { %14805 = vst [vmem:[#allocation61_spill] sm:$0xff] %v11891_v59  ;;  %v11902_v11 = vld [vmem:[#allocation5 + $0x130] sm:$0xff]  ;;  %v11923_v59 = vsel %vm827_vm2, %v4694_v16, %v4696_v15 }
 0x579   : > { %4415 = vst.msk [vmem:[#allocation5 + $0xf0] sm:$0xff] %vm638_vm4, %v11186_v9  ;;  %v11907_v43 = vld [vmem:[#allocation5 + $0x170] sm:$0xff]  ;;  %v3945_v39 = vpop.permute.xlu0 %3944  ;;  %4774 = vrot.lane.b32.xlu1 %v11923_v59, %s14642_s30 }
 0x57a   : > { %4021 = vst.msk [vmem:[#allocation5 + $0x160] sm:$0xff] %vm3998_vm15, %v3947_v50  ;;  %v11920_v50 = vpop.f32.mrf.mxu3  ;;  %8155 = vmatmul.msk.f32.gmra.mxu3 %vm638_vm4, %v5679_v46  ;;  %8104 = vmatmul.msk.f32.gmra.mxu2 %vm4072_vm13, %v11745_v29 }
 0x57b   : > { %4025 = vst.msk [vmem:[#allocation5 + $0x1a0] sm:$0xff] %vm3998_vm15, %v3955_v19 }
 0x57c   : > { %14806 = vst [vmem:[#allocation62_spill] sm:$0xff] %v11911_v54  ;;  %v11931_v54 = vsel %vm769_vm3, %v4555_v31, %v4556_v6  ;;  %v3961_v6 = vpop.permute.xlu2 %3960 }
 0x57d   : > { %4419 = vst.msk [vmem:[#allocation5 + $0x130] sm:$0xff] %vm638_vm4, %v11296_v13  ;;  %4620 = vrot.lane.b32.xlu2 %v11931_v54, %s14643_s23  ;;  %v3953_v15 = vpop.permute.xlu1 %3952 }
 0x57e   : > { %4423 = vst.msk [vmem:[#allocation5 + $0x170] sm:$0xff] %vm638_vm4, %v11385_v5  ;;  %v11925_v19 = vld [vmem:[#allocation5 + $0x120] sm:$0xff] }
 0x57f   : > { %14807 = vst [vmem:[#allocation63_spill] sm:$0xff] %v11920_v50  ;;  %v4693_v50 = vrot.slane %v11425_v42, 2 }
 0x580   : > { %14808 = vst [vmem:[#allocation64_spill] sm:$0xff] %v11923_v59 }
 0x581   : > { %4020 = vst.msk [vmem:[#allocation5 + $0x150] sm:$0xff] %vm3998_vm15, %v3945_v39  ;;  %v4691_v39 = vrot.slane %v11446_v22, 2  ;;  %v11942_v59 = vld [vmem:[#allocation5 + $0x160] sm:$0xff]  ;;  %v11949_v18 = vsel %vm827_vm2, %v4693_v50, %v4694_v16  ;;  %v14810_v22 = vrot.slane %v11444_v27, 2  ;;  %4780 = vrot.lane.b32.xlu1 %v11084_v61, %s14642_s30 }
 0x582   : > { %14809 = vst [vmem:[#allocation65_spill] sm:$0xff] %v11931_v54  ;;  %v11945_v31 = vld [vmem:[#allocation5 + $0x1a0] sm:$0xff]  ;;  %4772 = vrot.lane.b32.xlu0 %v11949_v18, %s14642_s30  ;;  %v11967_v16 = vpop.f32.mrf.mxu3  ;;  %8105 = vmatmul.msk.f32.gmra.mxu2 %vm4072_vm13, %v11693_v25 }
 0x583   : > { %4418 = vst.msk [vmem:[#allocation5 + $0x120] sm:$0xff] %vm638_vm4, %v11294_v20  ;;  %v4692_v46 = vsel %vm827_vm2, %v14810_v22, %v4691_v39 }
 0x584   : > { %4024 = vst.msk [vmem:[#allocation5 + $0x190] sm:$0xff] %vm3998_vm15, %v3953_v15  ;;  %v3951_v15 = vpop.permute.xlu0 %3950  ;;  %v4561_v39 = vpop.permute.xlu2 %4560 }
 0x585   : > { %4028 = vst.msk [vmem:[#allocation5 + $0x1d0] sm:$0xff] %vm3998_vm15, %v3961_v6  ;;  %v5681_v6 = vld [vmem:[#allocation5 + $0x1b8] sm:$0xff]  ;;  %4770 = vrot.lane.b32.xlu2 %v4692_v46, %s14642_s30  ;;  %v3959_v27 = vpop.permute.xlu1 %3958 }
 0x586   : > { %4422 = vst.msk [vmem:[#allocation5 + $0x160] sm:$0xff] %vm638_vm4, %v11381_v56  ;;  %8156 = vmatmul.msk.f32.gmra.mxu3 %vm638_vm4, %v5681_v6 }
 0x587   : > { %4426 = vst.msk [vmem:[#allocation5 + $0x1a0] sm:$0xff] %vm638_vm4, %v11529_v8 }
 0x588   : > { %v11960_v54 = vld [vmem:[#allocation5 + $0x150] sm:$0xff]  ;;  %4023 = vst.msk [vmem:[#allocation5 + $0x180] sm:$0xff] %vm3998_vm15, %v3951_v15 }
 0x589   : > { %14811 = vst [vmem:[#allocation66_spill] sm:$0xff] %v11967_v16  ;;  %4786 = vrot.lane.b32.xlu1 %v11138_v24, %s14642_s30  ;;  %v14812_v16 = vld [vmem:[#allocation25_spill] sm:$0xff]  ;;  %v2603_v24 = vpop.f32.mrf.mxu2 }
 0x58a   : > { %4421 = vst.msk [vmem:[#allocation5 + $0x150] sm:$0xff] %vm638_vm4, %v11339_v60  ;;  %4778 = vrot.lane.b32.xlu0 %v11034_v21, %s14642_s30  ;;  %8106 = vmatmul.msk.f32.gmra.mxu2 %vm4072_vm13, %v11804_v47 }
 0x58b   : > { %v11973_v50 = vld [vmem:[#allocation5 + $0x190] sm:$0xff]  ;;  %4027 = vst.msk [vmem:[#allocation5 + $0x1c0] sm:$0xff] %vm3998_vm15, %v3959_v27 }
 0x58c   : > { %v11976_v22 = vld [vmem:[#allocation5 + $0x1d0] sm:$0xff]  ;;  %4656 = vst.msk [vmem:[#allocation5] sm:$0xff] %vm818_vm5, %v4561_v39  ;;  %v3957_v29 = vpop.permute.xlu0 %3956  ;;  %v4567_v27 = vpop.permute.xlu2 %4566 }
 0x58d   : > { %4425 = vst.msk [vmem:[#allocation5 + $0x190] sm:$0xff] %vm638_vm4, %v11449_v30  ;;  %4776 = vrot.lane.b32.xlu2 %v11031_v0, %s14642_s30  ;;  %v3965_v15 = vpop.permute.xlu1 %3964 }
 0x58e   : > { %4429 = vst.msk [vmem:[#allocation5 + $0x1d0] sm:$0xff] %vm638_vm4, %v11615_v57 }
 0x58f   : > { %v11985_v46 = vld [vmem:[#allocation5 + $0x180] sm:$0xff]  ;;  %4026 = vst.msk [vmem:[#allocation5 + $0x1b0] sm:$0xff] %vm3998_vm15, %v3957_v29 }
 0x590   : > { %4424 = vst.msk [vmem:[#allocation5 + $0x180] sm:$0xff] %vm638_vm4, %v11438_v3 }
 0x591   : > { %4030 = vst.msk [vmem:[#allocation5 + $0x1f0] sm:$0xff] %vm3998_vm15, %v3965_v15  ;;  %4792 = vrot.lane.b32.xlu1 %v11234_v1, %s14642_s30 }
 0x592   : > { %v11996_v6 = vld [vmem:[#allocation5 + $0x1c0] sm:$0xff]  ;;  %4659 = vst.msk [vmem:[#allocation5 + $0x30] sm:$0xff] %vm818_vm5, %v4567_v27  ;;  %4784 = vrot.lane.b32.xlu0 %v11135_v51, %s14642_s30  ;;  %8107 = vmatmul.msk.f32.gmra.mxu2 %vm4072_vm13, %v11781_v58 }
 0x593   : > { %4428 = vst.msk [vmem:[#allocation5 + $0x1c0] sm:$0xff] %vm638_vm4, %v11601_v38  ;;  %v14815_v58 = vld [vmem:[#allocation34_spill] sm:$0xff] }
 0x594   : > { %v3963_v25 = vpop.permute.xlu0 %3962  ;;  %v4573_v27 = vpop.permute.xlu2 %4572  ;;  %4344 = vst.msk [vmem:[#allocation4 + $0x181] sm:$0xff] %vm638_vm4, %v2603_v24  ;;  %v14817_v24 = vld [vmem:[#allocation33_spill] sm:$0xff] }
 0x595   : > { %4029 = vst.msk [vmem:[#allocation5 + $0x1e0] sm:$0xff] %vm3998_vm15, %v3963_v25  ;;  %4782 = vrot.lane.b32.xlu2 %v11087_v48, %s14642_s30  ;;  %v4565_v29 = vpop.permute.xlu1 %4564 }
 0x596   : > { %v12004_v39 = vld [vmem:[#allocation5 + $0x1b0] sm:$0xff]  ;;  %4658 = vst.msk [vmem:[#allocation5 + $0x20] sm:$0xff] %vm818_vm5, %v4565_v29  ;;  %v14813_v29 = vld [vmem:[#allocation29_spill] sm:$0xff] }
 0x597   : > { %4427 = vst.msk [vmem:[#allocation5 + $0x1b0] sm:$0xff] %vm638_vm4, %v11539_v63 }
 0x598   : > { %v12015_v15 = vld [vmem:[#allocation5 + $0x1f0] sm:$0xff]  ;;  %4662 = vst.msk [vmem:[#allocation5 + $0x60] sm:$0xff] %vm818_vm5, %v4573_v27 }
 0x599   : > { %4431 = vst.msk [vmem:[#allocation5 + $0x1f0] sm:$0xff] %vm638_vm4, %v11704_v62  ;;  %4798 = vrot.lane.b32.xlu1 %v14812_v16, %s14642_s30 }
 0x59a   : > { %4790 = vrot.lane.b32.xlu0 %v11197_v53, %s14642_s30  ;;  %8108 = vmatmul.msk.f32.gmra.mxu2 %vm4072_vm13, %v11752_v7  ;;  %v14818_v7 = vld [vmem:[#allocation10_spill] sm:$0xff] }
 0x59c   : > { %v4563_v47 = vpop.permute.xlu0 %4562  ;;  %v12023_v25 = vld [vmem:[#allocation5 + $0x1e0] sm:$0xff]  ;;  %v4579_v1 = vpop.permute.xlu2 %4578 }
 0x59d   : > { %4657 = vst.msk [vmem:[#allocation5 + $0x10] sm:$0xff] %vm818_vm5, %v4563_v47  ;;  %4788 = vrot.lane.b32.xlu2 %v14813_v29, %s14642_s30  ;;  %v4571_v27 = vpop.permute.xlu1 %4570  ;;  %v14814_v47 = vld [vmem:[#allocation22_spill] sm:$0xff] }
 0x59e   : > { %4430 = vst.msk [vmem:[#allocation5 + $0x1e0] sm:$0xff] %vm638_vm4, %v11691_v34 }
 0x59f   : > { %4661 = vst.msk [vmem:[#allocation5 + $0x50] sm:$0xff] %vm818_vm5, %v4571_v27  ;;  %v14816_v27 = vld [vmem:[#allocation24_spill] sm:$0xff] }
 0x5a0   : > { %4665 = vst.msk [vmem:[#allocation5 + $0x90] sm:$0xff] %vm818_vm5, %v4579_v1 }
 0x5a1   : > { %4804 = vrot.lane.b32.xlu1 %v14815_v58, %s14642_s30 }
 0x5a2   : > { %4796 = vrot.lane.b32.xlu0 %v14814_v47, %s14642_s30  ;;  %v2606_v47 = vpop.f32.mrf.mxu2  ;;  %8109 = vmatmul.msk.f32.gmra.mxu2 %vm4072_vm13, %v11845_v41  ;;  %v14822_v41 = vld [vmem:[#allocation9_spill] sm:$0xff] }
 0x5a3   : > { %4345 = vst.msk [vmem:[#allocation4 + $0x189] sm:$0xff] %vm638_vm4, %v2606_v47 }
 0x5a4   : > { %v4569_v16 = vpop.permute.xlu0 %4568  ;;  %v4585_v1 = vpop.permute.xlu2 %4584 }
 0x5a5   : > { %4660 = vst.msk [vmem:[#allocation5 + $0x40] sm:$0xff] %vm818_vm5, %v4569_v16  ;;  %4794 = vrot.lane.b32.xlu2 %v14816_v27, %s14642_s30  ;;  %v4577_v29 = vpop.permute.xlu1 %4576 }
 0x5a6   : > { %4664 = vst.msk [vmem:[#allocation5 + $0x80] sm:$0xff] %vm818_vm5, %v4577_v29  ;;  %v14819_v29 = vld [vmem:[#allocation38_spill] sm:$0xff] }
 0x5a7   : > { %4668 = vst.msk [vmem:[#allocation5 + $0xc0] sm:$0xff] %vm818_vm5, %v4585_v1 }
 0x5a9   : > { %4810 = vrot.lane.b32.xlu1 %v14818_v7, %s14642_s30 }
 0x5aa   : > { %4802 = vrot.lane.b32.xlu0 %v14817_v24, %s14642_s30  ;;  %v14820_v24 = vld [vmem:[#allocation12_spill] sm:$0xff]  ;;  %8110 = vmatmul.msk.f32.gmra.mxu2 %vm4072_vm13, %v11822_v14  ;;  %v14825_v14 = vld [vmem:[#allocation15_spill] sm:$0xff] }
 0x5ac   : > { %v4575_v16 = vpop.permute.xlu0 %4574  ;;  %v4591_v1 = vpop.permute.xlu2 %4590 }
 0x5ad   : > { %4663 = vst.msk [vmem:[#allocation5 + $0x70] sm:$0xff] %vm818_vm5, %v4575_v16  ;;  %4800 = vrot.lane.b32.xlu2 %v14819_v29, %s14642_s30  ;;  %v4583_v58 = vpop.permute.xlu1 %4582  ;;  %v14821_v16 = vld [vmem:[#allocation19_spill] sm:$0xff] }
 0x5ae   : > { %4667 = vst.msk [vmem:[#allocation5 + $0xb0] sm:$0xff] %vm818_vm5, %v4583_v58 }
 0x5af   : > { %4671 = vst.msk [vmem:[#allocation5 + $0xf0] sm:$0xff] %vm818_vm5, %v4591_v1  ;;  %v14823_v1 = vld [vmem:[#allocation8_spill] sm:$0xff] }
 0x5b1   : > { %4816 = vrot.lane.b32.xlu1 %v14821_v16, %s14642_s30 }
 0x5b2   : > { %4808 = vrot.lane.b32.xlu0 %v14820_v24, %s14642_s30  ;;  %8111 = vmatmul.msk.f32.gmra.mxu2 %vm4072_vm13, %v11786_v52  ;;  %v14827_v52 = vld [vmem:[#allocation11_spill] sm:$0xff] }
 0x5b4   : > { %v4581_v47 = vpop.permute.xlu0 %4580  ;;  %v4597_v58 = vpop.permute.xlu2 %4596 }
 0x5b5   : > { %4666 = vst.msk [vmem:[#allocation5 + $0xa0] sm:$0xff] %vm818_vm5, %v4581_v47  ;;  %4806 = vrot.lane.b32.xlu2 %v14822_v41, %s14642_s30  ;;  %v4589_v7 = vpop.permute.xlu1 %4588  ;;  %v14824_v47 = vld [vmem:[#allocation31_spill] sm:$0xff] }
 0x5b6   : > { %4670 = vst.msk [vmem:[#allocation5 + $0xe0] sm:$0xff] %vm818_vm5, %v4589_v7 }
 0x5b7   : > { %4674 = vst.msk [vmem:[#allocation5 + $0x120] sm:$0xff] %vm818_vm5, %v4597_v58  ;;  %v14826_v58 = vld [vmem:[#allocation20_spill] sm:$0xff] }
 0x5b9   : > { %4822 = vrot.lane.b32.xlu1 %v14824_v47, %s14642_s30 }
 0x5ba   : > { %4814 = vrot.lane.b32.xlu0 %v14823_v1, %s14642_s30  ;;  %8112 = vmatmul.msk.f32.gmra.mxu2 %vm4072_vm13, %v11884_v55  ;;  %v14829_v55 = vld [vmem:[#allocation40_spill] sm:$0xff] }
 0x5bc   : > { %v4587_v24 = vpop.permute.xlu0 %4586  ;;  %v4603_v7 = vpop.permute.xlu2 %4602 }
 0x5bd   : > { %4669 = vst.msk [vmem:[#allocation5 + $0xd0] sm:$0xff] %vm818_vm5, %v4587_v24  ;;  %4812 = vrot.lane.b32.xlu2 %v14825_v14, %s14642_s30  ;;  %v4595_v16 = vpop.permute.xlu1 %4594 }
 0x5be   : > { %4673 = vst.msk [vmem:[#allocation5 + $0x110] sm:$0xff] %vm818_vm5, %v4595_v16 }
 0x5bf   : > { %4677 = vst.msk [vmem:[#allocation5 + $0x150] sm:$0xff] %vm818_vm5, %v4603_v7  ;;  %v14828_v7 = vld [vmem:[#allocation45_spill] sm:$0xff] }
 0x5c1   : > { %4828 = vrot.lane.b32.xlu1 %v11730_v26, %s14642_s30 }
 0x5c2   : > { %4820 = vrot.lane.b32.xlu0 %v14826_v58, %s14642_s30  ;;  %8113 = vmatmul.msk.f32.gmra.mxu2 %vm4072_vm13, %v11863_v28 }
 0x5c4   : > { %v4593_v1 = vpop.permute.xlu0 %4592  ;;  %v4609_v16 = vpop.permute.xlu2 %4608 }
 0x5c5   : > { %4672 = vst.msk [vmem:[#allocation5 + $0x100] sm:$0xff] %vm818_vm5, %v4593_v1  ;;  %4818 = vrot.lane.b32.xlu2 %v14827_v52, %s14642_s30  ;;  %v4601_v24 = vpop.permute.xlu1 %4600 }
 0x5c6   : > { %4676 = vst.msk [vmem:[#allocation5 + $0x140] sm:$0xff] %vm818_vm5, %v4601_v24 }
 0x5c7   : > { %4680 = vst.msk [vmem:[#allocation5 + $0x180] sm:$0xff] %vm818_vm5, %v4609_v16 }
 0x5c9   : > { %4900 = vrot.lane.b32.xlu1 %v11427_v36, %s14639_s29 }
 0x5ca   : > { %4826 = vrot.lane.b32.xlu0 %v14828_v7, %s14642_s30  ;;  %8114 = vmatmul.msk.f32.gmra.mxu2 %vm4072_vm13, %v11829_v49  ;;  %v14831_v49 = vld [vmem:[#allocation48_spill] sm:$0xff] }
 0x5cc   : > { %v4599_v47 = vpop.permute.xlu0 %4598 }
 0x5cd   : > { %4675 = vst.msk [vmem:[#allocation5 + $0x130] sm:$0xff] %vm818_vm5, %v4599_v47  ;;  %4824 = vrot.lane.b32.xlu2 %v14829_v55, %s14642_s30  ;;  %v4607_v1 = vpop.permute.xlu1 %4606  ;;  %v4615_v24 = vpop.permute.xlu2 %4614 }
 0x5ce   : > { %4679 = vst.msk [vmem:[#allocation5 + $0x170] sm:$0xff] %vm818_vm5, %v4607_v1 }
 0x5cf   : > { %4683 = vst.msk [vmem:[#allocation5 + $0x1b0] sm:$0xff] %vm818_vm5, %v4615_v24 }
 0x5d1   : > { %4906 = vrot.lane.b32.xlu1 %v11059_v32, %s14639_s29 }
 0x5d2   : > { %4898 = vrot.lane.b32.xlu0 %v11425_v42, %s14639_s29  ;;  %v14830_v42 = vld [vmem:[#allocation49_spill] sm:$0xff]  ;;  %8115 = vmatmul.msk.f32.gmra.mxu2 %vm4072_vm13, %v11925_v19 }
 0x5d4   : > { %v4605_v16 = vpop.permute.xlu0 %4604 }
 0x5d5   : > { %4678 = vst.msk [vmem:[#allocation5 + $0x160] sm:$0xff] %vm818_vm5, %v4605_v16  ;;  %4830 = vrot.lane.b32.xlu2 %v11738_v10, %s14642_s30  ;;  %v4613_v36 = vpop.permute.xlu1 %4612  ;;  %v14832_v16 = vld [vmem:[#allocation56_spill] sm:$0xff] }
 0x5d6   : > { %4682 = vst.msk [vmem:[#allocation5 + $0x1a0] sm:$0xff] %vm818_vm5, %v4613_v36 }
 0x5d7   : > { %v4621_v28 = vpop.permute.xlu2 %4620 }
 0x5d8   : > { %4686 = vst.msk [vmem:[#allocation5 + $0x1e0] sm:$0xff] %vm818_vm5, %v4621_v28 }
 0x5d9   : > { %4912 = vrot.lane.b32.xlu1 %v11124_v37, %s14639_s29 }
 0x5da   : > { %4904 = vrot.lane.b32.xlu0 %v14830_v42, %s14639_s29  ;;  %8116 = vmatmul.msk.f32.gmra.mxu2 %vm4072_vm13, %v11902_v11 }
 0x5dc   : > { %v4611_v47 = vpop.permute.xlu0 %4610 }
 0x5dd   : > { %4681 = vst.msk [vmem:[#allocation5 + $0x190] sm:$0xff] %vm818_vm5, %v4611_v47  ;;  %4902 = vrot.lane.b32.xlu2 %v14831_v49, %s14639_s29  ;;  %v4619_v1 = vpop.permute.xlu1 %4618 }
 0x5de   : > { %4685 = vst.msk [vmem:[#allocation5 + $0x1d0] sm:$0xff] %vm818_vm5, %v4619_v1 }
 0x5df   : > { %v4771_v24 = vpop.permute.xlu2 %4770 }
 0x5e0   : > { %4865 = vst.msk [vmem:[#allocation5 + $0x10] sm:$0xff] %vm876_vm6, %v4771_v24 }
 0x5e1   : > { %4918 = vrot.lane.b32.xlu1 %v11219_v33, %s14639_s29 }
 0x5e2   : > { %4910 = vrot.lane.b32.xlu0 %v14832_v16, %s14639_s29  ;;  %8117 = vmatmul.msk.f32.gmra.mxu2 %vm4072_vm13, %v11866_v45 }
 0x5e4   : > { %v4617_v36 = vpop.permute.xlu0 %4616 }
 0x5e5   : > { %4684 = vst.msk [vmem:[#allocation5 + $0x1c0] sm:$0xff] %vm818_vm5, %v4617_v36  ;;  %4908 = vrot.lane.b32.xlu2 %v11073_v40, %s14639_s29  ;;  %v4769_v19 = vpop.permute.xlu1 %4768 }
 0x5e6   : > { %4864 = vst.msk [vmem:[#allocation5] sm:$0xff] %vm876_vm6, %v4769_v19  ;;  %v14833_v19 = vld [vmem:[#allocation26_spill] sm:$0xff] }
 0x5e7   : > { %v4777_v28 = vpop.permute.xlu2 %4776 }
 0x5e8   : > { %4868 = vst.msk [vmem:[#allocation5 + $0x40] sm:$0xff] %vm876_vm6, %v4777_v28 }
 0x5e9   : > { %4924 = vrot.lane.b32.xlu1 %v11186_v9, %s14639_s29 }
 0x5ea   : > { %4916 = vrot.lane.b32.xlu0 %v11174_v2, %s14639_s29  ;;  %8118 = vmatmul.msk.f32.gmra.mxu2 %vm4072_vm13, %v11960_v54  ;;  %v12166_v54 = vld [vmem:[#allocation4 + $0x188] sm:$0xff] }
 0x5ec   : > { %v4623_v47 = vpop.permute.xlu0 %4622 }
 0x5ed   : > { %4687 = vst.msk [vmem:[#allocation5 + $0x1f0] sm:$0xff] %vm818_vm5, %v4623_v47  ;;  %4914 = vrot.lane.b32.xlu2 %v11162_v44, %s14639_s29  ;;  %v4775_v11 = vpop.permute.xlu1 %4774  ;;  %v12168_v47 = vld [vmem:[#allocation4 + $0x190] sm:$0x3] }
 0x5ee   : > { %4867 = vst.msk [vmem:[#allocation5 + $0x30] sm:$0xff] %vm876_vm6, %v4775_v11  ;;  %v12170_v11 = vld [vmem:[#allocation4 + $0x180] sm:$0xff] }
 0x5ef   : > { %v4783_v1 = vpop.permute.xlu2 %4782 }
 0x5f0   : > { %4871 = vst.msk [vmem:[#allocation5 + $0x70] sm:$0xff] %vm876_vm6, %v4783_v1  ;;  %v5161_v1 = vrot.slane %v12166_v54, 2 }
 0x5f1   : > { %4930 = vrot.lane.b32.xlu1 %v11294_v20, %s14639_s29 }
 0x5f2   : > { %4922 = vrot.lane.b32.xlu0 %v11179_v12, %s14639_s29  ;;  %8119 = vmatmul.msk.f32.gmra.mxu2 %vm4072_vm13, %v11942_v59 }
 0x5f4   : > { %v4773_v24 = vpop.permute.xlu0 %4772 }
 0x5f5   : > { %4866 = vst.msk [vmem:[#allocation5 + $0x20] sm:$0xff] %vm876_vm6, %v4773_v24  ;;  %4920 = vrot.lane.b32.xlu2 %v11221_v35, %s14639_s29  ;;  %v4781_v45 = vpop.permute.xlu1 %4780  ;;  %v5163_v24 = vrot.slane %v12168_v47, 2 }
 0x5f6   : > { %4870 = vst.msk [vmem:[#allocation5 + $0x60] sm:$0xff] %vm876_vm6, %v4781_v45  ;;  %v5160_v45 = vrot.slane %v12170_v11, 2 }
 0x5f7   : > { %v4789_v36 = vpop.permute.xlu2 %4788 }
 0x5f8   : > { %4874 = vst.msk [vmem:[#allocation5 + $0xa0] sm:$0xff] %vm876_vm6, %v4789_v36  ;;  %v12177_v36 = vpop.f32.mrf.mxu2  ;;  %v12184_v20 = vsel %vm827_vm2, %v5160_v45, %v5161_v1  ;;  %v12201_v45 = vpop.f32.mrf.mxu3 }
 0x5f9   : > { %4936 = vrot.lane.b32.xlu1 %v11339_v60, %s14639_s29  ;;  %14834 = vst [vmem:[#allocation24_spill] sm:$0xff] %v12177_v36  ;;  %v12181_v60 = vsel %vm827_vm2, %v5161_v1, %v5163_v24 }
 0x5fa   : > { %4928 = vrot.lane.b32.xlu0 %v14833_v19, %s14639_s29  ;;  %5623 = vst.msk [vmem:[#allocation5 + $0x1d8] sm:$0xff] %vm638_vm4, %v12181_v60  ;;  %8120 = vmatmul.msk.f32.gmra.mxu2 %vm4072_vm13, %v11907_v43 }
 0x5fb   : > { %5622 = vst.msk [vmem:[#allocation5 + $0x1c8] sm:$0xff] %vm638_vm4, %v12184_v20 }
 0x5fc   : > { %v4779_v28 = vpop.permute.xlu0 %4778  ;;  %14835 = vst [vmem:[#allocation38_spill] sm:$0xff] %v12201_v45  ;;  %v14843_v45 = vld [vmem:[#allocation27_spill] sm:$0xff] }
 0x5fd   : > { %4869 = vst.msk [vmem:[#allocation5 + $0x50] sm:$0xff] %vm876_vm6, %v4779_v28  ;;  %4926 = vrot.lane.b32.xlu2 %v11249_v23, %s14639_s29  ;;  %v4787_v28 = vpop.permute.xlu1 %4786 }
 0x5fe   : > { %4873 = vst.msk [vmem:[#allocation5 + $0x90] sm:$0xff] %vm876_vm6, %v4787_v28 }
 0x5ff   : > { %v4795_v59 = vpop.permute.xlu2 %4794 }
 0x600   : > { %4877 = vst.msk [vmem:[#allocation5 + $0xd0] sm:$0xff] %vm876_vm6, %v4795_v59  ;;  %v12203_v28 = vpop.f32.mrf.mxu2 }
 0x601   : > { %4942 = vrot.lane.b32.xlu1 %v11438_v3, %s14639_s29  ;;  %14836 = vst [vmem:[#allocation9_spill] sm:$0xff] %v12203_v28 }
 0x602   : > { %4934 = vrot.lane.b32.xlu0 %v11335_v4, %s14639_s29  ;;  %8121 = vmatmul.msk.f32.gmra.mxu2 %vm4072_vm13, %v11985_v46 }
 0x604   : > { %v4785_v36 = vpop.permute.xlu0 %4784 }
 0x605   : > { %4872 = vst.msk [vmem:[#allocation5 + $0x80] sm:$0xff] %vm876_vm6, %v4785_v36  ;;  %4932 = vrot.lane.b32.xlu2 %v11296_v13, %s14639_s29  ;;  %v4793_v1 = vpop.permute.xlu1 %4792  ;;  %v5683_v36 = vld [vmem:[#allocation5 + $0x1c8] sm:$0xff] }
 0x606   : > { %4876 = vst.msk [vmem:[#allocation5 + $0xc0] sm:$0xff] %vm876_vm6, %v4793_v1  ;;  %8157 = vmatmul.msk.f32.gmra.mxu3 %vm638_vm4, %v5683_v36  ;;  %v12220_v36 = vpop.f32.mrf.mxu3 }
 0x607   : > { %v4801_v24 = vpop.permute.xlu2 %4800  ;;  %14837 = vst [vmem:[#allocation15_spill] sm:$0xff] %v12220_v36  ;;  %v14842_v36 = vld [vmem:[#allocation18_spill] sm:$0xff] }
 0x608   : > { %4880 = vst.msk [vmem:[#allocation5 + $0x100] sm:$0xff] %vm876_vm6, %v4801_v24  ;;  %v5685_v24 = vld [vmem:[#allocation5 + $0x1d8] sm:$0xff] }
 0x609   : > { %4948 = vrot.lane.b32.xlu1 %v11539_v63, %s14639_s29 }
 0x60a   : > { %4940 = vrot.lane.b32.xlu0 %v11385_v5, %s14639_s29  ;;  %8122 = vmatmul.msk.f32.gmra.mxu2 %vm4072_vm13, %v11973_v50 }
 0x60c   : > { %v4791_v43 = vpop.permute.xlu0 %4790 }
 0x60d   : > { %4875 = vst.msk [vmem:[#allocation5 + $0xb0] sm:$0xff] %vm876_vm6, %v4791_v43  ;;  %4938 = vrot.lane.b32.xlu2 %v11381_v56, %s14639_s29  ;;  %v4799_v59 = vpop.permute.xlu1 %4798  ;;  %v12222_v43 = vpop.f32.mrf.mxu2 }
 0x60e   : > { %4879 = vst.msk [vmem:[#allocation5 + $0xf0] sm:$0xff] %vm876_vm6, %v4799_v59  ;;  %8158 = vmatmul.msk.f32.gmra.mxu3 %vm638_vm4, %v5685_v24 }
 0x60f   : > { %v4807_v1 = vpop.permute.xlu2 %4806  ;;  %14838 = vst [vmem:[#allocation20_spill] sm:$0xff] %v12222_v43  ;;  %v14851_v43 = vld [vmem:[#allocation35_spill] sm:$0xff] }
 0x610   : > { %4883 = vst.msk [vmem:[#allocation5 + $0x130] sm:$0xff] %vm876_vm6, %v4807_v1 }
 0x611   : > { %4954 = vrot.lane.b32.xlu1 %v11691_v34, %s14639_s29 }
 0x612   : > { %4946 = vrot.lane.b32.xlu0 %v11529_v8, %s14639_s29  ;;  %8123 = vmatmul.msk.f32.gmra.mxu2 %vm4072_vm13, %v11945_v31 }
 0x614   : > { %v4797_v46 = vpop.permute.xlu0 %4796 }
 0x615   : > { %4878 = vst.msk [vmem:[#allocation5 + $0xe0] sm:$0xff] %vm876_vm6, %v4797_v46  ;;  %4944 = vrot.lane.b32.xlu2 %v11449_v30, %s14639_s29  ;;  %v4805_v59 = vpop.permute.xlu1 %4804  ;;  %v12236_v46 = vpop.f32.mrf.mxu2 }
 0x616   : > { %4882 = vst.msk [vmem:[#allocation5 + $0x120] sm:$0xff] %vm876_vm6, %v4805_v59 }
 0x617   : > { %v4813_v1 = vpop.permute.xlu2 %4812  ;;  %14839 = vst [vmem:[#allocation11_spill] sm:$0xff] %v12236_v46  ;;  %v14847_v46 = vld [vmem:[#allocation32_spill] sm:$0xff] }
 0x618   : > { %4886 = vst.msk [vmem:[#allocation5 + $0x160] sm:$0xff] %vm876_vm6, %v4813_v1 }
 0x619   : > { %4960 = vrot.lane.b32.xlu1 %v12166_v54, %s14639_s29 }
 0x61a   : > { %4952 = vrot.lane.b32.xlu0 %v11615_v57, %s14639_s29  ;;  %8124 = vmatmul.msk.f32.gmra.mxu2 %vm4072_vm13, %v12004_v39  ;;  %v14844_v39 = vld [vmem:[#allocation13_spill] sm:$0xff] }
 0x61c   : > { %v4803_v24 = vpop.permute.xlu0 %4802 }
 0x61d   : > { %4881 = vst.msk [vmem:[#allocation5 + $0x110] sm:$0xff] %vm876_vm6, %v4803_v24  ;;  %4950 = vrot.lane.b32.xlu2 %v11601_v38, %s14639_s29  ;;  %v4811_v50 = vpop.permute.xlu1 %4810  ;;  %v14840_v24 = vld [vmem:[#allocation23_spill] sm:$0xff]  ;;  %v12256_v31 = vpop.f32.mrf.mxu2 }
 0x61e   : > { %4885 = vst.msk [vmem:[#allocation5 + $0x150] sm:$0xff] %vm876_vm6, %v4811_v50 }
 0x61f   : > { %v4819_v59 = vpop.permute.xlu2 %4818  ;;  %14841 = vst [vmem:[#allocation45_spill] sm:$0xff] %v12256_v31 }
 0x620   : > { %4889 = vst.msk [vmem:[#allocation5 + $0x190] sm:$0xff] %vm876_vm6, %v4819_v59 }
 0x621   : > { %5036 = vrot.lane.b32.xlu1 %v14840_v24, %s14641_s1 }
 0x622   : > { %4958 = vrot.lane.b32.xlu0 %v12170_v11, %s14639_s29  ;;  %8125 = vmatmul.msk.f32.gmra.mxu2 %vm4072_vm13, %v11996_v6  ;;  %v14848_v6 = vld [vmem:[#allocation16_spill] sm:$0xff] }
 0x624   : > { %v4809_v1 = vpop.permute.xlu0 %4808 }
 0x625   : > { %4884 = vst.msk [vmem:[#allocation5 + $0x140] sm:$0xff] %vm876_vm6, %v4809_v1  ;;  %4956 = vrot.lane.b32.xlu2 %v11704_v62, %s14639_s29  ;;  %v4817_v50 = vpop.permute.xlu1 %4816 }
 0x626   : > { %4888 = vst.msk [vmem:[#allocation5 + $0x180] sm:$0xff] %vm876_vm6, %v4817_v50 }
 0x627   : > { %v4825_v59 = vpop.permute.xlu2 %4824 }
 0x628   : > { %4892 = vst.msk [vmem:[#allocation5 + $0x1c0] sm:$0xff] %vm876_vm6, %v4825_v59  ;;  %v12270_v59 = vpop.f32.mrf.mxu2 }
 0x629   : > { %5042 = vrot.lane.b32.xlu1 %v14843_v45, %s14641_s1  ;;  %14845 = vst [vmem:[#allocation40_spill] sm:$0xff] %v12270_v59 }
 0x62a   : > { %5034 = vrot.lane.b32.xlu0 %v14842_v36, %s14641_s1  ;;  %v14846_v36 = vld [vmem:[#allocation21_spill] sm:$0xff]  ;;  %8126 = vmatmul.msk.f32.gmra.mxu2 %vm4072_vm13, %v11976_v22  ;;  %v14852_v22 = vld [vmem:[#allocation14_spill] sm:$0xff] }
 0x62c   : > { %v4815_v1 = vpop.permute.xlu0 %4814 }
 0x62d   : > { %4887 = vst.msk [vmem:[#allocation5 + $0x170] sm:$0xff] %vm876_vm6, %v4815_v1  ;;  %5032 = vrot.lane.b32.xlu2 %v14844_v39, %s14641_s1  ;;  %v4823_v31 = vpop.permute.xlu1 %4822 }
 0x62e   : > { %4891 = vst.msk [vmem:[#allocation5 + $0x1b0] sm:$0xff] %vm876_vm6, %v4823_v31 }
 0x62f   : > { %v4831_v50 = vpop.permute.xlu2 %4830 }
 0x630   : > { %4895 = vst.msk [vmem:[#allocation5 + $0x1f0] sm:$0xff] %vm876_vm6, %v4831_v50  ;;  %v14849_v50 = vld [vmem:[#allocation30_spill] sm:$0xff]  ;;  %v12286_v59 = vpop.f32.mrf.mxu2 }
 0x631   : > { %5048 = vrot.lane.b32.xlu1 %v14847_v46, %s14641_s1  ;;  %14850 = vst [vmem:[#allocation49_spill] sm:$0xff] %v12286_v59  ;;  %v14853_v59 = vld [vmem:[#allocation47_spill] sm:$0xff]  ;;  %v14857_v46 = vld [vmem:[#allocation44_spill] sm:$0xff] }
 0x632   : > { %5040 = vrot.lane.b32.xlu0 %v14846_v36, %s14641_s1  ;;  %8127 = vmatmul.msk.f32.gmra.mxu2 %vm4072_vm13, %v12023_v25  ;;  %v14856_v25 = vld [vmem:[#allocation37_spill] sm:$0xff] }
 0x634   : > { %v4821_v1 = vpop.permute.xlu0 %4820 }
 0x635   : > { %4890 = vst.msk [vmem:[#allocation5 + $0x1a0] sm:$0xff] %vm876_vm6, %v4821_v1  ;;  %5038 = vrot.lane.b32.xlu2 %v14848_v6, %s14641_s1  ;;  %v4829_v31 = vpop.permute.xlu1 %4828 }
 0x636   : > { %4894 = vst.msk [vmem:[#allocation5 + $0x1e0] sm:$0xff] %vm876_vm6, %v4829_v31 }
 0x637   : > { %v4903_v39 = vpop.permute.xlu2 %4902 }
 0x638   : > { %4996 = vst.msk [vmem:[#allocation5 + $0x20] sm:$0xff] %vm910_vm7, %v4903_v39 }
 0x639   : > { %5054 = vrot.lane.b32.xlu1 %v14851_v43, %s14641_s1  ;;  %v14855_v43 = vld [vmem:[#allocation41_spill] sm:$0xff] }
 0x63a   : > { %5046 = vrot.lane.b32.xlu0 %v14849_v50, %s14641_s1 }
 0x63c   : > { %v4827_v1 = vpop.permute.xlu0 %4826 }
 0x63d   : > { %4893 = vst.msk [vmem:[#allocation5 + $0x1d0] sm:$0xff] %vm876_vm6, %v4827_v1  ;;  %5044 = vrot.lane.b32.xlu2 %v14852_v22, %s14641_s1  ;;  %v4901_v31 = vpop.permute.xlu1 %4900  ;;  %v12299_v1 = vpop.f32.mrf.mxu2  ;;  %8128 = vmatmul.msk.f32.gmra.mxu2 %vm4072_vm13, %v12015_v15  ;;  %v14859_v15 = vld [vmem:[#allocation42_spill] sm:$0xff]  ;;  %vm14942_vm6 = vcmask 326912  }
 0x63e   : > { %4995 = vst.msk [vmem:[#allocation5 + $0x10] sm:$0xff] %vm910_vm7, %v4901_v31 }
 0x63f   : > { %v4909_v39 = vpop.permute.xlu2 %4908  ;;  %14854 = vst [vmem:[#allocation48_spill] sm:$0xff] %v12299_v1 }
 0x640   : > { %4999 = vst.msk [vmem:[#allocation5 + $0x50] sm:$0xff] %vm910_vm7, %v4909_v39 }
 0x641   : > { %5060 = vrot.lane.b32.xlu1 %v14855_v43, %s14641_s1 }
 0x642   : > { %5052 = vrot.lane.b32.xlu0 %v14853_v59, %s14641_s1 }
 0x644   : > { %v4899_v28 = vpop.permute.xlu0 %4898 }
 0x645   : > { %4994 = vst.msk [vmem:[#allocation5] sm:$0xff] %vm910_vm7, %v4899_v28  ;;  %5050 = vrot.lane.b32.xlu2 %v14856_v25, %s14641_s1  ;;  %v4907_v31 = vpop.permute.xlu1 %4906  ;;  %v14858_v28 = vld [vmem:[#allocation7_spill] sm:$0xff] }
 0x646   : > { %4998 = vst.msk [vmem:[#allocation5 + $0x40] sm:$0xff] %vm910_vm7, %v4907_v31  ;;  %v14860_v31 = vld [vmem:[#allocation6_spill] sm:$0xff] }
 0x647   : > { %v4915_v39 = vpop.permute.xlu2 %4914 }
 0x648   : > { %5002 = vst.msk [vmem:[#allocation5 + $0x80] sm:$0xff] %vm910_vm7, %v4915_v39 }
 0x649   : > { %5066 = vrot.lane.b32.xlu1 %v14858_v28, %s14641_s1  ;;  %v14862_v28 = vld [vmem:[#allocation43_spill] sm:$0xff] }
 0x64a   : > { %5058 = vrot.lane.b32.xlu0 %v14857_v46, %s14641_s1 }
 0x64c   : > { %v4905_v1 = vpop.permute.xlu0 %4904 }
 0x64d   : > { %4997 = vst.msk [vmem:[#allocation5 + $0x30] sm:$0xff] %vm910_vm7, %v4905_v1  ;;  %5056 = vrot.lane.b32.xlu2 %v14859_v15, %s14641_s1  ;;  %v4913_v43 = vpop.permute.xlu1 %4912  ;;  %v14861_v1 = vld [vmem:[#allocation50_spill] sm:$0xff] }
 0x64e   : > { %5001 = vst.msk [vmem:[#allocation5 + $0x70] sm:$0xff] %vm910_vm7, %v4913_v43  ;;  %v14863_v43 = vld [vmem:[#allocation53_spill] sm:$0xff] }
 0x64f   : > { %v4921_v25 = vpop.permute.xlu2 %4920 }
 0x650   : > { %5005 = vst.msk [vmem:[#allocation5 + $0xb0] sm:$0xff] %vm910_vm7, %v4921_v25 }
 0x651   : > { %5072 = vrot.lane.b32.xlu1 %v14861_v1, %s14641_s1  ;;  %v14865_v1 = vld [vmem:[#allocation46_spill] sm:$0xff] }
 0x652   : > { %5064 = vrot.lane.b32.xlu0 %v14860_v31, %s14641_s1 }
 0x654   : > { %v4911_v39 = vpop.permute.xlu0 %4910 }
 0x655   : > { %5000 = vst.msk [vmem:[#allocation5 + $0x60] sm:$0xff] %vm910_vm7, %v4911_v39  ;;  %5062 = vrot.lane.b32.xlu2 %v14862_v28, %s14641_s1  ;;  %v4919_v46 = vpop.permute.xlu1 %4918  ;;  %v14864_v39 = vld [vmem:[#allocation51_spill] sm:$0xff] }
 0x656   : > { %5004 = vst.msk [vmem:[#allocation5 + $0xa0] sm:$0xff] %vm910_vm7, %v4919_v46  ;;  %v14866_v46 = vld [vmem:[#allocation57_spill] sm:$0xff] }
 0x657   : > { %v4927_v15 = vpop.permute.xlu2 %4926 }
 0x658   : > { %5008 = vst.msk [vmem:[#allocation5 + $0xe0] sm:$0xff] %vm910_vm7, %v4927_v15 }
 0x659   : > { %5078 = vrot.lane.b32.xlu1 %v14864_v39, %s14641_s1 }
 0x65a   : > { %5070 = vrot.lane.b32.xlu0 %v14863_v43, %s14641_s1 }
 0x65c   : > { %v4917_v25 = vpop.permute.xlu0 %4916 }
 0x65d   : > { %5003 = vst.msk [vmem:[#allocation5 + $0x90] sm:$0xff] %vm910_vm7, %v4917_v25  ;;  %5068 = vrot.lane.b32.xlu2 %v14865_v1, %s14641_s1  ;;  %v4925_v31 = vpop.permute.xlu1 %4924  ;;  %v14867_v25 = vld [vmem:[#allocation52_spill] sm:$0xff] }
 0x65e   : > { %5007 = vst.msk [vmem:[#allocation5 + $0xd0] sm:$0xff] %vm910_vm7, %v4925_v31 }
 0x65f   : > { %v4933_v28 = vpop.permute.xlu2 %4932 }
 0x660   : > { %5011 = vst.msk [vmem:[#allocation5 + $0x110] sm:$0xff] %vm910_vm7, %v4933_v28  ;;  %v14868_v28 = vld [vmem:[#allocation61_spill] sm:$0xff] }
 0x661   : > { %5084 = vrot.lane.b32.xlu1 %v11870_v17, %s14641_s1  ;;  %v14870_v17 = vld [vmem:[#allocation55_spill] sm:$0xff] }
 0x662   : > { %5076 = vrot.lane.b32.xlu0 %v14866_v46, %s14641_s1 }
 0x664   : > { %v4923_v15 = vpop.permute.xlu0 %4922 }
 0x665   : > { %5006 = vst.msk [vmem:[#allocation5 + $0xc0] sm:$0xff] %vm910_vm7, %v4923_v15  ;;  %5074 = vrot.lane.b32.xlu2 %v14867_v25, %s14641_s1  ;;  %v4931_v39 = vpop.permute.xlu1 %4930  ;;  %v14869_v15 = vld [vmem:[#allocation62_spill] sm:$0xff] }
 0x666   : > { %5010 = vst.msk [vmem:[#allocation5 + $0x100] sm:$0xff] %vm910_vm7, %v4931_v39 }
 0x667   : > { %v4939_v1 = vpop.permute.xlu2 %4938 }
 0x668   : > { %5014 = vst.msk [vmem:[#allocation5 + $0x140] sm:$0xff] %vm910_vm7, %v4939_v1  ;;  %v14871_v1 = vld [vmem:[#allocation65_spill] sm:$0xff] }
 0x669   : > { %5090 = vrot.lane.b32.xlu1 %v14869_v15, %s14641_s1  ;;  %v5030_v15 = vrot.slane %v12168_v47, 1 }
 0x66a   : > { %5082 = vrot.lane.b32.xlu0 %v14868_v28, %s14641_s1 }
 0x66c   : > { %v4929_v31 = vpop.permute.xlu0 %4928 }
 0x66d   : > { %5009 = vst.msk [vmem:[#allocation5 + $0xf0] sm:$0xff] %vm910_vm7, %v4929_v31  ;;  %5080 = vrot.lane.b32.xlu2 %v14870_v17, %s14641_s1  ;;  %v4937_v46 = vpop.permute.xlu1 %4936  ;;  %v5028_v31 = vrot.slane %v12166_v54, 1  ;;  %v14872_v17 = vld [vmem:[#allocation54_spill] sm:$0xff] }
 0x66e   : > { %5013 = vst.msk [vmem:[#allocation5 + $0x130] sm:$0xff] %vm910_vm7, %v4937_v46 }
 0x66f   : > { %v4945_v25 = vpop.permute.xlu2 %4944 }
 0x670   : > { %5017 = vst.msk [vmem:[#allocation5 + $0x170] sm:$0xff] %vm910_vm7, %v4945_v25 }
 0x671   : > { %5165 = vrot.lane.b32.xlu1 %v11949_v18, %s14640_s19 }
 0x672   : > { %5088 = vrot.lane.b32.xlu0 %v14871_v1, %s14641_s1  ;;  %v12367_v1 = vsel %vm769_vm3, %v5028_v31, %v5030_v15 }
 0x674   : > { %v4935_v39 = vpop.permute.xlu0 %4934 }
 0x675   : > { %5012 = vst.msk [vmem:[#allocation5 + $0x120] sm:$0xff] %vm910_vm7, %v4935_v39  ;;  %5086 = vrot.lane.b32.xlu2 %v14872_v17, %s14641_s1  ;;  %v4943_v46 = vpop.permute.xlu1 %4942  ;;  %v5027_v39 = vrot.slane %v12170_v11, 1 }
 0x676   : > { %5016 = vst.msk [vmem:[#allocation5 + $0x160] sm:$0xff] %vm910_vm7, %v4943_v46 }
 0x677   : > { %v4951_v25 = vpop.permute.xlu2 %4950  ;;  %v12376_v47 = vsel %vm769_vm3, %v5027_v39, %v5028_v31 }
 0x678   : > { %5020 = vst.msk [vmem:[#allocation5 + $0x1a0] sm:$0xff] %vm910_vm7, %v4951_v25 }
 0x679   : > { %5171 = vrot.lane.b32.xlu1 %v11034_v21, %s14640_s19  ;;  %v14873_v21 = vld [vmem:[#allocation64_spill] sm:$0xff] }
 0x67a   : > { %5094 = vrot.lane.b32.xlu0 %v12367_v1, %s14641_s1 }
 0x67c   : > { %v4941_v18 = vpop.permute.xlu0 %4940 }
 0x67d   : > { %5015 = vst.msk [vmem:[#allocation5 + $0x150] sm:$0xff] %vm910_vm7, %v4941_v18  ;;  %5092 = vrot.lane.b32.xlu2 %v12376_v47, %s14641_s1  ;;  %v4949_v46 = vpop.permute.xlu1 %4948 }
 0x67e   : > { %5019 = vst.msk [vmem:[#allocation5 + $0x190] sm:$0xff] %vm910_vm7, %v4949_v46  ;;  %v14874_v46 = vld [vmem:[#allocation29_spill] sm:$0xff] }
 0x67f   : > { %v4957_v15 = vpop.permute.xlu2 %4956 }
 0x680   : > { %5023 = vst.msk [vmem:[#allocation5 + $0x1d0] sm:$0xff] %vm910_vm7, %v4957_v15 }
 0x681   : > { %5177 = vrot.lane.b32.xlu1 %v11135_v51, %s14640_s19 }
 0x682   : > { %5169 = vrot.lane.b32.xlu0 %v11031_v0, %s14640_s19 }
 0x684   : > { %v4947_v25 = vpop.permute.xlu0 %4946 }
 0x685   : > { %5018 = vst.msk [vmem:[#allocation5 + $0x180] sm:$0xff] %vm910_vm7, %v4947_v25  ;;  %5167 = vrot.lane.b32.xlu2 %v14873_v21, %s14640_s19  ;;  %v4955_v31 = vpop.permute.xlu1 %4954 }
 0x686   : > { %5022 = vst.msk [vmem:[#allocation5 + $0x1c0] sm:$0xff] %vm910_vm7, %v4955_v31  ;;  %v14877_v31 = vld [vmem:[#allocation33_spill] sm:$0xff] }
 0x687   : > { %v5033_v39 = vpop.permute.xlu2 %5032 }
 0x688   : > { %5128 = vst.msk [vmem:[#allocation5] sm:$0xff] %vm947_vm8, %v5033_v39  ;;  %v14878_v39 = vld [vmem:[#allocation28_spill] sm:$0xff] }
 0x689   : > { %5183 = vrot.lane.b32.xlu1 %v11197_v53, %s14640_s19  ;;  %v14876_v53 = vld [vmem:[#allocation17_spill] sm:$0xff] }
 0x68a   : > { %5175 = vrot.lane.b32.xlu0 %v11087_v48, %s14640_s19  ;;  %v14875_v48 = vld [vmem:[#allocation22_spill] sm:$0xff] }
 0x68c   : > { %v4953_v18 = vpop.permute.xlu0 %4952 }
 0x68d   : > { %5021 = vst.msk [vmem:[#allocation5 + $0x1b0] sm:$0xff] %vm910_vm7, %v4953_v18  ;;  %5173 = vrot.lane.b32.xlu2 %v11084_v61, %s14640_s19  ;;  %v4961_v0 = vpop.permute.xlu1 %4960 }
 0x68e   : > { %5025 = vst.msk [vmem:[#allocation5 + $0x1f0] sm:$0xff] %vm910_vm7, %v4961_v0 }
 0x68f   : > { %v5039_v51 = vpop.permute.xlu2 %5038 }
 0x690   : > { %5131 = vst.msk [vmem:[#allocation5 + $0x30] sm:$0xff] %vm947_vm8, %v5039_v51 }
 0x691   : > { %5189 = vrot.lane.b32.xlu1 %v14875_v48, %s14640_s19 }
 0x692   : > { %5181 = vrot.lane.b32.xlu0 %v14874_v46, %s14640_s19  ;;  %v14880_v46 = vld [vmem:[#allocation25_spill] sm:$0xff] }
 0x694   : > { %v4959_v15 = vpop.permute.xlu0 %4958 }
 0x695   : > { %5024 = vst.msk [vmem:[#allocation5 + $0x1e0] sm:$0xff] %vm910_vm7, %v4959_v15  ;;  %5179 = vrot.lane.b32.xlu2 %v14876_v53, %s14640_s19  ;;  %v5037_v25 = vpop.permute.xlu1 %5036  ;;  %vm14943_vm7 = vcmask 392512  }
 0x696   : > { %5130 = vst.msk [vmem:[#allocation5 + $0x20] sm:$0xff] %vm947_vm8, %v5037_v25  ;;  %v14882_v25 = vld [vmem:[#allocation34_spill] sm:$0xff] }
 0x697   : > { %v5045_v61 = vpop.permute.xlu2 %5044 }
 0x698   : > { %5134 = vst.msk [vmem:[#allocation5 + $0x60] sm:$0xff] %vm947_vm8, %v5045_v61 }
 0x699   : > { %5195 = vrot.lane.b32.xlu1 %v14877_v31, %s14640_s19 }
 0x69a   : > { %5187 = vrot.lane.b32.xlu0 %v14816_v27, %s14640_s19  ;;  %v14879_v27 = vld [vmem:[#allocation12_spill] sm:$0xff] }
 0x69c   : > { %v5035_v21 = vpop.permute.xlu0 %5034 }
 0x69d   : > { %5129 = vst.msk [vmem:[#allocation5 + $0x10] sm:$0xff] %vm947_vm8, %v5035_v21  ;;  %5185 = vrot.lane.b32.xlu2 %v14878_v39, %s14640_s19  ;;  %v5043_v18 = vpop.permute.xlu1 %5042 }
 0x69e   : > { %5133 = vst.msk [vmem:[#allocation5 + $0x50] sm:$0xff] %vm947_vm8, %v5043_v18 }
 0x69f   : > { %v5051_v0 = vpop.permute.xlu2 %5050 }
 0x6a0   : > { %5137 = vst.msk [vmem:[#allocation5 + $0x90] sm:$0xff] %vm947_vm8, %v5051_v0 }
 0x6a1   : > { %5201 = vrot.lane.b32.xlu1 %v14879_v27, %s14640_s19 }
 0x6a2   : > { %5193 = vrot.lane.b32.xlu0 %v14819_v29, %s14640_s19  ;;  %v14881_v29 = vld [vmem:[#allocation8_spill] sm:$0xff] }
 0x6a4   : > { %v5041_v51 = vpop.permute.xlu0 %5040 }
 0x6a5   : > { %5132 = vst.msk [vmem:[#allocation5 + $0x40] sm:$0xff] %vm947_vm8, %v5041_v51  ;;  %5191 = vrot.lane.b32.xlu2 %v14880_v46, %s14640_s19  ;;  %v5049_v15 = vpop.permute.xlu1 %5048 }
 0x6a6   : > { %5136 = vst.msk [vmem:[#allocation5 + $0x80] sm:$0xff] %vm947_vm8, %v5049_v15 }
 0x6a7   : > { %v5057_v48 = vpop.permute.xlu2 %5056 }
 0x6a8   : > { %5140 = vst.msk [vmem:[#allocation5 + $0xc0] sm:$0xff] %vm947_vm8, %v5057_v48 }
 0x6a9   : > { %5207 = vrot.lane.b32.xlu1 %v14881_v29, %s14640_s19 }
 0x6aa   : > { %5199 = vrot.lane.b32.xlu0 %v14822_v41, %s14640_s19  ;;  %v14883_v41 = vld [vmem:[#allocation10_spill] sm:$0xff] }
 0x6ac   : > { %v5047_v53 = vpop.permute.xlu0 %5046 }
 0x6ad   : > { %5135 = vst.msk [vmem:[#allocation5 + $0x70] sm:$0xff] %vm947_vm8, %v5047_v53  ;;  %5197 = vrot.lane.b32.xlu2 %v14882_v25, %s14640_s19  ;;  %v5055_v61 = vpop.permute.xlu1 %5054 }
 0x6ae   : > { %5139 = vst.msk [vmem:[#allocation5 + $0xb0] sm:$0xff] %vm947_vm8, %v5055_v61 }
 0x6af   : > { %v5063_v21 = vpop.permute.xlu2 %5062 }
 0x6b0   : > { %5143 = vst.msk [vmem:[#allocation5 + $0xf0] sm:$0xff] %vm947_vm8, %v5063_v21  ;;  %v14887_v21 = vld [vmem:[#allocation39_spill] sm:$0xff] }
 0x6b1   : > { %5213 = vrot.lane.b32.xlu1 %v14826_v58, %s14640_s19 }
 0x6b2   : > { %5205 = vrot.lane.b32.xlu0 %v14825_v14, %s14640_s19  ;;  %v14884_v14 = vld [vmem:[#allocation19_spill] sm:$0xff] }
 0x6b4   : > { %v5053_v31 = vpop.permute.xlu0 %5052 }
 0x6b5   : > { %5138 = vst.msk [vmem:[#allocation5 + $0xa0] sm:$0xff] %vm947_vm8, %v5053_v31  ;;  %5203 = vrot.lane.b32.xlu2 %v14883_v41, %s14640_s19  ;;  %v5061_v39 = vpop.permute.xlu1 %5060 }
 0x6b6   : > { %5142 = vst.msk [vmem:[#allocation5 + $0xe0] sm:$0xff] %vm947_vm8, %v5061_v39 }
 0x6b7   : > { %v5069_v18 = vpop.permute.xlu2 %5068 }
 0x6b8   : > { %5146 = vst.msk [vmem:[#allocation5 + $0x120] sm:$0xff] %vm947_vm8, %v5069_v18 }
 0x6b9   : > { %5219 = vrot.lane.b32.xlu1 %v14828_v7, %s14640_s19 }
 0x6ba   : > { %5211 = vrot.lane.b32.xlu0 %v14827_v52, %s14640_s19  ;;  %v14885_v52 = vld [vmem:[#allocation31_spill] sm:$0xff] }
 0x6bc   : > { %v5059_v0 = vpop.permute.xlu0 %5058 }
 0x6bd   : > { %5141 = vst.msk [vmem:[#allocation5 + $0xd0] sm:$0xff] %vm947_vm8, %v5059_v0  ;;  %5209 = vrot.lane.b32.xlu2 %v14884_v14, %s14640_s19  ;;  %v5067_v58 = vpop.permute.xlu1 %5066 }
 0x6be   : > { %5145 = vst.msk [vmem:[#allocation5 + $0x110] sm:$0xff] %vm947_vm8, %v5067_v58 }
 0x6bf   : > { %v5075_v51 = vpop.permute.xlu2 %5074 }
 0x6c0   : > { %5149 = vst.msk [vmem:[#allocation5 + $0x150] sm:$0xff] %vm947_vm8, %v5075_v51 }
 0x6c1   : > { %5225 = vrot.lane.b32.xlu1 %v12184_v20, %s14640_s19 }
 0x6c2   : > { %5217 = vrot.lane.b32.xlu0 %v14829_v55, %s14640_s19 }
 0x6c4   : > { %v5065_v27 = vpop.permute.xlu0 %5064 }
 0x6c5   : > { %5144 = vst.msk [vmem:[#allocation5 + $0x100] sm:$0xff] %vm947_vm8, %v5065_v27  ;;  %5215 = vrot.lane.b32.xlu2 %v14885_v52, %s14640_s19  ;;  %v5073_v7 = vpop.permute.xlu1 %5072  ;;  %v14891_v27 = vld [vmem:[#allocation42_spill] sm:$0xff] }
 0x6c6   : > { %5148 = vst.msk [vmem:[#allocation5 + $0x140] sm:$0xff] %vm947_vm8, %v5073_v7  ;;  %v14892_v7 = vld [vmem:[#allocation6_spill] sm:$0xff] }
 0x6c7   : > { %v5081_v46 = vpop.permute.xlu2 %5080 }
 0x6c8   : > { %5152 = vst.msk [vmem:[#allocation5 + $0x180] sm:$0xff] %vm947_vm8, %v5081_v46  ;;  %v14893_v46 = vld [vmem:[#allocation35_spill] sm:$0xff] }
 0x6c9   : > { %5297 = vrot.lane.b32.xlu1 %v14830_v42, %s14585_s22 }
 0x6ca   : > { %5223 = vrot.lane.b32.xlu0 %v11738_v10, %s14640_s19 }
 0x6cc   : > { %v5071_v15 = vpop.permute.xlu0 %5070 }
 0x6cd   : > { %5147 = vst.msk [vmem:[#allocation5 + $0x130] sm:$0xff] %vm947_vm8, %v5071_v15  ;;  %5221 = vrot.lane.b32.xlu2 %v11730_v26, %s14640_s19  ;;  %v5079_v20 = vpop.permute.xlu1 %5078 }
 0x6ce   : > { %5151 = vst.msk [vmem:[#allocation5 + $0x170] sm:$0xff] %vm947_vm8, %v5079_v20 }
 0x6cf   : > { %v5087_v55 = vpop.permute.xlu2 %5086 }
 0x6d0   : > { %5155 = vst.msk [vmem:[#allocation5 + $0x1b0] sm:$0xff] %vm947_vm8, %v5087_v55  ;;  %v14894_v55 = vld [vmem:[#allocation43_spill] sm:$0xff] }
 0x6d1   : > { %5303 = vrot.lane.b32.xlu1 %v14832_v16, %s14585_s22 }
 0x6d2   : > { %5295 = vrot.lane.b32.xlu0 %v14831_v49, %s14585_s22 }
 0x6d4   : > { %v5077_v48 = vpop.permute.xlu0 %5076 }
 0x6d5   : > { %5150 = vst.msk [vmem:[#allocation5 + $0x160] sm:$0xff] %vm947_vm8, %v5077_v48  ;;  %5227 = vrot.lane.b32.xlu2 %v12181_v60, %s14640_s19  ;;  %v5085_v10 = vpop.permute.xlu1 %5084 }
 0x6d6   : > { %5154 = vst.msk [vmem:[#allocation5 + $0x1a0] sm:$0xff] %vm947_vm8, %v5085_v10  ;;  %v14895_v10 = vld [vmem:[#allocation41_spill] sm:$0xff] }
 0x6d7   : > { %v5093_v26 = vpop.permute.xlu2 %5092 }
 0x6d8   : > { %5158 = vst.msk [vmem:[#allocation5 + $0x1e0] sm:$0xff] %vm947_vm8, %v5093_v26 }
 0x6d9   : > { %5309 = vrot.lane.b32.xlu1 %v11174_v2, %s14585_s22 }
 0x6da   : > { %5301 = vrot.lane.b32.xlu0 %v11073_v40, %s14585_s22 }
 0x6dc   : > { %v5083_v42 = vpop.permute.xlu0 %5082 }
 0x6dd   : > { %5153 = vst.msk [vmem:[#allocation5 + $0x190] sm:$0xff] %vm947_vm8, %v5083_v42  ;;  %5299 = vrot.lane.b32.xlu2 %v11059_v32, %s14585_s22  ;;  %v5091_v49 = vpop.permute.xlu1 %5090 }
 0x6de   : > { %5157 = vst.msk [vmem:[#allocation5 + $0x1d0] sm:$0xff] %vm947_vm8, %v5091_v49  ;;  %v5705_v49 = vld [vmem:[%s14308_s11 + $0x78] sm:$0xff] }
 0x6df   : > { %v5168_v60 = vpop.permute.xlu2 %5167  ;;  %5804 = vmatpush.msrb.mxu1 %v5705_v49 }
 0x6e0   : > { %5262 = vst.msk [vmem:[#allocation5 + $0x10] sm:$0xff] %vm983_vm9, %v5168_v60  ;;  %v14896_v60 = vld [vmem:[#allocation46_spill] sm:$0xff] }
 0x6e1   : > { %5315 = vrot.lane.b32.xlu1 %v11179_v12, %s14585_s22 }
 0x6e2   : > { %5307 = vrot.lane.b32.xlu0 %v11162_v44, %s14585_s22 }
 0x6e4   : > { %v5089_v16 = vpop.permute.xlu0 %5088 }
 0x6e5   : > { %5156 = vst.msk [vmem:[#allocation5 + $0x1c0] sm:$0xff] %vm947_vm8, %v5089_v16  ;;  %5305 = vrot.lane.b32.xlu2 %v11124_v37, %s14585_s22  ;;  %v5166_v40 = vpop.permute.xlu1 %5165 }
 0x6e6   : > { %5261 = vst.msk [vmem:[#allocation5] sm:$0xff] %vm983_vm9, %v5166_v40  ;;  %v14897_v40 = vld [vmem:[#allocation57_spill] sm:$0xff] }
 0x6e7   : > { %v5174_v32 = vpop.permute.xlu2 %5173 }
 0x6e8   : > { %5265 = vst.msk [vmem:[#allocation5 + $0x40] sm:$0xff] %vm983_vm9, %v5174_v32  ;;  %v5703_v32 = vld [vmem:[%s14308_s11 + $0x68] sm:$0xff] }
 0x6e9   : > { %5321 = vrot.lane.b32.xlu1 %v14833_v19, %s14585_s22 }
 0x6ea   : > { %5313 = vrot.lane.b32.xlu0 %v11221_v35, %s14585_s22 }
 0x6ec   : > { %v5095_v2 = vpop.permute.xlu0 %5094 }
 0x6ed   : > { %5159 = vst.msk [vmem:[#allocation5 + $0x1f0] sm:$0xff] %vm947_vm8, %v5095_v2  ;;  %5311 = vrot.lane.b32.xlu2 %v11219_v33, %s14585_s22  ;;  %v5172_v44 = vpop.permute.xlu1 %5171  ;;  %v14898_v2 = vld [vmem:[#allocation7_spill] sm:$0xff]  ;;  %vm14944_vm8 = vcmask 523712  }
 0x6ee   : > { %5264 = vst.msk [vmem:[#allocation5 + $0x30] sm:$0xff] %vm983_vm9, %v5172_v44  ;;  %v5702_v44 = vld [vmem:[%s14308_s11 + $0x60] sm:$0xff] }
 0x6ef   : > { %v5180_v37 = vpop.permute.xlu2 %5179 }
 0x6f0   : > { %5268 = vst.msk [vmem:[#allocation5 + $0x70] sm:$0xff] %vm983_vm9, %v5180_v37 }
 0x6f1   : > { %5327 = vrot.lane.b32.xlu1 %v11335_v4, %s14585_s22 }
 0x6f2   : > { %5319 = vrot.lane.b32.xlu0 %v11249_v23, %s14585_s22  ;;  %v14886_v23 = vld [vmem:[#allocation36_spill] sm:$0xff] }
 0x6f4   : > { %v5170_v12 = vpop.permute.xlu0 %5169 }
 0x6f5   : > { %5263 = vst.msk [vmem:[#allocation5 + $0x20] sm:$0xff] %vm983_vm9, %v5170_v12  ;;  %5317 = vrot.lane.b32.xlu2 %v11186_v9, %s14585_s22  ;;  %v5178_v35 = vpop.permute.xlu1 %5177  ;;  %v12524_v9 = vld [vmem:[#allocation4 + $0x1a0] sm:$0xff] }
 0x6f6   : > { %5267 = vst.msk [vmem:[#allocation5 + $0x60] sm:$0xff] %vm983_vm9, %v5178_v35  ;;  %v5558_v29 = vrot.slane %v12524_v9, 2  ;;  %v5701_v35 = vld [vmem:[%s14308_s11 + $0x58] sm:$0xff] }
 0x6f7   : > { %v5186_v33 = vpop.permute.xlu2 %5185 }
 0x6f8   : > { %5271 = vst.msk [vmem:[#allocation5 + $0xa0] sm:$0xff] %vm983_vm9, %v5186_v33  ;;  %v5700_v33 = vld [vmem:[%s14308_s11 + $0x50] sm:$0xff] }
 0x6f9   : > { %5333 = vrot.lane.b32.xlu1 %v11385_v5, %s14585_s22 }
 0x6fa   : > { %5325 = vrot.lane.b32.xlu0 %v11296_v13, %s14585_s22  ;;  %v12529_v13 = vld [vmem:[#allocation4 + $0x198] sm:$0xff] }
 0x6fb   : > { %v5557_v5 = vrot.slane %v12529_v13, 2 }
 0x6fc   : > { %v5176_v19 = vpop.permute.xlu0 %5175 }
 0x6fd   : > { %5266 = vst.msk [vmem:[#allocation5 + $0x50] sm:$0xff] %vm983_vm9, %v5176_v19  ;;  %5323 = vrot.lane.b32.xlu2 %v14886_v23, %s14585_s22  ;;  %v5184_v4 = vpop.permute.xlu1 %5183  ;;  %v5559_v61 = vsel %vm827_vm2, %v5557_v5, %v5558_v29  ;;  %v14899_v19 = vld [vmem:[#allocation52_spill] sm:$0xff]  ;;  %v14900_v5 = vld [vmem:[#allocation50_spill] sm:$0xff] }
 0x6fe   : > { %5270 = vst.msk [vmem:[#allocation5 + $0x90] sm:$0xff] %vm983_vm9, %v5184_v4  ;;  %v5699_v4 = vld [vmem:[%s14308_s11 + $0x48] sm:$0xff] }
 0x6ff   : > { %v5192_v53 = vpop.permute.xlu2 %5191  ;;  %5624 = vst.msk [vmem:[#allocation5 + $0x1e8] sm:$0xff] %vm638_vm4, %v5559_v61 }
 0x700   : > { %5274 = vst.msk [vmem:[#allocation5 + $0xd0] sm:$0xff] %vm983_vm9, %v5192_v53  ;;  %v5698_v53 = vld [vmem:[%s14308_s11 + $0x40] sm:$0xff] }
 0x701   : > { %5339 = vrot.lane.b32.xlu1 %v11529_v8, %s14585_s22 }
 0x702   : > { %5331 = vrot.lane.b32.xlu0 %v11381_v56, %s14585_s22 }
 0x704   : > { %v5182_v25 = vpop.permute.xlu0 %5181 }
 0x705   : > { %5269 = vst.msk [vmem:[#allocation5 + $0x80] sm:$0xff] %vm983_vm9, %v5182_v25  ;;  %5329 = vrot.lane.b32.xlu2 %v14887_v21, %s14585_s22  ;;  %v5190_v31 = vpop.permute.xlu1 %5189  ;;  %v5696_v21 = vld [vmem:[%s14308_s11 + $0x30] sm:$0xff] }
 0x706   : > { %5273 = vst.msk [vmem:[#allocation5 + $0xc0] sm:$0xff] %vm983_vm9, %v5190_v31  ;;  %v14901_v31 = vld [vmem:[#allocation55_spill] sm:$0xff] }
 0x707   : > { %v5198_v56 = vpop.permute.xlu2 %5197 }
 0x708   : > { %5277 = vst.msk [vmem:[#allocation5 + $0x100] sm:$0xff] %vm983_vm9, %v5198_v56 }
 0x709   : > { %5345 = vrot.lane.b32.xlu1 %v11615_v57, %s14585_s22 }
 0x70a   : > { %5337 = vrot.lane.b32.xlu0 %v11449_v30, %s14585_s22 }
 0x70c   : > { %v5188_v41 = vpop.permute.xlu0 %5187 }
 0x70d   : > { %5272 = vst.msk [vmem:[#allocation5 + $0xb0] sm:$0xff] %vm983_vm9, %v5188_v41  ;;  %5335 = vrot.lane.b32.xlu2 %v11438_v3, %s14585_s22  ;;  %v5196_v8 = vpop.permute.xlu1 %5195  ;;  %v14902_v41 = vld [vmem:[#allocation65_spill] sm:$0xff] }
 0x70e   : > { %5276 = vst.msk [vmem:[#allocation5 + $0xf0] sm:$0xff] %vm983_vm9, %v5196_v8  ;;  %v5695_v8 = vld [vmem:[%s14308_s11 + $0x28] sm:$0xff] }
 0x70f   : > { %v5204_v39 = vpop.permute.xlu2 %5203 }
 0x710   : > { %5280 = vst.msk [vmem:[#allocation5 + $0x130] sm:$0xff] %vm983_vm9, %v5204_v39  ;;  %v5694_v39 = vld [vmem:[%s14308_s11 + $0x20] sm:$0xff] }
 0x711   : > { %5351 = vrot.lane.b32.xlu1 %v12170_v11, %s14585_s22 }
 0x712   : > { %5343 = vrot.lane.b32.xlu0 %v11601_v38, %s14585_s22 }
 0x714   : > { %v5194_v18 = vpop.permute.xlu0 %5193 }
 0x715   : > { %5275 = vst.msk [vmem:[#allocation5 + $0xe0] sm:$0xff] %vm983_vm9, %v5194_v18  ;;  %5341 = vrot.lane.b32.xlu2 %v11539_v63, %s14585_s22  ;;  %v5202_v30 = vpop.permute.xlu1 %5201  ;;  %v14903_v18 = vld [vmem:[#allocation51_spill] sm:$0xff] }
 0x716   : > { %5279 = vst.msk [vmem:[#allocation5 + $0x120] sm:$0xff] %vm983_vm9, %v5202_v30 }
 0x717   : > { %v5210_v3 = vpop.permute.xlu2 %5209 }
 0x718   : > { %5283 = vst.msk [vmem:[#allocation5 + $0x160] sm:$0xff] %vm983_vm9, %v5210_v3 }
 0x719   : > { %5357 = vrot.lane.b32.xlu1 %v12524_v9, %s14585_s22 }
 0x71a   : > { %5349 = vrot.lane.b32.xlu0 %v11704_v62, %s14585_s22 }
 0x71c   : > { %v5200_v57 = vpop.permute.xlu0 %5199 }
 0x71d   : > { %5278 = vst.msk [vmem:[#allocation5 + $0x110] sm:$0xff] %vm983_vm9, %v5200_v57  ;;  %5347 = vrot.lane.b32.xlu2 %v11691_v34, %s14585_s22  ;;  %v5208_v38 = vpop.permute.xlu1 %5207  ;;  %v5693_v57 = vld [vmem:[%s14308_s11 + $0x18] sm:$0xff] }
 0x71e   : > { %5282 = vst.msk [vmem:[#allocation5 + $0x150] sm:$0xff] %vm983_vm9, %v5208_v38  ;;  %v5692_v38 = vld [vmem:[%s14308_s11 + $0x10] sm:$0xff] }
 0x71f   : > { %v5216_v63 = vpop.permute.xlu2 %5215 }
 0x720   : > { %5286 = vst.msk [vmem:[#allocation5 + $0x190] sm:$0xff] %vm983_vm9, %v5216_v63 }
 0x721   : > { %5433 = vrot.lane.b32.xlu1 %v14846_v36, %s14644_s2 }
 0x722   : > { %5355 = vrot.lane.b32.xlu0 %v12529_v13, %s14585_s22 }
 0x724   : > { %v5206_v11 = vpop.permute.xlu0 %5205 }
 0x725   : > { %5281 = vst.msk [vmem:[#allocation5 + $0x140] sm:$0xff] %vm983_vm9, %v5206_v11  ;;  %5353 = vrot.lane.b32.xlu2 %v12166_v54, %s14585_s22  ;;  %v5214_v62 = vpop.permute.xlu1 %5213  ;;  %v5691_v11 = vld [vmem:[%s14308_s11 + $0x8] sm:$0xff] }
 0x726   : > { %5285 = vst.msk [vmem:[#allocation5 + $0x180] sm:$0xff] %vm983_vm9, %v5214_v62  ;;  %v5690_v62 = vld [vmem:[%s14308_s11] sm:$0xff] }
 0x727   : > { %v5222_v34 = vpop.permute.xlu2 %5221 }
 0x728   : > { %5289 = vst.msk [vmem:[#allocation5 + $0x1c0] sm:$0xff] %vm983_vm9, %v5222_v34  ;;  %v14904_v34 = vld [vmem:[#allocation59_spill] sm:$0xff] }
 0x729   : > { %5439 = vrot.lane.b32.xlu1 %v14849_v50, %s14644_s2  ;;  %v14888_v50 = vld [vmem:[#allocation37_spill] sm:$0xff] }
 0x72a   : > { %5431 = vrot.lane.b32.xlu0 %v14848_v6, %s14644_s2 }
 0x72c   : > { %v5212_v0 = vpop.permute.xlu0 %5211 }
 0x72d   : > { %5284 = vst.msk [vmem:[#allocation5 + $0x170] sm:$0xff] %vm983_vm9, %v5212_v0  ;;  %5429 = vrot.lane.b32.xlu2 %v14840_v24, %s14644_s2  ;;  %v5220_v36 = vpop.permute.xlu1 %5219 }
 0x72e   : > { %5288 = vst.msk [vmem:[#allocation5 + $0x1b0] sm:$0xff] %vm983_vm9, %v5220_v36  ;;  %v14905_v36 = vld [vmem:[#allocation62_spill] sm:$0xff] }
 0x72f   : > { %v5228_v54 = vpop.permute.xlu2 %5227 }
 0x730   : > { %5292 = vst.msk [vmem:[#allocation5 + $0x1f0] sm:$0xff] %vm983_vm9, %v5228_v54 }
 0x731   : > { %5445 = vrot.lane.b32.xlu1 %v14853_v59, %s14644_s2  ;;  %v14890_v59 = vld [vmem:[#allocation32_spill] sm:$0xff] }
 0x732   : > { %5437 = vrot.lane.b32.xlu0 %v14852_v22, %s14644_s2  ;;  %v14889_v22 = vld [vmem:[#allocation44_spill] sm:$0xff] }
 0x734   : > { %v5218_v14 = vpop.permute.xlu0 %5217 }
 0x735   : > { %5287 = vst.msk [vmem:[#allocation5 + $0x1a0] sm:$0xff] %vm983_vm9, %v5218_v14  ;;  %5435 = vrot.lane.b32.xlu2 %v14843_v45, %s14644_s2  ;;  %v5226_v6 = vpop.permute.xlu1 %5225 }
 0x736   : > { %5291 = vst.msk [vmem:[#allocation5 + $0x1e0] sm:$0xff] %vm983_vm9, %v5226_v6 }
 0x737   : > { %v5300_v24 = vpop.permute.xlu2 %5299 }
 0x738   : > { %5393 = vst.msk [vmem:[#allocation5 + $0x20] sm:$0xff] %vm1017_vm10, %v5300_v24 }
 0x739   : > { %5451 = vrot.lane.b32.xlu1 %v14889_v22, %s14644_s2 }
 0x73a   : > { %5443 = vrot.lane.b32.xlu0 %v14888_v50, %s14644_s2 }
 0x73c   : > { %v5224_v58 = vpop.permute.xlu0 %5223 }
 0x73d   : > { %5290 = vst.msk [vmem:[#allocation5 + $0x1d0] sm:$0xff] %vm983_vm9, %v5224_v58  ;;  %5441 = vrot.lane.b32.xlu2 %v14890_v59, %s14644_s2  ;;  %v5298_v51 = vpop.permute.xlu1 %5297 }
 0x73e   : > { %5392 = vst.msk [vmem:[#allocation5 + $0x10] sm:$0xff] %vm1017_vm10, %v5298_v51 }
 0x73f   : > { %v5306_v45 = vpop.permute.xlu2 %5305 }
 0x740   : > { %5396 = vst.msk [vmem:[#allocation5 + $0x50] sm:$0xff] %vm1017_vm10, %v5306_v45 }
 0x741   : > { %5457 = vrot.lane.b32.xlu1 %v14892_v7, %s14644_s2 }
 0x742   : > { %5449 = vrot.lane.b32.xlu0 %v14891_v27, %s14644_s2 }
 0x744   : > { %v5296_v52 = vpop.permute.xlu0 %5295 }
 0x745   : > { %5391 = vst.msk [vmem:[#allocation5] sm:$0xff] %vm1017_vm10, %v5296_v52  ;;  %5447 = vrot.lane.b32.xlu2 %v14893_v46, %s14644_s2  ;;  %v5304_v15 = vpop.permute.xlu1 %5303 }
 0x746   : > { %5395 = vst.msk [vmem:[#allocation5 + $0x40] sm:$0xff] %vm1017_vm10, %v5304_v15 }
 0x747   : > { %v5312_v20 = vpop.permute.xlu2 %5311 }
 0x748   : > { %5399 = vst.msk [vmem:[#allocation5 + $0x80] sm:$0xff] %vm1017_vm10, %v5312_v20 }
 0x749   : > { %5463 = vrot.lane.b32.xlu1 %v14863_v43, %s14644_s2  ;;  %v5704_v43 = vld [vmem:[%s14308_s11 + $0x70] sm:$0xff] }
 0x74a   : > { %5455 = vrot.lane.b32.xlu0 %v14894_v55, %s14644_s2  ;;  %5805 = vmatpush.msrb.mxu1 %v5704_v43 }
 0x74c   : > { %v5302_v48 = vpop.permute.xlu0 %5301  ;;  %5806 = vmatpush.msrb.mxu1 %v5703_v32 }
 0x74d   : > { %5394 = vst.msk [vmem:[#allocation5 + $0x30] sm:$0xff] %vm1017_vm10, %v5302_v48  ;;  %5453 = vrot.lane.b32.xlu2 %v14895_v10, %s14644_s2  ;;  %v5310_v26 = vpop.permute.xlu1 %5309 }
 0x74e   : > { %5398 = vst.msk [vmem:[#allocation5 + $0x70] sm:$0xff] %vm1017_vm10, %v5310_v26  ;;  %5807 = vmatpush.msrb.mxu1 %v5702_v44 }
 0x74f   : > { %v5318_v42 = vpop.permute.xlu2 %5317 }
 0x750   : > { %5402 = vst.msk [vmem:[#allocation5 + $0xb0] sm:$0xff] %vm1017_vm10, %v5318_v42  ;;  %5808 = vmatpush.msrb.mxu1 %v5701_v35 }
 0x751   : > { %5469 = vrot.lane.b32.xlu1 %v14897_v40, %s14644_s2 }
 0x752   : > { %5461 = vrot.lane.b32.xlu0 %v14896_v60, %s14644_s2  ;;  %5809 = vmatpush.msrb.mxu1 %v5700_v33 }
 0x754   : > { %v5308_v16 = vpop.permute.xlu0 %5307  ;;  %5810 = vmatpush.msrb.mxu1 %v5699_v4 }
 0x755   : > { %5397 = vst.msk [vmem:[#allocation5 + $0x60] sm:$0xff] %vm1017_vm10, %v5308_v16  ;;  %5459 = vrot.lane.b32.xlu2 %v14898_v2, %s14644_s2  ;;  %v5316_v37 = vpop.permute.xlu1 %5315 }
 0x756   : > { %5401 = vst.msk [vmem:[#allocation5 + $0xa0] sm:$0xff] %vm1017_vm10, %v5316_v37  ;;  %5811 = vmatpush.msrb.mxu1 %v5698_v53 }
 0x757   : > { %v5324_v12 = vpop.permute.xlu2 %5323 }
 0x758   : > { %5405 = vst.msk [vmem:[#allocation5 + $0xe0] sm:$0xff] %vm1017_vm10, %v5324_v12 }
 0x759   : > { %5475 = vrot.lane.b32.xlu1 %v14868_v28, %s14644_s2  ;;  %v5697_v28 = vld [vmem:[%s14308_s11 + $0x38] sm:$0xff] }
 0x75a   : > { %5467 = vrot.lane.b32.xlu0 %v14899_v19, %s14644_s2  ;;  %5812 = vmatpush.msrb.mxu1 %v5697_v28 }
 0x75c   : > { %v5314_v23 = vpop.permute.xlu0 %5313  ;;  %5813 = vmatpush.msrb.mxu1 %v5696_v21 }
 0x75d   : > { %5400 = vst.msk [vmem:[#allocation5 + $0x90] sm:$0xff] %vm1017_vm10, %v5314_v23  ;;  %5465 = vrot.lane.b32.xlu2 %v14900_v5, %s14644_s2  ;;  %v5322_v25 = vpop.permute.xlu1 %5321 }
 0x75e   : > { %5404 = vst.msk [vmem:[#allocation5 + $0xd0] sm:$0xff] %vm1017_vm10, %v5322_v25  ;;  %5814 = vmatpush.msrb.mxu1 %v5695_v8 }
 0x75f   : > { %v5330_v61 = vpop.permute.xlu2 %5329 }
 0x760   : > { %5408 = vst.msk [vmem:[#allocation5 + $0x110] sm:$0xff] %vm1017_vm10, %v5330_v61  ;;  %5815 = vmatpush.msrb.mxu1 %v5694_v39 }
 0x761   : > { %5481 = vrot.lane.b32.xlu1 %v14902_v41, %s14644_s2 }
 0x762   : > { %5473 = vrot.lane.b32.xlu0 %v14901_v31, %s14644_s2  ;;  %5816 = vmatpush.msrb.mxu1 %v5693_v57  ;;  %v5425_v57 = vrot.slane %v12524_v9, 1  ;;  %v12768_v9 = vld [vmem:[%s14309_s12] ss:$0 sm:$0xff] }
 0x764   : > { %v5320_v56 = vpop.permute.xlu0 %5319  ;;  %5817 = vmatpush.msrb.mxu1 %v5692_v38 }
 0x765   : > { %5403 = vst.msk [vmem:[#allocation5 + $0xc0] sm:$0xff] %vm1017_vm10, %v5320_v56  ;;  %5471 = vrot.lane.b32.xlu2 %v14903_v18, %s14644_s2  ;;  %v5328_v30 = vpop.permute.xlu1 %5327 }
 0x766   : > { %5407 = vst.msk [vmem:[#allocation5 + $0x100] sm:$0xff] %vm1017_vm10, %v5328_v30  ;;  %5818 = vmatpush.msrb.mxu1 %v5691_v11 }
 0x767   : > { %v5336_v3 = vpop.permute.xlu2 %5335 }
 0x768   : > { %5411 = vst.msk [vmem:[#allocation5 + $0x140] sm:$0xff] %vm1017_vm10, %v5336_v3  ;;  %5819 = vmatpush.msrb.mxu1 %v5690_v62 }
 0x769   : > { %5487 = vrot.lane.b32.xlu1 %v12367_v1, %s14644_s2 }
 0x76a   : > { %5479 = vrot.lane.b32.xlu0 %v14872_v17, %s14644_s2 }
 0x76c   : > { %v5326_v63 = vpop.permute.xlu0 %5325 }
 0x76d   : > { %5406 = vst.msk [vmem:[#allocation5 + $0xf0] sm:$0xff] %vm1017_vm10, %v5326_v63  ;;  %5477 = vrot.lane.b32.xlu2 %v14904_v34, %s14644_s2  ;;  %v5334_v17 = vpop.permute.xlu1 %5333  ;;  %v4399_v63 = vld [vmem:[#allocation4 + $0x1a8] sm:$0x3] }
 0x76e   : > { %5410 = vst.msk [vmem:[#allocation5 + $0x130] sm:$0xff] %vm1017_vm10, %v5334_v17  ;;  %v5427_v11 = vrot.slane %v4399_v63, 1  ;;  %v5560_v62 = vrot.slane %v4399_v63, 2 }
 0x76f   : > { %v5342_v0 = vpop.permute.xlu2 %5341 }
 0x770   : > { %5414 = vst.msk [vmem:[#allocation5 + $0x170] sm:$0xff] %vm1017_vm10, %v5342_v0  ;;  %v5428_v34 = vsel %vm769_vm3, %v5425_v57, %v5427_v11  ;;  %v5561_v17 = vsel %vm827_vm2, %v5558_v29, %v5560_v62 }
 0x771   : > { %5625 = vst.msk [vmem:[#allocation5 + $0x1f8] sm:$0xff] %vm638_vm4, %v5561_v17  ;;  %v14915_v17 = vld [vmem:[#allocation45_spill] sm:$0xff] }
 0x772   : > { %5485 = vrot.lane.b32.xlu0 %v12376_v47, %s14644_s2 }
 0x774   : > { %v5332_v1 = vpop.permute.xlu0 %5331 }
 0x775   : > { %5409 = vst.msk [vmem:[#allocation5 + $0x120] sm:$0xff] %vm1017_vm10, %v5332_v1  ;;  %5483 = vrot.lane.b32.xlu2 %v14905_v36, %s14644_s2  ;;  %v5340_v54 = vpop.permute.xlu1 %5339  ;;  %v5424_v36 = vrot.slane %v12529_v13, 1 }
 0x776   : > { %5413 = vst.msk [vmem:[#allocation5 + $0x160] sm:$0xff] %vm1017_vm10, %v5340_v54 }
 0x777   : > { %v5348_v14 = vpop.permute.xlu2 %5347  ;;  %v5426_v54 = vsel %vm769_vm3, %v5424_v36, %v5425_v57 }
 0x778   : > { %5417 = vst.msk [vmem:[#allocation5 + $0x1a0] sm:$0xff] %vm1017_vm10, %v5348_v14  ;;  %v12770_v14 = vld [vmem:[#allocation4] sm:$0xff] }
 0x77a   : > { %5491 = vrot.lane.b32.xlu0 %v5428_v34, %s14644_s2 }
 0x77c   : > { %v5338_v6 = vpop.permute.xlu0 %5337 }
 0x77d   : > { %5412 = vst.msk [vmem:[#allocation5 + $0x150] sm:$0xff] %vm1017_vm10, %v5338_v6  ;;  %v5346_v24 = vpop.permute.xlu1 %5345  ;;  %5489 = vrot.lane.b32.xlu2 %v5426_v54, %s14644_s2  ;;  %v12772_v6 = vld [vmem:[#allocation4 + $0x8] sm:$0xff]  ;;  %s14908_s2 = smov 8  }
 0x77e   : > { %5416 = vst.msk [vmem:[#allocation5 + $0x190] sm:$0xff] %vm1017_vm10, %v5346_v24  ;;  %v6264_v24 = vrot.slane %v12770_v14, 1  ;;  %v6265_v13 = vrot.slane %v12772_v6, 1 }
 0x77f   : > { %v5354_v50 = vpop.permute.xlu2 %5353 }
 0x780   : > { %5420 = vst.msk [vmem:[#allocation5 + $0x1d0] sm:$0xff] %vm1017_vm10, %v5354_v50 }
 0x784   : > { %v5344_v47 = vpop.permute.xlu0 %5343 }
 0x785   : > { %5415 = vst.msk [vmem:[#allocation5 + $0x180] sm:$0xff] %vm1017_vm10, %v5344_v47  ;;  %v5352_v58 = vpop.permute.xlu1 %5351  ;;  %v14906_v47 = vld [vmem:[#allocation24_spill] sm:$0xff] }
 0x786   : > { %5419 = vst.msk [vmem:[#allocation5 + $0x1c0] sm:$0xff] %vm1017_vm10, %v5352_v58  ;;  %v4282_v58 = vadd.f32 %v12768_v9, %v14906_v47 }
 0x787   : > { %v5430_v22 = vpop.permute.xlu2 %5429 }
 0x788   : > { %5525 = vst.msk [vmem:[#allocation5] sm:$0xff] %vm1054_vm11, %v5430_v22  ;;  %v14907_v22 = vld [vmem:[#allocation58_spill] sm:$0xff] }
 0x78c   : > { %v5350_v59 = vpop.permute.xlu0 %5349 }
 0x78d   : > { %5418 = vst.msk [vmem:[#allocation5 + $0x1b0] sm:$0xff] %vm1017_vm10, %v5350_v59  ;;  %v5358_v51 = vpop.permute.xlu1 %5357 }
 0x78e   : > { %5422 = vst.msk [vmem:[#allocation5 + $0x1f0] sm:$0xff] %vm1017_vm10, %v5358_v51  ;;  %v6266_v51 = vsel %vm769_vm3, %v6264_v24, %v6265_v13 }
 0x78f   : > { %v5436_v45 = vpop.permute.xlu2 %5435  ;;  %v5626_v27 = vld [vmem:[#allocation5] sm:$0xff]  ;;  %6344 = vrot.lane.b32.xlu1 %v6266_v51, %s14908_s2 }
 0x790   : > { %5528 = vst.msk [vmem:[#allocation5 + $0x30] sm:$0xff] %vm1054_vm11, %v5436_v45  ;;  %5820 = vmatmul.f32.vlgmr.msrb.gmra.mxu1 %v5626_v27 }
 0x791   : > { %6184 = vst.msk [vmem:[#allocation5] sm:$0xff] %vm2646_vm1, %v12770_v14 }
 0x794   : > { %v5356_v52 = vpop.permute.xlu0 %5355 }
 0x795   : > { %5421 = vst.msk [vmem:[#allocation5 + $0x1e0] sm:$0xff] %vm1017_vm10, %v5356_v52  ;;  %v5434_v7 = vpop.permute.xlu1 %5433  ;;  %vm14946_vm10 = vmmov %vm14942_vm6 }
 0x796   : > { %5527 = vst.msk [vmem:[#allocation5 + $0x20] sm:$0xff] %vm1054_vm11, %v5434_v7  ;;  %v12786_v7 = vpop.f32.mrf.mxu3 }
 0x797   : > { %v5442_v46 = vpop.permute.xlu2 %5441  ;;  %v5632_v32 = vld [vmem:[#allocation5 + $0x30] sm:$0xff] }
 0x798   : > { %5531 = vst.msk [vmem:[#allocation5 + $0x60] sm:$0xff] %vm1054_vm11, %v5442_v46 }
 0x79c   : > { %v5432_v15 = vpop.permute.xlu0 %5431 }
 0x79d   : > { %5526 = vst.msk [vmem:[#allocation5 + $0x10] sm:$0xff] %vm1054_vm11, %v5432_v15  ;;  %v5440_v20 = vpop.permute.xlu1 %5439  ;;  %v5630_v60 = vld [vmem:[#allocation5 + $0x20] sm:$0xff] }
 0x79e   : > { %5530 = vst.msk [vmem:[#allocation5 + $0x50] sm:$0xff] %vm1054_vm11, %v5440_v20  ;;  %v12790_v20 = vld [vmem:[#allocation4 + $0x10] sm:$0x3] }
 0x79f   : > { %v5448_v55 = vpop.permute.xlu2 %5447  ;;  %v5638_v25 = vld [vmem:[#allocation5 + $0x60] sm:$0xff] }
 0x7a0   : > { %5534 = vst.msk [vmem:[#allocation5 + $0x90] sm:$0xff] %vm1054_vm11, %v5448_v55  ;;  %v6267_v55 = vrot.slane %v12790_v20, 1 }
 0x7a4   : > { %v5438_v48 = vpop.permute.xlu0 %5437  ;;  %v5628_v10 = vld [vmem:[#allocation5 + $0x10] sm:$0xff] }
 0x7a5   : > { %5529 = vst.msk [vmem:[#allocation5 + $0x40] sm:$0xff] %vm1054_vm11, %v5438_v48  ;;  %5823 = vmatmul.f32.gmra.mxu1 %v5628_v10  ;;  %v5446_v26 = vpop.permute.xlu1 %5445  ;;  %v5636_v23 = vld [vmem:[#allocation5 + $0x50] sm:$0xff]  ;;  %v6268_v48 = vsel %vm769_vm3, %v6265_v13, %v6267_v55 }
 0x7a6   : > { %5533 = vst.msk [vmem:[#allocation5 + $0x80] sm:$0xff] %vm1054_vm11, %v5446_v26  ;;  %6346 = vrot.lane.b32.xlu2 %v6268_v48, %s14908_s2  ;;  %v12797_v26 = vpop.f32.mrf.mxu3 }
 0x7a7   : > { %v5454_v42 = vpop.permute.xlu2 %5453  ;;  %v5644_v30 = vld [vmem:[#allocation5 + $0x90] sm:$0xff]  ;;  %6185 = vst.msk [vmem:[#allocation5 + $0x10] sm:$0xff] %vm2646_vm1, %v12772_v6 }
 0x7a8   : > { %5537 = vst.msk [vmem:[#allocation5 + $0xc0] sm:$0xff] %vm1054_vm11, %v5454_v42  ;;  %v14909_v42 = vld [vmem:[#allocation9_spill] sm:$0xff] }
 0x7ac   : > { %v5444_v49 = vpop.permute.xlu0 %5443  ;;  %v5634_v12 = vld [vmem:[#allocation5 + $0x40] sm:$0xff] }
 0x7ad   : > { %5532 = vst.msk [vmem:[#allocation5 + $0x70] sm:$0xff] %vm1054_vm11, %v5444_v49  ;;  %5826 = vmatmul.f32.gmra.mxu1 %v5630_v60  ;;  %v5452_v43 = vpop.permute.xlu1 %5451  ;;  %v5642_v8 = vld [vmem:[#allocation5 + $0x80] sm:$0xff]  ;;  %v4283_v49 = vadd.f32 %v12768_v9, %v14909_v42  ;;  %v14910_v60 = vld [vmem:[#allocation60_spill] sm:$0xff] }
 0x7ae   : > { %5536 = vst.msk [vmem:[#allocation5 + $0xb0] sm:$0xff] %vm1054_vm11, %v5452_v43 }
 0x7af   : > { %v5460_v16 = vpop.permute.xlu2 %5459  ;;  %v5650_v0 = vld [vmem:[#allocation5 + $0xc0] sm:$0xff] }
 0x7b0   : > { %5540 = vst.msk [vmem:[#allocation5 + $0xf0] sm:$0xff] %vm1054_vm11, %v5460_v16 }
 0x7b4   : > { %v5450_v40 = vpop.permute.xlu0 %5449  ;;  %v5640_v31 = vld [vmem:[#allocation5 + $0x70] sm:$0xff] }
 0x7b5   : > { %5535 = vst.msk [vmem:[#allocation5 + $0xa0] sm:$0xff] %vm1054_vm11, %v5450_v40  ;;  %5829 = vmatmul.f32.gmra.mxu1 %v5632_v32  ;;  %v5458_v2 = vpop.permute.xlu1 %5457  ;;  %v5648_v38 = vld [vmem:[#allocation5 + $0xb0] sm:$0xff] }
 0x7b6   : > { %5539 = vst.msk [vmem:[#allocation5 + $0xe0] sm:$0xff] %vm1054_vm11, %v5458_v2  ;;  %v12802_v2 = vpop.f32.mrf.mxu2 }
 0x7b7   : > { %v5466_v44 = vpop.permute.xlu2 %5465  ;;  %v5656_v52 = vld [vmem:[#allocation5 + $0xf0] sm:$0xff] }
 0x7b8   : > { %5543 = vst.msk [vmem:[#allocation5 + $0x120] sm:$0xff] %vm1054_vm11, %v5466_v44 }
 0x7bc   : > { %v5456_v37 = vpop.permute.xlu0 %5455  ;;  %v5646_v3 = vld [vmem:[#allocation5 + $0xa0] sm:$0xff] }
 0x7bd   : > { %5538 = vst.msk [vmem:[#allocation5 + $0xd0] sm:$0xff] %vm1054_vm11, %v5456_v37  ;;  %5832 = vmatmul.f32.gmra.mxu1 %v5634_v12  ;;  %v5464_v35 = vpop.permute.xlu1 %5463  ;;  %v5654_v29 = vld [vmem:[#allocation5 + $0xe0] sm:$0xff]  ;;  %v14911_v37 = vld [vmem:[#allocation20_spill] sm:$0xff] }
 0x7be   : > { %5542 = vst.msk [vmem:[#allocation5 + $0x110] sm:$0xff] %vm1054_vm11, %v5464_v35  ;;  %v4284_v12 = vadd.f32 %v12768_v9, %v14911_v37  ;;  %v14912_v35 = vld [vmem:[#allocation63_spill] sm:$0xff] }
 0x7bf   : > { %v5472_v33 = vpop.permute.xlu2 %5471 }
 0x7c0   : > { %5546 = vst.msk [vmem:[#allocation5 + $0x150] sm:$0xff] %vm1054_vm11, %v5472_v33 }
 0x7c4   : > { %v5462_v19 = vpop.permute.xlu0 %5461  ;;  %v5652_v1 = vld [vmem:[#allocation5 + $0xd0] sm:$0xff] }
 0x7c5   : > { %5541 = vst.msk [vmem:[#allocation5 + $0x100] sm:$0xff] %vm1054_vm11, %v5462_v19  ;;  %5835 = vmatmul.f32.gmra.mxu1 %v5636_v23  ;;  %v5470_v4 = vpop.permute.xlu1 %5469  ;;  %v5660_v16 = vld [vmem:[#allocation5 + $0x110] sm:$0xff]  ;;  %v5662_v19 = vld [vmem:[#allocation5 + $0x120] sm:$0xff]  ;;  %v12808_v23 = vpop.f32.mrf.mxu3 }
 0x7c6   : > { %5545 = vst.msk [vmem:[#allocation5 + $0x140] sm:$0xff] %vm1054_vm11, %v5470_v4 }
 0x7c7   : > { %v5478_v53 = vpop.permute.xlu2 %5477  ;;  %v5668_v42 = vld [vmem:[#allocation5 + $0x150] sm:$0xff] }
 0x7c8   : > { %5549 = vst.msk [vmem:[#allocation5 + $0x180] sm:$0xff] %vm1054_vm11, %v5478_v53 }
 0x7cc   : > { %v5468_v5 = vpop.permute.xlu0 %5467  ;;  %v5658_v46 = vld [vmem:[#allocation5 + $0x100] sm:$0xff] }
 0x7cd   : > { %5544 = vst.msk [vmem:[#allocation5 + $0x130] sm:$0xff] %vm1054_vm11, %v5468_v5  ;;  %5838 = vmatmul.f32.gmra.mxu1 %v5638_v25  ;;  %v5476_v61 = vpop.permute.xlu1 %5475  ;;  %v12835_v63 = vpop.f32.mrf.mxu3  ;;  %v5666_v54 = vld [vmem:[#allocation5 + $0x140] sm:$0xff] }
 0x7ce   : > { %5548 = vst.msk [vmem:[#allocation5 + $0x170] sm:$0xff] %vm1054_vm11, %v5476_v61 }
 0x7cf   : > { %v5484_v28 = vpop.permute.xlu2 %5483 }
 0x7d0   : > { %5552 = vst.msk [vmem:[#allocation5 + $0x1b0] sm:$0xff] %vm1054_vm11, %v5484_v28 }
 0x7d4   : > { %v5474_v21 = vpop.permute.xlu0 %5473  ;;  %v5664_v57 = vld [vmem:[#allocation5 + $0x130] sm:$0xff] }
 0x7d5   : > { %5547 = vst.msk [vmem:[#allocation5 + $0x160] sm:$0xff] %vm1054_vm11, %v5474_v21  ;;  %5841 = vmatmul.f32.gmra.mxu1 %v5640_v31  ;;  %v5482_v56 = vpop.permute.xlu1 %5481 }
 0x7d6   : > { %5551 = vst.msk [vmem:[#allocation5 + $0x1a0] sm:$0xff] %vm1054_vm11, %v5482_v56  ;;  %v14913_v56 = vld [vmem:[#allocation11_spill] sm:$0xff] }
 0x7dc   : > { %v5480_v41 = vpop.permute.xlu0 %5479 }
 0x7dd   : > { %5550 = vst.msk [vmem:[#allocation5 + $0x190] sm:$0xff] %vm1054_vm11, %v5480_v41  ;;  %5844 = vmatmul.f32.gmra.mxu1 %v5642_v8  ;;  %v5488_v39 = vpop.permute.xlu1 %5487  ;;  %v4285_v41 = vadd.f32 %v12768_v9, %v14913_v56  ;;  %v12822_v8 = vpop.f32.mrf.mxu2 }
 0x7de   : > { %5554 = vst.msk [vmem:[#allocation5 + $0x1d0] sm:$0xff] %vm1054_vm11, %v5488_v39  ;;  %v14914_v39 = vld [vmem:[#allocation66_spill] sm:$0xff] }
 0x7e4   : > { %v5486_v18 = vpop.permute.xlu0 %5485 }
 0x7e5   : > { %5553 = vst.msk [vmem:[#allocation5 + $0x1c0] sm:$0xff] %vm1054_vm11, %v5486_v18  ;;  %5847 = vmatmul.f32.gmra.mxu1 %v5644_v30 }
 0x7ed   : > { %5850 = vmatmul.f32.gmra.mxu1 %v5646_v3 }
 0x7f5   : > { %5853 = vmatmul.f32.gmra.mxu1 %v5648_v38 }
 0x7fd   : > { %5856 = vmatmul.f32.gmra.mxu1 %v5650_v0  ;;  %v4286_v0 = vadd.f32 %v12768_v9, %v14915_v17 }
 0x805   : > { %5859 = vmatmul.f32.gmra.mxu1 %v5652_v1  ;;  %v14916_v1 = vld [vmem:[#allocation38_spill] sm:$0xff] }
 0x80d   : > { %5862 = vmatmul.f32.gmra.mxu1 %v5654_v29  ;;  %v5821_v50 = vpop.f32.mrf.mxu1  ;;  %v12845_v29 = vpop.f32.mrf.mxu2 }
 0x80e   : > { %v5935_v59 = vadd.f32 %v14907_v22, %v5821_v50 }
 0x810   : > { %v6030_v45 = vadd.f32 %v5935_v59, %v4282_v58  ;;  %v12851_v58 = vpop.f32.mrf.mxu3 }
 0x812   : > { %v6062_v27 = vmax.f32 %v6030_v45, 0.0 }
 0x814   : > { %6098 = vst.msk [vmem:[#allocation4 + $0x19] sm:$0xff] %vm2646_vm1, %v6062_v27  ;;  %v14917_v27 = vld [vmem:[#allocation40_spill] sm:$0xff] }
 0x815   : > { %5865 = vmatmul.f32.gmra.mxu1 %v5656_v52  ;;  %v4287_v52 = vadd.f32 %v12768_v9, %v14917_v27 }
 0x81b   : > { %v12788_v15 = vld [vmem:[#allocation4 + $0x18] sm:$0xff] }
 0x81c   : > { %6186 = vst.msk [vmem:[#allocation5 + $0x20] sm:$0xff] %vm2646_vm1, %v12788_v15  ;;  %v6269_v21 = vrot.slane %v12788_v15, 1 }
 0x81d   : > { %5868 = vmatmul.f32.gmra.mxu1 %v5658_v46  ;;  %v14918_v46 = vld [vmem:[#allocation15_spill] sm:$0xff] }
 0x822   : > { %v5824_v10 = vpop.f32.mrf.mxu1 }
 0x823   : > { %v5938_v43 = vadd.f32 %v14910_v60, %v5824_v10  ;;  %v12872_v60 = vpop.f32.mrf.mxu2 }
 0x825   : > { %v6031_v40 = vadd.f32 %v5938_v43, %v4283_v49  ;;  %5871 = vmatmul.f32.gmra.mxu1 %v5660_v16 }
 0x827   : > { %v6063_v32 = vmax.f32 %v6031_v40, 0.0 }
 0x829   : > { %6099 = vst.msk [vmem:[#allocation4 + $0x21] sm:$0xff] %vm2646_vm1, %v6063_v32  ;;  %v12879_v32 = vpop.f32.mrf.mxu3 }
 0x82a   : > { %v5827_v44 = vpop.f32.mrf.mxu1 }
 0x82b   : > { %v5941_v33 = vadd.f32 %v14912_v35, %v5827_v44  ;;  %v14919_v44 = vld [vmem:[#allocation49_spill] sm:$0xff]  ;;  %v5670_v35 = vld [vmem:[#allocation5 + $0x160] sm:$0xff] }
 0x82c   : > { %v4288_v37 = vadd.f32 %v12768_v9, %v14919_v44 }
 0x82d   : > { %v6032_v4 = vadd.f32 %v5941_v33, %v4284_v12  ;;  %5874 = vmatmul.f32.gmra.mxu1 %v5662_v19 }
 0x82f   : > { %v6064_v53 = vmax.f32 %v6032_v4, 0.0 }
 0x830   : > { %v12810_v5 = vld [vmem:[#allocation4 + $0x20] sm:$0xff]  ;;  %v12812_v25 = vld [vmem:[#allocation4 + $0x28] sm:$0x3] }
 0x831   : > { %6100 = vst.msk [vmem:[#allocation4 + $0x31] sm:$0xff] %vm2646_vm1, %v6064_v53  ;;  %v6270_v61 = vrot.slane %v12810_v5, 1  ;;  %v6272_v28 = vrot.slane %v12812_v25, 1 }
 0x832   : > { %v5830_v31 = vpop.f32.mrf.mxu1  ;;  %6187 = vst.msk [vmem:[#allocation5 + $0x30] sm:$0xff] %vm2646_vm1, %v12810_v5 }
 0x833   : > { %v5944_v18 = vadd.f32 %v14914_v39, %v5830_v31  ;;  %v12826_v30 = vsel %vm769_vm3, %v6270_v61, %v6272_v28  ;;  %v12829_v3 = vsel %vm769_vm3, %v6269_v21, %v6270_v61  ;;  %v12888_v61 = vpop.f32.mrf.mxu2 }
 0x834   : > { %6350 = vrot.lane.b32.xlu1 %v12826_v30, %s14908_s2  ;;  %6348 = vrot.lane.b32.xlu0 %v12829_v3, %s14908_s2 }
 0x835   : > { %v6033_v38 = vadd.f32 %v5944_v18, %v4285_v41  ;;  %5877 = vmatmul.f32.gmra.mxu1 %v5664_v57 }
 0x837   : > { %v6065_v11 = vmax.f32 %v6033_v38, 0.0  ;;  %v5672_v38 = vld [vmem:[#allocation5 + $0x170] sm:$0xff] }
 0x838   : > { %v12837_v62 = vld [vmem:[#allocation4 + $0x30] sm:$0xff] }
 0x839   : > { %6101 = vst.msk [vmem:[#allocation4 + $0x39] sm:$0xff] %vm2646_vm1, %v6065_v11  ;;  %v6274_v51 = vrot.slane %v12837_v62, 1  ;;  %v12909_v11 = vpop.f32.mrf.mxu3 }
 0x83a   : > { %v5833_v34 = vpop.f32.mrf.mxu1  ;;  %6188 = vst.msk [vmem:[#allocation5 + $0x40] sm:$0xff] %vm2646_vm1, %v12837_v62 }
 0x83b   : > { %v5947_v36 = vadd.f32 %v14916_v1, %v5833_v34  ;;  %v4290_v1 = vadd.f32 %v12768_v9, %v12802_v2 }
 0x83d   : > { %v6034_v24 = vadd.f32 %v5947_v36, %v4286_v0  ;;  %5880 = vmatmul.f32.gmra.mxu1 %v5666_v54  ;;  %v12918_v36 = vpop.f32.mrf.mxu2 }
 0x83f   : > { %v6066_v13 = vmax.f32 %v6034_v24, 0.0  ;;  %v5674_v24 = vld [vmem:[#allocation5 + $0x180] sm:$0xff] }
 0x840   : > { %v12847_v50 = vld [vmem:[#allocation4 + $0x38] sm:$0xff]  ;;  %v12849_v47 = vld [vmem:[#allocation4 + $0x40] sm:$0x3] }
 0x841   : > { %6102 = vst.msk [vmem:[#allocation4 + $0x49] sm:$0xff] %vm2646_vm1, %v6066_v13  ;;  %v6275_v22 = vrot.slane %v12847_v50, 1  ;;  %v6277_v59 = vrot.slane %v12849_v47, 1 }
 0x842   : > { %v5836_v45 = vpop.f32.mrf.mxu1  ;;  %6189 = vst.msk [vmem:[#allocation5 + $0x50] sm:$0xff] %vm2646_vm1, %v12847_v50 }
 0x843   : > { %v5950_v55 = vadd.f32 %v14918_v46, %v5836_v45  ;;  %v12863_v48 = vsel %vm769_vm3, %v6275_v22, %v6277_v59  ;;  %v12866_v10 = vsel %vm769_vm3, %v6274_v51, %v6275_v22  ;;  %v12921_v22 = vpop.f32.mrf.mxu3 }
 0x844   : > { %6354 = vrot.lane.b32.xlu0 %v12863_v48, %s14908_s2  ;;  %6352 = vrot.lane.b32.xlu2 %v12866_v10, %s14908_s2 }
 0x845   : > { %v6035_v49 = vadd.f32 %v5950_v55, %v4287_v52  ;;  %5883 = vmatmul.f32.gmra.mxu1 %v5668_v42 }
 0x847   : > { %v6067_v43 = vmax.f32 %v6035_v49, 0.0 }
 0x848   : > { %v12874_v16 = vld [vmem:[#allocation4 + $0x48] sm:$0xff] }
 0x849   : > { %6103 = vst.msk [vmem:[#allocation4 + $0x51] sm:$0xff] %vm2646_vm1, %v6067_v43  ;;  %v6279_v31 = vrot.slane %v12874_v16, 1  ;;  %v5676_v43 = vld [vmem:[#allocation5 + $0x190] sm:$0xff] }
 0x84a   : > { %v5839_v40 = vpop.f32.mrf.mxu1  ;;  %6190 = vst.msk [vmem:[#allocation5 + $0x60] sm:$0xff] %vm2646_vm1, %v12874_v16 }
 0x84b   : > { %v5953_v12 = vadd.f32 %v12786_v7, %v5839_v40  ;;  %v14920_v7 = vld [vmem:[#allocation48_spill] sm:$0xff]  ;;  %v12946_v40 = vpop.f32.mrf.mxu2 }
 0x84c   : > { %v4289_v41 = vadd.f32 %v12768_v9, %v14920_v7 }
 0x84d   : > { %v6036_v33 = vadd.f32 %v5953_v12, %v4288_v37  ;;  %5886 = vmatmul.f32.gmra.mxu1 %v5670_v35  ;;  %v12950_v12 = vpop.f32.mrf.mxu3  ;;  %v5687_v35 = vld [vmem:[#allocation5 + $0x1e8] sm:$0xff] }
 0x84e   : > { %8159 = vmatmul.msk.f32.gmra.mxu3 %vm638_vm4, %v5687_v35 }
 0x84f   : > { %v6068_v19 = vmax.f32 %v6036_v33, 0.0 }
 0x850   : > { %v12884_v4 = vld [vmem:[#allocation4 + $0x50] sm:$0xff]  ;;  %v12886_v53 = vld [vmem:[#allocation4 + $0x58] sm:$0x3] }
 0x851   : > { %6104 = vst.msk [vmem:[#allocation4 + $0x61] sm:$0xff] %vm2646_vm1, %v6068_v19  ;;  %v6280_v28 = vrot.slane %v12884_v4, 1  ;;  %v6282_v21 = vrot.slane %v12886_v53, 1  ;;  %v4292_v19 = vadd.f32 %v12768_v9, %v12845_v29 }
 0x852   : > { %v5842_v56 = vpop.f32.mrf.mxu1  ;;  %6191 = vst.msk [vmem:[#allocation5 + $0x70] sm:$0xff] %vm2646_vm1, %v12884_v4 }
 0x853   : > { %v5956_v39 = vadd.f32 %v12797_v26, %v5842_v56  ;;  %v12900_v18 = vsel %vm769_vm3, %v6280_v28, %v6282_v21  ;;  %v12903_v57 = vsel %vm769_vm3, %v6279_v31, %v6280_v28  ;;  %v5678_v21 = vld [vmem:[#allocation5 + $0x1a0] sm:$0xff]  ;;  %v12960_v56 = vpop.f32.mrf.mxu2 }
 0x854   : > { %6358 = vrot.lane.b32.xlu2 %v12900_v18, %s14908_s2  ;;  %6356 = vrot.lane.b32.xlu1 %v12903_v57, %s14908_s2 }
 0x855   : > { %v6037_v34 = vadd.f32 %v5956_v39, %v4289_v41  ;;  %5889 = vmatmul.f32.gmra.mxu1 %v5672_v38  ;;  %v5492_v38 = vpop.permute.xlu0 %5491 }
 0x856   : > { %5556 = vst.msk [vmem:[#allocation5 + $0x1f0] sm:$0xff] %vm1054_vm11, %v5492_v38 }
 0x857   : > { %v6069_v17 = vmax.f32 %v6037_v34, 0.0 }
 0x858   : > { %v12911_v0 = vld [vmem:[#allocation4 + $0x60] sm:$0xff] }
 0x859   : > { %6105 = vst.msk [vmem:[#allocation4 + $0x69] sm:$0xff] %vm2646_vm1, %v6069_v17  ;;  %v6284_v52 = vrot.slane %v12911_v0, 1  ;;  %v5689_v17 = vld [vmem:[#allocation5 + $0x1f8] sm:$0xff] }
 0x85a   : > { %v5845_v26 = vpop.f32.mrf.mxu1  ;;  %6192 = vst.msk [vmem:[#allocation5 + $0x80] sm:$0xff] %vm2646_vm1, %v12911_v0  ;;  %8160 = vmatmul.msk.f32.gmra.mxu3 %vm638_vm4, %v5689_v17  ;;  %v5684_v17 = vld [vmem:[#allocation5 + $0x1d0] sm:$0xff]  ;;  %vm14940_vm4 = vcmask 261312  }
 0x85b   : > { %v5959_v54 = vadd.f32 %v12808_v23, %v5845_v26  ;;  %v4291_v23 = vadd.f32 %v12768_v9, %v12822_v8  ;;  %vm14941_vm5 = vmmov %vm14940_vm4 }
 0x85c   : > { %vm14945_vm9 = vmmov %vm14940_vm4 }
 0x85d   : > { %v6038_v13 = vadd.f32 %v5959_v54, %v4290_v1  ;;  %5892 = vmatmul.f32.gmra.mxu1 %v5674_v24  ;;  %v12973_v1 = vpop.f32.mrf.mxu3  ;;  %v4293_v54 = vadd.f32 %v12768_v9, %v12872_v60 }
 0x85f   : > { %v6070_v59 = vmax.f32 %v6038_v13, 0.0 }
 0x860   : > { %v12923_v51 = vld [vmem:[#allocation4 + $0x68] sm:$0xff]  ;;  %v12925_v45 = vld [vmem:[#allocation4 + $0x70] sm:$0x3] }
 0x861   : > { %6106 = vst.msk [vmem:[#allocation4 + $0x79] sm:$0xff] %vm2646_vm1, %v6070_v59  ;;  %v6285_v27 = vrot.slane %v12923_v51, 1  ;;  %v6287_v2 = vrot.slane %v12925_v45, 1 }
 0x862   : > { %v5848_v46 = vpop.f32.mrf.mxu1  ;;  %6193 = vst.msk [vmem:[#allocation5 + $0x90] sm:$0xff] %vm2646_vm1, %v12923_v51 }
 0x863   : > { %v5962_v55 = vadd.f32 %v12835_v63, %v5848_v46  ;;  %v12937_v42 = vsel %vm769_vm3, %v6285_v27, %v6287_v2  ;;  %v12940_v49 = vsel %vm769_vm3, %v6284_v52, %v6285_v27  ;;  %v5490_v63 = vpop.permute.xlu2 %5489  ;;  %v5680_v27 = vld [vmem:[#allocation5 + $0x1b0] sm:$0xff] }
 0x864   : > { %6362 = vrot.lane.b32.xlu1 %v12937_v42, %s14908_s2  ;;  %6360 = vrot.lane.b32.xlu0 %v12940_v49, %s14908_s2  ;;  %5555 = vst.msk [vmem:[#allocation5 + $0x1e0] sm:$0xff] %vm1054_vm11, %v5490_v63  ;;  %vm14947_vm11 = vmmov %vm14943_vm7 }
 0x865   : > { %v6039_v44 = vadd.f32 %v5962_v55, %v4291_v23  ;;  %5895 = vmatmul.f32.gmra.mxu1 %v5676_v43  ;;  %v4294_v55 = vadd.f32 %v12768_v9, %v12888_v61 }
 0x867   : > { %v6071_v8 = vmax.f32 %v6039_v44, 0.0  ;;  %v5682_v44 = vld [vmem:[#allocation5 + $0x1c0] sm:$0xff] }
 0x868   : > { %v12948_v37 = vld [vmem:[#allocation4 + $0x78] sm:$0xff] }
 0x869   : > { %6107 = vst.msk [vmem:[#allocation4 + $0x81] sm:$0xff] %vm2646_vm1, %v6071_v8  ;;  %v13000_v8 = vpop.f32.mrf.mxu3 }
 0x86a   : > { %v5851_v33 = vpop.f32.mrf.mxu1  ;;  %6194 = vst.msk [vmem:[#allocation5 + $0xa0] sm:$0xff] %vm2646_vm1, %v12948_v37 }
 0x86b   : > { %v5965_v28 = vadd.f32 %v12851_v58, %v5851_v33  ;;  %v6289_v58 = vrot.slane %v12948_v37, 1  ;;  %v6347_v23 = vpop.permute.xlu2 %6346 }
 0x86c   : > { %6441 = vst.msk [vmem:[#allocation5 + $0x10] sm:$0xff] %vm2989_vm0, %v6347_v23 }
 0x86d   : > { %v6040_v31 = vadd.f32 %v5965_v28, %v4292_v19  ;;  %5898 = vmatmul.f32.gmra.mxu1 %v5678_v21 }
 0x86f   : > { %v6072_v7 = vmax.f32 %v6040_v31, 0.0  ;;  %v6345_v31 = vpop.permute.xlu1 %6344 }
 0x870   : > { %v12962_v41 = vld [vmem:[#allocation4 + $0x80] sm:$0xff]  ;;  %v12964_v39 = vld [vmem:[#allocation4 + $0x88] sm:$0x3]  ;;  %6440 = vst.msk [vmem:[#allocation5] sm:$0xff] %vm2989_vm0, %v6345_v31 }
 0x871   : > { %6108 = vst.msk [vmem:[#allocation4 + $0x91] sm:$0xff] %vm2646_vm1, %v6072_v7  ;;  %v6290_v34 = vrot.slane %v12962_v41, 1  ;;  %v6292_v29 = vrot.slane %v12964_v39, 1  ;;  %v4295_v7 = vadd.f32 %v12768_v9, %v12918_v36 }
 0x872   : > { %v5854_v26 = vpop.f32.mrf.mxu1  ;;  %6195 = vst.msk [vmem:[#allocation5 + $0xb0] sm:$0xff] %vm2646_vm1, %v12962_v41 }
 0x873   : > { %v5968_v24 = vadd.f32 %v12879_v32, %v5854_v26  ;;  %v12979_v13 = vsel %vm769_vm3, %v6290_v34, %v6292_v29  ;;  %v12982_v59 = vsel %vm769_vm3, %v6289_v58, %v6290_v34  ;;  %v12991_v32 = vpop.f32.mrf.mxu2  ;;  %v5985_v26 = vpop.f32.mrf.mxu3 }
 0x874   : > { %6366 = vrot.lane.b32.xlu0 %v12979_v13, %s14908_s2  ;;  %6364 = vrot.lane.b32.xlu2 %v12982_v59, %s14908_s2 }
 0x875   : > { %v6041_v2 = vadd.f32 %v5968_v24, %v4293_v54  ;;  %5901 = vmatmul.f32.gmra.mxu1 %v5680_v27  ;;  %v5686_v27 = vld [vmem:[#allocation5 + $0x1e0] sm:$0xff] }
 0x877   : > { %v6073_v60 = vmax.f32 %v6041_v2, 0.0  ;;  %v4296_v2 = vadd.f32 %v12768_v9, %v12946_v40 }
 0x878   : > { %v12989_v52 = vld [vmem:[#allocation4 + $0x90] sm:$0xff] }
 0x879   : > { %6109 = vst.msk [vmem:[#allocation4 + $0x99] sm:$0xff] %vm2646_vm1, %v6073_v60 }
 0x87a   : > { %v5857_v46 = vpop.f32.mrf.mxu1  ;;  %6196 = vst.msk [vmem:[#allocation5 + $0xc0] sm:$0xff] %vm2646_vm1, %v12989_v52 }
 0x87b   : > { %v5971_v43 = vadd.f32 %v12909_v11, %v5857_v46  ;;  %v6294_v11 = vrot.slane %v12989_v52, 1  ;;  %v13014_v38 = vpop.f32.mrf.mxu2 }
 0x87d   : > { %v6042_v63 = vadd.f32 %v5971_v43, %v4294_v55  ;;  %5904 = vmatmul.f32.gmra.mxu1 %v5682_v44 }
 0x87f   : > { %v6074_v35 = vmax.f32 %v6042_v63, 0.0  ;;  %v5988_v63 = vpop.f32.mrf.mxu3 }
 0x880   : > { %v13002_v33 = vld [vmem:[#allocation4 + $0x98] sm:$0xff]  ;;  %v13004_v19 = vld [vmem:[#allocation4 + $0xa0] sm:$0x3] }
 0x881   : > { %6110 = vst.msk [vmem:[#allocation4 + $0xa9] sm:$0xff] %vm2646_vm1, %v6074_v35  ;;  %v6295_v28 = vrot.slane %v13002_v33, 1  ;;  %v6297_v61 = vrot.slane %v13004_v19, 1 }
 0x882   : > { %v5860_v21 = vpop.f32.mrf.mxu1  ;;  %6197 = vst.msk [vmem:[#allocation5 + $0xd0] sm:$0xff] %vm2646_vm1, %v13002_v33 }
 0x883   : > { %v5974_v34 = vadd.f32 %v12921_v22, %v5860_v21  ;;  %v13018_v29 = vsel %vm769_vm3, %v6295_v28, %v6297_v61  ;;  %v13021_v58 = vsel %vm769_vm3, %v6294_v11, %v6295_v28  ;;  %v4240_v46 = vpop.f32.mrf.mxu2  ;;  %v4297_v11 = vadd.f32 %v12768_v9, %v12960_v56 }
 0x884   : > { %6370 = vrot.lane.b32.xlu2 %v13018_v29, %s14908_s2  ;;  %6368 = vrot.lane.b32.xlu1 %v13021_v58, %s14908_s2 }
 0x885   : > { %v6043_v36 = vadd.f32 %v5974_v34, %v4295_v7  ;;  %5907 = vmatmul.f32.gmra.mxu1 %v5684_v17 }
 0x887   : > { %v6075_v54 = vmax.f32 %v6043_v36, 0.0 }
 0x888   : > { %v13028_v22 = vld [vmem:[#allocation4 + $0xa8] sm:$0xff] }
 0x889   : > { %6111 = vst.msk [vmem:[#allocation4 + $0xb1] sm:$0xff] %vm2646_vm1, %v6075_v54  ;;  %v6299_v61 = vrot.slane %v13028_v22, 1 }
 0x88a   : > { %v5863_v24 = vpop.f32.mrf.mxu1  ;;  %6198 = vst.msk [vmem:[#allocation5 + $0xe0] sm:$0xff] %vm2646_vm1, %v13028_v22 }
 0x88b   : > { %v5977_v60 = vadd.f32 %v12950_v12, %v5863_v24  ;;  %v5688_v12 = vld [vmem:[#allocation5 + $0x1f0] sm:$0xff]  ;;  %v4243_v17 = vpop.f32.mrf.mxu2  ;;  %v4298_v24 = vadd.f32 %v12768_v9, %v12991_v32 }
 0x88d   : > { %v6044_v23 = vadd.f32 %v5977_v60, %v4296_v2  ;;  %5910 = vmatmul.f32.gmra.mxu1 %v5686_v27 }
 0x88f   : > { %v6076_v55 = vmax.f32 %v6044_v23, 0.0 }
 0x890   : > { %v13036_v43 = vld [vmem:[#allocation4 + $0xb0] sm:$0xff]  ;;  %v13038_v44 = vld [vmem:[#allocation4 + $0xb8] sm:$0x3] }
 0x891   : > { %6112 = vst.msk [vmem:[#allocation4 + $0xc1] sm:$0xff] %vm2646_vm1, %v6076_v55  ;;  %v6300_v35 = vrot.slane %v13036_v43, 1  ;;  %v6302_v28 = vrot.slane %v13038_v44, 1 }
 0x892   : > { %v5866_v40 = vpop.f32.mrf.mxu1  ;;  %6199 = vst.msk [vmem:[#allocation5 + $0xf0] sm:$0xff] %vm2646_vm1, %v13036_v43 }
 0x893   : > { %v5980_v21 = vadd.f32 %v12973_v1, %v5866_v40  ;;  %v13050_v31 = vsel %vm769_vm3, %v6300_v35, %v6302_v28  ;;  %v13053_v7 = vsel %vm769_vm3, %v6299_v61, %v6300_v35  ;;  %v5991_v1 = vpop.f32.mrf.mxu3  ;;  %v4246_v28 = vpop.f32.mrf.mxu2 }
 0x894   : > { %6374 = vrot.lane.b32.xlu1 %v13050_v31, %s14908_s2  ;;  %6372 = vrot.lane.b32.xlu0 %v13053_v7, %s14908_s2 }
 0x895   : > { %v6045_v34 = vadd.f32 %v5980_v21, %v4297_v11  ;;  %5913 = vmatmul.f32.gmra.mxu1 %v5688_v12 }
 0x897   : > { %v6077_v36 = vmax.f32 %v6045_v34, 0.0 }
 0x898   : > { %v13059_v54 = vld [vmem:[#allocation4 + $0xc0] sm:$0xff] }
 0x899   : > { %6113 = vst.msk [vmem:[#allocation4 + $0xc9] sm:$0xff] %vm2646_vm1, %v6077_v36  ;;  %v6304_v32 = vrot.slane %v13059_v54, 1 }
 0x89a   : > { %v5869_v56 = vpop.f32.mrf.mxu1  ;;  %6200 = vst.msk [vmem:[#allocation5 + $0x100] sm:$0xff] %vm2646_vm1, %v13059_v54 }
 0x89b   : > { %v5983_v27 = vadd.f32 %v13000_v8, %v5869_v56  ;;  %v4299_v8 = vadd.f32 %v12768_v9, %v13014_v38  ;;  %v5994_v36 = vpop.f32.mrf.mxu3 }
 0x89d   : > { %v6046_v2 = vadd.f32 %v5983_v27, %v4298_v24 }
 0x89e   : > { %v6353_v60 = vpop.permute.xlu2 %6352 }
 0x89f   : > { %v6078_v23 = vmax.f32 %v6046_v2, 0.0  ;;  %6444 = vst.msk [vmem:[#allocation5 + $0x40] sm:$0xff] %vm2989_vm0, %v6353_v60  ;;  %v4300_v60 = vadd.f32 %v12768_v9, %v4240_v46  ;;  %v4301_v46 = vadd.f32 %v12768_v9, %v4243_v17 }
 0x8a0   : > { %v13068_v55 = vld [vmem:[#allocation4 + $0xc8] sm:$0xff]  ;;  %v13070_v35 = vld [vmem:[#allocation4 + $0xd0] sm:$0x3] }
 0x8a1   : > { %6114 = vst.msk [vmem:[#allocation4 + $0xd9] sm:$0xff] %vm2646_vm1, %v6078_v23  ;;  %v6305_v61 = vrot.slane %v13068_v55, 1  ;;  %v6307_v40 = vrot.slane %v13070_v35, 1  ;;  %v4249_v23 = vpop.f32.mrf.mxu2 }
 0x8a2   : > { %v5872_v12 = vpop.f32.mrf.mxu1  ;;  %6201 = vst.msk [vmem:[#allocation5 + $0x110] sm:$0xff] %vm2646_vm1, %v13068_v55 }
 0x8a3   : > { %v5986_v11 = vadd.f32 %v5985_v26, %v5872_v12  ;;  %v13081_v21 = vsel %vm769_vm3, %v6305_v61, %v6307_v40  ;;  %v13084_v34 = vsel %vm769_vm3, %v6304_v32, %v6305_v61  ;;  %v5997_v12 = vpop.f32.mrf.mxu3 }
 0x8a4   : > { %14921 = vst [vmem:[#allocation56_spill] sm:$0xff] %v13081_v21  ;;  %6378 = vrot.lane.b32.xlu0 %v13081_v21, %s14908_s2  ;;  %6376 = vrot.lane.b32.xlu2 %v13084_v34, %s14908_s2 }
 0x8a5   : > { %v6047_v56 = vadd.f32 %v5986_v11, %v4299_v8 }
 0x8a6   : > { %v6351_v24 = vpop.permute.xlu1 %6350  ;;  %v6349_v27 = vpop.permute.xlu0 %6348 }
 0x8a7   : > { %v6079_v2 = vmax.f32 %v6047_v56, 0.0  ;;  %6443 = vst.msk [vmem:[#allocation5 + $0x30] sm:$0xff] %vm2989_vm0, %v6351_v24 }
 0x8a8   : > { %6442 = vst.msk [vmem:[#allocation5 + $0x20] sm:$0xff] %vm2989_vm0, %v6349_v27  ;;  %v13092_v38 = vld [vmem:[#allocation4 + $0xd8] sm:$0xff] }
 0x8a9   : > { %6115 = vst.msk [vmem:[#allocation4 + $0xe1] sm:$0xff] %vm2646_vm1, %v6079_v2  ;;  %v6309_v2 = vrot.slane %v13092_v38, 1 }
 0x8aa   : > { %v5875_v26 = vpop.f32.mrf.mxu1  ;;  %6202 = vst.msk [vmem:[#allocation5 + $0x120] sm:$0xff] %vm2646_vm1, %v13092_v38 }
 0x8ab   : > { %v5989_v61 = vadd.f32 %v5988_v63, %v5875_v26 }
 0x8ad   : > { %v6048_v40 = vadd.f32 %v5989_v61, %v4300_v60  ;;  %v4252_v61 = vpop.f32.mrf.mxu2 }
 0x8ae   : > { %v6359_v32 = vpop.permute.xlu2 %6358 }
 0x8af   : > { %v6080_v8 = vmax.f32 %v6048_v40, 0.0  ;;  %6447 = vst.msk [vmem:[#allocation5 + $0x70] sm:$0xff] %vm2989_vm0, %v6359_v32 }
 0x8b0   : > { %v13099_v11 = vld [vmem:[#allocation4 + $0xe0] sm:$0xff]  ;;  %v6159_v56 = vld [vmem:[#allocation4 + $0xe8] sm:$0x3] }
 0x8b1   : > { %14922 = vst [vmem:[#allocation26_spill] sm:$0xff] %v13099_v11  ;;  %v6310_v24 = vrot.slane %v13099_v11, 1  ;;  %v6312_v27 = vrot.slane %v6159_v56, 1  ;;  %v4302_v56 = vadd.f32 %v12768_v9, %v4246_v28  ;;  %v4303_v28 = vadd.f32 %v12768_v9, %v4249_v23 }
 0x8b2   : > { %6116 = vst.msk [vmem:[#allocation4 + $0xf1] sm:$0xff] %vm2646_vm1, %v6080_v8  ;;  %v5878_v21 = vpop.f32.mrf.mxu1 }
 0x8b3   : > { %6203 = vst.msk [vmem:[#allocation5 + $0x130] sm:$0xff] %vm2646_vm1, %v13099_v11  ;;  %v5992_v63 = vadd.f32 %v5991_v1, %v5878_v21  ;;  %v13108_v26 = vsel %vm769_vm3, %v6310_v24, %v6312_v27  ;;  %v13111_v60 = vsel %vm769_vm3, %v6309_v2, %v6310_v24  ;;  %v6000_v1 = vpop.f32.mrf.mxu3 }
 0x8b4   : > { %14923 = vst [vmem:[#allocation23_spill] sm:$0xff] %v13108_v26  ;;  %6382 = vrot.lane.b32.xlu2 %v13108_v26, %s14908_s2  ;;  %6380 = vrot.lane.b32.xlu1 %v13111_v60, %s14908_s2 }
 0x8b5   : > { %14924 = vst [vmem:[#allocation18_spill] sm:$0xff] %v13111_v60  ;;  %v6049_v40 = vadd.f32 %v5992_v63, %v4301_v46  ;;  %v4255_v2 = vpop.f32.mrf.mxu2 }
 0x8b6   : > { %v6355_v32 = vpop.permute.xlu0 %6354 }
 0x8b7   : > { %v6081_v8 = vmax.f32 %v6049_v40, 0.0  ;;  %6445 = vst.msk [vmem:[#allocation5 + $0x50] sm:$0xff] %vm2989_vm0, %v6355_v32 }
 0x8b9   : > { %v13118_v17 = vld [vmem:[#allocation4 + $0xf0] sm:$0xff]  ;;  %6117 = vst.msk [vmem:[#allocation4 + $0xf9] sm:$0xff] %vm2646_vm1, %v6081_v8 }
 0x8ba   : > { %v5881_v21 = vpop.f32.mrf.mxu1  ;;  %6204 = vst.msk [vmem:[#allocation5 + $0x140] sm:$0xff] %vm2646_vm1, %v13118_v17  ;;  %v6314_v8 = vrot.slane %v13118_v17, 1 }
 0x8bb   : > { %v5995_v24 = vadd.f32 %v5994_v36, %v5881_v21  ;;  %v6003_v11 = vpop.f32.mrf.mxu3 }
 0x8bd   : > { %v6050_v27 = vadd.f32 %v5995_v24, %v4302_v56  ;;  %v4258_v23 = vpop.f32.mrf.mxu2 }
 0x8bf   : > { %v6082_v26 = vmax.f32 %v6050_v27, 0.0 }
 0x8c0   : > { %v13124_v46 = vld [vmem:[#allocation4 + $0xf8] sm:$0xff]  ;;  %v6162_v63 = vld [vmem:[#allocation4 + $0x100] sm:$0x3] }
 0x8c1   : > { %14925 = vst [vmem:[#allocation27_spill] sm:$0xff] %v13124_v46  ;;  %v6315_v40 = vrot.slane %v13124_v46, 1  ;;  %v6317_v32 = vrot.slane %v6162_v63, 1 }
 0x8c2   : > { %6118 = vst.msk [vmem:[#allocation4 + $0x109] sm:$0xff] %vm2646_vm1, %v6082_v26  ;;  %v5884_v60 = vpop.f32.mrf.mxu1 }
 0x8c3   : > { %6205 = vst.msk [vmem:[#allocation5 + $0x150] sm:$0xff] %vm2646_vm1, %v13124_v46  ;;  %v5998_v36 = vadd.f32 %v5997_v12, %v5884_v60  ;;  %v13133_v21 = vsel %vm769_vm3, %v6315_v40, %v6317_v32  ;;  %v13136_v56 = vsel %vm769_vm3, %v6314_v8, %v6315_v40  ;;  %v4304_v60 = vadd.f32 %v12768_v9, %v4252_v61  ;;  %v6006_v32 = vpop.f32.mrf.mxu3 }
 0x8c4   : > { %14926 = vst [vmem:[#allocation13_spill] sm:$0xff] %v13133_v21  ;;  %6386 = vrot.lane.b32.xlu1 %v13133_v21, %s14908_s2  ;;  %6384 = vrot.lane.b32.xlu0 %v13136_v56, %s14908_s2  ;;  %v4305_v61 = vadd.f32 %v12768_v9, %v4255_v2 }
 0x8c5   : > { %14927 = vst [vmem:[#allocation21_spill] sm:$0xff] %v13136_v56  ;;  %v6051_v26 = vadd.f32 %v5998_v36, %v4303_v28 }
 0x8c6   : > { %v6357_v24 = vpop.permute.xlu1 %6356 }
 0x8c7   : > { %v6083_v27 = vmax.f32 %v6051_v26, 0.0  ;;  %6446 = vst.msk [vmem:[#allocation5 + $0x60] sm:$0xff] %vm2989_vm0, %v6357_v24 }
 0x8c9   : > { %v13143_v63 = vld [vmem:[#allocation4 + $0x108] sm:$0xff]  ;;  %6119 = vst.msk [vmem:[#allocation4 + $0x111] sm:$0xff] %vm2646_vm1, %v6083_v27 }
 0x8ca   : > { %14928 = vst [vmem:[#allocation16_spill] sm:$0xff] %v13143_v63  ;;  %v5887_v12 = vpop.f32.mrf.mxu1  ;;  %v6319_v56 = vrot.slane %v13143_v63, 1 }
 0x8cb   : > { %6206 = vst.msk [vmem:[#allocation5 + $0x160] sm:$0xff] %vm2646_vm1, %v13143_v63  ;;  %v6001_v40 = vadd.f32 %v6000_v1, %v5887_v12  ;;  %v4261_v1 = vpop.f32.mrf.mxu2 }
 0x8cd   : > { %v6052_v8 = vadd.f32 %v6001_v40, %v4304_v60 }
 0x8ce   : > { %v6365_v21 = vpop.permute.xlu2 %6364 }
 0x8cf   : > { %v6084_v28 = vmax.f32 %v6052_v8, 0.0  ;;  %6450 = vst.msk [vmem:[#allocation5 + $0xa0] sm:$0xff] %vm2989_vm0, %v6365_v21 }
 0x8d0   : > { %v13150_v36 = vld [vmem:[#allocation4 + $0x110] sm:$0xff]  ;;  %v6165_v26 = vld [vmem:[#allocation4 + $0x118] sm:$0x3] }
 0x8d1   : > { %14929 = vst [vmem:[#allocation30_spill] sm:$0xff] %v13150_v36  ;;  %v6320_v24 = vrot.slane %v13150_v36, 1  ;;  %v6322_v27 = vrot.slane %v6165_v26, 1  ;;  %v6009_v26 = vpop.f32.mrf.mxu3 }
 0x8d2   : > { %6120 = vst.msk [vmem:[#allocation4 + $0x121] sm:$0xff] %vm2646_vm1, %v6084_v28  ;;  %v5890_v46 = vpop.f32.mrf.mxu1 }
 0x8d3   : > { %6207 = vst.msk [vmem:[#allocation5 + $0x170] sm:$0xff] %vm2646_vm1, %v13150_v36  ;;  %v6004_v12 = vadd.f32 %v6003_v11, %v5890_v46  ;;  %v13159_v21 = vsel %vm769_vm3, %v6320_v24, %v6322_v27  ;;  %v13162_v60 = vsel %vm769_vm3, %v6319_v56, %v6320_v24  ;;  %v4306_v46 = vadd.f32 %v12768_v9, %v4258_v23  ;;  %v4264_v24 = vpop.f32.mrf.mxu2 }
 0x8d4   : > { %14930 = vst [vmem:[#allocation14_spill] sm:$0xff] %v13159_v21  ;;  %6390 = vrot.lane.b32.xlu0 %v13159_v21, %s14908_s2  ;;  %6388 = vrot.lane.b32.xlu2 %v13162_v60, %s14908_s2  ;;  %v4307_v23 = vadd.f32 %v12768_v9, %v4261_v1 }
 0x8d5   : > { %14931 = vst [vmem:[#allocation47_spill] sm:$0xff] %v13162_v60  ;;  %v6053_v40 = vadd.f32 %v6004_v12, %v4305_v61 }
 0x8d6   : > { %v6363_v8 = vpop.permute.xlu1 %6362  ;;  %v6361_v28 = vpop.permute.xlu0 %6360 }
 0x8d7   : > { %v6085_v63 = vmax.f32 %v6053_v40, 0.0  ;;  %6449 = vst.msk [vmem:[#allocation5 + $0x90] sm:$0xff] %vm2989_vm0, %v6363_v8 }
 0x8d8   : > { %6448 = vst.msk [vmem:[#allocation5 + $0x80] sm:$0xff] %vm2989_vm0, %v6361_v28 }
 0x8d9   : > { %v13170_v11 = vld [vmem:[#allocation4 + $0x120] sm:$0xff]  ;;  %6121 = vst.msk [vmem:[#allocation4 + $0x129] sm:$0xff] %vm2646_vm1, %v6085_v63  ;;  %v6012_v28 = vpop.f32.mrf.mxu3 }
 0x8da   : > { %v5893_v2 = vpop.f32.mrf.mxu1  ;;  %6208 = vst.msk [vmem:[#allocation5 + $0x180] sm:$0xff] %vm2646_vm1, %v13170_v11  ;;  %v6324_v60 = vrot.slane %v13170_v11, 1 }
 0x8db   : > { %v6007_v56 = vadd.f32 %v6006_v32, %v5893_v2 }
 0x8dd   : > { %v6054_v27 = vadd.f32 %v6007_v56, %v4306_v46 }
 0x8de   : > { %v6371_v61 = vpop.permute.xlu2 %6370 }
 0x8df   : > { %v6086_v12 = vmax.f32 %v6054_v27, 0.0  ;;  %6453 = vst.msk [vmem:[#allocation5 + $0xd0] sm:$0xff] %vm2989_vm0, %v6371_v61  ;;  %v4267_v61 = vpop.f32.mrf.mxu2 }
 0x8e0   : > { %v13177_v40 = vld [vmem:[#allocation4 + $0x128] sm:$0xff]  ;;  %v6168_v8 = vld [vmem:[#allocation4 + $0x130] sm:$0x3] }
 0x8e1   : > { %6122 = vst.msk [vmem:[#allocation4 + $0x139] sm:$0xff] %vm2646_vm1, %v6086_v12  ;;  %v6325_v63 = vrot.slane %v13177_v40, 1  ;;  %v6327_v21 = vrot.slane %v6168_v8, 1 }
 0x8e2   : > { %v5896_v36 = vpop.f32.mrf.mxu1  ;;  %6209 = vst.msk [vmem:[#allocation5 + $0x190] sm:$0xff] %vm2646_vm1, %v13177_v40 }
 0x8e3   : > { %v6010_v32 = vadd.f32 %v6009_v26, %v5896_v36  ;;  %v13186_v2 = vsel %vm769_vm3, %v6325_v63, %v6327_v21  ;;  %v13189_v46 = vsel %vm769_vm3, %v6324_v60, %v6325_v63  ;;  %v6015_v21 = vpop.f32.mrf.mxu3  ;;  %v4308_v60 = vadd.f32 %v12768_v9, %v4264_v24 }
 0x8e4   : > { %14932 = vst [vmem:[#allocation53_spill] sm:$0xff] %v13186_v2  ;;  %6394 = vrot.lane.b32.xlu2 %v13186_v2, %s14908_s2  ;;  %6392 = vrot.lane.b32.xlu1 %v13189_v46, %s14908_s2  ;;  %v4309_v24 = vadd.f32 %v12768_v9, %v4267_v61 }
 0x8e5   : > { %14933 = vst [vmem:[#allocation61_spill] sm:$0xff] %v13189_v46  ;;  %v6055_v56 = vadd.f32 %v6010_v32, %v4307_v23 }
 0x8e6   : > { %v6367_v27 = vpop.permute.xlu0 %6366 }
 0x8e7   : > { %v6087_v12 = vmax.f32 %v6055_v56, 0.0  ;;  %6451 = vst.msk [vmem:[#allocation5 + $0xb0] sm:$0xff] %vm2989_vm0, %v6367_v27  ;;  %v4270_v56 = vpop.f32.mrf.mxu2 }
 0x8e8   : > { %v13196_v1 = vld [vmem:[#allocation4 + $0x138] sm:$0xff] }
 0x8e9   : > { %14934 = vst [vmem:[#allocation54_spill] sm:$0xff] %v13196_v1 }
 0x8ea   : > { %6123 = vst.msk [vmem:[#allocation4 + $0x141] sm:$0xff] %vm2646_vm1, %v6087_v12  ;;  %v5899_v36 = vpop.f32.mrf.mxu1  ;;  %v6329_v12 = vrot.slane %v13196_v1, 1 }
 0x8eb   : > { %6210 = vst.msk [vmem:[#allocation5 + $0x1a0] sm:$0xff] %vm2646_vm1, %v13196_v1  ;;  %v6013_v26 = vadd.f32 %v6012_v28, %v5899_v36  ;;  %v6018_v28 = vpop.f32.mrf.mxu3 }
 0x8ed   : > { %v6056_v8 = vadd.f32 %v6013_v26, %v4308_v60 }
 0x8ef   : > { %v6088_v63 = vmax.f32 %v6056_v8, 0.0 }
 0x8f1   : > { %v13202_v23 = vld [vmem:[#allocation4 + $0x140] sm:$0xff]  ;;  %v6171_v32 = vld [vmem:[#allocation4 + $0x148] sm:$0x3]  ;;  %6124 = vst.msk [vmem:[#allocation4 + $0x151] sm:$0xff] %vm2646_vm1, %v6088_v63 }
 0x8f2   : > { %14935 = vst [vmem:[#allocation64_spill] sm:$0xff] %v13202_v23  ;;  %v6330_v27 = vrot.slane %v13202_v23, 1  ;;  %v6332_v2 = vrot.slane %v6171_v32, 1  ;;  %v5902_v46 = vpop.f32.mrf.mxu1 }
 0x8f3   : > { %6211 = vst.msk [vmem:[#allocation5 + $0x1b0] sm:$0xff] %vm2646_vm1, %v13202_v23  ;;  %v6016_v36 = vadd.f32 %v6015_v21, %v5902_v46  ;;  %v4310_v46 = vadd.f32 %v12768_v9, %v4270_v56  ;;  %v4273_v21 = vpop.f32.mrf.mxu2 }
 0x8f4   : > { %v13211_v60 = vsel %vm769_vm3, %v6330_v27, %v6332_v2  ;;  %v13214_v26 = vsel %vm769_vm3, %v6329_v12, %v6330_v27  ;;  %v6021_v12 = vpop.f32.mrf.mxu3  ;;  %v4311_v56 = vadd.f32 %v12768_v9, %v4273_v21  ;;  %v6473_v21 = vrot.slane %v12772_v6, 2 }
 0x8f5   : > { %14936 = vst [vmem:[#allocation29_spill] sm:$0xff] %v13211_v60  ;;  %6398 = vrot.lane.b32.xlu1 %v13211_v60, %s14908_s2  ;;  %6396 = vrot.lane.b32.xlu0 %v13214_v26, %s14908_s2  ;;  %v6057_v8 = vadd.f32 %v6016_v36, %v4309_v24 }
 0x8f6   : > { %14937 = vst [vmem:[#allocation22_spill] sm:$0xff] %v13214_v26  ;;  %v6369_v63 = vpop.permute.xlu1 %6368 }
 0x8f7   : > { %v6089_v32 = vmax.f32 %v6057_v8, 0.0  ;;  %6452 = vst.msk [vmem:[#allocation5 + $0xc0] sm:$0xff] %vm2989_vm0, %v6369_v63 }
 0x8f8   : > { %v13221_v61 = vld [vmem:[#allocation4 + $0x150] sm:$0xff] }
 0x8f9   : > { %6125 = vst.msk [vmem:[#allocation4 + $0x159] sm:$0xff] %vm2646_vm1, %v6089_v32  ;;  %v6334_v1 = vrot.slane %v13221_v61, 1 }
 0x8fa   : > { %v5905_v2 = vpop.f32.mrf.mxu1  ;;  %6212 = vst.msk [vmem:[#allocation5 + $0x1c0] sm:$0xff] %vm2646_vm1, %v13221_v61 }
 0x8fb   : > { %v6019_v27 = vadd.f32 %v6018_v28, %v5905_v2  ;;  %v4276_v2 = vpop.f32.mrf.mxu2 }
 0x8fd   : > { %v6058_v60 = vadd.f32 %v6019_v27, %v4310_v46  ;;  %v6024_v27 = vpop.f32.mrf.mxu3 }
 0x8fe   : > { %v6377_v23 = vpop.permute.xlu2 %6376 }
 0x8ff   : > { %v6090_v24 = vmax.f32 %v6058_v60, 0.0  ;;  %6456 = vst.msk [vmem:[#allocation5 + $0x100] sm:$0xff] %vm2989_vm0, %v6377_v23 }
 0x900   : > { %v13228_v36 = vld [vmem:[#allocation4 + $0x158] sm:$0xff]  ;;  %v6174_v8 = vld [vmem:[#allocation4 + $0x160] sm:$0x3] }
 0x901   : > { %6126 = vst.msk [vmem:[#allocation4 + $0x169] sm:$0xff] %vm2646_vm1, %v6090_v24  ;;  %v6335_v63 = vrot.slane %v13228_v36, 1  ;;  %v6337_v32 = vrot.slane %v6174_v8, 1  ;;  %v6472_v24 = vrot.slane %v12770_v14, 2  ;;  %v4312_v14 = vadd.f32 %v12768_v9, %v4276_v2 }
 0x902   : > { %v5908_v26 = vpop.f32.mrf.mxu1  ;;  %6213 = vst.msk [vmem:[#allocation5 + $0x1d0] sm:$0xff] %vm2646_vm1, %v13228_v36 }
 0x903   : > { %v6022_v28 = vadd.f32 %v6021_v12, %v5908_v26  ;;  %v13237_v60 = vsel %vm769_vm3, %v6335_v63, %v6337_v32  ;;  %v13240_v23 = vsel %vm769_vm3, %v6334_v1, %v6335_v63  ;;  %v6474_v63 = vsel %vm827_vm2, %v6472_v24, %v6473_v21 }
 0x904   : > { %14938 = vst [vmem:[#allocation17_spill] sm:$0xff] %v13237_v60  ;;  %6402 = vrot.lane.b32.xlu0 %v13237_v60, %s14908_s2  ;;  %6400 = vrot.lane.b32.xlu2 %v13240_v23, %s14908_s2 }
 0x905   : > { %14939 = vst [vmem:[#allocation33_spill] sm:$0xff] %v13240_v23  ;;  %v6059_v46 = vadd.f32 %v6022_v28, %v4311_v56  ;;  %v6027_v24 = vpop.f32.mrf.mxu3 }
 0x906   : > { %v6375_v26 = vpop.permute.xlu1 %6374  ;;  %v6373_v12 = vpop.permute.xlu0 %6372 }
 0x907   : > { %v6091_v8 = vmax.f32 %v6059_v46, 0.0  ;;  %6455 = vst.msk [vmem:[#allocation5 + $0xf0] sm:$0xff] %vm2989_vm0, %v6375_v26  ;;  %v4279_v46 = vpop.f32.mrf.mxu2 }
 0x908   : > { %6454 = vst.msk [vmem:[#allocation5 + $0xe0] sm:$0xff] %vm2989_vm0, %v6373_v12  ;;  %v13250_v1 = vld [vmem:[#allocation4 + $0x168] sm:$0xff]  ;;  %v6478_v12 = vrot.slane %v12810_v5, 2 }
 0x909   : > { %6127 = vst.msk [vmem:[#allocation4 + $0x171] sm:$0xff] %vm2646_vm1, %v6091_v8  ;;  %v6480_v8 = vrot.slane %v12812_v25, 2 }
 0x90a   : > { %v5911_v32 = vpop.f32.mrf.mxu1  ;;  %6214 = vst.msk [vmem:[#allocation5 + $0x1e0] sm:$0xff] %vm2646_vm1, %v13250_v1 }
 0x90b   : > { %v6025_v6 = vadd.f32 %v6024_v27, %v5911_v32  ;;  %v4313_v32 = vadd.f32 %v12768_v9, %v4279_v46  ;;  %v13270_v25 = vsel %vm827_vm2, %v6478_v12, %v6480_v8  ;;  %v6475_v46 = vrot.slane %v12790_v20, 2 }
 0x90c   : > { %6552 = vrot.lane.b32.xlu0 %v6474_v63, %s14643_s23  ;;  %v6339_v63 = vrot.slane %v13250_v1, 1  ;;  %v6488_v8 = vrot.slane %v12884_v4, 2  ;;  %v6493_v20 = vrot.slane %v12923_v51, 2 }
 0x90d   : > { %v6060_v56 = vadd.f32 %v6025_v6, %v4312_v14 }
 0x90e   : > { %v6383_v28 = vpop.permute.xlu2 %6382 }
 0x90f   : > { %v6092_v26 = vmax.f32 %v6060_v56, 0.0  ;;  %6459 = vst.msk [vmem:[#allocation5 + $0x130] sm:$0xff] %vm2989_vm0, %v6383_v28 }
 0x910   : > { %v13261_v60 = vld [vmem:[#allocation4 + $0x170] sm:$0xff]  ;;  %v6177_v23 = vld [vmem:[#allocation4 + $0x178] sm:$0x3] }
 0x911   : > { %6128 = vst.msk [vmem:[#allocation4 + $0x181] sm:$0xff] %vm2646_vm1, %v6092_v26  ;;  %v6340_v2 = vrot.slane %v13261_v60, 1  ;;  %v6342_v27 = vrot.slane %v6177_v23, 1 }
 0x912   : > { %v5914_v14 = vpop.f32.mrf.mxu1  ;;  %6215 = vst.msk [vmem:[#allocation5 + $0x1f0] sm:$0xff] %vm2646_vm1, %v13261_v60 }
 0x913   : > { %v6028_v6 = vadd.f32 %v6027_v24, %v5914_v14  ;;  %v13273_v56 = vsel %vm769_vm3, %v6340_v2, %v6342_v27  ;;  %v13276_v28 = vsel %vm769_vm3, %v6339_v63, %v6340_v2  ;;  %v6487_v24 = vrot.slane %v12874_v16, 2 }
 0x914   : > { %6558 = vrot.lane.b32.xlu0 %v13270_v25, %s14643_s23  ;;  %6406 = vrot.lane.b32.xlu2 %v13273_v56, %s14908_s2  ;;  %v6477_v2 = vrot.slane %v12788_v15, 2  ;;  %v6476_v27 = vsel %vm827_vm2, %v6473_v21, %v6475_v46  ;;  %v6495_v14 = vrot.slane %v12925_v45, 2  ;;  %v6483_v21 = vrot.slane %v12847_v50, 2 }
 0x915   : > { %v6061_v9 = vadd.f32 %v6028_v6, %v4313_v32  ;;  %6404 = vrot.lane.b32.xlu1 %v13276_v28, %s14908_s2  ;;  %v13292_v63 = vsel %vm827_vm2, %v6487_v24, %v6488_v8  ;;  %v6485_v6 = vrot.slane %v12849_v47, 2  ;;  %v6503_v46 = vrot.slane %v13002_v33, 2 }
 0x916   : > { %v6379_v23 = vpop.permute.xlu0 %6378  ;;  %v13295_v32 = vsel %vm827_vm2, %v6477_v2, %v6478_v12  ;;  %v13308_v12 = vsel %vm827_vm2, %v6493_v20, %v6495_v14  ;;  %v6502_v24 = vrot.slane %v12989_v52, 2  ;;  %v6492_v2 = vrot.slane %v12911_v0, 2 }
 0x917   : > { %v6093_v26 = vmax.f32 %v6061_v9, 0.0  ;;  %6457 = vst.msk [vmem:[#allocation5 + $0x110] sm:$0xff] %vm2989_vm0, %v6379_v23  ;;  %v6482_v9 = vrot.slane %v12837_v62, 2  ;;  %v13311_v23 = vsel %vm827_vm2, %v6483_v21, %v6485_v6  ;;  %v6508_v6 = vrot.slane %v13036_v43, 2 }
 0x918   : > { %v13331_v14 = vsel %vm827_vm2, %v6492_v2, %v6493_v20  ;;  %v6510_v20 = vrot.slane %v13038_v44, 2 }
 0x919   : > { %6129 = vst.msk [vmem:[#allocation4 + $0x189] sm:$0xff] %vm2646_vm1, %v6093_v26  ;;  %v13318_v45 = vsel %vm827_vm2, %v6482_v9, %v6483_v21  ;;  %v6490_v26 = vrot.slane %v12886_v53, 2  ;;  %v6498_v9 = vrot.slane %v12962_v41, 2 }
 0x91a   : > { %v13349_v2 = vsel %vm827_vm2, %v6508_v6, %v6510_v20  ;;  %v6507_v20 = vrot.slane %v13028_v22, 2 }
 0x91b   : > { %v13338_v21 = vsel %vm827_vm2, %v6488_v8, %v6490_v26 }
 0x91c   : > { %6564 = vrot.lane.b32.xlu0 %v13292_v63, %s14643_s23  ;;  %6556 = vrot.lane.b32.xlu2 %v13295_v32, %s14643_s23 }
 0x91d   : > { %6554 = vrot.lane.b32.xlu1 %v6476_v27, %s14643_s23  ;;  %v13328_v27 = vsel %vm827_vm2, %v6502_v24, %v6503_v46  ;;  %v6497_v24 = vrot.slane %v12948_v37, 2 }
 0x91f   : > { %v13359_v44 = vsel %vm827_vm2, %v6497_v24, %v6498_v9 }
 0x924   : > { %6570 = vrot.lane.b32.xlu0 %v13308_v12, %s14643_s23  ;;  %6562 = vrot.lane.b32.xlu2 %v13311_v23, %s14643_s23 }
 0x925   : > { %6560 = vrot.lane.b32.xlu1 %v13318_v45, %s14643_s23 }
 0x926   : > { %v6381_v47 = vpop.permute.xlu1 %6380 }
 0x927   : > { %6458 = vst.msk [vmem:[#allocation5 + $0x120] sm:$0xff] %vm2989_vm0, %v6381_v47  ;;  %v6500_v47 = vrot.slane %v12964_v39, 2 }
 0x929   : > { %v13352_v8 = vsel %vm827_vm2, %v6498_v9, %v6500_v47  ;;  %v13368_v47 = vsel %vm827_vm2, %v6507_v20, %v6508_v6  ;;  %v6515_v6 = vrot.slane %v13070_v35, 2 }
 0x92c   : > { %6576 = vrot.lane.b32.xlu0 %v13328_v27, %s14643_s23  ;;  %6568 = vrot.lane.b32.xlu2 %v13331_v14, %s14643_s23 }
 0x92d   : > { %6566 = vrot.lane.b32.xlu1 %v13338_v21, %s14643_s23 }
 0x92e   : > { %v6389_v53 = vpop.permute.xlu2 %6388 }
 0x92f   : > { %6462 = vst.msk [vmem:[#allocation5 + $0x160] sm:$0xff] %vm2989_vm0, %v6389_v53  ;;  %v6505_v53 = vrot.slane %v13004_v19, 2  ;;  %v6513_v19 = vrot.slane %v13068_v55, 2 }
 0x931   : > { %v13375_v9 = vsel %vm827_vm2, %v6503_v46, %v6505_v53 }
 0x934   : > { %6582 = vrot.lane.b32.xlu0 %v13349_v2, %s14643_s23  ;;  %6574 = vrot.lane.b32.xlu2 %v13352_v8, %s14643_s23 }
 0x935   : > { %6572 = vrot.lane.b32.xlu1 %v13359_v44, %s14643_s23 }
 0x936   : > { %v6387_v39 = vpop.permute.xlu1 %6386  ;;  %v6385_v26 = vpop.permute.xlu0 %6384 }
 0x937   : > { %6461 = vst.msk [vmem:[#allocation5 + $0x150] sm:$0xff] %vm2989_vm0, %v6387_v39  ;;  %v6512_v39 = vrot.slane %v13059_v54, 2 }
 0x938   : > { %6460 = vst.msk [vmem:[#allocation5 + $0x140] sm:$0xff] %vm2989_vm0, %v6385_v26 }
 0x939   : > { %v13391_v46 = vsel %vm827_vm2, %v6512_v39, %v6513_v19  ;;  %v7514_v39 = vld [vmem:[%s14310_s13 + $0x40] sm:$0xff] }
 0x93a   : > { %7618 = vmatpush.msrb.mxu0 %v7514_v39 }
 0x93c   : > { %6682 = vrot.lane.b32.xlu0 %v12788_v15, %s8304_s3  ;;  %6580 = vrot.lane.b32.xlu2 %v13368_v47, %s14643_s23  ;;  %v13384_v15 = vsel %vm827_vm2, %v6513_v19, %v6515_v6 }
 0x93d   : > { %6578 = vrot.lane.b32.xlu1 %v13375_v9, %s14643_s23 }
 0x93e   : > { %v6395_v24 = vpop.permute.xlu2 %6394 }
 0x93f   : > { %6465 = vst.msk [vmem:[#allocation5 + $0x190] sm:$0xff] %vm2989_vm0, %v6395_v24 }
 0x944   : > { %7079 = vrot.lane.b32.xlu0 %v12837_v62, %s14639_s29  ;;  %6586 = vrot.lane.b32.xlu2 %v13384_v15, %s14643_s23 }
 0x945   : > { %6584 = vrot.lane.b32.xlu1 %v13391_v46, %s14643_s23 }
 0x946   : > { %v6391_v26 = vpop.permute.xlu0 %6390 }
 0x947   : > { %6463 = vst.msk [vmem:[#allocation5 + $0x170] sm:$0xff] %vm2989_vm0, %v6391_v26 }
 0x94c   : > { %6684 = vrot.lane.b32.xlu0 %v12810_v5, %s8304_s3  ;;  %6949 = vrot.lane.b32.xlu2 %v13295_v32, %s8305_s4 }
 0x94d   : > { %6816 = vrot.lane.b32.xlu1 %v12829_v3, %s14642_s30 }
 0x954   : > { %7081 = vrot.lane.b32.xlu0 %v12847_v50, %s14639_s29  ;;  %7346 = vrot.lane.b32.xlu2 %v13318_v45, %s14641_s1 }
 0x955   : > { %7213 = vrot.lane.b32.xlu1 %v12866_v10, %s8306_s26 }
 0x956   : > { %v6393_v35 = vpop.permute.xlu1 %6392 }
 0x957   : > { %6464 = vst.msk [vmem:[#allocation5 + $0x180] sm:$0xff] %vm2989_vm0, %v6393_v35  ;;  %v7511_v35 = vld [vmem:[%s14310_s13 + $0x28] sm:$0xff] }
 0x95c   : > { %6686 = vrot.lane.b32.xlu0 %v12837_v62, %s8304_s3  ;;  %6951 = vrot.lane.b32.xlu2 %v13270_v25, %s8305_s4 }
 0x95d   : > { %6818 = vrot.lane.b32.xlu1 %v12826_v30, %s14642_s30 }
 0x95e   : > { %v6401_v5 = vpop.permute.xlu2 %6400 }
 0x95f   : > { %6468 = vst.msk [vmem:[#allocation5 + $0x1c0] sm:$0xff] %vm2989_vm0, %v6401_v5 }
 0x964   : > { %7083 = vrot.lane.b32.xlu0 %v12874_v16, %s14639_s29  ;;  %7348 = vrot.lane.b32.xlu2 %v13311_v23, %s14641_s1 }
 0x965   : > { %7215 = vrot.lane.b32.xlu1 %v12863_v48, %s8306_s26 }
 0x967   : > { %v6399_v3 = vpop.permute.xlu1 %6398  ;;  %v6397_v62 = vpop.permute.xlu0 %6396 }
 0x968   : > { %6467 = vst.msk [vmem:[#allocation5 + $0x1b0] sm:$0xff] %vm2989_vm0, %v6399_v3  ;;  %v7510_v3 = vld [vmem:[%s14310_s13 + $0x20] sm:$0xff] }
 0x969   : > { %6466 = vst.msk [vmem:[#allocation5 + $0x1a0] sm:$0xff] %vm2989_vm0, %v6397_v62  ;;  %v7509_v62 = vld [vmem:[%s14310_s13 + $0x18] sm:$0xff] }
 0x96c   : > { %6688 = vrot.lane.b32.xlu0 %v12847_v50, %s8304_s3  ;;  %6953 = vrot.lane.b32.xlu2 %v13318_v45, %s8305_s4 }
 0x96d   : > { %6820 = vrot.lane.b32.xlu1 %v12866_v10, %s14642_s30 }
 0x96e   : > { %v6407_v30 = vpop.permute.xlu2 %6406 }
 0x96f   : > { %6471 = vst.msk [vmem:[#allocation5 + $0x1f0] sm:$0xff] %vm2989_vm0, %v6407_v30  ;;  %v7508_v30 = vld [vmem:[%s14310_s13 + $0x10] sm:$0xff] }
 0x974   : > { %7085 = vrot.lane.b32.xlu0 %v12884_v4, %s14639_s29  ;;  %7350 = vrot.lane.b32.xlu2 %v13292_v63, %s14641_s1 }
 0x975   : > { %7217 = vrot.lane.b32.xlu1 %v12903_v57, %s8306_s26 }
 0x976   : > { %v6557_v25 = vpop.permute.xlu2 %6556  ;;  %v6403_v50 = vpop.permute.xlu0 %6402 }
 0x977   : > { %6650 = vst.msk [vmem:[#allocation5 + $0x20] sm:$0xff] %vm3198_vm12, %v6557_v25 }
 0x978   : > { %6469 = vst.msk [vmem:[#allocation5 + $0x1d0] sm:$0xff] %vm2989_vm0, %v6403_v50 }
 0x97c   : > { %6690 = vrot.lane.b32.xlu0 %v12874_v16, %s8304_s3  ;;  %6955 = vrot.lane.b32.xlu2 %v13311_v23, %s8305_s4 }
 0x97d   : > { %6822 = vrot.lane.b32.xlu1 %v12863_v48, %s14642_s30 }
 0x97e   : > { %v6563_v10 = vpop.permute.xlu2 %6562  ;;  %v6553_v32 = vpop.permute.xlu0 %6552 }
 0x97f   : > { %6653 = vst.msk [vmem:[#allocation5 + $0x50] sm:$0xff] %vm3198_vm12, %v6563_v10  ;;  %v7507_v10 = vld [vmem:[%s14310_s13 + $0x8] sm:$0xff] }
 0x980   : > { %6648 = vst.msk [vmem:[#allocation5] sm:$0xff] %vm3198_vm12, %v6553_v32 }
 0x984   : > { %7087 = vrot.lane.b32.xlu0 %v12911_v0, %s14639_s29  ;;  %7352 = vrot.lane.b32.xlu2 %v13338_v21, %s14641_s1 }
 0x985   : > { %7219 = vrot.lane.b32.xlu1 %v12900_v18, %s8306_s26 }
 0x986   : > { %v6569_v16 = vpop.permute.xlu2 %6568  ;;  %v6559_v23 = vpop.permute.xlu0 %6558 }
 0x987   : > { %6656 = vst.msk [vmem:[#allocation5 + $0x80] sm:$0xff] %vm3198_vm12, %v6569_v16  ;;  %v6405_v48 = vpop.permute.xlu1 %6404 }
 0x988   : > { %6470 = vst.msk [vmem:[#allocation5 + $0x1e0] sm:$0xff] %vm2989_vm0, %v6405_v48  ;;  %vm14948_vm0 = vmmov %vm14944_vm8 }
 0x989   : > { %6651 = vst.msk [vmem:[#allocation5 + $0x30] sm:$0xff] %vm3198_vm12, %v6559_v23 }
 0x98c   : > { %6692 = vrot.lane.b32.xlu0 %v12884_v4, %s8304_s3  ;;  %6957 = vrot.lane.b32.xlu2 %v13292_v63, %s8305_s4 }
 0x98d   : > { %6824 = vrot.lane.b32.xlu1 %v12903_v57, %s14642_s30 }
 0x98e   : > { %v6575_v45 = vpop.permute.xlu2 %6574  ;;  %v6565_v53 = vpop.permute.xlu0 %6564 }
 0x98f   : > { %6659 = vst.msk [vmem:[#allocation5 + $0xb0] sm:$0xff] %vm3198_vm12, %v6575_v45  ;;  %v6555_v20 = vpop.permute.xlu1 %6554 }
 0x990   : > { %6649 = vst.msk [vmem:[#allocation5 + $0x10] sm:$0xff] %vm3198_vm12, %v6555_v20 }
 0x991   : > { %6654 = vst.msk [vmem:[#allocation5 + $0x60] sm:$0xff] %vm3198_vm12, %v6565_v53 }
 0x994   : > { %7089 = vrot.lane.b32.xlu0 %v12923_v51, %s14639_s29  ;;  %7354 = vrot.lane.b32.xlu2 %v13331_v14, %s14641_s1 }
 0x995   : > { %7221 = vrot.lane.b32.xlu1 %v12940_v49, %s8306_s26 }
 0x996   : > { %v6581_v4 = vpop.permute.xlu2 %6580  ;;  %v6571_v57 = vpop.permute.xlu0 %6570 }
 0x997   : > { %6662 = vst.msk [vmem:[#allocation5 + $0xe0] sm:$0xff] %vm3198_vm12, %v6581_v4  ;;  %v6561_v63 = vpop.permute.xlu1 %6560 }
 0x998   : > { %6652 = vst.msk [vmem:[#allocation5 + $0x40] sm:$0xff] %vm3198_vm12, %v6561_v63 }
 0x999   : > { %6657 = vst.msk [vmem:[#allocation5 + $0x90] sm:$0xff] %vm3198_vm12, %v6571_v57 }
 0x99c   : > { %6694 = vrot.lane.b32.xlu0 %v12911_v0, %s8304_s3  ;;  %6959 = vrot.lane.b32.xlu2 %v13338_v21, %s8305_s4  ;;  %v7513_v0 = vld [vmem:[%s14310_s13 + $0x38] sm:$0xff] }
 0x99d   : > { %6826 = vrot.lane.b32.xlu1 %v12900_v18, %s14642_s30  ;;  %v7512_v18 = vld [vmem:[%s14310_s13 + $0x30] sm:$0xff]  ;;  %7619 = vmatpush.msrb.mxu0 %v7513_v0 }
 0x99e   : > { %v6587_v24 = vpop.permute.xlu2 %6586  ;;  %v6577_v19 = vpop.permute.xlu0 %6576 }
 0x99f   : > { %6665 = vst.msk [vmem:[#allocation5 + $0x110] sm:$0xff] %vm3198_vm12, %v6587_v24  ;;  %v6567_v6 = vpop.permute.xlu1 %6566  ;;  %7620 = vmatpush.msrb.mxu0 %v7512_v18 }
 0x9a0   : > { %6655 = vst.msk [vmem:[#allocation5 + $0x70] sm:$0xff] %vm3198_vm12, %v6567_v6 }
 0x9a1   : > { %6660 = vst.msk [vmem:[#allocation5 + $0xc0] sm:$0xff] %vm3198_vm12, %v6577_v19  ;;  %7621 = vmatpush.msrb.mxu0 %v7511_v35 }
 0x9a3   : > { %7622 = vmatpush.msrb.mxu0 %v7510_v3 }
 0x9a4   : > { %7091 = vrot.lane.b32.xlu0 %v12948_v37, %s14639_s29  ;;  %7356 = vrot.lane.b32.xlu2 %v13308_v12, %s14641_s1 }
 0x9a5   : > { %7223 = vrot.lane.b32.xlu1 %v12937_v42, %s8306_s26  ;;  %7623 = vmatpush.msrb.mxu0 %v7509_v62 }
 0x9a6   : > { %v6950_v21 = vpop.permute.xlu2 %6949  ;;  %v6583_v26 = vpop.permute.xlu0 %6582 }
 0x9a7   : > { %v6573_v5 = vpop.permute.xlu1 %6572  ;;  %6663 = vst.msk [vmem:[#allocation5 + $0xf0] sm:$0xff] %vm3198_vm12, %v6583_v26  ;;  %7624 = vmatpush.msrb.mxu0 %v7508_v30 }
 0x9a8   : > { %6658 = vst.msk [vmem:[#allocation5 + $0xa0] sm:$0xff] %vm3198_vm12, %v6573_v5 }
 0x9a9   : > { %7625 = vmatpush.msrb.mxu0 %v7507_v10 }
 0x9ac   : > { %6696 = vrot.lane.b32.xlu0 %v12923_v51, %s8304_s3  ;;  %6961 = vrot.lane.b32.xlu2 %v13331_v14, %s8305_s4  ;;  %v7506_v51 = vld [vmem:[%s14310_s13] sm:$0xff] }
 0x9ad   : > { %6828 = vrot.lane.b32.xlu1 %v12940_v49, %s14642_s30  ;;  %7626 = vmatpush.msrb.mxu0 %v7506_v51 }
 0x9ae   : > { %v7347_v25 = vpop.permute.xlu2 %7346  ;;  %v6683_v50 = vpop.permute.xlu0 %6682 }
 0x9af   : > { %v6579_v32 = vpop.permute.xlu1 %6578  ;;  %6778 = vst.msk [vmem:[#allocation5] sm:$0xff] %vm14940_vm4, %v6683_v50 }
 0x9b0   : > { %6661 = vst.msk [vmem:[#allocation5 + $0xd0] sm:$0xff] %vm3198_vm12, %v6579_v32 }
 0x9b4   : > { %7093 = vrot.lane.b32.xlu0 %v12962_v41, %s14639_s29  ;;  %7358 = vrot.lane.b32.xlu2 %v13359_v44, %s14641_s1 }
 0x9b5   : > { %7225 = vrot.lane.b32.xlu1 %v12982_v59, %s8306_s26 }
 0x9b6   : > { %v6952_v49 = vpop.permute.xlu2 %6951  ;;  %v7080_v14 = vpop.permute.xlu0 %7079 }
 0x9b7   : > { %v6585_v16 = vpop.permute.xlu1 %6584 }
 0x9b8   : > { %6664 = vst.msk [vmem:[#allocation5 + $0x100] sm:$0xff] %vm3198_vm12, %v6585_v16 }
 0x9bc   : > { %6698 = vrot.lane.b32.xlu0 %v12948_v37, %s8304_s3  ;;  %6963 = vrot.lane.b32.xlu2 %v13308_v12, %s8305_s4 }
 0x9bd   : > { %6830 = vrot.lane.b32.xlu1 %v12937_v42, %s14642_s30 }
 0x9be   : > { %v7349_v23 = vpop.permute.xlu2 %7348  ;;  %v6685_v48 = vpop.permute.xlu0 %6684 }
 0x9bf   : > { %v6817_v45 = vpop.permute.xlu1 %6816  ;;  %6779 = vst.msk [vmem:[#allocation5 + $0x10] sm:$0xff] %vm14941_vm5, %v6685_v48  ;;  %vm14949_vm5 = vmmov %vm14942_vm6 }
 0x9c0   : > { %6912 = vst.msk [vmem:[#allocation5] sm:$0xff] %vm14942_vm6, %v6817_v45  ;;  %vm14950_vm6 = vmmov %vm14943_vm7  ;;  %v14970_v45 = vld [vmem:[#allocation26_spill] sm:$0xff] }
 0x9c1   : > { %7045 = vst.msk [vmem:[#allocation5] sm:$0xff] %vm14943_vm7, %v6950_v21  ;;  %vm14951_vm7 = vmmov %vm14948_vm0 }
 0x9c2   : > { %7175 = vst.msk [vmem:[#allocation5] sm:$0xff] %vm3729_vm14, %v7080_v14 }
 0x9c4   : > { %7095 = vrot.lane.b32.xlu0 %v12989_v52, %s14639_s29  ;;  %7360 = vrot.lane.b32.xlu2 %v13352_v8, %s14641_s1 }
 0x9c5   : > { %7227 = vrot.lane.b32.xlu1 %v12979_v13, %s8306_s26 }
 0x9c6   : > { %v6954_v42 = vpop.permute.xlu2 %6953  ;;  %v7082_v37 = vpop.permute.xlu0 %7081 }
 0x9c7   : > { %v7214_v12 = vpop.permute.xlu1 %7213 }
 0x9c8   : > { %7309 = vst.msk [vmem:[#allocation5] sm:$0xff] %vm14944_vm8, %v7214_v12  ;;  %vm14952_vm8 = vmmov %vm14940_vm4 }
 0x9c9   : > { %7442 = vst.msk [vmem:[#allocation5] sm:$0xff] %vm3998_vm15, %v7347_v25 }
 0x9cc   : > { %6700 = vrot.lane.b32.xlu0 %v12962_v41, %s8304_s3  ;;  %6965 = vrot.lane.b32.xlu2 %v13359_v44, %s8305_s4 }
 0x9cd   : > { %6832 = vrot.lane.b32.xlu1 %v12982_v59, %s14642_s30 }
 0x9ce   : > { %v7351_v53 = vpop.permute.xlu2 %7350  ;;  %v6687_v20 = vpop.permute.xlu0 %6686 }
 0x9cf   : > { %v6819_v4 = vpop.permute.xlu1 %6818  ;;  %6780 = vst.msk [vmem:[#allocation5 + $0x20] sm:$0xff] %vm14945_vm9, %v6687_v20  ;;  %vm14953_vm9 = vmmov %vm14949_vm5 }
 0x9d0   : > { %6913 = vst.msk [vmem:[#allocation5 + $0x10] sm:$0xff] %vm14946_vm10, %v6819_v4  ;;  %v7474_v57 = vld [vmem:[#allocation5] sm:$0xff]  ;;  %vm14954_vm10 = vmmov %vm14950_vm6 }
 0x9d1   : > { %7046 = vst.msk [vmem:[#allocation5 + $0x10] sm:$0xff] %vm14947_vm11, %v6952_v49  ;;  %8161 = vmatmul.msk.f32.vlgmr.msrb.gmra.mxu0 %vm4072_vm13, %v7474_v57  ;;  %vm14955_vm11 = vmmov %vm14948_vm0 }
 0x9d2   : > { %7176 = vst.msk [vmem:[#allocation5 + $0x10] sm:$0xff] %vm3729_vm14, %v7082_v37 }
 0x9d4   : > { %7097 = vrot.lane.b32.xlu0 %v13002_v33, %s14639_s29  ;;  %7362 = vrot.lane.b32.xlu2 %v13328_v27, %s14641_s1 }
 0x9d5   : > { %7229 = vrot.lane.b32.xlu1 %v13021_v58, %s8306_s26 }
 0x9d6   : > { %v6956_v41 = vpop.permute.xlu2 %6955  ;;  %v7084_v59 = vpop.permute.xlu0 %7083 }
 0x9d7   : > { %v7216_v44 = vpop.permute.xlu1 %7215 }
 0x9d8   : > { %7310 = vst.msk [vmem:[#allocation5 + $0x10] sm:$0xff] %vm14948_vm0, %v7216_v44  ;;  %vm14956_vm0 = vmmov %vm14940_vm4 }
 0x9d9   : > { %7443 = vst.msk [vmem:[#allocation5 + $0x10] sm:$0xff] %vm3998_vm15, %v7349_v23 }
 0x9dc   : > { %6702 = vrot.lane.b32.xlu0 %v12989_v52, %s8304_s3  ;;  %6967 = vrot.lane.b32.xlu2 %v13352_v8, %s8305_s4 }
 0x9dd   : > { %6834 = vrot.lane.b32.xlu1 %v12979_v13, %s14642_s30 }
 0x9de   : > { %v7353_v63 = vpop.permute.xlu2 %7352  ;;  %v6689_v24 = vpop.permute.xlu0 %6688 }
 0x9df   : > { %v6821_v19 = vpop.permute.xlu1 %6820  ;;  %6781 = vst.msk [vmem:[#allocation5 + $0x30] sm:$0xff] %vm14940_vm4, %v6689_v24  ;;  %vm14957_vm4 = vmmov %vm14949_vm5 }
 0x9e0   : > { %6914 = vst.msk [vmem:[#allocation5 + $0x20] sm:$0xff] %vm14949_vm5, %v6821_v19  ;;  %v7475_v6 = vld [vmem:[#allocation5 + $0x10] sm:$0xff]  ;;  %vm14958_vm5 = vmmov %vm14950_vm6 }
 0x9e1   : > { %7047 = vst.msk [vmem:[#allocation5 + $0x20] sm:$0xff] %vm14950_vm6, %v6954_v42  ;;  %8162 = vmatmul.msk.f32.gmra.mxu0 %vm4072_vm13, %v7475_v6  ;;  %vm14959_vm6 = vmmov %vm14951_vm7  ;;  %v6518_v42 = vrot.slane %v14970_v45, 2 }
 0x9e2   : > { %7177 = vst.msk [vmem:[#allocation5 + $0x20] sm:$0xff] %vm3729_vm14, %v7084_v59  ;;  %v8280_v59 = vld [vmem:[#allocation4 + $0xe8] sm:$0x3] }
 0x9e3   : > { %v6520_v44 = vrot.slane %v8280_v59, 2 }
 0x9e4   : > { %7099 = vrot.lane.b32.xlu0 %v13028_v22, %s14639_s29  ;;  %7364 = vrot.lane.b32.xlu2 %v13375_v9, %s14641_s1 }
 0x9e5   : > { %7231 = vrot.lane.b32.xlu1 %v13018_v29, %s8306_s26 }
 0x9e6   : > { %v6958_v13 = vpop.permute.xlu2 %6957  ;;  %v7086_v52 = vpop.permute.xlu0 %7085 }
 0x9e7   : > { %v7218_v8 = vpop.permute.xlu1 %7217 }
 0x9e8   : > { %7311 = vst.msk [vmem:[#allocation5 + $0x20] sm:$0xff] %vm14951_vm7, %v7218_v8  ;;  %vm14960_vm7 = vmmov %vm14956_vm0 }
 0x9e9   : > { %7444 = vst.msk [vmem:[#allocation5 + $0x20] sm:$0xff] %vm3998_vm15, %v7351_v53 }
 0x9ec   : > { %6704 = vrot.lane.b32.xlu0 %v13002_v33, %s8304_s3  ;;  %6969 = vrot.lane.b32.xlu2 %v13328_v27, %s8305_s4 }
 0x9ed   : > { %6836 = vrot.lane.b32.xlu1 %v13021_v58, %s14642_s30 }
 0x9ee   : > { %v7355_v39 = vpop.permute.xlu2 %7354  ;;  %v6691_v0 = vpop.permute.xlu0 %6690 }
 0x9ef   : > { %v6823_v18 = vpop.permute.xlu1 %6822  ;;  %6782 = vst.msk [vmem:[#allocation5 + $0x40] sm:$0xff] %vm14952_vm8, %v6691_v0  ;;  %vm14961_vm8 = vmmov %vm14957_vm4 }
 0x9f0   : > { %6915 = vst.msk [vmem:[#allocation5 + $0x30] sm:$0xff] %vm14953_vm9, %v6823_v18  ;;  %v7476_v21 = vld [vmem:[#allocation5 + $0x20] sm:$0xff]  ;;  %vm14962_vm9 = vmmov %vm14958_vm5 }
 0x9f1   : > { %7048 = vst.msk [vmem:[#allocation5 + $0x30] sm:$0xff] %vm14954_vm10, %v6956_v41  ;;  %8163 = vmatmul.msk.f32.gmra.mxu0 %vm4072_vm13, %v7476_v21  ;;  %vm14963_vm10 = vmmov %vm14959_vm6  ;;  %v6522_v21 = vrot.slane %v13118_v17, 2 }
 0x9f2   : > { %7178 = vst.msk [vmem:[#allocation5 + $0x30] sm:$0xff] %vm3729_vm14, %v7086_v52 }
 0x9f4   : > { %7101 = vrot.lane.b32.xlu0 %v13036_v43, %s14639_s29  ;;  %7366 = vrot.lane.b32.xlu2 %v13368_v47, %s14641_s1 }
 0x9f5   : > { %7233 = vrot.lane.b32.xlu1 %v13053_v7, %s8306_s26 }
 0x9f6   : > { %v6960_v33 = vpop.permute.xlu2 %6959  ;;  %v7088_v58 = vpop.permute.xlu0 %7087 }
 0x9f7   : > { %v7220_v27 = vpop.permute.xlu1 %7219 }
 0x9f8   : > { %7312 = vst.msk [vmem:[#allocation5 + $0x30] sm:$0xff] %vm14955_vm11, %v7220_v27  ;;  %vm14964_vm11 = vmmov %vm14956_vm0 }
 0x9f9   : > { %7445 = vst.msk [vmem:[#allocation5 + $0x30] sm:$0xff] %vm3998_vm15, %v7353_v63 }
 0x9fc   : > { %6706 = vrot.lane.b32.xlu0 %v13028_v22, %s8304_s3  ;;  %6971 = vrot.lane.b32.xlu2 %v13375_v9, %s8305_s4 }
 0x9fd   : > { %6838 = vrot.lane.b32.xlu1 %v13018_v29, %s14642_s30 }
 0x9fe   : > { %v7357_v26 = vpop.permute.xlu2 %7356  ;;  %v6693_v35 = vpop.permute.xlu0 %6692 }
 0x9ff   : > { %v6825_v5 = vpop.permute.xlu1 %6824  ;;  %6783 = vst.msk [vmem:[#allocation5 + $0x50] sm:$0xff] %vm14956_vm0, %v6693_v35  ;;  %vm14965_vm0 = vmmov %vm14957_vm4 }
 0xa00   : > { %6916 = vst.msk [vmem:[#allocation5 + $0x40] sm:$0xff] %vm14957_vm4, %v6825_v5  ;;  %v7477_v3 = vld [vmem:[#allocation5 + $0x30] sm:$0xff]  ;;  %vm14966_vm4 = vmmov %vm14958_vm5 }
 0xa01   : > { %7049 = vst.msk [vmem:[#allocation5 + $0x40] sm:$0xff] %vm14958_vm5, %v6958_v13  ;;  %8164 = vmatmul.msk.f32.gmra.mxu0 %vm4072_vm13, %v7477_v3  ;;  %vm14968_vm5 = vmmov %vm14959_vm6 }
 0xa02   : > { %7179 = vst.msk [vmem:[#allocation5 + $0x40] sm:$0xff] %vm3729_vm14, %v7088_v58  ;;  %v14984_v58 = vld [vmem:[#allocation21_spill] sm:$0xff] }
 0xa04   : > { %7103 = vrot.lane.b32.xlu0 %v13059_v54, %s14639_s29  ;;  %7368 = vrot.lane.b32.xlu2 %v13349_v2, %s14641_s1 }
 0xa05   : > { %7235 = vrot.lane.b32.xlu1 %v13050_v31, %s8306_s26 }
 0xa06   : > { %v6962_v29 = vpop.permute.xlu2 %6961  ;;  %v7090_v22 = vpop.permute.xlu0 %7089 }
 0xa07   : > { %v7222_v9 = vpop.permute.xlu1 %7221 }
 0xa08   : > { %7313 = vst.msk [vmem:[#allocation5 + $0x40] sm:$0xff] %vm14959_vm6, %v7222_v9  ;;  %vm14969_vm6 = vmmov %vm14960_vm7 }
 0xa09   : > { %7446 = vst.msk [vmem:[#allocation5 + $0x40] sm:$0xff] %vm3998_vm15, %v7355_v39  ;;  %v14980_v39 = vld [vmem:[#allocation27_spill] sm:$0xff] }
 0xa0a   : > { %v6523_v0 = vrot.slane %v14980_v39, 2 }
 0xa0c   : > { %6708 = vrot.lane.b32.xlu0 %v13036_v43, %s8304_s3  ;;  %6973 = vrot.lane.b32.xlu2 %v13368_v47, %s8305_s4 }
 0xa0d   : > { %6840 = vrot.lane.b32.xlu1 %v13053_v7, %s14642_s30 }
 0xa0e   : > { %v7359_v62 = vpop.permute.xlu2 %7358  ;;  %v6695_v30 = vpop.permute.xlu0 %6694 }
 0xa0f   : > { %v6827_v25 = vpop.permute.xlu1 %6826  ;;  %6784 = vst.msk [vmem:[#allocation5 + $0x60] sm:$0xff] %vm14960_vm7, %v6695_v30  ;;  %vm14971_vm7 = vmmov %vm14965_vm0 }
 0xa10   : > { %6917 = vst.msk [vmem:[#allocation5 + $0x50] sm:$0xff] %vm14961_vm8, %v6827_v25  ;;  %v7478_v50 = vld [vmem:[#allocation5 + $0x40] sm:$0xff]  ;;  %vm14972_vm8 = vmmov %vm14966_vm4  ;;  %v14989_v25 = vld [vmem:[#allocation13_spill] sm:$0xff] }
 0xa11   : > { %7050 = vst.msk [vmem:[#allocation5 + $0x50] sm:$0xff] %vm14962_vm9, %v6960_v33  ;;  %8165 = vmatmul.msk.f32.gmra.mxu0 %vm4072_vm13, %v7478_v50  ;;  %vm14974_vm9 = vmmov %vm14968_vm5  ;;  %v13721_v33 = vsel %vm827_vm2, %v6522_v21, %v6523_v0 }
 0xa12   : > { %7180 = vst.msk [vmem:[#allocation5 + $0x50] sm:$0xff] %vm3729_vm14, %v7090_v22  ;;  %v8281_v22 = vld [vmem:[#allocation4 + $0x100] sm:$0x3] }
 0xa13   : > { %v6525_v9 = vrot.slane %v8281_v22, 2 }
 0xa14   : > { %7105 = vrot.lane.b32.xlu0 %v13068_v55, %s14639_s29  ;;  %7370 = vrot.lane.b32.xlu2 %v13391_v46, %s14641_s1 }
 0xa15   : > { %7237 = vrot.lane.b32.xlu1 %v13084_v34, %s8306_s26  ;;  %v13742_v30 = vsel %vm827_vm2, %v6523_v0, %v6525_v9 }
 0xa16   : > { %v6964_v43 = vpop.permute.xlu2 %6963  ;;  %v7092_v7 = vpop.permute.xlu0 %7091 }
 0xa17   : > { %v7224_v47 = vpop.permute.xlu1 %7223 }
 0xa18   : > { %7314 = vst.msk [vmem:[#allocation5 + $0x50] sm:$0xff] %vm14963_vm10, %v7224_v47  ;;  %vm14975_vm10 = vmmov %vm14969_vm6  ;;  %v14990_v47 = vld [vmem:[#allocation30_spill] sm:$0xff] }
 0xa19   : > { %7447 = vst.msk [vmem:[#allocation5 + $0x50] sm:$0xff] %vm3998_vm15, %v7357_v26 }
 0xa1c   : > { %6710 = vrot.lane.b32.xlu0 %v13059_v54, %s8304_s3  ;;  %6975 = vrot.lane.b32.xlu2 %v13349_v2, %s8305_s4 }
 0xa1d   : > { %6842 = vrot.lane.b32.xlu1 %v13050_v31, %s14642_s30  ;;  %v14967_v31 = vld [vmem:[#allocation56_spill] sm:$0xff] }
 0xa1e   : > { %v7361_v10 = vpop.permute.xlu2 %7360  ;;  %v6697_v32 = vpop.permute.xlu0 %6696 }
 0xa1f   : > { %v6829_v51 = vpop.permute.xlu1 %6828  ;;  %6785 = vst.msk [vmem:[#allocation5 + $0x70] sm:$0xff] %vm14964_vm11, %v6697_v32  ;;  %vm14976_vm11 = vmmov %vm14965_vm0  ;;  %v14992_v32 = vld [vmem:[#allocation16_spill] sm:$0xff] }
 0xa20   : > { %6918 = vst.msk [vmem:[#allocation5 + $0x60] sm:$0xff] %vm14965_vm0, %v6829_v51  ;;  %v7479_v49 = vld [vmem:[#allocation5 + $0x50] sm:$0xff]  ;;  %vm14977_vm0 = vmmov %vm14966_vm4  ;;  %v6527_v51 = vrot.slane %v14992_v32, 2 }
 0xa21   : > { %7051 = vst.msk [vmem:[#allocation5 + $0x60] sm:$0xff] %vm14966_vm4, %v6962_v29  ;;  %8166 = vmatmul.msk.f32.gmra.mxu0 %vm4072_vm13, %v7479_v49  ;;  %vm14979_vm4 = vmmov %vm14968_vm5 }
 0xa22   : > { %7181 = vst.msk [vmem:[#allocation5 + $0x60] sm:$0xff] %vm3729_vm14, %v7092_v7 }
 0xa24   : > { %7107 = vrot.lane.b32.xlu0 %v13092_v38, %s14639_s29  ;;  %7372 = vrot.lane.b32.xlu2 %v13384_v15, %s14641_s1 }
 0xa25   : > { %7239 = vrot.lane.b32.xlu1 %v14967_v31, %s8306_s26 }
 0xa26   : > { %v6966_v54 = vpop.permute.xlu2 %6965  ;;  %v7094_v2 = vpop.permute.xlu0 %7093 }
 0xa27   : > { %v7226_v14 = vpop.permute.xlu1 %7225 }
 0xa28   : > { %7315 = vst.msk [vmem:[#allocation5 + $0x60] sm:$0xff] %vm14968_vm5, %v7226_v14  ;;  %vm14981_vm5 = vmmov %vm14971_vm7 }
 0xa29   : > { %7448 = vst.msk [vmem:[#allocation5 + $0x60] sm:$0xff] %vm3998_vm15, %v7359_v62 }
 0xa2c   : > { %6712 = vrot.lane.b32.xlu0 %v13068_v55, %s8304_s3  ;;  %6977 = vrot.lane.b32.xlu2 %v13391_v46, %s8305_s4  ;;  %v6517_v55 = vrot.slane %v13092_v38, 2  ;;  %v14973_v46 = vld [vmem:[#allocation18_spill] sm:$0xff] }
 0xa2d   : > { %6844 = vrot.lane.b32.xlu1 %v13084_v34, %s14642_s30 }
 0xa2e   : > { %v7363_v16 = vpop.permute.xlu2 %7362  ;;  %v6699_v23 = vpop.permute.xlu0 %6698  ;;  %v6519_v34 = vsel %vm827_vm2, %v6517_v55, %v6518_v42 }
 0xa2f   : > { %v6831_v48 = vpop.permute.xlu1 %6830  ;;  %6786 = vst.msk [vmem:[#allocation5 + $0x80] sm:$0xff] %vm14969_vm6, %v6699_v23  ;;  %vm14982_vm6 = vmmov %vm14977_vm0 }
 0xa30   : > { %6919 = vst.msk [vmem:[#allocation5 + $0x70] sm:$0xff] %vm14971_vm7, %v6831_v48  ;;  %v7480_v37 = vld [vmem:[#allocation5 + $0x60] sm:$0xff]  ;;  %vm14983_vm7 = vmmov %vm14975_vm10 }
 0xa31   : > { %7052 = vst.msk [vmem:[#allocation5 + $0x70] sm:$0xff] %vm14972_vm8, %v6964_v43  ;;  %8167 = vmatmul.msk.f32.gmra.mxu0 %vm4072_vm13, %v7480_v37  ;;  %vm14985_vm8 = vmmov %vm14979_vm4 }
 0xa32   : > { %7182 = vst.msk [vmem:[#allocation5 + $0x70] sm:$0xff] %vm3729_vm14, %v7094_v2 }
 0xa34   : > { %7374 = vrot.lane.b32.xlu2 %v6519_v34, %s14641_s1  ;;  %7109 = vrot.lane.b32.xlu0 %v14970_v45, %s14639_s29 }
 0xa35   : > { %7241 = vrot.lane.b32.xlu1 %v14973_v46, %s8306_s26 }
 0xa36   : > { %v6968_v12 = vpop.permute.xlu2 %6967  ;;  %v7096_v53 = vpop.permute.xlu0 %7095 }
 0xa37   : > { %v7228_v20 = vpop.permute.xlu1 %7227 }
 0xa38   : > { %7316 = vst.msk [vmem:[#allocation5 + $0x70] sm:$0xff] %vm14974_vm9, %v7228_v20  ;;  %vm14986_vm9 = vmmov %vm14981_vm5  ;;  %v8282_v20 = vld [vmem:[#allocation4 + $0x118] sm:$0x3] }
 0xa39   : > { %7449 = vst.msk [vmem:[#allocation5 + $0x70] sm:$0xff] %vm3998_vm15, %v7361_v10  ;;  %v6528_v10 = vrot.slane %v14990_v47, 2 }
 0xa3b   : > { %v13755_v49 = vsel %vm827_vm2, %v6527_v51, %v6528_v10 }
 0xa3c   : > { %6979 = vrot.lane.b32.xlu2 %v13384_v15, %s8305_s4  ;;  %6714 = vrot.lane.b32.xlu0 %v13092_v38, %s8304_s3  ;;  %v13698_v38 = vsel %vm827_vm2, %v6518_v42, %v6520_v44  ;;  %v14978_v15 = vld [vmem:[#allocation23_spill] sm:$0xff] }
 0xa3d   : > { %6846 = vrot.lane.b32.xlu1 %v14967_v31, %s14642_s30 }
 0xa3e   : > { %v7365_v4 = vpop.permute.xlu2 %7364  ;;  %v6701_v57 = vpop.permute.xlu0 %6700 }
 0xa3f   : > { %v6833_v41 = vpop.permute.xlu1 %6832  ;;  %6787 = vst.msk [vmem:[#allocation5 + $0x90] sm:$0xff] %vm14975_vm10, %v6701_v57  ;;  %vm14987_vm10 = vmmov %vm14977_vm0 }
 0xa40   : > { %6920 = vst.msk [vmem:[#allocation5 + $0x80] sm:$0xff] %vm14976_vm11, %v6833_v41  ;;  %v7481_v63 = vld [vmem:[#allocation5 + $0x70] sm:$0xff]  ;;  %vm14988_vm11 = vmmov %vm14983_vm7 }
 0xa41   : > { %7053 = vst.msk [vmem:[#allocation5 + $0x80] sm:$0xff] %vm14977_vm0, %v6966_v54  ;;  %8168 = vmatmul.msk.f32.gmra.mxu0 %vm4072_vm13, %v7481_v63  ;;  %vm14991_vm0 = vmmov %vm14979_vm4 }
 0xa42   : > { %7183 = vst.msk [vmem:[#allocation5 + $0x80] sm:$0xff] %vm3729_vm14, %v7096_v53 }
 0xa44   : > { %7376 = vrot.lane.b32.xlu2 %v13698_v38, %s14641_s1  ;;  %7111 = vrot.lane.b32.xlu0 %v13118_v17, %s14639_s29 }
 0xa45   : > { %7243 = vrot.lane.b32.xlu1 %v14978_v15, %s8306_s26 }
 0xa46   : > { %v6970_v24 = vpop.permute.xlu2 %6969  ;;  %v7098_v19 = vpop.permute.xlu0 %7097 }
 0xa47   : > { %v7230_v6 = vpop.permute.xlu1 %7229 }
 0xa48   : > { %7317 = vst.msk [vmem:[#allocation5 + $0x80] sm:$0xff] %vm14979_vm4, %v7230_v6  ;;  %vm14993_vm4 = vmmov %vm14981_vm5  ;;  %v6532_v6 = vrot.slane %v13170_v11, 2 }
 0xa49   : > { %7450 = vst.msk [vmem:[#allocation5 + $0x80] sm:$0xff] %vm3998_vm15, %v7363_v16  ;;  %v14996_v16 = vld [vmem:[#allocation47_spill] sm:$0xff] }
 0xa4c   : > { %6981 = vrot.lane.b32.xlu2 %v6519_v34, %s8305_s4  ;;  %6716 = vrot.lane.b32.xlu0 %v14970_v45, %s8304_s3  ;;  %v14998_v45 = vld [vmem:[#allocation14_spill] sm:$0xff] }
 0xa4d   : > { %6848 = vrot.lane.b32.xlu1 %v14973_v46, %s14642_s30 }
 0xa4e   : > { %v7367_v13 = vpop.permute.xlu2 %7366  ;;  %v6703_v8 = vpop.permute.xlu0 %6702 }
 0xa4f   : > { %v6835_v52 = vpop.permute.xlu1 %6834  ;;  %6788 = vst.msk [vmem:[#allocation5 + $0xa0] sm:$0xff] %vm14983_vm7, %v6703_v8 }
 0xa50   : > { %6921 = vst.msk [vmem:[#allocation5 + $0x90] sm:$0xff] %vm14981_vm5, %v6835_v52  ;;  %v7482_v18 = vld [vmem:[#allocation5 + $0x80] sm:$0xff]  ;;  %vm14994_vm5 = vmmov %vm14982_vm6  ;;  %v15007_v52 = vld [vmem:[#allocation61_spill] sm:$0xff] }
 0xa51   : > { %7054 = vst.msk [vmem:[#allocation5 + $0x90] sm:$0xff] %vm14982_vm6, %v6968_v12  ;;  %8169 = vmatmul.msk.f32.gmra.mxu0 %vm4072_vm13, %v7482_v18  ;;  %vm14995_vm6 = vmmov %vm14983_vm7  ;;  %v8283_v18 = vld [vmem:[#allocation4 + $0x130] sm:$0x3] }
 0xa52   : > { %7184 = vst.msk [vmem:[#allocation5 + $0x90] sm:$0xff] %vm3729_vm14, %v7098_v19  ;;  %vm14997_vm7 = vmmov %vm14991_vm0  ;;  %v6533_v19 = vrot.slane %v13177_v40, 2  ;;  %v6535_v21 = vrot.slane %v8283_v18, 2 }
 0xa54   : > { %7378 = vrot.lane.b32.xlu2 %v13721_v33, %s14641_s1  ;;  %7113 = vrot.lane.b32.xlu0 %v14980_v39, %s14639_s29 }
 0xa55   : > { %7245 = vrot.lane.b32.xlu1 %v14984_v58, %s8306_s26 }
 0xa56   : > { %v6972_v27 = vpop.permute.xlu2 %6971  ;;  %v7100_v35 = vpop.permute.xlu0 %7099 }
 0xa57   : > { %v7232_v26 = vpop.permute.xlu1 %7231 }
 0xa58   : > { %7318 = vst.msk [vmem:[#allocation5 + $0x90] sm:$0xff] %vm14985_vm8, %v7232_v26  ;;  %vm14999_vm8 = vmmov %vm14993_vm4 }
 0xa59   : > { %7451 = vst.msk [vmem:[#allocation5 + $0x90] sm:$0xff] %vm3998_vm15, %v7365_v4  ;;  %v6530_v4 = vrot.slane %v8282_v20, 2 }
 0xa5b   : > { %v13798_v57 = vsel %vm827_vm2, %v6528_v10, %v6530_v4  ;;  %v6543_v4 = vrot.slane %v13228_v36, 2 }
 0xa5c   : > { %6983 = vrot.lane.b32.xlu2 %v13698_v38, %s8305_s4  ;;  %6588 = vrot.lane.b32.xlu0 %v6519_v34, %s14643_s23 }
 0xa5d   : > { %6850 = vrot.lane.b32.xlu1 %v14978_v15, %s14642_s30 }
 0xa5e   : > { %v7369_v5 = vpop.permute.xlu2 %7368  ;;  %v6705_v29 = vpop.permute.xlu0 %6704 }
 0xa5f   : > { %v6837_v3 = vpop.permute.xlu1 %6836  ;;  %6789 = vst.msk [vmem:[#allocation5 + $0xb0] sm:$0xff] %vm14988_vm11, %v6705_v29  ;;  %vm15002_vm11 = vmmov %vm14991_vm0 }
 0xa60   : > { %6922 = vst.msk [vmem:[#allocation5 + $0xa0] sm:$0xff] %vm14986_vm9, %v6837_v3  ;;  %v7483_v62 = vld [vmem:[#allocation5 + $0x90] sm:$0xff]  ;;  %vm15000_vm9 = vmmov %vm14994_vm5 }
 0xa61   : > { %7055 = vst.msk [vmem:[#allocation5 + $0xa0] sm:$0xff] %vm14987_vm10, %v6970_v24  ;;  %8170 = vmatmul.msk.f32.gmra.mxu0 %vm4072_vm13, %v7483_v62  ;;  %vm15001_vm10 = vmmov %vm14995_vm6  ;;  %v15016_v62 = vld [vmem:[#allocation22_spill] sm:$0xff] }
 0xa62   : > { %7185 = vst.msk [vmem:[#allocation5 + $0xa0] sm:$0xff] %vm3729_vm14, %v7100_v35 }
 0xa64   : > { %7380 = vrot.lane.b32.xlu2 %v13742_v30, %s14641_s1  ;;  %6985 = vrot.lane.b32.xlu0 %v13721_v33, %s8305_s4 }
 0xa65   : > { %7247 = vrot.lane.b32.xlu1 %v14989_v25, %s8306_s26 }
 0xa66   : > { %v6974_v50 = vpop.permute.xlu2 %6973  ;;  %v7102_v7 = vpop.permute.xlu0 %7101 }
 0xa67   : > { %v7234_v43 = vpop.permute.xlu1 %7233 }
 0xa68   : > { %7319 = vst.msk [vmem:[#allocation5 + $0xa0] sm:$0xff] %vm14991_vm0, %v7234_v43  ;;  %vm15003_vm0 = vmmov %vm14993_vm4  ;;  %v15018_v43 = vld [vmem:[#allocation54_spill] sm:$0xff] }
 0xa69   : > { %7452 = vst.msk [vmem:[#allocation5 + $0xa0] sm:$0xff] %vm3998_vm15, %v7367_v13  ;;  %v13820_v13 = vsel %vm827_vm2, %v6532_v6, %v6533_v19 }
 0xa6c   : > { %6852 = vrot.lane.b32.xlu2 %v14984_v58, %s14642_s30  ;;  %7382 = vrot.lane.b32.xlu0 %v13755_v49, %s14641_s1  ;;  %v13834_v58 = vsel %vm827_vm2, %v6533_v19, %v6535_v21 }
 0xa6d   : > { %6718 = vrot.lane.b32.xlu1 %v13118_v17, %s8304_s3 }
 0xa6e   : > { %v7371_v31 = vpop.permute.xlu2 %7370  ;;  %v6707_v2 = vpop.permute.xlu0 %6706 }
 0xa6f   : > { %v6839_v54 = vpop.permute.xlu1 %6838  ;;  %6790 = vst.msk [vmem:[#allocation5 + $0xc0] sm:$0xff] %vm14995_vm6, %v6707_v2 }
 0xa70   : > { %6923 = vst.msk [vmem:[#allocation5 + $0xb0] sm:$0xff] %vm14993_vm4, %v6839_v54  ;;  %v7484_v14 = vld [vmem:[#allocation5 + $0xa0] sm:$0xff]  ;;  %vm15004_vm4 = vmmov %vm14994_vm5 }
 0xa71   : > { %7056 = vst.msk [vmem:[#allocation5 + $0xb0] sm:$0xff] %vm14994_vm5, %v6972_v27  ;;  %8171 = vmatmul.msk.f32.gmra.mxu0 %vm4072_vm13, %v7484_v14  ;;  %vm15005_vm5 = vmmov %vm14995_vm6 }
 0xa72   : > { %7186 = vst.msk [vmem:[#allocation5 + $0xb0] sm:$0xff] %vm3729_vm14, %v7102_v7  ;;  %vm15006_vm6 = vmmov %vm14997_vm7 }
 0xa74   : > { %7249 = vrot.lane.b32.xlu2 %v14996_v16, %s8306_s26  ;;  %6854 = vrot.lane.b32.xlu0 %v14989_v25, %s14642_s30 }
 0xa75   : > { %7115 = vrot.lane.b32.xlu1 %v14992_v32, %s14639_s29 }
 0xa76   : > { %v6976_v17 = vpop.permute.xlu2 %6975  ;;  %v7104_v48 = vpop.permute.xlu0 %7103 }
 0xa77   : > { %v7236_v23 = vpop.permute.xlu1 %7235 }
 0xa78   : > { %7320 = vst.msk [vmem:[#allocation5 + $0xb0] sm:$0xff] %vm14997_vm7, %v7236_v23  ;;  %vm15008_vm7 = vmmov %vm15003_vm0 }
 0xa79   : > { %7453 = vst.msk [vmem:[#allocation5 + $0xb0] sm:$0xff] %vm3998_vm15, %v7369_v5  ;;  %v15012_v5 = vld [vmem:[#allocation53_spill] sm:$0xff] }
 0xa7c   : > { %6720 = vrot.lane.b32.xlu2 %v14980_v39, %s8304_s3  ;;  %7251 = vrot.lane.b32.xlu0 %v14998_v45, %s8306_s26 }
 0xa7d   : > { %6590 = vrot.lane.b32.xlu1 %v13698_v38, %s14643_s23 }
 0xa7e   : > { %v7373_v42 = vpop.permute.xlu2 %7372  ;;  %v6709_v55 = vpop.permute.xlu0 %6708 }
 0xa7f   : > { %v6841_v37 = vpop.permute.xlu1 %6840  ;;  %6791 = vst.msk [vmem:[#allocation5 + $0xd0] sm:$0xff] %vm15001_vm10, %v6709_v55  ;;  %vm15011_vm10 = vmmov %vm15006_vm6 }
 0xa80   : > { %6924 = vst.msk [vmem:[#allocation5 + $0xc0] sm:$0xff] %vm14999_vm8, %v6841_v37  ;;  %v7485_v34 = vld [vmem:[#allocation5 + $0xb0] sm:$0xff]  ;;  %vm15009_vm8 = vmmov %vm15004_vm4 }
 0xa81   : > { %7057 = vst.msk [vmem:[#allocation5 + $0xc0] sm:$0xff] %vm15000_vm9, %v6974_v50  ;;  %8172 = vmatmul.msk.f32.gmra.mxu0 %vm4072_vm13, %v7485_v34  ;;  %vm15010_vm9 = vmmov %vm15005_vm5  ;;  %v15026_v34 = vld [vmem:[#allocation29_spill] sm:$0xff] }
 0xa82   : > { %7187 = vst.msk [vmem:[#allocation5 + $0xc0] sm:$0xff] %vm3729_vm14, %v7104_v48 }
 0xa84   : > { %7117 = vrot.lane.b32.xlu2 %v14990_v47, %s14639_s29  ;;  %6722 = vrot.lane.b32.xlu0 %v14992_v32, %s8304_s3  ;;  %v15020_v32 = vld [vmem:[#allocation64_spill] sm:$0xff] }
 0xa85   : > { %6987 = vrot.lane.b32.xlu1 %v13742_v30, %s8305_s4  ;;  %v6538_v51 = vrot.slane %v15020_v32, 2 }
 0xa86   : > { %v6978_v46 = vpop.permute.xlu2 %6977  ;;  %v7106_v53 = vpop.permute.xlu0 %7105 }
 0xa87   : > { %v7238_v12 = vpop.permute.xlu1 %7237 }
 0xa88   : > { %7321 = vst.msk [vmem:[#allocation5 + $0xc0] sm:$0xff] %vm15002_vm11, %v7238_v12  ;;  %vm15013_vm11 = vmmov %vm15003_vm0 }
 0xa89   : > { %7454 = vst.msk [vmem:[#allocation5 + $0xc0] sm:$0xff] %vm3998_vm15, %v7371_v31  ;;  %v13885_v31 = vpop.f32.mrf.mxu0 }
 0xa8c   : > { %6592 = vrot.lane.b32.xlu2 %v13721_v33, %s14643_s23  ;;  %7119 = vrot.lane.b32.xlu0 %v13170_v11, %s14639_s29 }
 0xa8d   : > { %7384 = vrot.lane.b32.xlu1 %v13798_v57, %s14641_s1 }
 0xa8e   : > { %v7375_v41 = vpop.permute.xlu2 %7374  ;;  %v6711_v44 = vpop.permute.xlu0 %6710 }
 0xa8f   : > { %v6843_v59 = vpop.permute.xlu1 %6842  ;;  %6792 = vst.msk [vmem:[#allocation5 + $0xe0] sm:$0xff] %vm15005_vm5, %v6711_v44 }
 0xa90   : > { %6925 = vst.msk [vmem:[#allocation5 + $0xd0] sm:$0xff] %vm15003_vm0, %v6843_v59  ;;  %v7486_v63 = vld [vmem:[#allocation5 + $0xc0] sm:$0xff]  ;;  %vm15014_vm0 = vmmov %vm15004_vm4 }
 0xa91   : > { %7058 = vst.msk [vmem:[#allocation5 + $0xd0] sm:$0xff] %vm15004_vm4, %v6976_v17  ;;  %8173 = vmatmul.msk.f32.gmra.mxu0 %vm4072_vm13, %v7486_v63  ;;  %vm15015_vm4 = vmmov %vm15005_vm5 }
 0xa92   : > { %7188 = vst.msk [vmem:[#allocation5 + $0xd0] sm:$0xff] %vm3729_vm14, %v7106_v53  ;;  %vm15017_vm5 = vmmov %vm15006_vm6 }
 0xa94   : > { %6989 = vrot.lane.b32.xlu2 %v13755_v49, %s8305_s4  ;;  %6594 = vrot.lane.b32.xlu0 %v13742_v30, %s14643_s23 }
 0xa95   : > { %6856 = vrot.lane.b32.xlu1 %v14996_v16, %s14642_s30  ;;  %v13895_v16 = vpop.f32.mrf.mxu0 }
 0xa96   : > { %v6980_v38 = vpop.permute.xlu2 %6979  ;;  %v7108_v24 = vpop.permute.xlu0 %7107 }
 0xa97   : > { %v7240_v15 = vpop.permute.xlu1 %7239 }
 0xa98   : > { %7322 = vst.msk [vmem:[#allocation5 + $0xd0] sm:$0xff] %vm15006_vm6, %v7240_v15  ;;  %vm15019_vm6 = vmmov %vm15008_vm7 }
 0xa99   : > { %7455 = vst.msk [vmem:[#allocation5 + $0xd0] sm:$0xff] %vm3998_vm15, %v7373_v42 }
 0xa9c   : > { %7386 = vrot.lane.b32.xlu2 %v13820_v13, %s14641_s1  ;;  %6991 = vrot.lane.b32.xlu0 %v13798_v57, %s8305_s4 }
 0xa9d   : > { %7253 = vrot.lane.b32.xlu1 %v15007_v52, %s8306_s26 }
 0xa9e   : > { %v7377_v8 = vpop.permute.xlu2 %7376  ;;  %v6713_v0 = vpop.permute.xlu0 %6712 }
 0xa9f   : > { %v6845_v39 = vpop.permute.xlu1 %6844  ;;  %6793 = vst.msk [vmem:[#allocation5 + $0xf0] sm:$0xff] %vm15010_vm9, %v6713_v0  ;;  %vm15023_vm9 = vmmov %vm15017_vm5 }
 0xaa0   : > { %6926 = vst.msk [vmem:[#allocation5 + $0xe0] sm:$0xff] %vm15008_vm7, %v6845_v39  ;;  %v7487_v33 = vld [vmem:[#allocation5 + $0xd0] sm:$0xff]  ;;  %vm15021_vm7 = vmmov %vm15014_vm0 }
 0xaa1   : > { %7059 = vst.msk [vmem:[#allocation5 + $0xe0] sm:$0xff] %vm15009_vm8, %v6978_v46  ;;  %8174 = vmatmul.msk.f32.gmra.mxu0 %vm4072_vm13, %v7487_v33  ;;  %vm15022_vm8 = vmmov %vm15015_vm4  ;;  %v13911_v46 = vpop.f32.mrf.mxu0 }
 0xaa2   : > { %7189 = vst.msk [vmem:[#allocation5 + $0xe0] sm:$0xff] %vm3729_vm14, %v7108_v24  ;;  %v15030_v24 = vld [vmem:[#allocation33_spill] sm:$0xff] }
 0xaa4   : > { %6858 = vrot.lane.b32.xlu2 %v14998_v45, %s14642_s30  ;;  %7388 = vrot.lane.b32.xlu0 %v13834_v58, %s14641_s1  ;;  %v8284_v45 = vld [vmem:[#allocation4 + $0x148] sm:$0x3] }
 0xaa5   : > { %6724 = vrot.lane.b32.xlu1 %v14990_v47, %s8304_s3  ;;  %v6540_v42 = vrot.slane %v8284_v45, 2 }
 0xaa6   : > { %v6982_v27 = vpop.permute.xlu2 %6981  ;;  %v7110_v35 = vpop.permute.xlu0 %7109 }
 0xaa7   : > { %v7242_v26 = vpop.permute.xlu1 %7241  ;;  %v13903_v55 = vsel %vm827_vm2, %v6538_v51, %v6540_v42 }
 0xaa8   : > { %7323 = vst.msk [vmem:[#allocation5 + $0xe0] sm:$0xff] %vm15011_vm10, %v7242_v26  ;;  %vm15024_vm10 = vmmov %vm15019_vm6 }
 0xaa9   : > { %7456 = vst.msk [vmem:[#allocation5 + $0xe0] sm:$0xff] %vm3998_vm15, %v7375_v41  ;;  %v13926_v59 = vpop.f32.mrf.mxu0 }
 0xaac   : > { %7255 = vrot.lane.b32.xlu2 %v15012_v5, %s8306_s26  ;;  %6860 = vrot.lane.b32.xlu0 %v15007_v52, %s14642_s30 }
 0xaad   : > { %7121 = vrot.lane.b32.xlu1 %v13177_v40, %s14639_s29 }
 0xaae   : > { %v7379_v3 = vpop.permute.xlu2 %7378  ;;  %v6715_v22 = vpop.permute.xlu0 %6714 }
 0xaaf   : > { %v6847_v29 = vpop.permute.xlu1 %6846  ;;  %6794 = vst.msk [vmem:[#allocation5 + $0x100] sm:$0xff] %vm15015_vm4, %v6715_v22 }
 0xab0   : > { %6927 = vst.msk [vmem:[#allocation5 + $0xf0] sm:$0xff] %vm15013_vm11, %v6847_v29  ;;  %v7488_v9 = vld [vmem:[#allocation5 + $0xe0] sm:$0xff]  ;;  %vm15025_vm11 = vmmov %vm15014_vm0 }
 0xab1   : > { %7060 = vst.msk [vmem:[#allocation5 + $0xf0] sm:$0xff] %vm15014_vm0, %v6980_v38  ;;  %8175 = vmatmul.msk.f32.gmra.mxu0 %vm4072_vm13, %v7488_v9  ;;  %vm15027_vm0 = vmmov %vm15017_vm5  ;;  %v13938_v19 = vpop.f32.mrf.mxu0 }
 0xab2   : > { %7190 = vst.msk [vmem:[#allocation5 + $0xf0] sm:$0xff] %vm3729_vm14, %v7110_v35 }
 0xab4   : > { %6726 = vrot.lane.b32.xlu2 %v13170_v11, %s8304_s3  ;;  %7257 = vrot.lane.b32.xlu0 %v15016_v62, %s8306_s26 }
 0xab5   : > { %6596 = vrot.lane.b32.xlu1 %v13755_v49, %s14643_s23  ;;  %v6537_v49 = vrot.slane %v15018_v43, 2 }
 0xab6   : > { %v6984_v30 = vpop.permute.xlu2 %6983  ;;  %v7112_v50 = vpop.permute.xlu0 %7111 }
 0xab7   : > { %v7244_v25 = vpop.permute.xlu1 %7243 }
 0xab8   : > { %7324 = vst.msk [vmem:[#allocation5 + $0xf0] sm:$0xff] %vm15017_vm5, %v7244_v25  ;;  %vm15028_vm5 = vmmov %vm15019_vm6 }
 0xab9   : > { %7457 = vst.msk [vmem:[#allocation5 + $0xf0] sm:$0xff] %vm3998_vm15, %v7377_v8  ;;  %v15032_v8 = vld [vmem:[#allocation17_spill] sm:$0xff]  ;;  %v13950_v39 = vpop.f32.mrf.mxu0 }
 0xabc   : > { %7123 = vrot.lane.b32.xlu2 %v15018_v43, %s14639_s29  ;;  %6728 = vrot.lane.b32.xlu0 %v13177_v40, %s8304_s3  ;;  %v13879_v40 = vsel %vm827_vm2, %v6537_v49, %v6538_v51 }
 0xabd   : > { %6993 = vrot.lane.b32.xlu1 %v13820_v13, %s8305_s4 }
 0xabe   : > { %v7381_v11 = vpop.permute.xlu2 %7380  ;;  %v6717_v47 = vpop.permute.xlu0 %6716 }
 0xabf   : > { %v6849_v7 = vpop.permute.xlu1 %6848  ;;  %6795 = vst.msk [vmem:[#allocation5 + $0x110] sm:$0xff] %vm15022_vm8, %v6717_v47  ;;  %vm15033_vm8 = vmmov %vm15015_vm4  ;;  %v6547_v47 = vrot.slane %v13250_v1, 2 }
 0xac0   : > { %6928 = vst.msk [vmem:[#allocation5 + $0x100] sm:$0xff] %vm15019_vm6, %v6849_v7  ;;  %v7489_v10 = vld [vmem:[#allocation5 + $0xf0] sm:$0xff]  ;;  %vm15029_vm6 = vmmov %vm15021_vm7  ;;  %v6548_v7 = vrot.slane %v13261_v60, 2 }
 0xac1   : > { %7061 = vst.msk [vmem:[#allocation5 + $0x100] sm:$0xff] %vm15021_vm7, %v6982_v27  ;;  %8176 = vmatmul.msk.f32.gmra.mxu0 %vm4072_vm13, %v7489_v10  ;;  %vm15031_vm7 = vmmov %vm15027_vm0 }
 0xac2   : > { %7191 = vst.msk [vmem:[#allocation5 + $0x100] sm:$0xff] %vm3729_vm14, %v7112_v50  ;;  %v13996_v10 = vsel %vm827_vm2, %v6547_v47, %v6548_v7 }
 0xac4   : > { %6598 = vrot.lane.b32.xlu2 %v13798_v57, %s14643_s23  ;;  %7125 = vrot.lane.b32.xlu0 %v15020_v32, %s14639_s29  ;;  %v6542_v57 = vrot.slane %v13221_v61, 2 }
 0xac5   : > { %7390 = vrot.lane.b32.xlu1 %v13879_v40, %s14641_s1 }
 0xac6   : > { %v6853_v54 = vpop.permute.xlu2 %6852  ;;  %v7114_v14 = vpop.permute.xlu0 %7113  ;;  %v13918_v41 = vsel %vm827_vm2, %v6542_v57, %v6543_v4 }
 0xac7   : > { %v7246_v2 = vpop.permute.xlu1 %7245 }
 0xac8   : > { %7325 = vst.msk [vmem:[#allocation5 + $0x100] sm:$0xff] %vm15023_vm9, %v7246_v2  ;;  %vm15034_vm9 = vmmov %vm15028_vm5 }
 0xac9   : > { %7458 = vst.msk [vmem:[#allocation5 + $0x100] sm:$0xff] %vm3998_vm15, %v7379_v3 }
 0xacc   : > { %6995 = vrot.lane.b32.xlu2 %v13834_v58, %s8305_s4  ;;  %6600 = vrot.lane.b32.xlu0 %v13820_v13, %s14643_s23 }
 0xacd   : > { %6862 = vrot.lane.b32.xlu1 %v15012_v5, %s14642_s30  ;;  %v8285_v5 = vld [vmem:[#allocation4 + $0x160] sm:$0x3] }
 0xace   : > { %v7250_v17 = vpop.permute.xlu2 %7249  ;;  %v6589_v48 = vpop.permute.xlu0 %6588  ;;  %v6545_v3 = vrot.slane %v8285_v5, 2 }
 0xacf   : > { %v6851_v23 = vpop.permute.xlu1 %6850  ;;  %6666 = vst.msk [vmem:[#allocation5 + $0x120] sm:$0xff] %vm3198_vm12, %v6589_v48 }
 0xad0   : > { %6929 = vst.msk [vmem:[#allocation5 + $0x110] sm:$0xff] %vm15024_vm10, %v6851_v23  ;;  %v7490_v37 = vld [vmem:[#allocation5 + $0x100] sm:$0xff]  ;;  %vm15035_vm10 = vmmov %vm15029_vm6 }
 0xad1   : > { %7062 = vst.msk [vmem:[#allocation5 + $0x110] sm:$0xff] %vm15025_vm11, %v6984_v30  ;;  %8177 = vmatmul.msk.f32.gmra.mxu0 %vm4072_vm13, %v7490_v37  ;;  %vm15036_vm11 = vmmov %vm15027_vm0 }
 0xad2   : > { %7192 = vst.msk [vmem:[#allocation5 + $0x110] sm:$0xff] %vm3729_vm14, %v7114_v14 }
 0xad4   : > { %7392 = vrot.lane.b32.xlu2 %v13903_v55, %s14641_s1  ;;  %6997 = vrot.lane.b32.xlu0 %v13879_v40, %s8305_s4 }
 0xad5   : > { %7259 = vrot.lane.b32.xlu1 %v15026_v34, %s8306_s26 }
 0xad6   : > { %v6721_v12 = vpop.permute.xlu2 %6720  ;;  %v6986_v20 = vpop.permute.xlu0 %6985 }
 0xad7   : > { %v7248_v53 = vpop.permute.xlu1 %7247 }
 0xad8   : > { %7326 = vst.msk [vmem:[#allocation5 + $0x110] sm:$0xff] %vm15027_vm0, %v7248_v53  ;;  %vm15037_vm0 = vmmov %vm15015_vm4 }
 0xad9   : > { %7459 = vst.msk [vmem:[#allocation5 + $0x110] sm:$0xff] %vm3998_vm15, %v7381_v11 }
 0xadc   : > { %6864 = vrot.lane.b32.xlu2 %v15016_v62, %s14642_s30  ;;  %7394 = vrot.lane.b32.xlu0 %v13918_v41, %s14641_s1 }
 0xadd   : > { %6730 = vrot.lane.b32.xlu1 %v15018_v43, %s8304_s3 }
 0xade   : > { %v7118_v44 = vpop.permute.xlu2 %7117  ;;  %v7383_v38 = vpop.permute.xlu0 %7382 }
 0xadf   : > { %v6719_v63 = vpop.permute.xlu1 %6718 }
 0xae0   : > { %6796 = vst.msk [vmem:[#allocation5 + $0x120] sm:$0xff] %vm15015_vm4, %v6719_v63  ;;  %v7491_v15 = vld [vmem:[#allocation5 + $0x110] sm:$0xff]  ;;  %vm15038_vm4 = vmmov %vm15028_vm5 }
 0xae1   : > { %6930 = vst.msk [vmem:[#allocation5 + $0x120] sm:$0xff] %vm15028_vm5, %v6853_v54  ;;  %8178 = vmatmul.msk.f32.gmra.mxu0 %vm4072_vm13, %v7491_v15  ;;  %vm15039_vm5 = vmmov %vm15029_vm6  ;;  %v8286_v54 = vld [vmem:[#allocation4 + $0x178] sm:$0x3] }
 0xae2   : > { %7063 = vst.msk [vmem:[#allocation5 + $0x120] sm:$0xff] %vm15029_vm6, %v6986_v20  ;;  %v6550_v2 = vrot.slane %v8286_v54, 2  ;;  %vm15040_vm6 = vmmov %vm15031_vm7 }
 0xae4   : > { %7261 = vrot.lane.b32.xlu2 %v15030_v24, %s8306_s26  ;;  %6866 = vrot.lane.b32.xlu0 %v15026_v34, %s14642_s30  ;;  %v14009_v14 = vsel %vm827_vm2, %v6548_v7, %v6550_v2  ;;  %v14033_v34 = vld [vmem:[#allocation4 + $0x180] sm:$0xff] }
 0xae5   : > { %7127 = vrot.lane.b32.xlu1 %v13221_v61, %s14639_s29 }
 0xae6   : > { %v6593_v6 = vpop.permute.xlu2 %6592  ;;  %v6855_v52 = vpop.permute.xlu0 %6854 }
 0xae7   : > { %6668 = vst.msk [vmem:[#allocation5 + $0x140] sm:$0xff] %vm3198_vm12, %v6593_v6  ;;  %v7116_v13 = vpop.permute.xlu1 %7115 }
 0xae8   : > { %7193 = vst.msk [vmem:[#allocation5 + $0x120] sm:$0xff] %vm3729_vm14, %v7116_v13 }
 0xae9   : > { %7327 = vst.msk [vmem:[#allocation5 + $0x120] sm:$0xff] %vm15031_vm7, %v7250_v17  ;;  %vm15041_vm7 = vmmov %vm15037_vm0 }
 0xaea   : > { %7460 = vst.msk [vmem:[#allocation5 + $0x120] sm:$0xff] %vm3998_vm15, %v7383_v38 }
 0xaec   : > { %6732 = vrot.lane.b32.xlu2 %v15020_v32, %s8304_s3  ;;  %7263 = vrot.lane.b32.xlu0 %v15032_v8, %s8306_s26 }
 0xaed   : > { %6602 = vrot.lane.b32.xlu1 %v13834_v58, %s14643_s23  ;;  %v13962_v58 = vpop.f32.mrf.mxu0 }
 0xaee   : > { %v6990_v0 = vpop.permute.xlu2 %6989  ;;  %v7252_v21 = vpop.permute.xlu0 %7251 }
 0xaef   : > { %v6591_v18 = vpop.permute.xlu1 %6590 }
 0xaf0   : > { %6667 = vst.msk [vmem:[#allocation5 + $0x130] sm:$0xff] %vm3198_vm12, %v6591_v18 }
 0xaf1   : > { %6797 = vst.msk [vmem:[#allocation5 + $0x130] sm:$0xff] %vm15033_vm8, %v6721_v12  ;;  %v7492_v33 = vld [vmem:[#allocation5 + $0x120] sm:$0xff]  ;;  %vm15042_vm8 = vmmov %vm15038_vm4 }
 0xaf2   : > { %6931 = vst.msk [vmem:[#allocation5 + $0x130] sm:$0xff] %vm15034_vm9, %v6855_v52  ;;  %8179 = vmatmul.msk.f32.gmra.mxu0 %vm4072_vm13, %v7492_v33  ;;  %vm15043_vm9 = vmmov %vm15039_vm5  ;;  %v6944_v52 = vrot.slane %v14033_v34, 2  ;;  %v6180_v33 = vld [vmem:[#allocation4 + $0x190] sm:$0x3] }
 0xaf4   : > { %7129 = vrot.lane.b32.xlu2 %v13228_v36, %s14639_s29  ;;  %6734 = vrot.lane.b32.xlu0 %v13221_v61, %s8304_s3  ;;  %v13971_v61 = vsel %vm827_vm2, %v6543_v4, %v6545_v3 }
 0xaf5   : > { %6999 = vrot.lane.b32.xlu1 %v13903_v55, %s8305_s4  ;;  %v13977_v29 = vpop.f32.mrf.mxu0 }
 0xaf6   : > { %v7387_v27 = vpop.permute.xlu2 %7386  ;;  %v6723_v35 = vpop.permute.xlu0 %6722 }
 0xaf7   : > { %v6988_v26 = vpop.permute.xlu1 %6987  ;;  %6798 = vst.msk [vmem:[#allocation5 + $0x140] sm:$0xff] %vm15037_vm0, %v6723_v35 }
 0xaf8   : > { %7064 = vst.msk [vmem:[#allocation5 + $0x130] sm:$0xff] %vm15035_vm10, %v6988_v26  ;;  %vm15044_vm10 = vmmov %vm15040_vm6 }
 0xaf9   : > { %7194 = vst.msk [vmem:[#allocation5 + $0x130] sm:$0xff] %vm3729_vm14, %v7118_v44 }
 0xafa   : > { %7328 = vst.msk [vmem:[#allocation5 + $0x130] sm:$0xff] %vm15036_vm11, %v7252_v21  ;;  %vm15045_vm11 = vmmov %vm15037_vm0 }
 0xafb   : > { %vm15046_vm0 = vmmov %vm15038_vm4 }
 0xafc   : > { %6604 = vrot.lane.b32.xlu2 %v13879_v40, %s14643_s23  ;;  %7131 = vrot.lane.b32.xlu0 %v13250_v1, %s14639_s29 }
 0xafd   : > { %7396 = vrot.lane.b32.xlu1 %v13971_v61, %s14641_s1  ;;  %v13986_v30 = vpop.f32.mrf.mxu0 }
 0xafe   : > { %v6859_v22 = vpop.permute.xlu2 %6858  ;;  %v7120_v62 = vpop.permute.xlu0 %7119 }
 0xaff   : > { %v7385_v9 = vpop.permute.xlu1 %7384 }
 0xb00   : > { %7461 = vst.msk [vmem:[#allocation5 + $0x130] sm:$0xff] %vm3998_vm15, %v7385_v9  ;;  %v6947_v9 = vrot.slane %v6180_v33, 2 }
 0xb04   : > { %7001 = vrot.lane.b32.xlu2 %v13918_v41, %s8305_s4  ;;  %6606 = vrot.lane.b32.xlu0 %v13903_v55, %s14643_s23 }
 0xb05   : > { %6868 = vrot.lane.b32.xlu1 %v15030_v24, %s14642_s30  ;;  %v14004_v32 = vpop.f32.mrf.mxu0 }
 0xb06   : > { %v7256_v25 = vpop.permute.xlu2 %7255  ;;  %v6595_v43 = vpop.permute.xlu0 %6594 }
 0xb07   : > { %v6857_v50 = vpop.permute.xlu1 %6856  ;;  %v7493_v11 = vld [vmem:[#allocation5 + $0x130] sm:$0xff]  ;;  %6669 = vst.msk [vmem:[#allocation5 + $0x150] sm:$0xff] %vm3198_vm12, %v6595_v43 }
 0xb08   : > { %6932 = vst.msk [vmem:[#allocation5 + $0x140] sm:$0xff] %vm15038_vm4, %v6857_v50  ;;  %8180 = vmatmul.msk.f32.gmra.mxu0 %vm4072_vm13, %v7493_v11  ;;  %vm15047_vm4 = vmmov %vm15039_vm5  ;;  %v14096_v43 = vld [vmem:[#allocation4 + $0x1a0] sm:$0xff] }
 0xb09   : > { %7065 = vst.msk [vmem:[#allocation5 + $0x140] sm:$0xff] %vm15039_vm5, %v6990_v0  ;;  %vm15048_vm5 = vmmov %vm15040_vm6 }
 0xb0a   : > { %7195 = vst.msk [vmem:[#allocation5 + $0x140] sm:$0xff] %vm3729_vm14, %v7120_v62  ;;  %v6814_v62 = vrot.slane %v6180_v33, 1 }
 0xb0c   : > { %7398 = vrot.lane.b32.xlu2 %v13996_v10, %s14641_s1  ;;  %7003 = vrot.lane.b32.xlu0 %v13971_v61, %s8305_s4 }
 0xb0d   : > { %7265 = vrot.lane.b32.xlu1 %v13276_v28, %s8306_s26  ;;  %v14017_v17 = vpop.f32.mrf.mxu0 }
 0xb0e   : > { %v6727_v51 = vpop.permute.xlu2 %6726  ;;  %v6992_v40 = vpop.permute.xlu0 %6991 }
 0xb0f   : > { %v7254_v49 = vpop.permute.xlu1 %7253 }
 0xb10   : > { %7329 = vst.msk [vmem:[#allocation5 + $0x140] sm:$0xff] %vm15040_vm6, %v7254_v49  ;;  %vm15049_vm6 = vmmov %vm15041_vm7  ;;  %v7342_v49 = vrot.slane %v14096_v43, 2 }
 0xb11   : > { %7462 = vst.msk [vmem:[#allocation5 + $0x140] sm:$0xff] %vm3998_vm15, %v7387_v27  ;;  %v14084_v27 = vld [vmem:[%s14311_s14] ss:$0 sm:$0xff] }
 0xb14   : > { %6870 = vrot.lane.b32.xlu2 %v15032_v8, %s14642_s30  ;;  %7400 = vrot.lane.b32.xlu0 %v14009_v14, %s14641_s1 }
 0xb15   : > { %6736 = vrot.lane.b32.xlu1 %v13228_v36, %s8304_s3  ;;  %v14027_v36 = vld [vmem:[#allocation4 + $0x188] sm:$0xff]  ;;  %v14031_v37 = vpop.f32.mrf.mxu0 }
 0xb16   : > { %v7124_v23 = vpop.permute.xlu2 %7123  ;;  %v7389_v45 = vpop.permute.xlu0 %7388  ;;  %v6812_v20 = vrot.slane %v14027_v36, 1  ;;  %v6945_v13 = vrot.slane %v14027_v36, 2 }
 0xb17   : > { %v6725_v48 = vpop.permute.xlu1 %6724 }
 0xb18   : > { %6799 = vst.msk [vmem:[#allocation5 + $0x150] sm:$0xff] %vm15041_vm7, %v6725_v48  ;;  %v7494_v42 = vld [vmem:[#allocation5 + $0x140] sm:$0xff]  ;;  %vm15050_vm7 = vmmov %vm15046_vm0  ;;  %v14101_v11 = vsel %vm827_vm2, %v6945_v13, %v6947_v9  ;;  %v6815_v7 = vsel %vm769_vm3, %v6812_v20, %v6814_v62 }
 0xb19   : > { %6933 = vst.msk [vmem:[#allocation5 + $0x150] sm:$0xff] %vm15042_vm8, %v6859_v22  ;;  %8181 = vmatmul.msk.f32.gmra.mxu0 %vm4072_vm13, %v7494_v42  ;;  %vm15051_vm8 = vmmov %vm15047_vm4  ;;  %v7735_v42 = vadd.f32 %v14084_v27, %v14031_v37 }
 0xb1a   : > { %7066 = vst.msk [vmem:[#allocation5 + $0x150] sm:$0xff] %vm15043_vm9, %v6992_v40  ;;  %vm15052_vm9 = vmmov %vm15048_vm5 }
 0xb1c   : > { %7267 = vrot.lane.b32.xlu2 %v13273_v56, %s8306_s26  ;;  %6872 = vrot.lane.b32.xlu0 %v13276_v28, %s14642_s30  ;;  %v6811_v28 = vrot.slane %v14033_v34, 1 }
 0xb1d   : > { %7133 = vrot.lane.b32.xlu1 %v13261_v60, %s14639_s29  ;;  %v14052_v57 = vpop.f32.mrf.mxu0 }
 0xb1e   : > { %v6599_v55 = vpop.permute.xlu2 %6598  ;;  %v6861_v53 = vpop.permute.xlu0 %6860  ;;  %v14044_v4 = vsel %vm769_vm3, %v6811_v28, %v6812_v20 }
 0xb1f   : > { %6671 = vst.msk [vmem:[#allocation5 + $0x170] sm:$0xff] %vm3198_vm12, %v6599_v55  ;;  %v7122_v12 = vpop.permute.xlu1 %7121 }
 0xb20   : > { %7196 = vst.msk [vmem:[#allocation5 + $0x150] sm:$0xff] %vm3729_vm14, %v7122_v12 }
 0xb21   : > { %7330 = vst.msk [vmem:[#allocation5 + $0x150] sm:$0xff] %vm15044_vm10, %v7256_v25  ;;  %vm15053_vm10 = vmmov %vm15049_vm6 }
 0xb22   : > { %7463 = vst.msk [vmem:[#allocation5 + $0x150] sm:$0xff] %vm3998_vm15, %v7389_v45 }
 0xb24   : > { %6738 = vrot.lane.b32.xlu2 %v13250_v1, %s8304_s3  ;;  %7269 = vrot.lane.b32.xlu0 %v14044_v4, %s8306_s26 }
 0xb25   : > { %6608 = vrot.lane.b32.xlu1 %v13918_v41, %s14643_s23  ;;  %v7667_v1 = vpop.f32.mrf.mxu0 }
 0xb26   : > { %v6996_v44 = vpop.permute.xlu2 %6995  ;;  %v7258_v38 = vpop.permute.xlu0 %7257  ;;  %v7737_v47 = vadd.f32 %v14084_v27, %v7667_v1 }
 0xb27   : > { %v6597_v63 = vpop.permute.xlu1 %6596 }
 0xb28   : > { %6670 = vst.msk [vmem:[#allocation5 + $0x160] sm:$0xff] %vm3198_vm12, %v6597_v63  ;;  %v7769_v48 = vmax.f32 %v7737_v47, 0.0  ;;  %v7767_v63 = vmax.f32 %v7735_v42, 0.0 }
 0xb29   : > { %6800 = vst.msk [vmem:[#allocation5 + $0x160] sm:$0xff] %vm15045_vm11, %v6727_v51  ;;  %v7495_v15 = vld [vmem:[#allocation5 + $0x150] sm:$0xff]  ;;  %vm15054_vm11 = vmmov %vm15046_vm0 }
 0xb2a   : > { %6934 = vst.msk [vmem:[#allocation5 + $0x160] sm:$0xff] %vm15046_vm0, %v6861_v53  ;;  %8182 = vmatmul.msk.f32.gmra.mxu0 %vm4072_vm13, %v7495_v15  ;;  %v7209_v53 = vrot.slane %v14096_v43, 1  ;;  %vm15055_vm0 = vmmov %vm15047_vm4 }
 0xb2c   : > { %7135 = vrot.lane.b32.xlu2 %v14033_v34, %s14639_s29  ;;  %6740 = vrot.lane.b32.xlu0 %v13261_v60, %s8304_s3  ;;  %v6946_v60 = vsel %vm827_vm2, %v6944_v52, %v6945_v13  ;;  %v7731_v52 = vadd.f32 %v14084_v27, %v13977_v29  ;;  %v7729_v29 = vadd.f32 %v14084_v27, %v13950_v39 }
 0xb2d   : > { %7005 = vrot.lane.b32.xlu1 %v13996_v10, %s8305_s4 }
 0xb2e   : > { %v7393_v41 = vpop.permute.xlu2 %7392  ;;  %v6729_v6 = vpop.permute.xlu0 %6728 }
 0xb2f   : > { %v6994_v24 = vpop.permute.xlu1 %6993  ;;  %6801 = vst.msk [vmem:[#allocation5 + $0x170] sm:$0xff] %vm15049_vm6, %v6729_v6  ;;  %v7670_v8 = vpop.f32.mrf.mxu0  ;;  %v7732_v6 = vadd.f32 %v14084_v27, %v13986_v30 }
 0xb30   : > { %7067 = vst.msk [vmem:[#allocation5 + $0x160] sm:$0xff] %vm15047_vm4, %v6994_v24  ;;  %v7738_v25 = vadd.f32 %v14084_v27, %v7670_v8  ;;  %vm15056_vm4 = vmmov %vm15048_vm5 }
 0xb31   : > { %7197 = vst.msk [vmem:[#allocation5 + $0x160] sm:$0xff] %vm3729_vm14, %v7124_v23  ;;  %v7736_v23 = vadd.f32 %v14084_v27, %v14052_v57 }
 0xb32   : > { %7331 = vst.msk [vmem:[#allocation5 + $0x160] sm:$0xff] %vm15048_vm5, %v7258_v38  ;;  %v7733_v38 = vadd.f32 %v14084_v27, %v14004_v32  ;;  %vm15058_vm5 = vmmov %vm15050_vm7 }
 0xb33   : > { %v7768_v55 = vmax.f32 %v7736_v23, 0.0 }
 0xb34   : > { %6610 = vrot.lane.b32.xlu2 %v13971_v61, %s14643_s23  ;;  %7137 = vrot.lane.b32.xlu0 %v14027_v36, %s14639_s29  ;;  %v7765_v13 = vmax.f32 %v7733_v38, 0.0 }
 0xb35   : > { %7402 = vrot.lane.b32.xlu1 %v6946_v60, %s14641_s1 }
 0xb36   : > { %v6865_v0 = vpop.permute.xlu2 %6864  ;;  %v7126_v21 = vpop.permute.xlu0 %7125 }
 0xb37   : > { %v7391_v18 = vpop.permute.xlu1 %7390 }
 0xb38   : > { %7464 = vst.msk [vmem:[#allocation5 + $0x160] sm:$0xff] %vm3998_vm15, %v7391_v18  ;;  %v7730_v18 = vadd.f32 %v14084_v27, %v13962_v58 }
 0xb3c   : > { %7007 = vrot.lane.b32.xlu2 %v14009_v14, %s8305_s4  ;;  %6612 = vrot.lane.b32.xlu0 %v13996_v10, %s14643_s23  ;;  %v7770_v10 = vmax.f32 %v7738_v25, 0.0  ;;  %v7726_v25 = vadd.f32 %v14084_v27, %v13911_v46  ;;  %v7724_v46 = vadd.f32 %v14084_v27, %v13885_v31 }
 0xb3d   : > { %6874 = vrot.lane.b32.xlu1 %v13273_v56, %s14642_s30  ;;  %v6181_v56 = vld [vmem:[#allocation4 + $0x198] sm:$0xff] }
 0xb3e   : > { %v7673_v26 = vpop.f32.mrf.mxu0  ;;  %v14088_v35 = vpop.permute.xlu2 %7261  ;;  %v7341_v51 = vrot.slane %v6181_v56, 2  ;;  %v7208_v12 = vrot.slane %v6181_v56, 1 }
 0xb3f   : > { %v7739_v5 = vadd.f32 %v14084_v27, %v7673_v26  ;;  %v6863_v3 = vpop.permute.xlu1 %6862  ;;  %v6601_v61 = vpop.permute.xlu0 %6600  ;;  %v7496_v22 = vld [vmem:[#allocation5 + $0x160] sm:$0xff] }
 0xb40   : > { %6935 = vst.msk [vmem:[#allocation5 + $0x170] sm:$0xff] %vm15050_vm7, %v6863_v3  ;;  %8183 = vmatmul.msk.f32.gmra.mxu0 %vm4072_vm13, %v7496_v22  ;;  %v7343_v45 = vsel %vm827_vm2, %v7341_v51, %v7342_v49  ;;  %v7210_v37 = vsel %vm769_vm3, %v7208_v12, %v7209_v53  ;;  %v7761_v3 = vmax.f32 %v7729_v29, 0.0  ;;  %vm15060_vm7 = vmmov %vm15056_vm4 }
 0xb41   : > { %v7771_v50 = vmax.f32 %v7739_v5, 0.0  ;;  %7068 = vst.msk [vmem:[#allocation5 + $0x170] sm:$0xff] %vm15051_vm8, %v6996_v44  ;;  %v7734_v44 = vadd.f32 %v14084_v27, %v14017_v17  ;;  %v7728_v5 = vadd.f32 %v14084_v27, %v13938_v19 }
 0xb42   : > { %7198 = vst.msk [vmem:[#allocation5 + $0x170] sm:$0xff] %vm3729_vm14, %v7126_v21 }
 0xb43   : > { %6672 = vst.msk [vmem:[#allocation5 + $0x180] sm:$0xff] %vm3198_vm12, %v6601_v61  ;;  %8193 = vmatpush.xpose.msk.msrb.mxu2 %vm2646_vm1, %v7771_v50  ;;  %v7766_v17 = vmax.f32 %v7734_v44, 0.0  ;;  %v7727_v61 = vadd.f32 %v14084_v27, %v13926_v59  ;;  %v7760_v22 = vmax.f32 %v7728_v5, 0.0  ;;  %v7758_v59 = vmax.f32 %v7726_v25, 0.0 }
 0xb44   : > { %7404 = vrot.lane.b32.xlu2 %v14101_v11, %s14641_s1  ;;  %7009 = vrot.lane.b32.xlu0 %v6946_v60, %s8305_s4  ;;  %v7764_v60 = vmax.f32 %v7732_v6, 0.0 }
 0xb45   : > { %7271 = vrot.lane.b32.xlu1 %v6815_v7, %s8306_s26  ;;  %v7759_v50 = vmax.f32 %v7727_v61, 0.0 }
 0xb46   : > { %v6733_v40 = vpop.permute.xlu2 %6732 }
 0xb47   : > { %v7260_v54 = vpop.permute.xlu1 %7259  ;;  %8194 = vmatpush.xpose.msk.msrb.mxu2 %vm2646_vm1, %v7770_v10  ;;  %v6998_v2 = vpop.permute.xlu0 %6997 }
 0xb48   : > { %7332 = vst.msk [vmem:[#allocation5 + $0x170] sm:$0xff] %vm15052_vm9, %v7260_v54  ;;  %vm15063_vm9 = vmmov %vm15055_vm0 }
 0xb49   : > { %7465 = vst.msk [vmem:[#allocation5 + $0x170] sm:$0xff] %vm3998_vm15, %v7393_v41 }
 0xb4b   : > { %8195 = vmatpush.xpose.msk.msrb.mxu2 %vm2646_vm1, %v7769_v48 }
 0xb4c   : > { %6876 = vrot.lane.b32.xlu2 %v14044_v4, %s14642_s30  ;;  %7406 = vrot.lane.b32.xlu0 %v7343_v45, %s14641_s1 }
 0xb4d   : > { %6742 = vrot.lane.b32.xlu1 %v14033_v34, %s8304_s3  ;;  %v6183_v34 = vld [vmem:[#allocation4 + $0x1a8] sm:$0x3] }
 0xb4e   : > { %v7130_v20 = vpop.permute.xlu2 %7129  ;;  %v7211_v15 = vrot.slane %v6183_v34, 1  ;;  %v7344_v33 = vrot.slane %v6183_v34, 2 }
 0xb4f   : > { %v6731_v28 = vpop.permute.xlu1 %6730  ;;  %8196 = vmatpush.xpose.msk.msrb.mxu2 %vm2646_vm1, %v7768_v55  ;;  %v7395_v57 = vpop.permute.xlu0 %7394 }
 0xb50   : > { %6802 = vst.msk [vmem:[#allocation5 + $0x180] sm:$0xff] %vm15053_vm10, %v6731_v28  ;;  %v7497_v4 = vld [vmem:[#allocation5 + $0x170] sm:$0xff]  ;;  %v7212_v32 = vsel %vm769_vm3, %v7209_v53, %v7211_v15  ;;  %vm15057_vm3 = vmmov %vm15049_vm6  ;;  %v7345_v39 = vsel %vm827_vm2, %v7342_v49, %v7344_v33 }
 0xb51   : > { %6936 = vst.msk [vmem:[#allocation5 + $0x180] sm:$0xff] %vm15054_vm11, %v6865_v0  ;;  %8184 = vmatmul.msk.f32.gmra.mxu0 %vm4072_vm13, %v7497_v4  ;;  %vm15059_vm6 = vmmov %vm15055_vm0 }
 0xb52   : > { %7069 = vst.msk [vmem:[#allocation5 + $0x180] sm:$0xff] %vm15055_vm0, %v6998_v2  ;;  %vm15061_vm8 = vmmov %vm15057_vm3 }
 0xb53   : > { %8197 = vmatpush.xpose.msk.msrb.mxu2 %vm2646_vm1, %v7767_v63  ;;  %vm15062_vm2 = vmmov %vm15058_vm5 }
 0xb54   : > { %7273 = vrot.lane.b32.xlu2 %v7210_v37, %s8306_s26  ;;  %6878 = vrot.lane.b32.xlu0 %v6815_v7, %s14642_s30  ;;  %vm15064_vm10 = vmmov %vm15056_vm4 }
 0xb55   : > { %7139 = vrot.lane.b32.xlu1 %v6181_v56, %s14639_s29  ;;  %v7725_v56 = vadd.f32 %v14084_v27, %v13895_v16  ;;  %v7756_v16 = vmax.f32 %v7724_v46, 0.0  ;;  %vm15065_vm11 = vmmov %vm15057_vm3 }
 0xb56   : > { %v6605_v1 = vpop.permute.xlu2 %6604  ;;  %vm15066_vm0 = vmmov %vm15062_vm2 }
 0xb57   : > { %6674 = vst.msk [vmem:[#allocation5 + $0x1a0] sm:$0xff] %vm3198_vm12, %v6605_v1  ;;  %v7128_v41 = vpop.permute.xlu1 %7127  ;;  %8198 = vmatpush.xpose.msk.msrb.mxu2 %vm2646_vm1, %v7766_v17  ;;  %v6867_v24 = vpop.permute.xlu0 %6866  ;;  %v7757_v10 = vmax.f32 %v7725_v56, 0.0 }
 0xb58   : > { %7199 = vst.msk [vmem:[#allocation5 + $0x180] sm:$0xff] %vm3729_vm14, %v7128_v41 }
 0xb59   : > { %7333 = vst.msk [vmem:[#allocation5 + $0x180] sm:$0xff] %vm15056_vm4, %v14088_v35  ;;  %vm15067_vm4 = vmmov %vm15059_vm6 }
 0xb5a   : > { %7466 = vst.msk [vmem:[#allocation5 + $0x180] sm:$0xff] %vm3998_vm15, %v7395_v57 }
 0xb5b   : > { %8199 = vmatpush.xpose.msk.msrb.mxu2 %vm2646_vm1, %v7765_v13 }
 0xb5c   : > { %6744 = vrot.lane.b32.xlu2 %v14027_v36, %s8304_s3  ;;  %7275 = vrot.lane.b32.xlu0 %v7212_v32, %s8306_s26  ;;  %v7763_v36 = vmax.f32 %v7731_v52, 0.0  ;;  %s8232_s3 = sshll.u32 %s15086_s25, 3 }
 0xb5d   : > { %6614 = vrot.lane.b32.xlu1 %v14009_v14, %s14643_s23  ;;  %v7762_v14 = vmax.f32 %v7730_v18, 0.0  ;;  %s588_s27 = scalar_lea.vmem %s14314_s17, %s8232_s3 }
 0xb5e   : > { %v7002_v30 = vpop.permute.xlu2 %7001 }
 0xb5f   : > { %v6603_v8 = vpop.permute.xlu1 %6602  ;;  %8200 = vmatpush.xpose.msk.msrb.mxu2 %vm2646_vm1, %v7764_v60  ;;  %v7264_v0 = vpop.permute.xlu0 %7263 }
 0xb60   : > { %6673 = vst.msk [vmem:[#allocation5 + $0x190] sm:$0xff] %vm3198_vm12, %v6603_v8 }
 0xb61   : > { %6803 = vst.msk [vmem:[#allocation5 + $0x190] sm:$0xff] %vm15057_vm3, %v6733_v40  ;;  %v7498_v21 = vld [vmem:[#allocation5 + $0x180] sm:$0xff]  ;;  %vm15068_vm3 = vmmov %vm15060_vm7 }
 0xb62   : > { %6937 = vst.msk [vmem:[#allocation5 + $0x190] sm:$0xff] %vm15058_vm5, %v6867_v24  ;;  %8185 = vmatmul.msk.f32.gmra.mxu0 %vm4072_vm13, %v7498_v21  ;;  %vm15069_vm5 = vmmov %vm15061_vm8 }
 0xb63   : > { %8201 = vmatpush.xpose.msk.msrb.mxu2 %vm2646_vm1, %v7763_v36 }
 0xb64   : > { %7141 = vrot.lane.b32.xlu2 %v14096_v43, %s14639_s29 }
 0xb65   : > { %7011 = vrot.lane.b32.xlu1 %v14101_v11, %s8305_s4 }
 0xb66   : > { %v7399_v58 = vpop.permute.xlu2 %7398 }
 0xb67   : > { %v7000_v26 = vpop.permute.xlu1 %6999  ;;  %8202 = vmatpush.xpose.msk.msrb.mxu2 %vm2646_vm1, %v7762_v14  ;;  %v6735_v35 = vpop.permute.xlu0 %6734 }
 0xb68   : > { %7070 = vst.msk [vmem:[#allocation5 + $0x190] sm:$0xff] %vm15059_vm6, %v7000_v26  ;;  %vm15070_vm6 = vmmov %vm15066_vm0  ;;  %v14247_v14 = vpop.f32.mrf.mxu0 }
 0xb69   : > { %7200 = vst.msk [vmem:[#allocation5 + $0x190] sm:$0xff] %vm3729_vm14, %v7130_v20 }
 0xb6a   : > { %7334 = vst.msk [vmem:[#allocation5 + $0x190] sm:$0xff] %vm15060_vm7, %v7264_v0  ;;  %vm15071_vm7 = vmmov %vm15067_vm4 }
 0xb6b   : > { %6804 = vst.msk [vmem:[#allocation5 + $0x1a0] sm:$0xff] %vm15061_vm8, %v6735_v35  ;;  %8203 = vmatpush.xpose.msk.msrb.mxu2 %vm2646_vm1, %v7761_v3  ;;  %vm15072_vm8 = vmmov %vm15068_vm3 }
 0xb6d   : > { %7408 = vrot.lane.b32.xlu1 %v7345_v39, %s14641_s1 }
 0xb6e   : > { %v6871_v19 = vpop.permute.xlu2 %6870 }
 0xb6f   : > { %v7397_v9 = vpop.permute.xlu1 %7396  ;;  %8204 = vmatpush.xpose.msk.msrb.mxu2 %vm2646_vm1, %v7760_v22  ;;  %v7132_v62 = vpop.permute.xlu0 %7131 }
 0xb70   : > { %7467 = vst.msk [vmem:[#allocation5 + $0x190] sm:$0xff] %vm3998_vm15, %v7397_v9 }
 0xb73   : > { %8205 = vmatpush.xpose.msk.msrb.mxu2 %vm2646_vm1, %v7759_v50 }
 0xb76   : > { %v7268_v43 = vpop.permute.xlu2 %7267 }
 0xb77   : > { %v6869_v11 = vpop.permute.xlu1 %6868  ;;  %8206 = vmatpush.xpose.msk.msrb.mxu2 %vm2646_vm1, %v7758_v59  ;;  %v7499_v7 = vld [vmem:[#allocation5 + $0x190] sm:$0xff]  ;;  %v6607_v47 = vpop.permute.xlu0 %6606 }
 0xb78   : > { %6938 = vst.msk [vmem:[#allocation5 + $0x1a0] sm:$0xff] %vm15062_vm2, %v6869_v11  ;;  %8186 = vmatmul.msk.f32.gmra.mxu0 %vm4072_vm13, %v7499_v7  ;;  %vm15073_vm2 = vmmov %vm15069_vm5 }
 0xb79   : > { %7071 = vst.msk [vmem:[#allocation5 + $0x1a0] sm:$0xff] %vm15063_vm9, %v7002_v30  ;;  %vm15074_vm9 = vmmov %vm15066_vm0 }
 0xb7a   : > { %7201 = vst.msk [vmem:[#allocation5 + $0x1a0] sm:$0xff] %vm3729_vm14, %v7132_v62 }
 0xb7b   : > { %6675 = vst.msk [vmem:[#allocation5 + $0x1b0] sm:$0xff] %vm3198_vm12, %v6607_v47  ;;  %8207 = vmatpush.xpose.msk.msrb.mxu2 %vm2646_vm1, %v7757_v10 }
 0xb7e   : > { %v6739_v51 = vpop.permute.xlu2 %6738 }
 0xb7f   : > { %v7266_v49 = vpop.permute.xlu1 %7265  ;;  %8208 = vmatpush.xpose.msk.msrb.mxu2 %vm2646_vm1, %v7756_v16  ;;  %v7004_v40 = vpop.permute.xlu0 %7003 }
 0xb80   : > { %7335 = vst.msk [vmem:[#allocation5 + $0x1a0] sm:$0xff] %vm15064_vm10, %v7266_v49  ;;  %vm15075_vm10 = vmmov %vm15067_vm4 }
 0xb81   : > { %7468 = vst.msk [vmem:[#allocation5 + $0x1a0] sm:$0xff] %vm3998_vm15, %v7399_v58  ;;  %v7679_v58 = vpop.f32.mrf.mxu0 }
 0xb86   : > { %v7136_v31 = vpop.permute.xlu2 %7135 }
 0xb87   : > { %v6737_v54 = vpop.permute.xlu1 %6736  ;;  %v7401_v2 = vpop.permute.xlu0 %7400 }
 0xb88   : > { %6805 = vst.msk [vmem:[#allocation5 + $0x1b0] sm:$0xff] %vm15065_vm11, %v6737_v54  ;;  %v7500_v23 = vld [vmem:[#allocation5 + $0x1a0] sm:$0xff]  ;;  %vm15076_vm11 = vmmov %vm15068_vm3 }
 0xb89   : > { %6939 = vst.msk [vmem:[#allocation5 + $0x1b0] sm:$0xff] %vm15066_vm0, %v6871_v19  ;;  %8187 = vmatmul.msk.f32.gmra.mxu0 %vm4072_vm13, %v7500_v23  ;;  %vm15077_vm0 = vmmov %vm15073_vm2  ;;  %v7682_v33 = vpop.f32.mrf.mxu0 }
 0xb8a   : > { %7072 = vst.msk [vmem:[#allocation5 + $0x1b0] sm:$0xff] %vm15067_vm4, %v7004_v40  ;;  %vm15078_vm4 = vmmov %vm15070_vm6 }
 0xb8e   : > { %v6611_v48 = vpop.permute.xlu2 %6610 }
 0xb8f   : > { %v7134_v45 = vpop.permute.xlu1 %7133  ;;  %6677 = vst.msk [vmem:[#allocation5 + $0x1d0] sm:$0xff] %vm3198_vm12, %v6611_v48  ;;  %v6873_v42 = vpop.permute.xlu0 %6872 }
 0xb90   : > { %7202 = vst.msk [vmem:[#allocation5 + $0x1b0] sm:$0xff] %vm3729_vm14, %v7134_v45 }
 0xb91   : > { %7336 = vst.msk [vmem:[#allocation5 + $0x1b0] sm:$0xff] %vm15068_vm3, %v7268_v43  ;;  %vm15079_vm3 = vmmov %vm15071_vm7  ;;  %v7685_v26 = vpop.f32.mrf.mxu0 }
 0xb92   : > { %7469 = vst.msk [vmem:[#allocation5 + $0x1b0] sm:$0xff] %vm3998_vm15, %v7401_v2 }
 0xb96   : > { %v7008_v57 = vpop.permute.xlu2 %7007 }
 0xb97   : > { %v6609_v55 = vpop.permute.xlu1 %6608  ;;  %v7270_v12 = vpop.permute.xlu0 %7269 }
 0xb98   : > { %6676 = vst.msk [vmem:[#allocation5 + $0x1c0] sm:$0xff] %vm3198_vm12, %v6609_v55 }
 0xb99   : > { %6806 = vst.msk [vmem:[#allocation5 + $0x1c0] sm:$0xff] %vm15069_vm5, %v6739_v51  ;;  %v7501_v53 = vld [vmem:[#allocation5 + $0x1b0] sm:$0xff]  ;;  %vm15080_vm5 = vmmov %vm15072_vm8  ;;  %v7688_v35 = vpop.f32.mrf.mxu0 }
 0xb9a   : > { %6940 = vst.msk [vmem:[#allocation5 + $0x1c0] sm:$0xff] %vm15070_vm6, %v6873_v42  ;;  %8188 = vmatmul.msk.f32.gmra.mxu0 %vm4072_vm13, %v7501_v53  ;;  %vm15081_vm6 = vmmov %vm15077_vm0  ;;  %v7788_v42 = vld [vmem:[%s14312_s15] sm:$0x7] }
 0xb9b   : > { %8209 = vmatmul.msk.f32.vlgmr.msrb.gmra.mxu2 %vm2646_vm1, %v7788_v42  ;;  %v7789_v53 = vld [vmem:[%s14313_s16] sm:$0x7] }
 0xb9e   : > { %v7405_v34 = vpop.permute.xlu2 %7404 }
 0xb9f   : > { %v7006_v20 = vpop.permute.xlu1 %7005  ;;  %v6741_v28 = vpop.permute.xlu0 %6740 }
 0xba0   : > { %7073 = vst.msk [vmem:[#allocation5 + $0x1c0] sm:$0xff] %vm15071_vm7, %v7006_v20  ;;  %vm15082_vm7 = vmmov %vm15078_vm4  ;;  %v8307_v20 = vmov 0  }
 0xba1   : > { %7203 = vst.msk [vmem:[#allocation5 + $0x1c0] sm:$0xff] %vm3729_vm14, %v7136_v31  ;;  %8264 = vset.pattern.permute.xlu2 %v8307_v20  ;;  %8265 = vset.pattern.permute.xlu0 %v8307_v20 }
 0xba2   : > { %7337 = vst.msk [vmem:[#allocation5 + $0x1c0] sm:$0xff] %vm15072_vm8, %v7270_v12  ;;  %vm15083_vm8 = vmmov %vm15079_vm3  ;;  %7792 = vperm.xlu2 %8264, %v7789_v53  }
 0xba3   : > { %6807 = vst.msk [vmem:[#allocation5 + $0x1d0] sm:$0xff] %vm15073_vm2, %v6741_v28  ;;  %vm15084_vm2 = vmmov %vm15080_vm5 }
 0xba6   : > { %v6877_v15 = vpop.permute.xlu2 %6876 }
 0xba7   : > { %v7403_v4 = vpop.permute.xlu1 %7402  ;;  %v7138_v44 = vpop.permute.xlu0 %7137 }
 0xba8   : > { %7470 = vst.msk [vmem:[#allocation5 + $0x1c0] sm:$0xff] %vm3998_vm15, %v7403_v4  ;;  %v7691_v5 = vpop.f32.mrf.mxu0  ;;  %v7744_v4 = vadd.f32 %v14084_v27, %v7688_v35 }
 0xba9   : > { %v7745_v28 = vadd.f32 %v14084_v27, %v7691_v5 }
 0xbae   : > { %v7274_v6 = vpop.permute.xlu2 %7273 }
 0xbaf   : > { %v6875_v63 = vpop.permute.xlu1 %6874  ;;  %v7502_v37 = vld [vmem:[#allocation5 + $0x1c0] sm:$0xff]  ;;  %v6613_v38 = vpop.permute.xlu0 %6612 }
 0xbb0   : > { %6941 = vst.msk [vmem:[#allocation5 + $0x1d0] sm:$0xff] %vm15074_vm9, %v6875_v63  ;;  %8189 = vmatmul.msk.f32.gmra.mxu0 %vm4072_vm13, %v7502_v37  ;;  %v7743_v63 = vadd.f32 %v14084_v27, %v7685_v26  ;;  %v7776_v37 = vmax.f32 %v7744_v4, 0.0 }
 0xbb1   : > { %7074 = vst.msk [vmem:[#allocation5 + $0x1d0] sm:$0xff] %vm15075_vm10, %v7008_v57 }
 0xbb2   : > { %7204 = vst.msk [vmem:[#allocation5 + $0x1d0] sm:$0xff] %vm3729_vm14, %v7138_v44  ;;  %v7777_v44 = vmax.f32 %v7745_v28, 0.0 }
 0xbb3   : > { %6678 = vst.msk [vmem:[#allocation5 + $0x1e0] sm:$0xff] %vm3198_vm12, %v6613_v38  ;;  %v7775_v38 = vmax.f32 %v7743_v63, 0.0 }
 0xbb6   : > { %v6745_v52 = vpop.permute.xlu2 %6744 }
 0xbb7   : > { %v7272_v17 = vpop.permute.xlu1 %7271  ;;  %v7010_v1 = vpop.permute.xlu0 %7009 }
 0xbb8   : > { %7338 = vst.msk [vmem:[#allocation5 + $0x1d0] sm:$0xff] %vm15076_vm11, %v7272_v17  ;;  %v7741_v17 = vadd.f32 %v14084_v27, %v7679_v58 }
 0xbb9   : > { %7471 = vst.msk [vmem:[#allocation5 + $0x1d0] sm:$0xff] %vm3998_vm15, %v7405_v34  ;;  %v7742_v34 = vadd.f32 %v14084_v27, %v7682_v33 }
 0xbbd   : > { %v7694_v3 = vpop.f32.mrf.mxu0 }
 0xbbe   : > { %v7142_v0 = vpop.permute.xlu2 %7141  ;;  %v7746_v55 = vadd.f32 %v14084_v27, %v7694_v3 }
 0xbbf   : > { %v6743_v41 = vpop.permute.xlu1 %6742  ;;  %v7407_v13 = vpop.permute.xlu0 %7406 }
 0xbc0   : > { %6808 = vst.msk [vmem:[#allocation5 + $0x1e0] sm:$0xff] %vm15077_vm0, %v6743_v41  ;;  %v7503_v24 = vld [vmem:[#allocation5 + $0x1d0] sm:$0xff]  ;;  %v7778_v57 = vmax.f32 %v7746_v55, 0.0  ;;  %v7773_v41 = vmax.f32 %v7741_v17, 0.0 }
 0xbc1   : > { %6942 = vst.msk [vmem:[#allocation5 + $0x1e0] sm:$0xff] %vm15078_vm4, %v6877_v15  ;;  %8190 = vmatmul.msk.f32.gmra.mxu0 %vm4072_vm13, %v7503_v24  ;;  %v7774_v15 = vmax.f32 %v7742_v34, 0.0 }
 0xbc2   : > { %7075 = vst.msk [vmem:[#allocation5 + $0x1e0] sm:$0xff] %vm15079_vm3, %v7010_v1  ;;  %v7740_v1 = vadd.f32 %v14084_v27, %v14247_v14 }
 0xbc4   : > { %v7772_v24 = vmax.f32 %v7740_v1, 0.0 }
 0xbc7   : > { %v7140_v32 = vpop.permute.xlu1 %7139  ;;  %v6879_v60 = vpop.permute.xlu0 %6878 }
 0xbc8   : > { %7205 = vst.msk [vmem:[#allocation5 + $0x1e0] sm:$0xff] %vm3729_vm14, %v7140_v32 }
 0xbc9   : > { %7339 = vst.msk [vmem:[#allocation5 + $0x1e0] sm:$0xff] %vm15080_vm5, %v7274_v6 }
 0xbca   : > { %7472 = vst.msk [vmem:[#allocation5 + $0x1e0] sm:$0xff] %vm3998_vm15, %v7407_v13 }
 0xbce   : > { %v7697_v39 = vpop.f32.mrf.mxu0 }
 0xbcf   : > { %v6615_v30 = vpop.permute.xlu1 %6614  ;;  %v7276_v36 = vpop.permute.xlu0 %7275  ;;  %v7747_v48 = vadd.f32 %v14084_v27, %v7697_v39 }
 0xbd0   : > { %6679 = vst.msk [vmem:[#allocation5 + $0x1f0] sm:$0xff] %vm3198_vm12, %v6615_v30  ;;  %vm7937_vm12 = vcmask 1043456  }
 0xbd1   : > { %6809 = vst.msk [vmem:[#allocation5 + $0x1f0] sm:$0xff] %vm15081_vm6, %v6745_v52  ;;  %v7504_v8 = vld [vmem:[#allocation5 + $0x1e0] sm:$0xff]  ;;  %v7779_v12 = vmax.f32 %v7747_v48, 0.0 }
 0xbd2   : > { %6943 = vst.msk [vmem:[#allocation5 + $0x1f0] sm:$0xff] %vm15082_vm7, %v6879_v60  ;;  %8191 = vmatmul.msk.f32.gmra.mxu0 %vm4072_vm13, %v7504_v8 }
 0xbd7   : > { %v7012_v18 = vpop.permute.xlu1 %7011 }
 0xbd8   : > { %7076 = vst.msk [vmem:[#allocation5 + $0x1f0] sm:$0xff] %vm15083_vm8, %v7012_v18 }
 0xbd9   : > { %7206 = vst.msk [vmem:[#allocation5 + $0x1f0] sm:$0xff] %vm3729_vm14, %v7142_v0 }
 0xbda   : > { %7340 = vst.msk [vmem:[#allocation5 + $0x1f0] sm:$0xff] %vm15084_vm2, %v7276_v36 }
 0xbdf   : > { %v7409_v21 = vpop.permute.xlu1 %7408  ;;  %v7700_v61 = vpop.f32.mrf.mxu0 }
 0xbe0   : > { %7473 = vst.msk [vmem:[#allocation5 + $0x1f0] sm:$0xff] %vm3998_vm15, %v7409_v21  ;;  %v7748_v2 = vadd.f32 %v14084_v27, %v7700_v61 }
 0xbe2   : > { %v7780_v45 = vmax.f32 %v7748_v2, 0.0 }
 0xbe7   : > { %v7505_v29 = vld [vmem:[#allocation5 + $0x1f0] sm:$0xff] }
 0xbe8   : > { %8192 = vmatmul.msk.f32.gmra.mxu0 %vm4072_vm13, %v7505_v29 }
 0xbf5   : > { %v7703_v22 = vpop.f32.mrf.mxu0 }
 0xbf6   : > { %v7749_v31 = vadd.f32 %v14084_v27, %v7703_v22 }
 0xbf8   : > { %v7781_v23 = vmax.f32 %v7749_v31, 0.0 }
 0xbfc   : > { %v7793_v6 = vpop.permute.xlu2 %7792 }
 0xc06   : > { %v7706_v19 = vpop.f32.mrf.mxu0 }
 0xc07   : > { %v7750_v49 = vadd.f32 %v14084_v27, %v7706_v19 }
 0xc09   : > { %v7782_v54 = vmax.f32 %v7750_v49, 0.0 }
 0xc17   : > { %v7709_v9 = vpop.f32.mrf.mxu0 }
 0xc18   : > { %v7751_v16 = vadd.f32 %v14084_v27, %v7709_v9 }
 0xc1a   : > { %v7783_v40 = vmax.f32 %v7751_v16, 0.0 }
 0xc1e   : > { %v7911_v32 = vpop.f32.mrf.mxu2 }
 0xc2d   : > { %v7712_v62 = vpop.f32.mrf.mxu0 }
 0xc2e   : > { %v7752_v46 = vadd.f32 %v14084_v27, %v7712_v62 }
 0xc30   : > { %v7784_v51 = vmax.f32 %v7752_v46, 0.0 }
 0xc3e   : > { %v7715_v25 = vpop.f32.mrf.mxu0 }
 0xc3f   : > { %v7753_v7 = vadd.f32 %v14084_v27, %v7715_v25 }
 0xc41   : > { %v7785_v10 = vmax.f32 %v7753_v7, 0.0 }
 0xc4f   : > { %v7718_v50 = vpop.f32.mrf.mxu0 }
 0xc50   : > { %v7754_v43 = vadd.f32 %v14084_v27, %v7718_v50 }
 0xc52   : > { %v7786_v47 = vmax.f32 %v7754_v43, 0.0 }
 0xc65   : > { %v7721_v56 = vpop.f32.mrf.mxu0 }
 0xc66   : > { %v7755_v59 = vadd.f32 %v14084_v27, %v7721_v56  ;;  %v7912_v27 = vadd.f32 %v7911_v32, %v7793_v6 }
 0xc68   : > { %v7787_v11 = vmax.f32 %v7755_v59, 0.0 }
 0xc6a   : > { %8210 = vmatpush.xpose.msk.msra.mxu1 %vm2646_vm1, %v7787_v11 }
 0xc6e   : > { %8211 = vmatpush.xpose.msk.msra.mxu1 %vm2646_vm1, %v7786_v47 }
 0xc72   : > { %8212 = vmatpush.xpose.msk.msra.mxu1 %vm2646_vm1, %v7785_v10 }
 0xc76   : > { %8213 = vmatpush.xpose.msk.msra.mxu1 %vm2646_vm1, %v7784_v51 }
 0xc7a   : > { %8214 = vmatpush.xpose.msk.msra.mxu1 %vm2646_vm1, %v7783_v40 }
 0xc7e   : > { %8215 = vmatpush.xpose.msk.msra.mxu1 %vm2646_vm1, %v7782_v54 }
 0xc82   : > { %8216 = vmatpush.xpose.msk.msra.mxu1 %vm2646_vm1, %v7781_v23 }
 0xc86   : > { %8217 = vmatpush.xpose.msk.msra.mxu1 %vm2646_vm1, %v7780_v45 }
 0xc8a   : > { %8218 = vmatpush.xpose.msk.msra.mxu1 %vm2646_vm1, %v7779_v12 }
 0xc8e   : > { %8219 = vmatpush.xpose.msk.msra.mxu1 %vm2646_vm1, %v7778_v57 }
 0xc92   : > { %8220 = vmatpush.xpose.msk.msra.mxu1 %vm2646_vm1, %v7777_v44 }
 0xc96   : > { %8221 = vmatpush.xpose.msk.msra.mxu1 %vm2646_vm1, %v7776_v37 }
 0xc9a   : > { %8222 = vmatpush.xpose.msk.msra.mxu1 %vm2646_vm1, %v7775_v38 }
 0xc9e   : > { %8223 = vmatpush.xpose.msk.msra.mxu1 %vm2646_vm1, %v7774_v15 }
 0xca2   : > { %8224 = vmatpush.xpose.msk.msra.mxu1 %vm2646_vm1, %v7773_v41 }
 0xca6   : > { %8225 = vmatpush.xpose.msk.msra.mxu1 %vm2646_vm1, %v7772_v24 }
 0xca9   : > { %8226 = vmatmul.msk.f32.vlgmr.msra.gmra.mxu1 %vm2646_vm1, %v7788_v42 }
 0xd26   : > { %v7931_v13 = vpop.f32.mrf.mxu1 }
 0xd27   : > { %v7932_v52 = vadd.f32 %v7931_v13, %v7793_v6 }
 0xd29   : > { %v7936_v60 = vrot.slane %v7932_v52, 4 }
 0xd2b   : > { %v7938_v30 = vsel %vm7937_vm12, %v7912_v27, %v7936_v60 }
 0xd2c   : > { %7940 = vst [vmem:[%s588_s27] sm:$0x77] %v7938_v30 }
 0xd2d PF: > { %s27_s24 = sadd.s32 1, %s8293_s24  }
 0xd2e   : > { %p24_p4 = scmp.ge.s32.totalorder %s27_s24, 4  }
 0xd30   :  { %26 = sbr.rel (!%p24_p4) target bundleno = 6 (0x6), region = 129 }

</bundles_post_ra>
